<compile_context>
chip_gen: v5e
topology: v5e:2x2
jax: 0.10.0
libtpu: 0.0.40
codegen_flags: <defaults>
</compile_context>

<pallas_src>
import functools

import jax
import jax.numpy as jnp
from jax import lax
from jax.experimental import pallas as pl
from jax.experimental.pallas import tpu as pltpu

TOPIC_NUM = 10  # stand-in for params.topic_num (Parameters() is not defined in the source)

VGG16_CFG = (64, 64, "M", 128, 128, "M", 256, 256, 256, "M",
             512, 512, 512, "M", 512, 512, 512, "M")


# --------------------------- "ext" (flattened, padded) layout ---------------------------
# An activation (N, H, W, C) is stored as a 2-D array (M_ext, C):
#   ext[PAD + n*B + r*(W+2) + c, :] = zero-padded pixel (r, c) of image n,
# with B = (H+2)*(W+2), and PAD = round_up(W+3, 8) zero rows at both ends so all 9 shifted
# conv reads stay in-bounds and the output store is sublane-aligned.  In this layout a 3x3
# conv is 9 row-shifted (M, Cin) x (Cin, Cout) matmuls with the batch folded into M.

def _ext_pad(W):
    return ((W + 3) + 7) // 8 * 8


def _ext_geometry(N, H, W):
    B = (H + 2) * (W + 2)
    M_in = N * B
    PAD = _ext_pad(W)
    return B, M_in, PAD, M_in + 2 * PAD


def _to_ext(x):
    """(N, H, W, C) dense -> (M_ext, C) ext layout."""
    N, H, W, C = x.shape
    _, M_in, PAD, _ = _ext_geometry(N, H, W)
    xp = jnp.pad(x, ((0, 0), (1, 1), (1, 1), (0, 0)))
    return jnp.pad(xp.reshape(M_in, C), ((PAD, PAD), (0, 0)))


def _from_ext(y, N, H, W):
    """(M_ext, C) ext layout -> (N, H, W, C) dense."""
    C = y.shape[-1]
    _, M_in, PAD, _ = _ext_geometry(N, H, W)
    core = y[PAD:PAD + M_in].reshape(N, H + 2, W + 2, C)
    return core[:, 1:H + 1, 1:W + 1, :]


def _border_mask(N, H, W):
    """(M_in, 1) f32: 1.0 on interior pixels, 0.0 on the zero-padding border."""
    B = (H + 2) * (W + 2)
    m = jnp.zeros((H + 2, W + 2), jnp.float32).at[1:H + 1, 1:W + 1].set(1.0)
    return jnp.tile(m.reshape(1, B), (N, 1)).reshape(N * B, 1)


# ----------------------------------- Pallas kernels ------------------------------------

def _conv3x3_kernel(x_ref, w_ref, b_ref, m_ref, o_ref, acc_ref, *, W, M_in, PAD):
    # x_ref : (M_ext, Cin)  bf16  ext-layout input activation
    # w_ref : (9, Cin, tn)  bf16  3x3 taps, one Cout tile
    # b_ref : (1, tn)       f32
    # m_ref : (M_in, 1)     f32   interior mask (re-zeroes the padding border)
    # o_ref : (M_ext, tn)   bf16  ext-layout output (directly chainable into the next conv)
    # acc_ref: (M_in, tn)   f32   VMEM accumulator
    base = PAD - (W + 3)
    for k in range(9):                       # unrolled at trace time
        dy, dx = k // 3, k % 3
        start = base + dy * (W + 2) + dx     # static row shift for this tap
        term = jnp.dot(x_ref[pl.ds(start, M_in), :], w_ref[k],
                       preferred_element_type=jnp.float32)
        if k == 0:
            acc_ref[...] = term
        else:
            acc_ref[...] += term
    y = jnp.maximum(acc_ref[...] + b_ref[...], 0.0) * m_ref[...]
    o_ref[...] = jnp.zeros(o_ref.shape, o_ref.dtype)     # zero alignment + border rows
    o_ref[pl.ds(PAD, M_in), :] = y.astype(o_ref.dtype)


def _head_kernel(x_ref, w_ref, b_ref, o_ref):
    # x_ref: (N, S, C) bf16 ; w_ref: (C, Tp) bf16 ; b_ref: (1, Tp) f32 ; o_ref: (N, Tp) f32
    feat = jnp.mean(x_ref[...].astype(jnp.float32), axis=1)   # AdaptiveAvgPool2d((1,1))
    logits = jnp.dot(feat.astype(jnp.bfloat16), w_ref[...],
                     preferred_element_type=jnp.float32)
    o_ref[...] = logits + b_ref[...]


# ------------------------------------ layer wrappers ------------------------------------

def conv3x3_relu(x_ext, w_hwio, b, N, H, W):
    """3x3 / stride 1 / pad 1 conv + bias + ReLU on an ext-layout bf16 activation.

    x_ext: (M_ext, Cin) bf16, w_hwio: (3, 3, Cin, Cout) bf16, b: (Cout,) f32.
    Returns the ext-layout output (M_ext, Cout) bf16 (same spatial dims).
    """
    Cin, Cout = w_hwio.shape[2], w_hwio.shape[3]
    _, M_in, PAD, M_ext = _ext_geometry(N, H, W)
    assert x_ext.shape == (M_ext, Cin), (x_ext.shape, (M_ext, Cin))

    # Cout tile: keeps the resident weight block small; grid axis is "parallel" (v7x cores).
    tn = Cout if Cout <= 128 else 128
    grid = (Cout // tn,)
    w9 = w_hwio.reshape(9, Cin, Cout)
    b2 = b.astype(jnp.float32).reshape(1, Cout)
    mask = _border_mask(N, H, W)             # constant-folded by XLA

    # At these small spatial sizes the full (M_ext, Cin) block fits VMEM comfortably; at
    # 224x224-class resolutions an additional halo'd M-tile grid axis would be required.
    kernel = functools.partial(_conv3x3_kernel, W=W, M_in=M_in, PAD=PAD)
    return pl.pallas_call(
        kernel,
        out_shape=jax.ShapeDtypeStruct((M_ext, Cout), jnp.bfloat16),
        grid=grid,
        in_specs=[
            pl.BlockSpec((M_ext, Cin), lambda j: (0, 0)),   # same block every step
            pl.BlockSpec((9, Cin, tn), lambda j: (0, 0, j)),
            pl.BlockSpec((1, tn), lambda j: (0, j)),
            pl.BlockSpec((M_in, 1), lambda j: (0, 0)),
        ],
        out_specs=pl.BlockSpec((M_ext, tn), lambda j: (0, j)),
        scratch_shapes=[pltpu.VMEM((M_in, tn), jnp.float32)],
        compiler_params=pltpu.CompilerParams(dimension_semantics=("parallel",)),
    )(x_ext, w9, b2, mask)


def maxpool2x2(x):
    """nn.MaxPool2d(2, 2) on dense NHWC: one fused XLA pass (no stacked HBM copy)."""
    N, H, W, C = x.shape
    assert H % 2 == 0 and W % 2 == 0, "maxpool expects even spatial dims"
    a = jnp.maximum(x[:, 0::2, 0::2, :], x[:, 0::2, 1::2, :])
    b = jnp.maximum(x[:, 1::2, 0::2, :], x[:, 1::2, 1::2, :])
    return jnp.maximum(a, b)


def head(x_pooled, fc_w, fc_b):
    """AdaptiveAvgPool2d((1,1)) + Flatten + Dropout(eval: identity) + Linear(512, T)."""
    N, S, C = x_pooled.shape
    T = fc_w.shape[1]
    Tp = ((T + 127) // 128) * 128            # lane-dense output store, sliced below
    w_pad = jnp.pad(fc_w, ((0, 0), (0, Tp - T)))
    b_pad = jnp.pad(fc_b.astype(jnp.float32), (0, Tp - T)).reshape(1, Tp)
    out = pl.pallas_call(
        _head_kernel,
        out_shape=jax.ShapeDtypeStruct((N, Tp), jnp.float32),
        grid=(1,),
        in_specs=[
            pl.BlockSpec((N, S, C), lambda i: (0, 0, 0)),
            pl.BlockSpec((C, Tp), lambda i: (0, 0)),
            pl.BlockSpec((1, Tp), lambda i: (0, 0)),
        ],
        out_specs=pl.BlockSpec((N, Tp), lambda i: (0, 0)),
    )(x_pooled, w_pad, b_pad)
    return out[:, :T]


def _first_conv(x, w, b):
    # Cin == 3: ~2% MXU lane utilization -> run this single small layer through XLA's conv
    # (per perf review) instead of a pure-waste Pallas kernel.
    y = lax.conv_general_dilated(
        x, w, window_strides=(1, 1), padding=((1, 1), (1, 1)),
        dimension_numbers=("NHWC", "HWIO", "NHWC"),
        preferred_element_type=jnp.float32)
    return jnp.maximum(y + b.astype(jnp.float32), 0.0).astype(jnp.bfloat16)


# ------------------------------------ model assembly ------------------------------------

def init_params(key):
    """Synthetic He-init with VGG16 shapes (no pretrained checkpoint); weights in bf16."""
    conv_params = []
    cin = 3
    for v in VGG16_CFG:
        if v == "M":
            continue
        key, wk = jax.random.split(key)
        w = (jax.random.normal(wk, (3, 3, cin, v), jnp.float32)
             * jnp.sqrt(2.0 / (9 * cin))).astype(jnp.bfloat16)
        b = jnp.full((v,), 0.01, jnp.float32)
        conv_params.append((w, b))
        cin = v
    key, wk = jax.random.split(key)
    fc_w = (jax.random.normal(wk, (512, TOPIC_NUM), jnp.float32)
            * jnp.sqrt(1.0 / 512)).astype(jnp.bfloat16)
    fc_b = jnp.zeros((TOPIC_NUM,), jnp.float32)
    return conv_params, fc_w, fc_b


def classifier_forward(x_nhwc, conv_params, fc_w, fc_b):
    """VGG16 features -> AdaptiveAvgPool2d((1,1)) -> Flatten -> Dropout -> Linear."""
    N, H, W, _ = x_nhwc.shape
    act = x_nhwc.astype(jnp.bfloat16)       # dense NHWC
    x_ext = None                            # ext-layout activation while inside a conv chain
    ci = 0
    for v in VGG16_CFG:
        if v == "M":
            if x_ext is not None:
                act = _from_ext(x_ext, N, H, W)
                x_ext = None
            act = maxpool2x2(act)
            H //= 2
            W //= 2
        else:
            w, b = conv_params[ci]
            ci += 1
            if w.shape[2] < 8:              # first layer, Cin == 3
                act = _first_conv(act, w, b)
            else:
                if x_ext is None:
                    x_ext = _to_ext(act)
                x_ext = conv3x3_relu(x_ext, w, b, N, H, W)
    # VGG16_CFG ends with "M", so `act` is dense (N, H, W, 512) here.
    # TODO(synk): training-mode Dropout(0.5) mask (pltpu.prng_* Bernoulli) not implemented;
    #             inference behaviour (identity) is what is reproduced here.
    return head(act.reshape(N, H * W, act.shape[-1]), fc_w, fc_b)


# --------------------------------- numerical sanity checks ------------------------------

def _check_conv_kernel():
    k1, k2, k3 = jax.random.split(jax.random.PRNGKey(42), 3)
    N, H, W, Cin, Cout = 2, 16, 16, 64, 256          # Cout=256 also exercises Cout tiling
    x = jax.random.normal(k1, (N, H, W, Cin), jnp.float32) * 0.5
    w = jax.random.normal(k2, (3, 3, Cin, Cout), jnp.float32) * 0.05
    b = jax.random.normal(k3, (Cout,), jnp.float32) * 0.1
    got = _from_ext(conv3x3_relu(_to_ext(x.astype(jnp.bfloat16)),
                                 w.astype(jnp.bfloat16), b, N, H, W),
                    N, H, W).astype(jnp.float32)
    ref = lax.conv_general_dilated(x, w, (1, 1), ((1, 1), (1, 1)),
                                   dimension_numbers=("NHWC", "HWIO", "NHWC"))
    ref = jnp.maximum(ref + b, 0.0)
    err = float(jnp.max(jnp.abs(got - ref)) / (jnp.max(jnp.abs(ref)) + 1e-6))
    assert err < 3e-2, f"conv kernel mismatch vs lax.conv reference: {err}"


def _check_head_kernel():
    k1, k2, k3 = jax.random.split(jax.random.PRNGKey(7), 3)
    N, S, C = 2, 4, 512
    x = jax.random.normal(k1, (N, S, C), jnp.float32)
    w = jax.random.normal(k2, (C, TOPIC_NUM), jnp.float32) * 0.05
    b = jax.random.normal(k3, (TOPIC_NUM,), jnp.float32) * 0.1
    got = head(x.astype(jnp.bfloat16), w.astype(jnp.bfloat16), b)
    ref = jnp.mean(x, axis=1) @ w + b
    err = float(jnp.max(jnp.abs(got - ref)) / (jnp.max(jnp.abs(ref)) + 1e-6))
    assert err < 3e-2, f"head kernel mismatch: {err}"


if __name__ == "__main__":
    # quick kernel-vs-XLA reference checks (bf16 tolerance)
    _check_conv_kernel()
    _check_head_kernel()

    key = jax.random.PRNGKey(0)
    pkey, xkey = jax.random.split(key)
    conv_params, fc_w, fc_b = init_params(pkey)

    # NCHW like PyTorch; 32x32 spatial so the five 2x2 maxpools land on 1x1 before the head.
    x_nchw = jax.random.normal(xkey, (2, 3, 32, 32), jnp.float32)
    # layout conversion once at the boundary (per review), not inside the per-step forward
    x_nhwc = jnp.transpose(x_nchw, (0, 2, 3, 1))

    fwd = jax.jit(classifier_forward)
    logits = jax.block_until_ready(fwd(x_nhwc, conv_params, fc_w, fc_b))

    assert logits.shape == (2, TOPIC_NUM), logits.shape
    assert bool(jnp.all(jnp.isfinite(logits)))
    print("KERNEL_OK")
</pallas_src>

<mosaic_0001>
module attributes {stable_mosaic.version = 11 : i64} {
  func.func @_conv3x3_kernel(%arg0: i32, %arg1: memref<696x64xbf16, #tpu.memory_space<vmem>>, %arg2: memref<9x64x128xbf16, #tpu.memory_space<vmem>>, %arg3: memref<1x128xf32, #tpu.memory_space<vmem>>, %arg4: memref<648x1xf32, #tpu.memory_space<vmem>>, %arg5: memref<696x128xbf16, #tpu.memory_space<vmem>>, %arg6: memref<648x128xf32, #tpu.memory_space<vmem>>) attributes {dimension_semantics = [#tpu.dimension_semantics<parallel>], iteration_bounds = array<i64: 2>, scalar_prefetch = 0 : i64, scratch_operands = 1 : i64, tpu.core_type = #tpu.core_type<tc>, window_params = [{pipeline_mode = #tpu.pipeline_mode<synchronous>, transform_indices = @transform_0, window_bounds = array<i64: 696, 64>}, {transform_indices = @transform_1, window_bounds = array<i64: 9, 64, 128>}, {transform_indices = @transform_2, window_bounds = array<i64: 1, 128>}, {pipeline_mode = #tpu.pipeline_mode<synchronous>, transform_indices = @transform_3, window_bounds = array<i64: 648, 1>}, {transform_indices = @transform_4, window_bounds = array<i64: 696, 128>}]} {
    %c5 = arith.constant 5 : index
    %c0 = arith.constant 0 : index
    %0 = vector.load %arg1[%c5, %c0] : memref<696x64xbf16, #tpu.memory_space<vmem>>, vector<648x64xbf16>
    %c0_0 = arith.constant 0 : index
    %c0_1 = arith.constant 0 : index
    %c0_2 = arith.constant 0 : index
    %1 = vector.load %arg2[%c0_0, %c0_1, %c0_2] : memref<9x64x128xbf16, #tpu.memory_space<vmem>>, vector<1x64x128xbf16>
    %2 = vector.shape_cast %1 : vector<1x64x128xbf16> to vector<64x128xbf16>
    %cst = arith.constant dense<0.000000e+00> : vector<648x128xf32>
    %3 = tpu.matmul %0, %2, %cst {dimension_numbers = #tpu.dot_dimension_numbers<[1], [0], [0], [1], [0, 0, 1, 1], [], []>} : vector<648x64xbf16>, vector<64x128xbf16>, vector<648x128xf32> -> vector<648x128xf32>
    %c0_3 = arith.constant 0 : index
    %c0_4 = arith.constant 0 : index
    %4 = vector.load %arg6[%c0_3, %c0_4] : memref<648x128xf32, #tpu.memory_space<vmem>>, vector<648x128xf32>
    tpu.vector_store %arg6[%c0_3, %c0_4], %3 {strides = array<i32>} : memref<648x128xf32, #tpu.memory_space<vmem>>, vector<648x128xf32>,
    %c6 = arith.constant 6 : index
    %c0_5 = arith.constant 0 : index
    %5 = vector.load %arg1[%c6, %c0_5] : memref<696x64xbf16, #tpu.memory_space<vmem>>, vector<648x64xbf16>
    %c1 = arith.constant 1 : index
    %c0_6 = arith.constant 0 : index
    %c0_7 = arith.constant 0 : index
    %6 = vector.load %arg2[%c1, %c0_6, %c0_7] : memref<9x64x128xbf16, #tpu.memory_space<vmem>>, vector<1x64x128xbf16>
    %7 = vector.shape_cast %6 : vector<1x64x128xbf16> to vector<64x128xbf16>
    %cst_8 = arith.constant dense<0.000000e+00> : vector<648x128xf32>
    %8 = tpu.matmul %5, %7, %cst_8 {dimension_numbers = #tpu.dot_dimension_numbers<[1], [0], [0], [1], [0, 0, 1, 1], [], []>} : vector<648x64xbf16>, vector<64x128xbf16>, vector<648x128xf32> -> vector<648x128xf32>
    %c0_9 = arith.constant 0 : index
    %c0_10 = arith.constant 0 : index
    %9 = vector.load %arg6[%c0_9, %c0_10] : memref<648x128xf32, #tpu.memory_space<vmem>>, vector<648x128xf32>
    %10 = arith.addf %9, %8 : vector<648x128xf32>
    %c0_11 = arith.constant 0 : index
    %c0_12 = arith.constant 0 : index
    %11 = vector.load %arg6[%c0_11, %c0_12] : memref<648x128xf32, #tpu.memory_space<vmem>>, vector<648x128xf32>
    tpu.vector_store %arg6[%c0_11, %c0_12], %10 {strides = array<i32>} : memref<648x128xf32, #tpu.memory_space<vmem>>, vector<648x128xf32>,
    %c7 = arith.constant 7 : index
    %c0_13 = arith.constant 0 : index
    %12 = vector.load %arg1[%c7, %c0_13] : memref<696x64xbf16, #tpu.memory_space<vmem>>, vector<648x64xbf16>
    %c2 = arith.constant 2 : index
    %c0_14 = arith.constant 0 : index
    %c0_15 = arith.constant 0 : index
    %13 = vector.load %arg2[%c2, %c0_14, %c0_15] : memref<9x64x128xbf16, #tpu.memory_space<vmem>>, vector<1x64x128xbf16>
    %14 = vector.shape_cast %13 : vector<1x64x128xbf16> to vector<64x128xbf16>
    %cst_16 = arith.constant dense<0.000000e+00> : vector<648x128xf32>
    %15 = tpu.matmul %12, %14, %cst_16 {dimension_numbers = #tpu.dot_dimension_numbers<[1], [0], [0], [1], [0, 0, 1, 1], [], []>} : vector<648x64xbf16>, vector<64x128xbf16>, vector<648x128xf32> -> vector<648x128xf32>
    %c0_17 = arith.constant 0 : index
    %c0_18 = arith.constant 0 : index
    %16 = vector.load %arg6[%c0_17, %c0_18] : memref<648x128xf32, #tpu.memory_space<vmem>>, vector<648x128xf32>
    %17 = arith.addf %16, %15 : vector<648x128xf32>
    %c0_19 = arith.constant 0 : index
    %c0_20 = arith.constant 0 : index
    %18 = vector.load %arg6[%c0_19, %c0_20] : memref<648x128xf32, #tpu.memory_space<vmem>>, vector<648x128xf32>
    tpu.vector_store %arg6[%c0_19, %c0_20], %17 {strides = array<i32>} : memref<648x128xf32, #tpu.memory_space<vmem>>, vector<648x128xf32>,
    %c23 = arith.constant 23 : index
    %c0_21 = arith.constant 0 : index
    %19 = vector.load %arg1[%c23, %c0_21] : memref<696x64xbf16, #tpu.memory_space<vmem>>, vector<648x64xbf16>
    %c3 = arith.constant 3 : index
    %c0_22 = arith.constant 0 : index
    %c0_23 = arith.constant 0 : index
    %20 = vector.load %arg2[%c3, %c0_22, %c0_23] : memref<9x64x128xbf16, #tpu.memory_space<vmem>>, vector<1x64x128xbf16>
    %21 = vector.shape_cast %20 : vector<1x64x128xbf16> to vector<64x128xbf16>
    %cst_24 = arith.constant dense<0.000000e+00> : vector<648x128xf32>
    %22 = tpu.matmul %19, %21, %cst_24 {dimension_numbers = #tpu.dot_dimension_numbers<[1], [0], [0], [1], [0, 0, 1, 1], [], []>} : vector<648x64xbf16>, vector<64x128xbf16>, vector<648x128xf32> -> vector<648x128xf32>
    %c0_25 = arith.constant 0 : index
    %c0_26 = arith.constant 0 : index
    %23 = vector.load %arg6[%c0_25, %c0_26] : memref<648x128xf32, #tpu.memory_space<vmem>>, vector<648x128xf32>
    %24 = arith.addf %23, %22 : vector<648x128xf32>
    %c0_27 = arith.constant 0 : index
    %c0_28 = arith.constant 0 : index
    %25 = vector.load %arg6[%c0_27, %c0_28] : memref<648x128xf32, #tpu.memory_space<vmem>>, vector<648x128xf32>
    tpu.vector_store %arg6[%c0_27, %c0_28], %24 {strides = array<i32>} : memref<648x128xf32, #tpu.memory_space<vmem>>, vector<648x128xf32>,
    %c24 = arith.constant 24 : index
    %c0_29 = arith.constant 0 : index
    %26 = vector.load %arg1[%c24, %c0_29] : memref<696x64xbf16, #tpu.memory_space<vmem>>, vector<648x64xbf16>
    %c4 = arith.constant 4 : index
    %c0_30 = arith.constant 0 : index
    %c0_31 = arith.constant 0 : index
    %27 = vector.load %arg2[%c4, %c0_30, %c0_31] : memref<9x64x128xbf16, #tpu.memory_space<vmem>>, vector<1x64x128xbf16>
    %28 = vector.shape_cast %27 : vector<1x64x128xbf16> to vector<64x128xbf16>
    %cst_32 = arith.constant dense<0.000000e+00> : vector<648x128xf32>
    %29 = tpu.matmul %26, %28, %cst_32 {dimension_numbers = #tpu.dot_dimension_numbers<[1], [0], [0], [1], [0, 0, 1, 1], [], []>} : vector<648x64xbf16>, vector<64x128xbf16>, vector<648x128xf32> -> vector<648x128xf32>
    %c0_33 = arith.constant 0 : index
    %c0_34 = arith.constant 0 : index
    %30 = vector.load %arg6[%c0_33, %c0_34] : memref<648x128xf32, #tpu.memory_space<vmem>>, vector<648x128xf32>
    %31 = arith.addf %30, %29 : vector<648x128xf32>
    %c0_35 = arith.constant 0 : index
    %c0_36 = arith.constant 0 : index
    %32 = vector.load %arg6[%c0_35, %c0_36] : memref<648x128xf32, #tpu.memory_space<vmem>>, vector<648x128xf32>
    tpu.vector_store %arg6[%c0_35, %c0_36], %31 {strides = array<i32>} : memref<648x128xf32, #tpu.memory_space<vmem>>, vector<648x128xf32>,
    %c25 = arith.constant 25 : index
    %c0_37 = arith.constant 0 : index
    %33 = vector.load %arg1[%c25, %c0_37] : memref<696x64xbf16, #tpu.memory_space<vmem>>, vector<648x64xbf16>
    %c5_38 = arith.constant 5 : index
    %c0_39 = arith.constant 0 : index
    %c0_40 = arith.constant 0 : index
    %34 = vector.load %arg2[%c5_38, %c0_39, %c0_40] : memref<9x64x128xbf16, #tpu.memory_space<vmem>>, vector<1x64x128xbf16>
    %35 = vector.shape_cast %34 : vector<1x64x128xbf16> to vector<64x128xbf16>
    %cst_41 = arith.constant dense<0.000000e+00> : vector<648x128xf32>
    %36 = tpu.matmul %33, %35, %cst_41 {dimension_numbers = #tpu.dot_dimension_numbers<[1], [0], [0], [1], [0, 0, 1, 1], [], []>} : vector<648x64xbf16>, vector<64x128xbf16>, vector<648x128xf32> -> vector<648x128xf32>
    %c0_42 = arith.constant 0 : index
    %c0_43 = arith.constant 0 : index
    %37 = vector.load %arg6[%c0_42, %c0_43] : memref<648x128xf32, #tpu.memory_space<vmem>>, vector<648x128xf32>
    %38 = arith.addf %37, %36 : vector<648x128xf32>
    %c0_44 = arith.constant 0 : index
    %c0_45 = arith.constant 0 : index
    %39 = vector.load %arg6[%c0_44, %c0_45] : memref<648x128xf32, #tpu.memory_space<vmem>>, vector<648x128xf32>
    tpu.vector_store %arg6[%c0_44, %c0_45], %38 {strides = array<i32>} : memref<648x128xf32, #tpu.memory_space<vmem>>, vector<648x128xf32>,
    %c41 = arith.constant 41 : index
    %c0_46 = arith.constant 0 : index
    %40 = vector.load %arg1[%c41, %c0_46] : memref<696x64xbf16, #tpu.memory_space<vmem>>, vector<648x64xbf16>
    %c6_47 = arith.constant 6 : index
    %c0_48 = arith.constant 0 : index
    %c0_49 = arith.constant 0 : index
    %41 = vector.load %arg2[%c6_47, %c0_48, %c0_49] : memref<9x64x128xbf16, #tpu.memory_space<vmem>>, vector<1x64x128xbf16>
    %42 = vector.shape_cast %41 : vector<1x64x128xbf16> to vector<64x128xbf16>
    %cst_50 = arith.constant dense<0.000000e+00> : vector<648x128xf32>
    %43 = tpu.matmul %40, %42, %cst_50 {dimension_numbers = #tpu.dot_dimension_numbers<[1], [0], [0], [1], [0, 0, 1, 1], [], []>} : vector<648x64xbf16>, vector<64x128xbf16>, vector<648x128xf32> -> vector<648x128xf32>
    %c0_51 = arith.constant 0 : index
    %c0_52 = arith.constant 0 : index
    %44 = vector.load %arg6[%c0_51, %c0_52] : memref<648x128xf32, #tpu.memory_space<vmem>>, vector<648x128xf32>
    %45 = arith.addf %44, %43 : vector<648x128xf32>
    %c0_53 = arith.constant 0 : index
    %c0_54 = arith.constant 0 : index
    %46 = vector.load %arg6[%c0_53, %c0_54] : memref<648x128xf32, #tpu.memory_space<vmem>>, vector<648x128xf32>
    tpu.vector_store %arg6[%c0_53, %c0_54], %45 {strides = array<i32>} : memref<648x128xf32, #tpu.memory_space<vmem>>, vector<648x128xf32>,
    %c42 = arith.constant 42 : index
    %c0_55 = arith.constant 0 : index
    %47 = vector.load %arg1[%c42, %c0_55] : memref<696x64xbf16, #tpu.memory_space<vmem>>, vector<648x64xbf16>
    %c7_56 = arith.constant 7 : index
    %c0_57 = arith.constant 0 : index
    %c0_58 = arith.constant 0 : index
    %48 = vector.load %arg2[%c7_56, %c0_57, %c0_58] : memref<9x64x128xbf16, #tpu.memory_space<vmem>>, vector<1x64x128xbf16>
    %49 = vector.shape_cast %48 : vector<1x64x128xbf16> to vector<64x128xbf16>
    %cst_59 = arith.constant dense<0.000000e+00> : vector<648x128xf32>
    %50 = tpu.matmul %47, %49, %cst_59 {dimension_numbers = #tpu.dot_dimension_numbers<[1], [0], [0], [1], [0, 0, 1, 1], [], []>} : vector<648x64xbf16>, vector<64x128xbf16>, vector<648x128xf32> -> vector<648x128xf32>
    %c0_60 = arith.constant 0 : index
    %c0_61 = arith.constant 0 : index
    %51 = vector.load %arg6[%c0_60, %c0_61] : memref<648x128xf32, #tpu.memory_space<vmem>>, vector<648x128xf32>
    %52 = arith.addf %51, %50 : vector<648x128xf32>
    %c0_62 = arith.constant 0 : index
    %c0_63 = arith.constant 0 : index
    %53 = vector.load %arg6[%c0_62, %c0_63] : memref<648x128xf32, #tpu.memory_space<vmem>>, vector<648x128xf32>
    tpu.vector_store %arg6[%c0_62, %c0_63], %52 {strides = array<i32>} : memref<648x128xf32, #tpu.memory_space<vmem>>, vector<648x128xf32>,
    %c43 = arith.constant 43 : index
    %c0_64 = arith.constant 0 : index
    %54 = vector.load %arg1[%c43, %c0_64] : memref<696x64xbf16, #tpu.memory_space<vmem>>, vector<648x64xbf16>
    %c8 = arith.constant 8 : index
    %c0_65 = arith.constant 0 : index
    %c0_66 = arith.constant 0 : index
    %55 = vector.load %arg2[%c8, %c0_65, %c0_66] : memref<9x64x128xbf16, #tpu.memory_space<vmem>>, vector<1x64x128xbf16>
    %56 = vector.shape_cast %55 : vector<1x64x128xbf16> to vector<64x128xbf16>
    %cst_67 = arith.constant dense<0.000000e+00> : vector<648x128xf32>
    %57 = tpu.matmul %54, %56, %cst_67 {dimension_numbers = #tpu.dot_dimension_numbers<[1], [0], [0], [1], [0, 0, 1, 1], [], []>} : vector<648x64xbf16>, vector<64x128xbf16>, vector<648x128xf32> -> vector<648x128xf32>
    %c0_68 = arith.constant 0 : index
    %c0_69 = arith.constant 0 : index
    %58 = vector.load %arg6[%c0_68, %c0_69] : memref<648x128xf32, #tpu.memory_space<vmem>>, vector<648x128xf32>
    %59 = arith.addf %58, %57 : vector<648x128xf32>
    %c0_70 = arith.constant 0 : index
    %c0_71 = arith.constant 0 : index
    %60 = vector.load %arg6[%c0_70, %c0_71] : memref<648x128xf32, #tpu.memory_space<vmem>>, vector<648x128xf32>
    tpu.vector_store %arg6[%c0_70, %c0_71], %59 {strides = array<i32>} : memref<648x128xf32, #tpu.memory_space<vmem>>, vector<648x128xf32>,
    %c0_72 = arith.constant 0 : index
    %c0_73 = arith.constant 0 : index
    %61 = vector.load %arg6[%c0_72, %c0_73] : memref<648x128xf32, #tpu.memory_space<vmem>>, vector<648x128xf32>
    %c0_74 = arith.constant 0 : index
    %c0_75 = arith.constant 0 : index
    %62 = vector.load %arg3[%c0_74, %c0_75] : memref<1x128xf32, #tpu.memory_space<vmem>>, vector<1x128xf32>
    %63 = vector.broadcast %62 : vector<1x128xf32> to vector<648x128xf32>
    %64 = arith.addf %61, %63 : vector<648x128xf32>
    %cst_76 = arith.constant 0.000000e+00 : f32
    %65 = vector.broadcast %cst_76 : f32 to vector<648x128xf32>
    %66 = arith.maximumf %64, %65 : vector<648x128xf32>
    %c0_77 = arith.constant 0 : index
    %c0_78 = arith.constant 0 : index
    %67 = vector.load %arg4[%c0_77, %c0_78] : memref<648x1xf32, #tpu.memory_space<vmem>>, vector<648x1xf32>
    %68 = vector.broadcast %67 : vector<648x1xf32> to vector<648x128xf32>
    %69 = arith.mulf %66, %68 : vector<648x128xf32>
    %cst_79 = arith.constant 0.000000e+00 : bf16
    %70 = vector.broadcast %cst_79 : bf16 to vector<696x128xbf16>
    %c0_80 = arith.constant 0 : index
    %c0_81 = arith.constant 0 : index
    %71 = vector.load %arg5[%c0_80, %c0_81] : memref<696x128xbf16, #tpu.memory_space<vmem>>, vector<696x128xbf16>
    tpu.vector_store %arg5[%c0_80, %c0_81], %70 {strides = array<i32>} : memref<696x128xbf16, #tpu.memory_space<vmem>>, vector<696x128xbf16>,
    %72 = arith.truncf %69 : vector<648x128xf32> to vector<648x128xbf16>
    %c24_82 = arith.constant 24 : index
    %c0_83 = arith.constant 0 : index
    %73 = vector.load %arg5[%c24_82, %c0_83] : memref<696x128xbf16, #tpu.memory_space<vmem>>, vector<648x128xbf16>
    tpu.vector_store %arg5[%c24_82, %c0_83], %72 {strides = array<i32>} : memref<696x128xbf16, #tpu.memory_space<vmem>>, vector<648x128xbf16>,
    return
  }
  func.func @transform_0(%arg0: i32) -> (i32, i32) {
    %c0_i32 = arith.constant 0 : i32
    %c0_i32_0 = arith.constant 0 : i32
    %c0_i32_1 = arith.constant 0 : i32
    return %c0_i32, %c0_i32_0 : i32, i32
  }
  func.func @transform_1(%arg0: i32) -> (i32, i32, i32) {
    %c0_i32 = arith.constant 0 : i32
    %c0_i32_0 = arith.constant 0 : i32
    %c0_i32_1 = arith.constant 0 : i32
    return %c0_i32, %c0_i32_0, %arg0 : i32, i32, i32
  }
  func.func @transform_2(%arg0: i32) -> (i32, i32) {
    %c0_i32 = arith.constant 0 : i32
    %c0_i32_0 = arith.constant 0 : i32
    return %c0_i32, %arg0 : i32, i32
  }
  func.func @transform_3(%arg0: i32) -> (i32, i32) {
    %c0_i32 = arith.constant 0 : i32
    %c0_i32_0 = arith.constant 0 : i32
    %c0_i32_1 = arith.constant 0 : i32
    return %c0_i32, %c0_i32_0 : i32, i32
  }
  func.func @transform_4(%arg0: i32) -> (i32, i32) {
    %c0_i32 = arith.constant 0 : i32
    %c0_i32_0 = arith.constant 0 : i32
    return %c0_i32, %arg0 : i32, i32
  }
}

</mosaic_0001>

<bundles_post_ra>
// kernel: tpu_custom_call.1
= control target key start
LH: loop header
LB: loop body
LE: loop exit
PB: predicated region body
PF: predicated region fallthrough
CT: control target
= control target key end

     0   :  { %9 = vsyncpa [#allocation5], 0  ;;  %s19113_s0 = inlined_call_operand.vmem [shape: bf16[696,64], index: 0, kind: input, shape index: {}]   ;;  %s19114_s1 = inlined_call_operand.vmem [shape: bf16[9,64,256], index: 1, kind: input, shape index: {}]   ;;  %s19115_s2 = inlined_call_operand.vmem [shape: f32[1,256], index: 2, kind: input, shape index: {}]   ;;  %s19116_s3 = inlined_call_operand.vmem [shape: f32[648,1], index: 3, kind: input, shape index: {}]   ;;  %s19117_s4 = inlined_call_operand.hbm [shape: bf16[696,256], index: 4, kind: output, shape index: {}]  }
   0x1   :  { %11 = vsyncpa [#allocation5 + $0x1], 0  ;;  %s14772_s15 = smov 0   ;;  %s14774_s16 = smov 0  }
   0x2   :  { %s14776_s17 = smov 0   ;;  %s14778_s18 = smov 0  }
   0x3 LB: > { %s14793_s19 = sadd.s32 4294967295, %s14741_s18   ;;  %s11913_s20 = sadd.s32 4294967294, %s14741_s18   ;;  %s14741_s18 = sphi %s14778_s18, %s19323_s18   ;;  %s14737_s17 = sphi %s14776_s17, %s19322_s17   ;;  %s14733_s16 = sphi %s14774_s16, %s19321_s16   ;;  %s14729_s15 = sphi %s14772_s15, %s19320_s15  }
   0x4   : > { %s14797_s21 = sadd.s32 1, %s14741_s18   ;;  %s45_s22 = sadd.s32 1, %s14737_s17 }
   0x5   : > { %s42_s23 = ssub.s32 %s14741_s18, %s14797_s21  ;;  %p52_p0 = scmp.ne.s32.totalorder %s14737_s17, %s14733_s16 }
   0x6   : > { %p43_p1 = scmp.eq.s32.totalorder %s42_s23, 0  ;;  %p53_p2 = scmp.eq.s32.totalorder %s14741_s18, 0 }
   0x7   : > { %p129_p3 = scmp.eq.s32.totalorder %s14793_s19, 1  ;;  %p134_p4 = scmp.ne.s32.totalorder %s14733_s16, %s14729_s15 }
   0x8   : > { %s14809_s24 = scalar_select %p43_p1, %s14737_s17, %s45_s22  }
   0x9   : > { %p54_p5 = por %p53_p2, %p52_p0  ;;  %p14811_p6 = por %p129_p3, %p52_p0 }
   0xa   : > { %p135_p7 = scmp.eq.s32.totalorder %s11913_s20, 1  ;;  %p11915_p9 = scmp.ge.s32.totalorder %s14741_s18, 2 }
   0xc   : > { %p14815_p8 = por %p135_p7, %p134_p4  ;;  %157 = sbr.rel (%p11915_p9) target bundleno = 94 (0x5e), region = 24 }
  0x11   : > { %160 = sbr.rel (!%p54_p5) target bundleno = 94 (0x5e), region = 28  ;;  %s162_s27 = sand.u32 (%p54_p5), 1, %s14737_s17  }
  0x12   : > { %s11916_s28 = sshll.u32 (%p54_p5), %s14741_s18, 2  ;;  %s14626_s29 = smul.u32 (%p54_p5), 288, %s162_s27 }
  0x13   : > { %s14827_s6 = scalar_lea.vmem (%p54_p5), %s19114_s1, %s11916_s28 }
  0x14   : > { %v183_v0 = vld [vmem:[%s14827_s6] sm:$0xf] (%p54_p5)  ;;  %v185_v1 = vld [vmem:[%s14827_s6 + $0x8] sm:$0xf] (%p54_p5)  ;;  %v187_v2 = vld [vmem:[%s14827_s6 + $0x10] sm:$0xf] (%p54_p5) }
  0x15   : > { %s14832_s7 = scalar_lea.vmem (%p54_p5), [#allocation3], %s14626_s29  ;;  %v189_v3 = vld [vmem:[%s14827_s6 + $0x18] sm:$0xf] (%p54_p5)  ;;  %v191_v4 = vld [vmem:[%s14827_s6 + $0x20] sm:$0xf] (%p54_p5) }
  0x16   : > { %184 = vst [vmem:[%s14832_s7] sm:$0xf] %v183_v0  ;;  %v193_v5 = vld [vmem:[%s14827_s6 + $0x28] sm:$0xf]  ;;  %v195_v6 = vld [vmem:[%s14827_s6 + $0x30] sm:$0xf] }
  0x17   : > { %186 = vst [vmem:[%s14832_s7 + $0x4] sm:$0xf] %v185_v1  ;;  %v197_v7 = vld [vmem:[%s14827_s6 + $0x38] sm:$0xf]  ;;  %v199_v8 = vld [vmem:[%s14827_s6 + $0x40] sm:$0xf] }
  0x18   : > { %188 = vst [vmem:[%s14832_s7 + $0x8] sm:$0xf] %v187_v2  ;;  %v201_v9 = vld [vmem:[%s14827_s6 + $0x48] sm:$0xf]  ;;  %v203_v10 = vld [vmem:[%s14827_s6 + $0x50] sm:$0xf] }
  0x19   : > { %190 = vst [vmem:[%s14832_s7 + $0xc] sm:$0xf] %v189_v3  ;;  %v205_v11 = vld [vmem:[%s14827_s6 + $0x58] sm:$0xf]  ;;  %v207_v12 = vld [vmem:[%s14827_s6 + $0x60] sm:$0xf] }
  0x1a   : > { %192 = vst [vmem:[%s14832_s7 + $0x10] sm:$0xf] %v191_v4  ;;  %v209_v13 = vld [vmem:[%s14827_s6 + $0x68] sm:$0xf]  ;;  %v211_v14 = vld [vmem:[%s14827_s6 + $0x70] sm:$0xf] }
  0x1b   : > { %194 = vst [vmem:[%s14832_s7 + $0x14] sm:$0xf] %v193_v5  ;;  %v213_v15 = vld [vmem:[%s14827_s6 + $0x78] sm:$0xf]  ;;  %v215_v16 = vld [vmem:[%s14827_s6 + $0x80] sm:$0xf] }
  0x1c   : > { %196 = vst [vmem:[%s14832_s7 + $0x18] sm:$0xf] %v195_v6  ;;  %v217_v17 = vld [vmem:[%s14827_s6 + $0x88] sm:$0xf]  ;;  %v219_v18 = vld [vmem:[%s14827_s6 + $0x90] sm:$0xf] }
  0x1d   : > { %198 = vst [vmem:[%s14832_s7 + $0x1c] sm:$0xf] %v197_v7  ;;  %v221_v19 = vld [vmem:[%s14827_s6 + $0x98] sm:$0xf]  ;;  %v223_v20 = vld [vmem:[%s14827_s6 + $0xa0] sm:$0xf] }
  0x1e   : > { %200 = vst [vmem:[%s14832_s7 + $0x20] sm:$0xf] %v199_v8  ;;  %v225_v21 = vld [vmem:[%s14827_s6 + $0xa8] sm:$0xf]  ;;  %v227_v22 = vld [vmem:[%s14827_s6 + $0xb0] sm:$0xf] }
  0x1f   : > { %202 = vst [vmem:[%s14832_s7 + $0x24] sm:$0xf] %v201_v9  ;;  %v229_v23 = vld [vmem:[%s14827_s6 + $0xb8] sm:$0xf]  ;;  %v231_v24 = vld [vmem:[%s14827_s6 + $0xc0] sm:$0xf] }
  0x20   : > { %204 = vst [vmem:[%s14832_s7 + $0x28] sm:$0xf] %v203_v10  ;;  %v233_v25 = vld [vmem:[%s14827_s6 + $0xc8] sm:$0xf]  ;;  %v235_v26 = vld [vmem:[%s14827_s6 + $0xd0] sm:$0xf] }
  0x21   : > { %206 = vst [vmem:[%s14832_s7 + $0x2c] sm:$0xf] %v205_v11  ;;  %v237_v27 = vld [vmem:[%s14827_s6 + $0xd8] sm:$0xf]  ;;  %v239_v28 = vld [vmem:[%s14827_s6 + $0xe0] sm:$0xf] }
  0x22   : > { %208 = vst [vmem:[%s14832_s7 + $0x30] sm:$0xf] %v207_v12  ;;  %v241_v29 = vld [vmem:[%s14827_s6 + $0xe8] sm:$0xf]  ;;  %v243_v30 = vld [vmem:[%s14827_s6 + $0xf0] sm:$0xf] }
  0x23   : > { %210 = vst [vmem:[%s14832_s7 + $0x34] sm:$0xf] %v209_v13  ;;  %v245_v31 = vld [vmem:[%s14827_s6 + $0xf8] sm:$0xf]  ;;  %v247_v32 = vld [vmem:[%s14827_s6 + $0x100] sm:$0xf] }
  0x24   : > { %212 = vst [vmem:[%s14832_s7 + $0x38] sm:$0xf] %v211_v14  ;;  %v249_v33 = vld [vmem:[%s14827_s6 + $0x108] sm:$0xf]  ;;  %v251_v34 = vld [vmem:[%s14827_s6 + $0x110] sm:$0xf] }
  0x25   : > { %214 = vst [vmem:[%s14832_s7 + $0x3c] sm:$0xf] %v213_v15  ;;  %v253_v35 = vld [vmem:[%s14827_s6 + $0x118] sm:$0xf]  ;;  %v255_v36 = vld [vmem:[%s14827_s6 + $0x120] sm:$0xf] }
  0x26   : > { %216 = vst [vmem:[%s14832_s7 + $0x40] sm:$0xf] %v215_v16  ;;  %v257_v37 = vld [vmem:[%s14827_s6 + $0x128] sm:$0xf]  ;;  %v259_v38 = vld [vmem:[%s14827_s6 + $0x130] sm:$0xf] }
  0x27   : > { %218 = vst [vmem:[%s14832_s7 + $0x44] sm:$0xf] %v217_v17  ;;  %v261_v39 = vld [vmem:[%s14827_s6 + $0x138] sm:$0xf]  ;;  %v263_v40 = vld [vmem:[%s14827_s6 + $0x140] sm:$0xf] }
  0x28   : > { %220 = vst [vmem:[%s14832_s7 + $0x48] sm:$0xf] %v219_v18  ;;  %v265_v41 = vld [vmem:[%s14827_s6 + $0x148] sm:$0xf]  ;;  %v267_v42 = vld [vmem:[%s14827_s6 + $0x150] sm:$0xf] }
  0x29   : > { %222 = vst [vmem:[%s14832_s7 + $0x4c] sm:$0xf] %v221_v19  ;;  %v269_v43 = vld [vmem:[%s14827_s6 + $0x158] sm:$0xf]  ;;  %v271_v44 = vld [vmem:[%s14827_s6 + $0x160] sm:$0xf] }
  0x2a   : > { %224 = vst [vmem:[%s14832_s7 + $0x50] sm:$0xf] %v223_v20  ;;  %v273_v45 = vld [vmem:[%s14827_s6 + $0x168] sm:$0xf]  ;;  %v275_v46 = vld [vmem:[%s14827_s6 + $0x170] sm:$0xf] }
  0x2b   : > { %226 = vst [vmem:[%s14832_s7 + $0x54] sm:$0xf] %v225_v21  ;;  %v277_v47 = vld [vmem:[%s14827_s6 + $0x178] sm:$0xf]  ;;  %v279_v48 = vld [vmem:[%s14827_s6 + $0x180] sm:$0xf] }
  0x2c   : > { %228 = vst [vmem:[%s14832_s7 + $0x58] sm:$0xf] %v227_v22  ;;  %v281_v49 = vld [vmem:[%s14827_s6 + $0x188] sm:$0xf]  ;;  %v283_v50 = vld [vmem:[%s14827_s6 + $0x190] sm:$0xf] }
  0x2d   : > { %230 = vst [vmem:[%s14832_s7 + $0x5c] sm:$0xf] %v229_v23  ;;  %v285_v51 = vld [vmem:[%s14827_s6 + $0x198] sm:$0xf]  ;;  %v287_v52 = vld [vmem:[%s14827_s6 + $0x1a0] sm:$0xf] }
  0x2e   : > { %232 = vst [vmem:[%s14832_s7 + $0x60] sm:$0xf] %v231_v24  ;;  %v289_v53 = vld [vmem:[%s14827_s6 + $0x1a8] sm:$0xf]  ;;  %v291_v54 = vld [vmem:[%s14827_s6 + $0x1b0] sm:$0xf] }
  0x2f   : > { %234 = vst [vmem:[%s14832_s7 + $0x64] sm:$0xf] %v233_v25  ;;  %v293_v55 = vld [vmem:[%s14827_s6 + $0x1b8] sm:$0xf]  ;;  %v295_v56 = vld [vmem:[%s14827_s6 + $0x1c0] sm:$0xf] }
  0x30   : > { %236 = vst [vmem:[%s14832_s7 + $0x68] sm:$0xf] %v235_v26  ;;  %v297_v57 = vld [vmem:[%s14827_s6 + $0x1c8] sm:$0xf]  ;;  %v299_v58 = vld [vmem:[%s14827_s6 + $0x1d0] sm:$0xf] }
  0x31   : > { %238 = vst [vmem:[%s14832_s7 + $0x6c] sm:$0xf] %v237_v27  ;;  %v301_v59 = vld [vmem:[%s14827_s6 + $0x1d8] sm:$0xf]  ;;  %v303_v60 = vld [vmem:[%s14827_s6 + $0x1e0] sm:$0xf] }
  0x32   : > { %240 = vst [vmem:[%s14832_s7 + $0x70] sm:$0xf] %v239_v28  ;;  %v305_v61 = vld [vmem:[%s14827_s6 + $0x1e8] sm:$0xf]  ;;  %v307_v62 = vld [vmem:[%s14827_s6 + $0x1f0] sm:$0xf] }
  0x33   : > { %242 = vst [vmem:[%s14832_s7 + $0x74] sm:$0xf] %v241_v29  ;;  %v309_v63 = vld [vmem:[%s14827_s6 + $0x1f8] sm:$0xf]  ;;  %v311_v0 = vld [vmem:[%s14827_s6 + $0x200] sm:$0xf] }
  0x34   : > { %244 = vst [vmem:[%s14832_s7 + $0x78] sm:$0xf] %v243_v30  ;;  %v313_v1 = vld [vmem:[%s14827_s6 + $0x208] sm:$0xf]  ;;  %v315_v2 = vld [vmem:[%s14827_s6 + $0x210] sm:$0xf] }
  0x35   : > { %246 = vst [vmem:[%s14832_s7 + $0x7c] sm:$0xf] %v245_v31  ;;  %v317_v3 = vld [vmem:[%s14827_s6 + $0x218] sm:$0xf]  ;;  %v319_v4 = vld [vmem:[%s14827_s6 + $0x220] sm:$0xf] }
  0x36   : > { %248 = vst [vmem:[%s14832_s7 + $0x80] sm:$0xf] %v247_v32  ;;  %v321_v5 = vld [vmem:[%s14827_s6 + $0x228] sm:$0xf]  ;;  %v323_v6 = vld [vmem:[%s14827_s6 + $0x230] sm:$0xf] }
  0x37   : > { %250 = vst [vmem:[%s14832_s7 + $0x84] sm:$0xf] %v249_v33  ;;  %v325_v7 = vld [vmem:[%s14827_s6 + $0x238] sm:$0xf] }
  0x38   : > { %252 = vst [vmem:[%s14832_s7 + $0x88] sm:$0xf] %v251_v34 }
  0x39   : > { %254 = vst [vmem:[%s14832_s7 + $0x8c] sm:$0xf] %v253_v35 }
  0x3a   : > { %256 = vst [vmem:[%s14832_s7 + $0x90] sm:$0xf] %v255_v36 }
  0x3b   : > { %258 = vst [vmem:[%s14832_s7 + $0x94] sm:$0xf] %v257_v37 }
  0x3c   : > { %260 = vst [vmem:[%s14832_s7 + $0x98] sm:$0xf] %v259_v38 }
  0x3d   : > { %262 = vst [vmem:[%s14832_s7 + $0x9c] sm:$0xf] %v261_v39 }
  0x3e   : > { %264 = vst [vmem:[%s14832_s7 + $0xa0] sm:$0xf] %v263_v40 }
  0x3f   : > { %266 = vst [vmem:[%s14832_s7 + $0xa4] sm:$0xf] %v265_v41 }
  0x40   : > { %268 = vst [vmem:[%s14832_s7 + $0xa8] sm:$0xf] %v267_v42 }
  0x41   : > { %270 = vst [vmem:[%s14832_s7 + $0xac] sm:$0xf] %v269_v43 }
  0x42   : > { %272 = vst [vmem:[%s14832_s7 + $0xb0] sm:$0xf] %v271_v44 }
  0x43   : > { %274 = vst [vmem:[%s14832_s7 + $0xb4] sm:$0xf] %v273_v45 }
  0x44   : > { %276 = vst [vmem:[%s14832_s7 + $0xb8] sm:$0xf] %v275_v46 }
  0x45   : > { %278 = vst [vmem:[%s14832_s7 + $0xbc] sm:$0xf] %v277_v47 }
  0x46   : > { %280 = vst [vmem:[%s14832_s7 + $0xc0] sm:$0xf] %v279_v48 }
  0x47   : > { %282 = vst [vmem:[%s14832_s7 + $0xc4] sm:$0xf] %v281_v49 }
  0x48   : > { %284 = vst [vmem:[%s14832_s7 + $0xc8] sm:$0xf] %v283_v50 }
  0x49   : > { %286 = vst [vmem:[%s14832_s7 + $0xcc] sm:$0xf] %v285_v51 }
  0x4a   : > { %288 = vst [vmem:[%s14832_s7 + $0xd0] sm:$0xf] %v287_v52 }
  0x4b   : > { %290 = vst [vmem:[%s14832_s7 + $0xd4] sm:$0xf] %v289_v53 }
  0x4c   : > { %292 = vst [vmem:[%s14832_s7 + $0xd8] sm:$0xf] %v291_v54 }
  0x4d   : > { %294 = vst [vmem:[%s14832_s7 + $0xdc] sm:$0xf] %v293_v55 }
  0x4e   : > { %296 = vst [vmem:[%s14832_s7 + $0xe0] sm:$0xf] %v295_v56 }
  0x4f   : > { %298 = vst [vmem:[%s14832_s7 + $0xe4] sm:$0xf] %v297_v57 }
  0x50   : > { %300 = vst [vmem:[%s14832_s7 + $0xe8] sm:$0xf] %v299_v58 }
  0x51   : > { %302 = vst [vmem:[%s14832_s7 + $0xec] sm:$0xf] %v301_v59 }
  0x52   : > { %304 = vst [vmem:[%s14832_s7 + $0xf0] sm:$0xf] %v303_v60 }
  0x53   : > { %306 = vst [vmem:[%s14832_s7 + $0xf4] sm:$0xf] %v305_v61 }
  0x54   : > { %308 = vst [vmem:[%s14832_s7 + $0xf8] sm:$0xf] %v307_v62 }
  0x55   : > { %310 = vst [vmem:[%s14832_s7 + $0xfc] sm:$0xf] %v309_v63 }
  0x56   : > { %312 = vst [vmem:[%s14832_s7 + $0x100] sm:$0xf] %v311_v0 }
  0x57   : > { %314 = vst [vmem:[%s14832_s7 + $0x104] sm:$0xf] %v313_v1 }
  0x58   : > { %316 = vst [vmem:[%s14832_s7 + $0x108] sm:$0xf] %v315_v2 }
  0x59   : > { %318 = vst [vmem:[%s14832_s7 + $0x10c] sm:$0xf] %v317_v3 }
  0x5a   : > { %320 = vst [vmem:[%s14832_s7 + $0x110] sm:$0xf] %v319_v4 }
  0x5b   : > { %322 = vst [vmem:[%s14832_s7 + $0x114] sm:$0xf] %v321_v5 }
  0x5c   : > { %324 = vst [vmem:[%s14832_s7 + $0x118] sm:$0xf] %v323_v6 }
  0x5d   : > { %326 = vst [vmem:[%s14832_s7 + $0x11c] sm:$0xf] %v325_v7 }
  0x5e PF: > { %p11917_p10 = scmp.ge.s32.totalorder %s14741_s18, 1  ;;  %p499_p11 = scmp.lt.s32.totalorder %s14741_s18, 3 }
  0x60   : > { %p500_p12 = pnand %p11917_p10, %p499_p11 }
  0x62   : > { %503 = sbr.rel (%p500_p12) target bundleno = 1746 (0x6d2), region = 73 }
  0x67   : > { %s14978_s8 = sand.u32 1, %s14733_s16   ;;  %v13981_v8 = vld [vmem:[%s19113_s0 + $0x58] sm:$0xff]  ;;  %v13982_v9 = vld [vmem:[%s19113_s0 + $0x60] sm:$0xff]  ;;  %v13992_v10 = vld [vmem:[%s19113_s0 + $0xb0] sm:$0xff]  ;;  %vm833_vm0 = vsmask.f32 5376 }
  0x68   : > { %s14627_s11 = smul.u32 288, %s14978_s8  ;;  %v13993_v11 = vld [vmem:[%s19113_s0 + $0xb8] sm:$0xff]  ;;  %v13971_v12 = vld [vmem:[%s19113_s0 + $0x8] sm:$0xff]  ;;  %v933_v14 = vshrl.u32 %v13981_v8, 16  ;;  %v936_v15 = vshll.u32 %v13981_v8, 16  ;;  %v942_v17 = vshrl.u32 %v13982_v9, 16 }
  0x69   : > { %v11920_v16 = vld [vmem:[%s19113_s0] sm:$0xc]  ;;  %v945_v18 = vshll.u32 %v13982_v9, 16  ;;  %v1032_v19 = vshrl.u32 %v13992_v10, 16  ;;  %v1035_v21 = vshll.u32 %v13992_v10, 16  ;;  %v1041_v22 = vshrl.u32 %v13993_v11, 16 }
  0x6a   : > { %s14996_s29 = scalar_lea.vmem [#allocation3], %s14627_s11  ;;  %v1044_v23 = vshll.u32 %v13993_v11, 16  ;;  %v13970_v24 = vld [vmem:[%s19113_s0] sm:$0xf0]  ;;  %v843_v26 = vshrl.u32 %v13971_v12, 16  ;;  %v846_v27 = vshll.u32 %v13971_v12, 16 }
  0x6b   : > { %v14014_v13 = vld [vmem:[%s14996_s29 + $0x18] sm:$0xff]  ;;  %v14013_v20 = vld [vmem:[%s14996_s29 + $0x10] sm:$0xff]  ;;  %v11921_v25 = vor.u32 %v13970_v24, %v11920_v16  ;;  %v935_v28 = vrot.slane %v933_v14, 2  ;;  %v938_v29 = vrot.slane %v936_v15, 3  ;;  %v944_v30 = vrot.slane %v942_v17, 2  ;;  %v14012_v34 = vld [vmem:[%s14996_s29 + $0x8] sm:$0xff] }
  0x6c   : > { %14614 = vmatpush.bf16.msra.mxu1 %v14014_v13  ;;  %14615 = vmatpush.bf16.msra.mxu2 %v14014_v13  ;;  %v947_v31 = vrot.slane %v945_v18, 3  ;;  %v1034_v35 = vrot.slane %v1032_v19, 2  ;;  %v1037_v36 = vrot.slane %v1035_v21, 3  ;;  %v1043_v37 = vrot.slane %v1041_v22, 2  ;;  %v14011_v44 = vld [vmem:[%s14996_s29] sm:$0xff]  ;;  %v14104_v48 = vld [vmem:[%s14996_s29 + $0x58] sm:$0xff] }
  0x6d   : > { %1354 = vmatpush.bf16.msra.mxu0 %v14014_v13  ;;  %14616 = vmatpush.bf16.msra.mxu3 %v14014_v13  ;;  %v835_v32 = vshrl.u32 %v11921_v25, 16  ;;  %v838_v33 = vshll.u32 %v11921_v25, 16  ;;  %v1046_v38 = vrot.slane %v1044_v23, 3  ;;  %v845_v41 = vrot.slane %v843_v26, 2  ;;  %v14059_v51 = vld [vmem:[%s14996_s29 + $0x38] sm:$0xff]  ;;  %v13983_v53 = vld [vmem:[%s19113_s0 + $0x68] sm:$0xff] }
  0x6e   : > { %v848_v42 = vrot.slane %v846_v27, 3  ;;  %v15007_v43 = vor.u32 %v938_v29, %v935_v28  ;;  %v948_v45 = vor.u32 %v947_v31, %v944_v30  ;;  %v15010_v46 = vor.u32 %v1037_v36, %v1034_v35  ;;  %v14193_v52 = vld [vmem:[%s14996_s29 + $0x98] sm:$0xff]  ;;  %v13994_v54 = vld [vmem:[%s19113_s0 + $0xc0] sm:$0xff]  ;;  %v13972_v58 = vld [vmem:[%s19113_s0 + $0x10] sm:$0xff]  ;;  %p534_p13 = scmp.lt.s32.totalorder %s14793_s19, 1  ;;  %s13967_s28 = sshll.u32 %s14793_s19, 2 }
  0x6f   : > { %v837_v39 = vrot.slane %v835_v32, 2  ;;  %v840_v40 = vrot.slane %v838_v33, 3  ;;  %v1047_v47 = vor.u32 %v1046_v38, %v1043_v37  ;;  %vm1226_vm1 = vcmask 523264   ;;  %v14003_v63 = vld [vmem:[%s19113_s0 + $0x108] sm:$0xff]  ;;  %v14004_v0 = vld [vmem:[%s19113_s0 + $0x110] sm:$0xff]  ;;  %v13973_v29 = vld [vmem:[%s19113_s0 + $0x18] sm:$0xff]  ;;  %s11832_s6 = scalar_lea.hbm %s19117_s4, %s13967_s28 }
  0x70   : > { %14617 = vmatpush.bf16.msra.mxu1 %v14013_v20  ;;  %14618 = vmatpush.bf16.msra.mxu2 %v14013_v20  ;;  %v849_v50 = vor.u32 %v848_v42, %v845_v41  ;;  %v949_v55 = vsel %vm833_vm0, %v15007_v43, %v948_v45  ;;  %v951_v59 = vshrl.u32 %v13983_v53, 16  ;;  %v954_v60 = vshll.u32 %v13983_v53, 16  ;;  %v14103_v1 = vld [vmem:[%s14996_s29 + $0x50] sm:$0xff]  ;;  %v13995_v27 = vld [vmem:[%s19113_s0 + $0xc8] sm:$0xff]  ;;  %v14149_v35 = vld [vmem:[%s14996_s29 + $0x78] sm:$0xff]  ;;  %s11835_s9 = sshll.u32 %s11832_s6, 4  ;;  %s11836_s9 = int_to_ptr.hbm [resolvable:$true] %s11835_s9 }
  0x71   : > { %1355 = vmatpush.bf16.msra.mxu0 %v14013_v20  ;;  %14619 = vmatpush.bf16.msra.mxu3 %v14013_v20  ;;  %v841_v49 = vor.u32 %v840_v40, %v837_v39  ;;  %v1048_v56 = vsel %vm833_vm0, %v15010_v46, %v1047_v47  ;;  %v1050_v61 = vshrl.u32 %v13994_v54, 16  ;;  %v1053_v62 = vshll.u32 %v13994_v54, 16  ;;  %v13984_v24 = vld [vmem:[%s19113_s0 + $0x70] sm:$0xff]  ;;  %v14005_v37 = vld [vmem:[%s19113_s0 + $0x118] sm:$0xff]  ;;  %s14693_s10 = sshra.s32 %s11836_s9, 4  ;;  %s14699_s13 = scalar_lea.hbm %s19117_s4, 696  ;;  %s14694_s10 = int_to_ptr.hbm [resolvable:$true] %s14693_s10 }
  0x72   : > { %v852_v2 = vshrl.u32 %v13972_v58, 16  ;;  %v855_v3 = vshll.u32 %v13972_v58, 16  ;;  %v1131_v4 = vshrl.u32 %v14003_v63, 16  ;;  %v1134_v5 = vshll.u32 %v14003_v63, 16  ;;  %v14058_v32 = vld [vmem:[%s14996_s29 + $0x30] sm:$0xff]  ;;  %s14695_s11 = scalar_lea.hbm %s14694_s10, 348  ;;  %p14700_p3 = scmp.lt.s32.totalorder %s14694_s10, %s19117_s4 }
  0x73   : > { %v850_v57 = vsel %vm833_vm0, %v841_v49, %v849_v50  ;;  %v1140_v6 = vshrl.u32 %v14004_v0, 16  ;;  %v1143_v7 = vshll.u32 %v14004_v0, 16  ;;  %v953_v8 = vrot.slane %v951_v59, 2  ;;  %v14192_v36 = vld [vmem:[%s14996_s29 + $0x90] sm:$0xff]  ;;  %p14696_p0 = scmp.ne.s32.totalorder %s14694_s10, %s14695_s11  ;;  %p14701_p4 = scmp.lt.s32.totalorder %s14699_s13, %s14695_s11 }
  0x74   : > { %14620 = vmatpush.bf16.msra.mxu1 %v14012_v34  ;;  %14621 = vmatpush.bf16.msra.mxu2 %v14012_v34  ;;  %v956_v9 = vrot.slane %v954_v60, 3  ;;  %v1052_v10 = vrot.slane %v1050_v61, 2  ;;  %v1055_v11 = vrot.slane %v1053_v62, 3  ;;  %v1133_v12 = vrot.slane %v1131_v4, 2  ;;  %v13996_v60 = vld [vmem:[%s19113_s0 + $0xd0] sm:$0xff]  ;;  %v13974_v62 = vld [vmem:[%s19113_s0 + $0x20] sm:$0xff] }
  0x75   : > { %1356 = vmatpush.bf16.msra.mxu0 %v14012_v34  ;;  %14622 = vmatpush.bf16.msra.mxu3 %v14012_v34  ;;  %v1136_v13 = vrot.slane %v1134_v5, 3  ;;  %v1142_v14 = vrot.slane %v1140_v6, 2  ;;  %v1145_v15 = vrot.slane %v1143_v7, 3  ;;  %v854_v16 = vrot.slane %v852_v2, 2  ;;  %p14697_p1 = pnand %p14696_p0, %p14811_p6  ;;  %p14702_p5 = por %p14701_p4, %p14700_p3 }
  0x76   : > { %v857_v17 = vrot.slane %v855_v3, 3  ;;  %v957_v20 = vor.u32 %v956_v9, %v953_v8  ;;  %v1056_v21 = vor.u32 %v1055_v11, %v1052_v10  ;;  %v960_v30 = vshrl.u32 %v13984_v24, 16  ;;  %v14006_v3 = vld [vmem:[%s19113_s0 + $0x120] sm:$0xff] }
  0x77   : > { %v15039_v18 = vor.u32 %v1136_v13, %v1133_v12  ;;  %v1146_v19 = vor.u32 %v1145_v15, %v1142_v14  ;;  %v963_v31 = vshll.u32 %v13984_v24, 16  ;;  %v1059_v33 = vshrl.u32 %v13995_v27, 16  ;;  %p14698_p2 = pneg %p14697_p1 }
  0x78   : > { %14623 = vmatpush.bf16.msra.mxu1 %v14011_v44  ;;  %14624 = vmatpush.bf16.msra.mxu2 %v14011_v44  ;;  %v858_v23 = vor.u32 %v857_v17, %v854_v16  ;;  %v958_v25 = vsel %vm833_vm0, %v948_v45, %v957_v20  ;;  %v1057_v26 = vsel %vm833_vm0, %v1047_v47, %v1056_v21  ;;  %v1062_v34 = vshll.u32 %v13995_v27, 16  ;;  %v13975_v27 = vld [vmem:[%s19113_s0 + $0x28] sm:$0xff] }
  0x79   : > { %1357 = vmatpush.bf16.msra.mxu0 %v14011_v44  ;;  %14625 = vmatpush.bf16.msra.mxu3 %v14011_v44  ;;  %v1147_v22 = vsel %vm833_vm0, %v15039_v18, %v1146_v19  ;;  %v861_v38 = vshrl.u32 %v13973_v29, 16  ;;  %v864_v39 = vshll.u32 %v13973_v29, 16  ;;  %v1149_v40 = vshrl.u32 %v14005_v37, 16  ;;  %p14703_p7 = pnand %p14702_p5, %p14698_p2 }
  0x7a   : > { %v859_v28 = vsel %vm833_vm0, %v849_v50, %v858_v23  ;;  %v1152_v41 = vshll.u32 %v14005_v37, 16  ;;  %v962_v42 = vrot.slane %v960_v30, 2  ;;  %v965_v44 = vrot.slane %v963_v31, 3  ;;  %v14057_v37 = vld [vmem:[%s14996_s29 + $0x28] sm:$0xff] }
  0x7b   : > { %12109 = vmatmul.msk.bf16.vlgmr.msra.gmra.mxu1 %vm1226_vm1, %v949_v55  ;;  %12120 = vmatmul.msk.bf16.vlgmr.msra.gmra.mxu2 %vm1226_vm1, %v1048_v56  ;;  %v1061_v45 = vrot.slane %v1059_v33, 2  ;;  %v1064_v47 = vrot.slane %v1062_v34, 3  ;;  %v863_v50 = vrot.slane %v861_v38, 2  ;;  %v1071_v2 = vshll.u32 %v13996_v60, 16  ;;  %v14102_v33 = vld [vmem:[%s14996_s29 + $0x48] sm:$0xff] }
  0x7c   : > { %3441 = vmatpush.bf16.msrb.mxu2 %v14104_v48  ;;  %2173 = vmatpush.bf16.msrb.mxu1 %v14059_v51  ;;  %v1151_v48 = vrot.slane %v1149_v40, 2  ;;  %v1154_v49 = vrot.slane %v1152_v41, 3  ;;  %v866_v51 = vrot.slane %v864_v39, 3  ;;  %v966_v53 = vor.u32 %v965_v44, %v962_v42  ;;  %v14007_v34 = vld [vmem:[%s19113_s0 + $0x128] sm:$0xff] }
  0x7d   : > { %5604 = vmatpush.bf16.msrb.mxu0 %v14193_v52  ;;  %12131 = vmatmul.msk.bf16.vlgmr.msra.gmra.mxu3 %vm1226_vm1, %v1147_v22  ;;  %v1065_v54 = vor.u32 %v1064_v47, %v1061_v45  ;;  %v870_v4 = vshrl.u32 %v13974_v62, 16  ;;  %v873_v5 = vshll.u32 %v13974_v62, 16  ;;  %v1158_v6 = vshrl.u32 %v14006_v3, 16  ;;  %v13986_v22 = vld [vmem:[%s19113_s0 + $0x80] sm:$0xff] }
  0x7e   : > { %12098 = vmatmul.msk.bf16.vlgmr.msra.gmra.mxu0 %vm1226_vm1, %v850_v57  ;;  %4708 = vmatpush.bf16.msrb.mxu3 %v14149_v35  ;;  %v1155_v52 = vor.u32 %v1154_v49, %v1151_v48  ;;  %v867_v56 = vor.u32 %v866_v51, %v863_v50  ;;  %v13985_v57 = vld [vmem:[%s19113_s0 + $0x78] sm:$0xff]  ;;  %v967_v58 = vsel %vm833_vm0, %v957_v20, %v966_v53  ;;  %v1161_v7 = vshll.u32 %v14006_v3, 16 }
  0x7f   : > { %v1066_v59 = vsel %vm833_vm0, %v1056_v21, %v1065_v54  ;;  %v969_v63 = vshrl.u32 %v13985_v57, 16  ;;  %v972_v0 = vshll.u32 %v13985_v57, 16  ;;  %v1073_v11 = vrot.slane %v1071_v2, 3  ;;  %v14008_v2 = vld [vmem:[%s19113_s0 + $0x130] sm:$0xff] }
  0x80   : > { %3442 = vmatpush.bf16.msrb.mxu2 %v14103_v1  ;;  %2174 = vmatpush.bf16.msrb.mxu1 %v14058_v32  ;;  %v1156_v55 = vsel %vm833_vm0, %v1146_v19, %v1155_v52  ;;  %v868_v61 = vsel %vm833_vm0, %v858_v23, %v867_v56  ;;  %v1068_v1 = vshrl.u32 %v13996_v60, 16  ;;  %v1160_v12 = vrot.slane %v1158_v6, 2  ;;  %v14148_v32 = vld [vmem:[%s14996_s29 + $0x70] sm:$0xff] }
  0x81   : > { %5605 = vmatpush.bf16.msrb.mxu0 %v14192_v36  ;;  %v971_v8 = vrot.slane %v969_v63, 2  ;;  %v974_v9 = vrot.slane %v972_v0, 3  ;;  %v1163_v13 = vrot.slane %v1161_v7, 3  ;;  %v872_v14 = vrot.slane %v870_v4, 2  ;;  %v13976_v60 = vld [vmem:[%s19113_s0 + $0x30] sm:$0xff] }
  0x82   : > { %v1070_v10 = vrot.slane %v1068_v1, 2  ;;  %v875_v15 = vrot.slane %v873_v5, 3  ;;  %v981_v29 = vshll.u32 %v13986_v22, 16  ;;  %v879_v35 = vshrl.u32 %v13975_v27, 16  ;;  %4709 = vmatpush.bf16.msrb.mxu3 %v14148_v32  ;;  %v14191_v1 = vld [vmem:[%s14996_s29 + $0x88] sm:$0xff]  ;;  %v14009_v32 = vld [vmem:[%s19113_s0 + $0x138] sm:$0xff] }
  0x83   : > { %v1164_v16 = vor.u32 %v1163_v13, %v1160_v12  ;;  %v975_v17 = vor.u32 %v974_v9, %v971_v8  ;;  %v882_v36 = vshll.u32 %v13975_v27, 16  ;;  %v1167_v38 = vshrl.u32 %v14007_v34, 16 }
  0x84   : > { %v1074_v19 = vor.u32 %v1073_v11, %v1070_v10  ;;  %v876_v21 = vor.u32 %v875_v15, %v872_v14  ;;  %3443 = vmatpush.bf16.msrb.mxu2 %v14102_v33  ;;  %v1170_v39 = vshll.u32 %v14007_v34, 16  ;;  %v983_v41 = vrot.slane %v981_v29, 3  ;;  %2175 = vmatpush.bf16.msrb.mxu1 %v14057_v37 }
  0x85   : > { %v1165_v20 = vsel %vm833_vm0, %v1155_v52, %v1164_v16  ;;  %v976_v23 = vsel %vm833_vm0, %v966_v53, %v975_v17  ;;  %v1169_v45 = vrot.slane %v1167_v38, 2  ;;  %v881_v48 = vrot.slane %v879_v35, 2  ;;  %5606 = vmatpush.bf16.msrb.mxu0 %v14191_v1 }
  0x86   : > { %v1075_v24 = vsel %vm833_vm0, %v1065_v54, %v1074_v19  ;;  %v1172_v47 = vrot.slane %v1170_v39, 3  ;;  %v884_v49 = vrot.slane %v882_v36, 3  ;;  %v888_v3 = vshrl.u32 %v13976_v60, 16 }
  0x87   : > { %v891_v4 = vshll.u32 %v13976_v60, 16  ;;  %v1176_v5 = vshrl.u32 %v14008_v2, 16  ;;  %v1179_v6 = vshll.u32 %v14008_v2, 16  ;;  %v1185_v35 = vshrl.u32 %v14009_v32, 16  ;;  %v12080_v60 = vld [vmem:[%s19113_s0 + $0x140] sm:$0xf] }
  0x88   : > { %v1173_v50 = vor.u32 %v1172_v47, %v1169_v45  ;;  %v885_v54 = vor.u32 %v884_v49, %v881_v48  ;;  %v890_v13 = vrot.slane %v888_v3, 2  ;;  %v1188_v36 = vshll.u32 %v14009_v32, 16  ;;  %v14101_v3 = vld [vmem:[%s14996_s29 + $0x40] sm:$0xff] }
  0x89   : > { %v1178_v11 = vrot.slane %v1176_v5, 2  ;;  %v1181_v12 = vrot.slane %v1179_v6, 3  ;;  %v893_v14 = vrot.slane %v891_v4, 3  ;;  %3444 = vmatpush.bf16.msrb.mxu2 %v14101_v3  ;;  %v14146_v32 = vld [vmem:[%s14996_s29 + $0x60] sm:$0xff]  ;;  %vm2921_vm2 = vsmask.f32 4352 }
  0x8a   : > { %v1174_v53 = vsel %vm833_vm0, %v1164_v16, %v1173_v50  ;;  %vm1940_vm3 = vcmask 1044480   ;;  %vm8805_vm4 = vcmask 1046528   ;;  %vm6352_vm5 = vsmask.f32 7424 }
  0x8b   : > { %12110 = vmatmul.msk.bf16.gmra.mxu1 %vm1226_vm1, %v958_v25  ;;  %12121 = vmatmul.msk.bf16.gmra.mxu2 %vm1226_vm1, %v1057_v26  ;;  %v13997_v25 = vld [vmem:[%s19113_s0 + $0xd8] sm:$0xff]  ;;  %v877_v26 = vsel %vm833_vm0, %v867_v56, %v876_v21  ;;  %v1182_v15 = vor.u32 %v1181_v12, %v1178_v11  ;;  %vm9786_vm6 = vsmask.f32 6400 }
  0x8c   : > { %v1077_v30 = vshrl.u32 %v13997_v25, 16  ;;  %v1080_v31 = vshll.u32 %v13997_v25, 16 }
  0x8d   : > { %12132 = vmatmul.msk.bf16.gmra.mxu3 %vm1226_vm1, %v1156_v55  ;;  %v13987_v55 = vld [vmem:[%s19113_s0 + $0x88] sm:$0xff] }
  0x8e   : > { %12099 = vmatmul.msk.bf16.gmra.mxu0 %vm1226_vm1, %v859_v28  ;;  %v978_v28 = vshrl.u32 %v13986_v22, 16  ;;  %v1079_v42 = vrot.slane %v1077_v30, 2  ;;  %v1082_v44 = vrot.slane %v1080_v31, 3  ;;  %v990_v62 = vshll.u32 %v13987_v55, 16  ;;  %v14147_v31 = vld [vmem:[%s14996_s29 + $0x68] sm:$0xff] }
  0x8f   : > { %4710 = vmatpush.bf16.msrb.mxu3 %v14147_v31 }
  0x90   : > { %v980_v40 = vrot.slane %v978_v28, 2  ;;  %v1083_v52 = vor.u32 %v1082_v44, %v1079_v42  ;;  %v992_v8 = vrot.slane %v990_v62, 3  ;;  %v1190_v42 = vrot.slane %v1188_v36, 3 }
  0x92   : > { %v984_v51 = vor.u32 %v983_v41, %v980_v40  ;;  %v1084_v57 = vsel %vm833_vm0, %v1074_v19, %v1083_v52  ;;  %v1183_v19 = vsel %vm833_vm0, %v1173_v50, %v1182_v15  ;;  %v1187_v41 = vrot.slane %v1185_v35, 2 }
  0x93   : > { %4711 = vmatpush.bf16.msrb.mxu3 %v14146_v32  ;;  %v14328_v32 = vld [vmem:[%s14996_s29 + $0xf8] sm:$0xff] }
  0x94   : > { %v985_v56 = vsel %vm833_vm0, %v975_v17, %v984_v51  ;;  %v1191_v47 = vor.u32 %v1190_v42, %v1187_v41 }
  0x96   : > { %v1192_v50 = vsel %vm833_vm0, %v1182_v15, %v1191_v47 }
  0x97   : > { %9038 = vmatpush.bf16.msra.mxu3 %v14328_v32 }
  0x9b   : > { %12111 = vmatmul.msk.bf16.gmra.mxu1 %vm1226_vm1, %v967_v58  ;;  %12122 = vmatmul.msk.bf16.gmra.mxu2 %vm1226_vm1, %v1066_v59  ;;  %v13998_v58 = vld [vmem:[%s19113_s0 + $0xe0] sm:$0xff]  ;;  %v886_v59 = vsel %vm833_vm0, %v876_v21, %v885_v54  ;;  %v13988_v21 = vld [vmem:[%s19113_s0 + $0x90] sm:$0xff] }
  0x9c   : > { %v1086_v63 = vshrl.u32 %v13998_v58, 16  ;;  %v1089_v0 = vshll.u32 %v13998_v58, 16  ;;  %v996_v27 = vshrl.u32 %v13988_v21, 16  ;;  %v999_v28 = vshll.u32 %v13988_v21, 16 }
  0x9d   : > { %12133 = vmatmul.msk.bf16.gmra.mxu3 %vm1226_vm1, %v1165_v20  ;;  %v894_v20 = vor.u32 %v893_v14, %v890_v13  ;;  %v14056_v14 = vld [vmem:[%s14996_s29 + $0x20] sm:$0xff] }
  0x9e   : > { %12100 = vmatmul.msk.bf16.gmra.mxu0 %vm1226_vm1, %v868_v61  ;;  %v987_v61 = vshrl.u32 %v13987_v55, 16  ;;  %v1088_v9 = vrot.slane %v1086_v63, 2  ;;  %v1091_v10 = vrot.slane %v1089_v0, 3  ;;  %v998_v37 = vrot.slane %v996_v27, 2  ;;  %v14000_v55 = vld [vmem:[%s19113_s0 + $0xf0] sm:$0xff]  ;;  %2176 = vmatpush.bf16.msrb.mxu1 %v14056_v14  ;;  %v13979_v27 = vld [vmem:[%s19113_s0 + $0x48] sm:$0xff] }
  0x9f   : > { %v895_v25 = vsel %vm833_vm0, %v885_v54, %v894_v20  ;;  %v1001_v38 = vrot.slane %v999_v28, 3  ;;  %v1104_v62 = vshrl.u32 %v14000_v55, 16  ;;  %v1107_v63 = vshll.u32 %v14000_v55, 16 }
  0xa0   : > { %v989_v7 = vrot.slane %v987_v61, 2  ;;  %v1092_v17 = vor.u32 %v1091_v10, %v1088_v9  ;;  %v14010_v61 = vld [vmem:[%s19113_s0 + $0x140] sm:$0x70] }
  0xa1   : > { %v1002_v48 = vor.u32 %v1001_v38, %v998_v37  ;;  %v12081_v0 = vor.u32 %v14010_v61, %v12080_v60  ;;  %v1109_v9 = vrot.slane %v1107_v63, 3  ;;  %v14106_v60 = vld [vmem:[%s19113_s0 + $0x10] sm:$0xff] }
  0xa2   : > { %v993_v16 = vor.u32 %v992_v8, %v989_v7  ;;  %v1106_v8 = vrot.slane %v1104_v62, 2  ;;  %v4198_v3 = vshrl.u32 %v14106_v60, 16 }
  0xa3   : > { %v1194_v4 = vshrl.u32 %v12081_v0, 16  ;;  %v1197_v5 = vshll.u32 %v12081_v0, 16 }
  0xa4   : > { %v994_v22 = vsel %vm833_vm0, %v984_v51, %v993_v16 }
  0xa5   : > { %v1196_v10 = vrot.slane %v1194_v4, 2  ;;  %v1199_v11 = vrot.slane %v1197_v5, 3  ;;  %v4201_v4 = vshll.u32 %v14106_v60, 16 }
  0xa7   : > { %v1200_v15 = vor.u32 %v1199_v11, %v1196_v10 }
  0xab   : > { %12112 = vmatmul.msk.bf16.gmra.mxu1 %vm1226_vm1, %v976_v23  ;;  %12123 = vmatmul.msk.bf16.gmra.mxu2 %vm1226_vm1, %v1075_v24  ;;  %v1093_v23 = vsel %vm833_vm0, %v1083_v52, %v1092_v17  ;;  %v13999_v24 = vld [vmem:[%s19113_s0 + $0xe8] sm:$0xff]  ;;  %v13989_v52 = vld [vmem:[%s19113_s0 + $0x98] sm:$0xff] }
  0xac   : > { %v1095_v29 = vshrl.u32 %v13999_v24, 16  ;;  %v1098_v30 = vshll.u32 %v13999_v24, 16  ;;  %v1005_v58 = vshrl.u32 %v13989_v52, 16  ;;  %v14001_v24 = vld [vmem:[%s19113_s0 + $0xf8] sm:$0xff] }
  0xad   : > { %12134 = vmatmul.msk.bf16.gmra.mxu3 %vm1226_vm1, %v1174_v53  ;;  %v1003_v53 = vsel %vm833_vm0, %v993_v16, %v1002_v48  ;;  %v1116_v31 = vshll.u32 %v14001_v24, 16 }
  0xae   : > { %12101 = vmatmul.msk.bf16.gmra.mxu0 %vm1226_vm1, %v877_v26  ;;  %v13977_v26 = vld [vmem:[%s19113_s0 + $0x38] sm:$0xff]  ;;  %v1097_v39 = vrot.slane %v1095_v29, 2  ;;  %v1100_v40 = vrot.slane %v1098_v30, 3  ;;  %v1007_v6 = vrot.slane %v1005_v58, 2  ;;  %v1113_v30 = vshrl.u32 %v14001_v24, 16 }
  0xaf   : > { %v897_v33 = vshrl.u32 %v13977_v26, 16  ;;  %v900_v34 = vshll.u32 %v13977_v26, 16  ;;  %v1118_v38 = vrot.slane %v1116_v31, 3  ;;  %v12607_v58 = vld [vmem:[%s19113_s0 + $0x8] sm:$0x8]  ;;  %v14283_v31 = vld [vmem:[%s14996_s29 + $0xd8] sm:$0xff] }
  0xb0   : > { %v1101_v49 = vor.u32 %v1100_v40, %v1097_v39  ;;  %v1115_v37 = vrot.slane %v1113_v30, 2  ;;  %8057 = vmatpush.bf16.msra.mxu2 %v14283_v31 }
  0xb1   : > { %v899_v44 = vrot.slane %v897_v33, 2  ;;  %v902_v45 = vrot.slane %v900_v34, 3  ;;  %v915_v33 = vshrl.u32 %v13979_v27, 16  ;;  %v918_v34 = vshll.u32 %v13979_v27, 16 }
  0xb2   : > { %v1102_v54 = vsel %vm833_vm0, %v1092_v17, %v1101_v49  ;;  %v1110_v17 = vor.u32 %v1109_v9, %v1106_v8  ;;  %v1119_v42 = vor.u32 %v1118_v38, %v1115_v37 }
  0xb3   : > { %v903_v51 = vor.u32 %v902_v45, %v899_v44  ;;  %v917_v39 = vrot.slane %v915_v33, 2  ;;  %v920_v40 = vrot.slane %v918_v34, 3  ;;  %v13991_v45 = vld [vmem:[%s19113_s0 + $0xa8] sm:$0xff]  ;;  %v14107_v33 = vld [vmem:[%s19113_s0 + $0x18] sm:$0xff] }
  0xb4   : > { %v1026_v55 = vshll.u32 %v13991_v45, 16  ;;  %v4210_v37 = vshll.u32 %v14107_v33, 16 }
  0xb5   : > { %v921_v44 = vor.u32 %v920_v40, %v917_v39 }
  0xbb   : > { %12113 = vmatmul.msk.bf16.gmra.mxu1 %vm1226_vm1, %v985_v56  ;;  %12124 = vmatmul.msk.bf16.gmra.mxu2 %vm1226_vm1, %v1084_v57  ;;  %v904_v56 = vsel %vm833_vm0, %v894_v20, %v903_v51  ;;  %v13978_v57 = vld [vmem:[%s19113_s0 + $0x40] sm:$0xff] }
  0xbc   : > { %v906_v1 = vshrl.u32 %v13978_v57, 16  ;;  %v909_v2 = vshll.u32 %v13978_v57, 16 }
  0xbd   : > { %12135 = vmatmul.msk.bf16.gmra.mxu3 %vm1226_vm1, %v1183_v19  ;;  %v1201_v19 = vsel %vm833_vm0, %v1191_v47, %v1200_v15  ;;  %v14002_v47 = vld [vmem:[%s19113_s0 + $0x100] sm:$0xff] }
  0xbe   : > { %12102 = vmatmul.msk.bf16.gmra.mxu0 %vm1226_vm1, %v886_v59  ;;  %v1008_v59 = vshll.u32 %v13989_v52, 16  ;;  %v908_v12 = vrot.slane %v906_v1, 2  ;;  %v911_v13 = vrot.slane %v909_v2, 3  ;;  %v1125_v57 = vshll.u32 %v14002_v47, 16 }
  0xc0   : > { %v1010_v7 = vrot.slane %v1008_v59, 3  ;;  %v912_v20 = vor.u32 %v911_v13, %v908_v12  ;;  %v14105_v59 = vld [vmem:[%s19113_s0 + $0x8] sm:$0xf0]  ;;  %v1127_v8 = vrot.slane %v1125_v57, 3  ;;  %v4200_v12 = vrot.slane %v4198_v3, 3 }
  0xc1   : > { %v12608_v61 = vor.u32 %v14105_v59, %v12607_v58  ;;  %v4203_v13 = vrot.slane %v4201_v4, 4 }
  0xc2   : > { %v1011_v16 = vor.u32 %v1010_v7, %v1007_v6  ;;  %v913_v26 = vsel %vm833_vm0, %v903_v51, %v912_v20  ;;  %v922_v52 = vsel %vm833_vm0, %v912_v20, %v921_v44  ;;  %v1028_v6 = vrot.slane %v1026_v55, 3 }
  0xc3   : > { %v4190_v1 = vshrl.u32 %v12608_v61, 16  ;;  %v4193_v2 = vshll.u32 %v12608_v61, 16 }
  0xc4   : > { %v1012_v21 = vsel %vm833_vm0, %v1002_v48, %v1011_v16 }
  0xc5   : > { %v4192_v10 = vrot.slane %v4190_v1, 3  ;;  %v4195_v11 = vrot.slane %v4193_v2, 4 }
  0xcb   : > { %12114 = vmatmul.msk.bf16.gmra.mxu1 %vm1226_vm1, %v994_v22  ;;  %12125 = vmatmul.msk.bf16.gmra.mxu2 %vm1226_vm1, %v1093_v23  ;;  %v1111_v22 = vsel %vm833_vm0, %v1101_v49, %v1110_v17  ;;  %v13990_v23 = vld [vmem:[%s19113_s0 + $0xa0] sm:$0xff] }
  0xcc   : > { %v1014_v28 = vshrl.u32 %v13990_v23, 16  ;;  %v1017_v29 = vshll.u32 %v13990_v23, 16 }
  0xcd   : > { %12136 = vmatmul.msk.bf16.gmra.mxu3 %vm1226_vm1, %v1192_v50  ;;  %v1120_v50 = vsel %vm833_vm0, %v1110_v17, %v1119_v42  ;;  %v4196_v17 = vor.u32 %v4195_v11, %v4192_v10  ;;  %v14016_v10 = vld [vmem:[%s19113_s0 + $0x8] sm:$0xff] }
  0xce   : > { %12103 = vmatmul.msk.bf16.gmra.mxu0 %vm1226_vm1, %v895_v25  ;;  %v14190_v25 = vld [vmem:[%s14996_s29 + $0x80] sm:$0xff]  ;;  %v1016_v35 = vrot.slane %v1014_v28, 2  ;;  %v1019_v36 = vrot.slane %v1017_v29, 3 }
  0xcf   : > { %5607 = vmatpush.bf16.msrb.mxu0 %v14190_v25 }
  0xd0   : > { %v1020_v41 = vor.u32 %v1019_v36, %v1016_v35  ;;  %v14238_v35 = vld [vmem:[%s14996_s29 + $0xb8] sm:$0xff]  ;;  %v4207_v36 = vshrl.u32 %v14107_v33, 16  ;;  %v14150_v33 = vld [vmem:[%s19113_s0 + $0xc] sm:$0xff] }
  0xd1   : > { %6831 = vmatpush.bf16.msra.mxu1 %v14238_v35  ;;  %v14062_v35 = vld [vmem:[%s19113_s0 + $0x10] sm:$0xff] }
  0xd2   : > { %v1021_v49 = vsel %vm833_vm0, %v1011_v16, %v1020_v41  ;;  %v4209_v40 = vrot.slane %v4207_v36, 3 }
  0xdb   : > { %12115 = vmatmul.msk.bf16.gmra.mxu1 %vm1226_vm1, %v1003_v53  ;;  %12126 = vmatmul.msk.bf16.gmra.mxu2 %vm1226_vm1, %v1102_v54  ;;  %v13980_v53 = vld [vmem:[%s19113_s0 + $0x50] sm:$0xff]  ;;  %v1023_v54 = vshrl.u32 %v13991_v45, 16 }
  0xdc   : > { %v924_v62 = vshrl.u32 %v13980_v53, 16  ;;  %v927_v63 = vshll.u32 %v13980_v53, 16  ;;  %v14061_v53 = vld [vmem:[%s19113_s0 + $0x8] sm:$0xff] }
  0xdd   : > { %12137 = vmatmul.msk.bf16.gmra.mxu3 %vm1226_vm1, %v1201_v19  ;;  %v1025_v5 = vrot.slane %v1023_v54, 2  ;;  %v4204_v19 = vor.u32 %v4203_v13, %v4200_v12  ;;  %v2934_v1 = vshll.u32 %v14061_v53, 16 }
  0xde   : > { %12104 = vmatmul.msk.bf16.gmra.mxu0 %vm1226_vm1, %v904_v56  ;;  %v1122_v56 = vshrl.u32 %v14002_v47, 16  ;;  %v929_v16 = vrot.slane %v927_v63, 3  ;;  %v12378_v47 = vld [vmem:[%s19113_s0] sm:$0x8]  ;;  %v2931_v63 = vshrl.u32 %v14061_v53, 16  ;;  %v14017_v53 = vld [vmem:[%s19113_s0 + $0x10] sm:$0xff] }
  0xdf   : > { %v1029_v20 = vor.u32 %v1028_v6, %v1025_v5  ;;  %v2936_v12 = vrot.slane %v2934_v1, 4 }
  0xe0   : > { %v1124_v7 = vrot.slane %v1122_v56, 2  ;;  %v2933_v11 = vrot.slane %v2931_v63, 3 }
  0xe1   : > { %v1039_v56 = vsel %vm833_vm0, %v1029_v20, %v15010_v46  ;;  %v12149_v46 = vld [vmem:[%s19113_s0] sm:$0x8] }
  0xeb   : > { %12116 = vmatmul.msk.bf16.gmra.mxu1 %vm1226_vm1, %v1012_v21  ;;  %12127 = vmatmul.msk.bf16.gmra.mxu2 %vm1226_vm1, %v1111_v22  ;;  %v1128_v21 = vor.u32 %v1127_v8, %v1124_v7  ;;  %v4205_v22 = vsel %vm2921_vm2, %v4196_v17, %v4204_v19 }
  0xed   : > { %12138 = vmatmul.msk.bf16.gmra.mxu3 %vm1226_vm1, %v1200_v15  ;;  %v926_v15 = vrot.slane %v924_v62, 2  ;;  %v1129_v27 = vsel %vm833_vm0, %v1119_v42, %v1128_v21  ;;  %v1138_v57 = vsel %vm833_vm0, %v1128_v21, %v15039_v18  ;;  %v14015_v18 = vld [vmem:[%s19113_s0] sm:$0xf0]  ;;  %v1942_v21 = vrot.slane %v14016_v10, 3 }
  0xee   : > { %12105 = vmatmul.msk.bf16.gmra.mxu0 %vm1226_vm1, %v913_v26  ;;  %v1030_v26 = vsel %vm833_vm0, %v1020_v41, %v1029_v20  ;;  %v4212_v41 = vrot.slane %v4210_v37, 4  ;;  %v12150_v5 = vor.u32 %v14015_v18, %v12149_v46  ;;  %v1944_v46 = vrot.slane %v14017_v53, 3 }
  0xef   : > { %v930_v23 = vor.u32 %v929_v16, %v926_v15 }
  0xf0   : > { %v4213_v45 = vor.u32 %v4212_v41, %v4209_v40  ;;  %v1941_v20 = vrot.slane %v12150_v5, 3  ;;  %v2940_v40 = vshrl.u32 %v14062_v35, 16  ;;  %v2943_v41 = vshll.u32 %v14062_v35, 16 }
  0xf1   : > { %v931_v30 = vsel %vm833_vm0, %v921_v44, %v930_v23  ;;  %v14373_v44 = vld [vmem:[%s14996_s29 + $0x118] sm:$0xff]  ;;  %v940_v60 = vsel %vm833_vm0, %v930_v23, %v15007_v43  ;;  %v14108_v43 = vld [vmem:[%s19113_s0 + $0x20] sm:$0xff]  ;;  %v2937_v23 = vor.u32 %v2936_v12, %v2933_v11 }
  0xf2   : > { %10306 = vmatpush.bf16.msra.mxu0 %v14373_v44  ;;  %v4216_v3 = vshrl.u32 %v14108_v43, 16  ;;  %v4219_v4 = vshll.u32 %v14108_v43, 16  ;;  %v1943_v31 = vsel %vm1940_vm3, %v1941_v20, %v1942_v21  ;;  %v14109_v44 = vld [vmem:[%s19113_s0 + $0x28] sm:$0xff] }
  0xf4   : > { %v4218_v15 = vrot.slane %v4216_v3, 3  ;;  %v4221_v16 = vrot.slane %v4219_v4, 4  ;;  %v1945_v4 = vsel %vm1940_vm3, %v1942_v21, %v1944_v46 }
  0xf8   : > { %v15201_v48 = vpop.f32.mrf.mxu1 }
  0xfb   : > { %v15205_v51 = vpop.f32.mrf.mxu0  ;;  %12117 = vmatmul.msk.bf16.gmra.mxu1 %vm1226_vm1, %v1021_v49  ;;  %12128 = vmatmul.msk.bf16.gmra.mxu2 %vm1226_vm1, %v1120_v50  ;;  %v14060_v49 = vld [vmem:[%s19113_s0] sm:$0xf0]  ;;  %v4214_v50 = vsel %vm2921_vm2, %v4204_v19, %v4213_v45  ;;  %v4222_v19 = vor.u32 %v4221_v16, %v4218_v15  ;;  %v14110_v16 = vld [vmem:[%s19113_s0 + $0x30] sm:$0xff] }
  0xfc   : > { %v12379_v54 = vor.u32 %v14060_v49, %v12378_v47  ;;  %v4225_v47 = vshrl.u32 %v14109_v44, 16  ;;  %v4228_v49 = vshll.u32 %v14109_v44, 16  ;;  %v4234_v20 = vshrl.u32 %v14110_v16, 16 }
  0xfd   : > { %12785 = vmatmul.msk.bf16.vlgmr.msrb.gmra.mxu3 %vm1226_vm1, %v4205_v22  ;;  %v4237_v21 = vshll.u32 %v14110_v16, 16  ;;  %v14019_v16 = vld [vmem:[%s19113_s0 + $0x20] sm:$0xff] }
  0xfe   : > { %12106 = vmatmul.msk.bf16.gmra.mxu0 %vm1226_vm1, %v922_v52  ;;  %v15223_v0 = vpop.f32.mrf.mxu2  ;;  %v2923_v61 = vshrl.u32 %v12379_v54, 16  ;;  %v2926_v62 = vshll.u32 %v12379_v54, 16  ;;  %v2942_v54 = vrot.slane %v2940_v40, 3 }
  0xff   : > { %19124 = vst [vmem:[#allocation7_spill] sm:$0xff] %v15223_v0  ;;  %v4239_v35 = vrot.slane %v4237_v21, 4 }
 0x100   : > { %v15225_v9 = vpop.f32.mrf.mxu1  ;;  %v15237_v28 = vpop.f32.mrf.mxu3  ;;  %v2925_v6 = vrot.slane %v2923_v61, 3  ;;  %v2928_v7 = vrot.slane %v2926_v62, 4  ;;  %v4230_v61 = vrot.slane %v4228_v49, 4 }
 0x101   : > { %19126 = vst [vmem:[#allocation9_spill] sm:$0xff] %v15237_v28 }
 0x102   : > { %v2929_v22 = vor.u32 %v2928_v7, %v2925_v6  ;;  %v14151_v6 = vld [vmem:[%s19113_s0 + $0x14] sm:$0xff] }
 0x103   : > { %v15227_v14 = vpop.f32.mrf.mxu0  ;;  %v14063_v7 = vld [vmem:[%s19113_s0 + $0x18] sm:$0xff] }
 0x104   : > { %v2938_v32 = vsel %vm2921_vm2, %v2929_v22, %v2937_v23  ;;  %v2949_v12 = vshrl.u32 %v14063_v7, 16  ;;  %v2952_v15 = vshll.u32 %v14063_v7, 16 }
 0x106   : > { %v15231_v24 = vpop.f32.mrf.mxu2 }
 0x107   : > { %19125 = vst [vmem:[#allocation8_spill] sm:$0xff] %v15231_v24 }
 0x108   : > { %v15233_v25 = vpop.f32.mrf.mxu1  ;;  %v15255_v39 = vpop.f32.mrf.mxu3 }
 0x109   : > { %19128 = vst [vmem:[#allocation11_spill] sm:$0xff] %v15255_v39 }
 0x10b   : > { %v15239_v29 = vpop.f32.mrf.mxu0  ;;  %12118 = vmatmul.msk.bf16.gmra.mxu1 %vm1226_vm1, %v1030_v26  ;;  %12129 = vmatmul.msk.bf16.gmra.mxu2 %vm1226_vm1, %v1129_v27  ;;  %v4223_v26 = vsel %vm2921_vm2, %v4213_v45, %v4222_v19 }
 0x10d   : > { %12786 = vmatmul.msk.bf16.gmra.mxu3 %vm1226_vm1, %v4214_v50 }
 0x10e   : > { %12107 = vmatmul.msk.bf16.gmra.mxu0 %vm1226_vm1, %v931_v30  ;;  %v15250_v34 = vpop.f32.mrf.mxu2 }
 0x10f   : > { %19127 = vst [vmem:[#allocation10_spill] sm:$0xff] %v15250_v34 }
 0x110   : > { %v15253_v38 = vpop.f32.mrf.mxu1  ;;  %v15279_v58 = vpop.f32.mrf.mxu3 }
 0x111   : > { %19130 = vst [vmem:[#allocation13_spill] sm:$0xff] %v15279_v58 }
 0x113   : > { %v15257_v42 = vpop.f32.mrf.mxu0 }
 0x116   : > { %v15268_v52 = vpop.f32.mrf.mxu2 }
 0x117   : > { %19129 = vst [vmem:[#allocation12_spill] sm:$0xff] %v15268_v52 }
 0x118   : > { %v15273_v55 = vpop.f32.mrf.mxu1  ;;  %v15304_v13 = vpop.f32.mrf.mxu3 }
 0x119   : > { %19132 = vst [vmem:[#allocation15_spill] sm:$0xff] %v15304_v13 }
 0x11b   : > { %v15281_v59 = vpop.f32.mrf.mxu0  ;;  %12119 = vmatmul.msk.bf16.gmra.mxu1 %vm1226_vm1, %v1039_v56  ;;  %12130 = vmatmul.msk.bf16.gmra.mxu2 %vm1226_vm1, %v1138_v57  ;;  %v2945_v56 = vrot.slane %v2943_v41, 4 }
 0x11d   : > { %12787 = vmatmul.msk.bf16.gmra.mxu3 %vm1226_vm1, %v4223_v26  ;;  %v2946_v18 = vor.u32 %v2945_v56, %v2942_v54  ;;  %v2951_v26 = vrot.slane %v2949_v12, 3 }
 0x11e   : > { %12108 = vmatmul.msk.bf16.gmra.mxu0 %vm1226_vm1, %v940_v60  ;;  %v15297_v2 = vpop.f32.mrf.mxu2  ;;  %v4227_v60 = vrot.slane %v4225_v47, 3 }
 0x11f   : > { %19131 = vst [vmem:[#allocation14_spill] sm:$0xff] %v15297_v2  ;;  %v2947_v5 = vsel %vm2921_vm2, %v2937_v23, %v2946_v18  ;;  %v14018_v23 = vld [vmem:[%s19113_s0 + $0x18] sm:$0xff] }
 0x120   : > { %v15299_v8 = vpop.f32.mrf.mxu1  ;;  %v15322_v36 = vpop.f32.mrf.mxu3  ;;  %v4231_v63 = vor.u32 %v4230_v61, %v4227_v60  ;;  %v1946_v44 = vrot.slane %v14018_v23, 3  ;;  %v14152_v61 = vld [vmem:[%s19113_s0 + $0x1c] sm:$0xff] }
 0x121   : > { %19134 = vst [vmem:[#allocation17_spill] sm:$0xff] %v15322_v36 }
 0x122   : > { %v4232_v1 = vsel %vm2921_vm2, %v4222_v19, %v4231_v63  ;;  %v1947_v56 = vsel %vm1940_vm3, %v1944_v46, %v1946_v44 }
 0x123   : > { %v15306_v17 = vpop.f32.mrf.mxu0 }
 0x126   : > { %v15310_v27 = vpop.f32.mrf.mxu2 }
 0x127   : > { %19133 = vst [vmem:[#allocation16_spill] sm:$0xff] %v15310_v27 }
 0x128   : > { %v15312_v30 = vpop.f32.mrf.mxu1  ;;  %v15339_v57 = vpop.f32.mrf.mxu3 }
 0x129   : > { %19136 = vst [vmem:[#allocation19_spill] sm:$0xff] %v15339_v57 }
 0x12b   : > { %v15324_v37 = vpop.f32.mrf.mxu0  ;;  %12327 = vmatmul.msk.bf16.vlgmr.msrb.gmra.mxu1 %vm1226_vm1, %v1943_v31  ;;  %12556 = vmatmul.msk.bf16.vlgmr.msrb.gmra.mxu2 %vm1226_vm1, %v2938_v32  ;;  %v2954_v31 = vrot.slane %v2952_v15, 4 }
 0x12d   : > { %12788 = vmatmul.msk.bf16.gmra.mxu3 %vm1226_vm1, %v4232_v1  ;;  %v2955_v47 = vor.u32 %v2954_v31, %v2951_v26  ;;  %v14064_v1 = vld [vmem:[%s19113_s0 + $0x20] sm:$0xff] }
 0x12e   : > { %13010 = vmatmul.msk.bf16.vlgmr.msrb.gmra.mxu0 %vm1226_vm1, %v14150_v33  ;;  %v15332_v45 = vpop.f32.mrf.mxu2  ;;  %v4236_v33 = vrot.slane %v4234_v20, 3  ;;  %v2958_v46 = vshrl.u32 %v14064_v1, 16 }
 0x12f   : > { %19135 = vst [vmem:[#allocation18_spill] sm:$0xff] %v15332_v45  ;;  %v2956_v60 = vsel %vm2921_vm2, %v2946_v18, %v2955_v47  ;;  %v2961_v18 = vshll.u32 %v14064_v1, 16 }
 0x130   : > { %v15334_v50 = vpop.f32.mrf.mxu1  ;;  %v15357_v10 = vpop.f32.mrf.mxu3  ;;  %v4240_v41 = vor.u32 %v4239_v35, %v4236_v33  ;;  %v2960_v20 = vrot.slane %v2958_v46, 3 }
 0x131   : > { %19138 = vst [vmem:[#allocation21_spill] sm:$0xff] %v15357_v10  ;;  %v2963_v21 = vrot.slane %v2961_v18, 4 }
 0x132   : > { %v4241_v49 = vsel %vm2921_vm2, %v4231_v63, %v4240_v41 }
 0x133   : > { %v15341_v62 = vpop.f32.mrf.mxu0 }
 0x136   : > { %v15345_v43 = vpop.f32.mrf.mxu2 }
 0x137   : > { %19137 = vst [vmem:[#allocation20_spill] sm:$0xff] %v15345_v43 }
 0x138   : > { %v15347_v3 = vpop.f32.mrf.mxu1  ;;  %v15374_v32 = vpop.f32.mrf.mxu3 }
 0x139   : > { %19140 = vst [vmem:[#allocation23_spill] sm:$0xff] %v15374_v32 }
 0x13b   : > { %v15359_v11 = vpop.f32.mrf.mxu0  ;;  %12328 = vmatmul.msk.bf16.gmra.mxu1 %vm1226_vm1, %v1945_v4  ;;  %12557 = vmatmul.msk.bf16.gmra.mxu2 %vm1226_vm1, %v2947_v5  ;;  %v14111_v5 = vld [vmem:[%s19113_s0 + $0x38] sm:$0xff] }
 0x13c   : > { %v4243_v7 = vshrl.u32 %v14111_v5, 16  ;;  %v4246_v12 = vshll.u32 %v14111_v5, 16  ;;  %v14153_v5 = vld [vmem:[%s19113_s0 + $0x24] sm:$0xff] }
 0x13d   : > { %12789 = vmatmul.msk.bf16.gmra.mxu3 %vm1226_vm1, %v4241_v49  ;;  %v1948_v49 = vrot.slane %v14019_v16, 3  ;;  %v14112_v16 = vld [vmem:[%s19113_s0 + $0x40] sm:$0xff] }
 0x13e   : > { %13011 = vmatmul.msk.bf16.gmra.mxu0 %vm1226_vm1, %v14151_v6  ;;  %v15367_v19 = vpop.f32.mrf.mxu2  ;;  %v4245_v26 = vrot.slane %v4243_v7, 3  ;;  %v4248_v31 = vrot.slane %v4246_v12, 4  ;;  %v14065_v7 = vld [vmem:[%s19113_s0 + $0x28] sm:$0xff] }
 0x13f   : > { %19139 = vst [vmem:[#allocation22_spill] sm:$0xff] %v15367_v19  ;;  %v1949_v46 = vsel %vm1940_vm3, %v1946_v44, %v1948_v49  ;;  %v2967_v44 = vshrl.u32 %v14065_v7, 16 }
 0x140   : > { %v15369_v22 = vpop.f32.mrf.mxu1  ;;  %v15392_v4 = vpop.f32.mrf.mxu3  ;;  %v4249_v35 = vor.u32 %v4248_v31, %v4245_v26  ;;  %v4255_v26 = vshll.u32 %v14112_v16, 16 }
 0x141   : > { %19142 = vst [vmem:[#allocation25_spill] sm:$0xff] %v15392_v4 }
 0x143   : > { %v15376_v40 = vpop.f32.mrf.mxu0 }
 0x146   : > { %v15380_v53 = vpop.f32.mrf.mxu2 }
 0x147   : > { %19141 = vst [vmem:[#allocation24_spill] sm:$0xff] %v15380_v53 }
 0x148   : > { %v15382_v54 = vpop.f32.mrf.mxu1  ;;  %v15409_v23 = vpop.f32.mrf.mxu3 }
 0x149   : > { %19144 = vst [vmem:[#allocation27_spill] sm:$0xff] %v15409_v23 }
 0x14b   : > { %v15394_v63 = vpop.f32.mrf.mxu0  ;;  %12329 = vmatmul.msk.bf16.gmra.mxu1 %vm1226_vm1, %v1947_v56  ;;  %12558 = vmatmul.msk.bf16.gmra.mxu2 %vm1226_vm1, %v2956_v60  ;;  %v2964_v56 = vor.u32 %v2963_v21, %v2960_v20  ;;  %v4250_v60 = vsel %vm2921_vm2, %v4240_v41, %v4249_v35  ;;  %v4252_v21 = vshrl.u32 %v14112_v16, 16 }
 0x14d   : > { %12790 = vmatmul.msk.bf16.gmra.mxu3 %vm1226_vm1, %v4250_v60  ;;  %v2965_v18 = vsel %vm2921_vm2, %v2955_v47, %v2964_v56  ;;  %v2970_v47 = vshll.u32 %v14065_v7, 16  ;;  %v14020_v60 = vld [vmem:[%s19113_s0 + $0x28] sm:$0xff]  ;;  %v4257_v7 = vrot.slane %v4255_v26, 4  ;;  %v14066_v26 = vld [vmem:[%s19113_s0 + $0x30] sm:$0xff] }
 0x14e   : > { %13012 = vmatmul.msk.bf16.gmra.mxu0 %vm1226_vm1, %v14152_v61  ;;  %v15402_v6 = vpop.f32.mrf.mxu2  ;;  %v1950_v32 = vrot.slane %v14020_v60, 3 }
 0x14f   : > { %19143 = vst [vmem:[#allocation26_spill] sm:$0xff] %v15402_v6 }
 0x150   : > { %v15404_v15 = vpop.f32.mrf.mxu1  ;;  %v15427_v12 = vpop.f32.mrf.mxu3 }
 0x151   : > { %19146 = vst [vmem:[#allocation29_spill] sm:$0xff] %v15427_v12 }
 0x153   : > { %v15411_v33 = vpop.f32.mrf.mxu0 }
 0x156   : > { %v15415_v61 = vpop.f32.mrf.mxu2 }
 0x157   : > { %19145 = vst [vmem:[#allocation28_spill] sm:$0xff] %v15415_v61 }
 0x158   : > { %v15417_v1 = vpop.f32.mrf.mxu1  ;;  %v15444_v12 = vpop.f32.mrf.mxu3 }
 0x159   : > { %19148 = vst [vmem:[#allocation31_spill] sm:$0xff] %v15444_v12 }
 0x15b   : > { %v15429_v41 = vpop.f32.mrf.mxu0  ;;  %12330 = vmatmul.msk.bf16.gmra.mxu1 %vm1226_vm1, %v1949_v46  ;;  %12559 = vmatmul.msk.bf16.gmra.mxu2 %vm1226_vm1, %v2965_v18  ;;  %v2969_v46 = vrot.slane %v2967_v44, 3  ;;  %v2972_v18 = vrot.slane %v2970_v47, 4  ;;  %v1951_v44 = vsel %vm1940_vm3, %v1948_v49, %v1950_v32  ;;  %v2979_v49 = vshll.u32 %v14066_v26, 16 }
 0x15d   : > { %v2973_v10 = vor.u32 %v2972_v18, %v2969_v46 }
 0x15e   : > { %13013 = vmatmul.msk.bf16.gmra.mxu0 %vm1226_vm1, %v14153_v5  ;;  %v15437_v20 = vpop.f32.mrf.mxu2  ;;  %v4254_v5 = vrot.slane %v4252_v21, 3  ;;  %v14154_v21 = vld [vmem:[%s19113_s0 + $0x2c] sm:$0xff] }
 0x15f   : > { %19147 = vst [vmem:[#allocation30_spill] sm:$0xff] %v15437_v20  ;;  %v2974_v47 = vsel %vm2921_vm2, %v2964_v56, %v2973_v10  ;;  %v14113_v56 = vld [vmem:[%s19113_s0 + $0x48] sm:$0xff] }
 0x160   : > { %v15439_v31 = vpop.f32.mrf.mxu1  ;;  %v4258_v4 = vor.u32 %v4257_v7, %v4254_v5  ;;  %v15462_v60 = vpop.f32.mrf.mxu3  ;;  %v4261_v18 = vshrl.u32 %v14113_v56, 16  ;;  %v4264_v5 = vshll.u32 %v14113_v56, 16 }
 0x161   : > { %19151 = vst [vmem:[#allocation34_spill] sm:$0xff] %v15462_v60 }
 0x162   : > { %v4259_v57 = vsel %vm2921_vm2, %v4249_v35, %v4258_v4 }
 0x163   : > { %v15446_v23 = vpop.f32.mrf.mxu0  ;;  %12791 = vmatmul.msk.bf16.gmra.mxu3 %vm1226_vm1, %v4259_v57  ;;  %v2976_v57 = vshrl.u32 %v14066_v26, 16  ;;  %v4266_v26 = vrot.slane %v4264_v5, 4 }
 0x165   : > { %v2978_v60 = vrot.slane %v2976_v57, 3 }
 0x166   : > { %v15450_v16 = vpop.f32.mrf.mxu2 }
 0x167   : > { %19149 = vst [vmem:[#allocation32_spill] sm:$0xff] %v15450_v16 }
 0x168   : > { %v15452_v36 = vpop.f32.mrf.mxu1  ;;  %v15479_v12 = vpop.f32.mrf.mxu3 }
 0x169   : > { %19150 = vst [vmem:[#allocation33_spill] sm:$0xff] %v15452_v36  ;;  %v14237_v36 = vld [vmem:[%s14996_s29 + $0xb0] sm:$0xff] }
 0x16a   : > { %19154 = vst [vmem:[#allocation37_spill] sm:$0xff] %v15479_v12  ;;  %6832 = vmatpush.bf16.msra.mxu1 %v14237_v36  ;;  %v14071_v36 = vld [vmem:[%s19113_s0 + $0x58] sm:$0xff] }
 0x16b   : > { %v15464_v35 = vpop.f32.mrf.mxu0  ;;  %12331 = vmatmul.msk.bf16.gmra.mxu1 %vm1226_vm1, %v1951_v44  ;;  %12560 = vmatmul.msk.bf16.gmra.mxu2 %vm1226_vm1, %v2974_v47  ;;  %v14021_v44 = vld [vmem:[%s19113_s0 + $0x30] sm:$0xff]  ;;  %v2981_v47 = vrot.slane %v2979_v49, 4 }
 0x16c   : > { %v1952_v39 = vrot.slane %v14021_v44, 3 }
 0x16d   : > { %v2982_v28 = vor.u32 %v2981_v47, %v2978_v60  ;;  %v14067_v60 = vld [vmem:[%s19113_s0 + $0x38] sm:$0xff] }
 0x16e   : > { %13014 = vmatmul.msk.bf16.gmra.mxu0 %vm1226_vm1, %v14154_v21  ;;  %v15472_v46 = vpop.f32.mrf.mxu2  ;;  %v4263_v21 = vrot.slane %v4261_v18, 3  ;;  %v1953_v57 = vsel %vm1940_vm3, %v1950_v32, %v1952_v39  ;;  %v14155_v18 = vld [vmem:[%s19113_s0 + $0x34] sm:$0xff]  ;;  %v2985_v32 = vshrl.u32 %v14067_v60, 16 }
 0x16f   : > { %19152 = vst [vmem:[#allocation35_spill] sm:$0xff] %v15472_v46  ;;  %v2983_v49 = vsel %vm2921_vm2, %v2973_v10, %v2982_v28  ;;  %v2988_v10 = vshll.u32 %v14067_v60, 16 }
 0x170   : > { %v15474_v7 = vpop.f32.mrf.mxu1  ;;  %v4267_v58 = vor.u32 %v4266_v26, %v4263_v21  ;;  %v15497_v5 = vpop.f32.mrf.mxu3 }
 0x171   : > { %19153 = vst [vmem:[#allocation36_spill] sm:$0xff] %v15474_v7  ;;  %v14327_v7 = vld [vmem:[%s14996_s29 + $0xf0] sm:$0xff] }
 0x172   : > { %v4268_v46 = vsel %vm2921_vm2, %v4258_v4, %v4267_v58  ;;  %19157 = vst [vmem:[#allocation40_spill] sm:$0xff] %v15497_v5  ;;  %v2987_v5 = vrot.slane %v2985_v32, 3  ;;  %9039 = vmatpush.bf16.msra.mxu3 %v14327_v7 }
 0x173   : > { %v15481_v13 = vpop.f32.mrf.mxu0  ;;  %12792 = vmatmul.msk.bf16.gmra.mxu3 %vm1226_vm1, %v4268_v46  ;;  %v14114_v46 = vld [vmem:[%s19113_s0 + $0x50] sm:$0xff] }
 0x174   : > { %v4270_v47 = vshrl.u32 %v14114_v46, 16  ;;  %v4273_v21 = vshll.u32 %v14114_v46, 16 }
 0x176   : > { %v15485_v56 = vpop.f32.mrf.mxu2 }
 0x177   : > { %19155 = vst [vmem:[#allocation38_spill] sm:$0xff] %v15485_v56  ;;  %v4275_v56 = vrot.slane %v4273_v21, 4 }
 0x178   : > { %v15487_v16 = vpop.f32.mrf.mxu1  ;;  %v1561_v12 = vpop.f32.mrf.mxu3 }
 0x179   : > { %19156 = vst [vmem:[#allocation39_spill] sm:$0xff] %v15487_v16  ;;  %v14156_v12 = vld [vmem:[%s19113_s0 + $0x3c] sm:$0xff] }
 0x17b   : > { %v15499_v4 = vpop.f32.mrf.mxu0  ;;  %12332 = vmatmul.msk.bf16.gmra.mxu1 %vm1226_vm1, %v1953_v57  ;;  %12561 = vmatmul.msk.bf16.gmra.mxu2 %vm1226_vm1, %v2983_v49  ;;  %v14022_v57 = vld [vmem:[%s19113_s0 + $0x38] sm:$0xff]  ;;  %v2990_v49 = vrot.slane %v2988_v10, 4 }
 0x17c   : > { %v1954_v61 = vrot.slane %v14022_v57, 3  ;;  %v14115_v10 = vld [vmem:[%s19113_s0 + $0x58] sm:$0xff] }
 0x17d   : > { %v2991_v6 = vor.u32 %v2990_v49, %v2987_v5  ;;  %v4282_v21 = vshll.u32 %v14115_v10, 16 }
 0x17e   : > { %13015 = vmatmul.msk.bf16.gmra.mxu0 %vm1226_vm1, %v14155_v18  ;;  %v15507_v44 = vpop.f32.mrf.mxu2  ;;  %v4272_v18 = vrot.slane %v4270_v47, 3  ;;  %v1955_v19 = vsel %vm1940_vm3, %v1952_v39, %v1954_v61  ;;  %v4279_v47 = vshrl.u32 %v14115_v10, 16 }
 0x17f   : > { %19158 = vst [vmem:[#allocation41_spill] sm:$0xff] %v15507_v44  ;;  %v2992_v32 = vsel %vm2921_vm2, %v2982_v28, %v2991_v6 }
 0x180   : > { %v15509_v26 = vpop.f32.mrf.mxu1  ;;  %v4276_v20 = vor.u32 %v4275_v56, %v4272_v18  ;;  %v14068_v56 = vld [vmem:[%s19113_s0 + $0x40] sm:$0xff]  ;;  %v15530_v5 = vpop.f32.mrf.mxu3 }
 0x181   : > { %19159 = vst [vmem:[#allocation42_spill] sm:$0xff] %v15509_v26  ;;  %v2994_v39 = vshrl.u32 %v14068_v56, 16  ;;  %v2997_v28 = vshll.u32 %v14068_v56, 16  ;;  %v4284_v56 = vrot.slane %v4282_v21, 4  ;;  %v14069_v21 = vld [vmem:[%s19113_s0 + $0x48] sm:$0xff] }
 0x182   : > { %v4277_v44 = vsel %vm2921_vm2, %v4267_v58, %v4276_v20 }
 0x183   : > { %v15514_v60 = vpop.f32.mrf.mxu0  ;;  %12793 = vmatmul.msk.bf16.gmra.mxu3 %vm1226_vm1, %v4277_v44  ;;  %v2996_v49 = vrot.slane %v2994_v39, 3  ;;  %v2999_v18 = vrot.slane %v2997_v28, 4 }
 0x185   : > { %v3000_v27 = vor.u32 %v2999_v18, %v2996_v49 }
 0x186   : > { %v15518_v46 = vpop.f32.mrf.mxu2 }
 0x187   : > { %19160 = vst [vmem:[#allocation43_spill] sm:$0xff] %v15518_v46  ;;  %v3001_v28 = vsel %vm2921_vm2, %v2991_v6, %v3000_v27  ;;  %v3006_v6 = vshll.u32 %v14069_v21, 16 }
 0x188   : > { %v15520_v53 = vpop.f32.mrf.mxu1 }
 0x189   : > { %19161 = vst [vmem:[#allocation44_spill] sm:$0xff] %v15520_v53 }
 0x18b   : > { %v15532_v58 = vpop.f32.mrf.mxu0  ;;  %12333 = vmatmul.msk.bf16.gmra.mxu1 %vm1226_vm1, %v1955_v19  ;;  %12562 = vmatmul.msk.bf16.gmra.mxu2 %vm1226_vm1, %v2992_v32  ;;  %v14023_v19 = vld [vmem:[%s19113_s0 + $0x40] sm:$0xff]  ;;  %v15547_v32 = vpop.f32.mrf.mxu3 }
 0x18c   : > { %v1956_v45 = vrot.slane %v14023_v19, 3 }
 0x18e   : > { %13016 = vmatmul.msk.bf16.gmra.mxu0 %vm1226_vm1, %v14156_v12  ;;  %v15540_v44 = vpop.f32.mrf.mxu2  ;;  %v4281_v12 = vrot.slane %v4279_v47, 3  ;;  %v1957_v39 = vsel %vm1940_vm3, %v1954_v61, %v1956_v45  ;;  %v14157_v47 = vld [vmem:[%s19113_s0 + $0x44] sm:$0xff]  ;;  %v3003_v61 = vshrl.u32 %v14069_v21, 16 }
 0x18f   : > { %19162 = vst [vmem:[#allocation45_spill] sm:$0xff] %v15540_v44 }
 0x190   : > { %v15542_v57 = vpop.f32.mrf.mxu1  ;;  %v4285_v43 = vor.u32 %v4284_v56, %v4281_v12 }
 0x191   : > { %19163 = vst [vmem:[#allocation46_spill] sm:$0xff] %v15542_v57 }
 0x192   : > { %v4286_v44 = vsel %vm2921_vm2, %v4276_v20, %v4285_v43 }
 0x193   : > { %v15549_v46 = vpop.f32.mrf.mxu0  ;;  %12794 = vmatmul.msk.bf16.gmra.mxu3 %vm1226_vm1, %v4286_v44  ;;  %v15565_v19 = vpop.f32.mrf.mxu3  ;;  %v14116_v44 = vld [vmem:[%s19113_s0 + $0x60] sm:$0xff] }
 0x194   : > { %v4288_v18 = vshrl.u32 %v14116_v44, 16  ;;  %v4291_v12 = vshll.u32 %v14116_v44, 16 }
 0x196   : > { %v15553_v10 = vpop.f32.mrf.mxu2  ;;  %v4293_v21 = vrot.slane %v4291_v12, 4 }
 0x197   : > { %19164 = vst [vmem:[#allocation47_spill] sm:$0xff] %v15553_v10  ;;  %v3005_v10 = vrot.slane %v3003_v61, 3 }
 0x198   : > { %v15555_v2 = vpop.f32.mrf.mxu1 }
 0x199   : > { %19165 = vst [vmem:[#allocation48_spill] sm:$0xff] %v15555_v2 }
 0x19b   : > { %v15567_v20 = vpop.f32.mrf.mxu0  ;;  %12334 = vmatmul.msk.bf16.gmra.mxu1 %vm1226_vm1, %v1957_v39  ;;  %12563 = vmatmul.msk.bf16.gmra.mxu2 %vm1226_vm1, %v3001_v28  ;;  %v14024_v39 = vld [vmem:[%s19113_s0 + $0x48] sm:$0xff]  ;;  %v3008_v28 = vrot.slane %v3006_v6, 4  ;;  %v15582_v52 = vpop.f32.mrf.mxu3 }
 0x19c   : > { %v1958_v0 = vrot.slane %v14024_v39, 3  ;;  %v14158_v6 = vld [vmem:[%s19113_s0 + $0x4c] sm:$0xff] }
 0x19d   : > { %v3009_v2 = vor.u32 %v3008_v28, %v3005_v10 }
 0x19e   : > { %13017 = vmatmul.msk.bf16.gmra.mxu0 %vm1226_vm1, %v14157_v47  ;;  %v15575_v49 = vpop.f32.mrf.mxu2  ;;  %v4290_v47 = vrot.slane %v4288_v18, 3  ;;  %v1959_v57 = vsel %vm1940_vm3, %v1956_v45, %v1958_v0  ;;  %v14070_v18 = vld [vmem:[%s19113_s0 + $0x50] sm:$0xff] }
 0x19f   : > { %19166 = vst [vmem:[#allocation49_spill] sm:$0xff] %v15575_v49  ;;  %v3010_v61 = vsel %vm2921_vm2, %v3000_v27, %v3009_v2  ;;  %v3012_v45 = vshrl.u32 %v14070_v18, 16  ;;  %v14117_v27 = vld [vmem:[%s19113_s0 + $0x68] sm:$0xff] }
 0x1a0   : > { %v15577_v56 = vpop.f32.mrf.mxu1  ;;  %v4294_v24 = vor.u32 %v4293_v21, %v4290_v47  ;;  %v4297_v28 = vshrl.u32 %v14117_v27, 16  ;;  %v4300_v47 = vshll.u32 %v14117_v27, 16 }
 0x1a1   : > { %19167 = vst [vmem:[#allocation50_spill] sm:$0xff] %v15577_v56 }
 0x1a2   : > { %v4295_v49 = vsel %vm2921_vm2, %v4285_v43, %v4294_v24  ;;  %v4299_v53 = vrot.slane %v4297_v28, 3  ;;  %v4302_v26 = vrot.slane %v4300_v47, 4 }
 0x1a3   : > { %v15584_v34 = vpop.f32.mrf.mxu0  ;;  %12795 = vmatmul.msk.bf16.gmra.mxu3 %vm1226_vm1, %v4295_v49  ;;  %v15598_v10 = vpop.f32.mrf.mxu3  ;;  %v3015_v49 = vshll.u32 %v14070_v18, 16 }
 0x1a4   : > { %v4303_v27 = vor.u32 %v4302_v26, %v4299_v53 }
 0x1a5   : > { %v3017_v18 = vrot.slane %v3015_v49, 4 }
 0x1a6   : > { %v15588_v44 = vpop.f32.mrf.mxu2  ;;  %v4304_v49 = vsel %vm2921_vm2, %v4294_v24, %v4303_v27 }
 0x1a7   : > { %19168 = vst [vmem:[#allocation51_spill] sm:$0xff] %v15588_v44 }
 0x1a8   : > { %v2178_v56 = vpop.f32.mrf.mxu1 }
 0x1a9   : > { %v2463_v12 = vadd.f32 %v2178_v56, %v15205_v51  ;;  %v14282_v56 = vld [vmem:[%s14996_s29 + $0xd0] sm:$0xff] }
 0x1aa   : > { %8058 = vmatpush.bf16.msra.mxu2 %v14282_v56 }
 0x1ab   : > { %v5609_v43 = vpop.f32.mrf.mxu0  ;;  %12335 = vmatmul.msk.bf16.gmra.mxu1 %vm1226_vm1, %v1959_v57  ;;  %12564 = vmatmul.msk.bf16.gmra.mxu2 %vm1226_vm1, %v3010_v61  ;;  %v15610_v61 = vld [vmem:[%s19113_s0 + $0x50] sm:$0xff]  ;;  %v15612_v44 = vpop.f32.mrf.mxu3 }
 0x1ae   : > { %13018 = vmatmul.msk.bf16.gmra.mxu0 %vm1226_vm1, %v14158_v6  ;;  %v3446_v39 = vpop.f32.mrf.mxu2  ;;  %v3014_v6 = vrot.slane %v3012_v45, 3 }
 0x1af   : > { %v3731_v21 = vadd.f32 %v3446_v39, %v2463_v12  ;;  %v1960_v39 = vrot.slane %v15610_v61, 3  ;;  %v14118_v61 = vld [vmem:[%s19113_s0 + $0x70] sm:$0xff] }
 0x1b0   : > { %v2180_v57 = vpop.f32.mrf.mxu1  ;;  %v3018_v45 = vor.u32 %v3017_v18, %v3014_v6  ;;  %v4306_v18 = vshrl.u32 %v14118_v61, 16  ;;  %v4309_v56 = vshll.u32 %v14118_v61, 16 }
 0x1b1   : > { %v4998_v16 = vadd.f32 %v15530_v5, %v3731_v21  ;;  %v2464_v28 = vadd.f32 %v2180_v57, %v15227_v14  ;;  %v1961_v53 = vsel %vm1940_vm3, %v1958_v0, %v1960_v39  ;;  %v3024_v57 = vshll.u32 %v14071_v36, 16 }
 0x1b2   : > { %v3019_v7 = vsel %vm2921_vm2, %v3009_v2, %v3018_v45  ;;  %v3021_v2 = vshrl.u32 %v14071_v36, 16 }
 0x1b3   : > { %v5611_v51 = vpop.f32.mrf.mxu0  ;;  %v15618_v12 = vadd.f32 %v5609_v43, %v4998_v16  ;;  %12796 = vmatmul.msk.bf16.gmra.mxu3 %vm1226_vm1, %v4304_v49  ;;  %v14159_v16 = vld [vmem:[%s19113_s0 + $0x54] sm:$0xff]  ;;  %v15632_v24 = vpop.f32.mrf.mxu3 }
 0x1b4   : > { %v14372_v43 = vld [vmem:[%s14996_s29 + $0x110] sm:$0xff] }
 0x1b5   : > { %10307 = vmatpush.bf16.msra.mxu0 %v14372_v43 }
 0x1b6   : > { %v3448_v5 = vpop.f32.mrf.mxu2 }
 0x1b7   : > { %v3732_v47 = vadd.f32 %v3448_v5, %v2464_v28  ;;  %v3023_v5 = vrot.slane %v3021_v2, 3 }
 0x1b8   : > { %v2183_v21 = vpop.f32.mrf.mxu1 }
 0x1b9   : > { %v4999_v14 = vadd.f32 %v15547_v32, %v3732_v47  ;;  %v2465_v6 = vadd.f32 %v2183_v21, %v15239_v29  ;;  %v3026_v47 = vrot.slane %v3024_v57, 4 }
 0x1bb   : > { %v5614_v26 = vpop.f32.mrf.mxu0  ;;  %12336 = vmatmul.msk.bf16.gmra.mxu1 %vm1226_vm1, %v1961_v53  ;;  %12565 = vmatmul.msk.bf16.gmra.mxu2 %vm1226_vm1, %v3019_v7  ;;  %v15638_v0 = vadd.f32 %v5611_v51, %v4999_v14  ;;  %v14026_v51 = vld [vmem:[%s19113_s0 + $0x58] sm:$0xff]  ;;  %v15648_v53 = vpop.f32.mrf.mxu3  ;;  %v4308_v7 = vrot.slane %v4306_v18, 3  ;;  %v3027_v61 = vor.u32 %v3026_v47, %v3023_v5 }
 0x1bc   : > { %v1962_v43 = vrot.slane %v14026_v51, 3  ;;  %v14119_v51 = vld [vmem:[%s19113_s0 + $0x78] sm:$0xff] }
 0x1bd   : > { %19169 = vst [vmem:[#allocation52_spill] sm:$0xff] %v15638_v0 }
 0x1be   : > { %13019 = vmatmul.msk.bf16.gmra.mxu0 %vm1226_vm1, %v14159_v16  ;;  %v3451_v32 = vpop.f32.mrf.mxu2  ;;  %v4311_v16 = vrot.slane %v4309_v56, 4  ;;  %v1963_v18 = vsel %vm1940_vm3, %v1960_v39, %v1962_v43  ;;  %v3028_v56 = vsel %vm2921_vm2, %v3018_v45, %v3027_v61 }
 0x1bf   : > { %v3733_v49 = vadd.f32 %v3451_v32, %v2465_v6 }
 0x1c0   : > { %v2185_v28 = vpop.f32.mrf.mxu1  ;;  %v4312_v29 = vor.u32 %v4311_v16, %v4308_v7  ;;  %v4315_v7 = vshrl.u32 %v14119_v51, 16 }
 0x1c1   : > { %v5000_v36 = vadd.f32 %v15565_v19, %v3733_v49  ;;  %v2466_v32 = vadd.f32 %v2185_v28, %v15257_v42  ;;  %v14160_v19 = vld [vmem:[%s19113_s0 + $0x5c] sm:$0xff] }
 0x1c2   : > { %v4313_v6 = vsel %vm2921_vm2, %v4303_v27, %v4312_v29 }
 0x1c3   : > { %v5616_v14 = vpop.f32.mrf.mxu0  ;;  %v15651_v21 = vadd.f32 %v5614_v26, %v5000_v36  ;;  %12797 = vmatmul.msk.bf16.gmra.mxu3 %vm1226_vm1, %v4313_v6  ;;  %v14072_v26 = vld [vmem:[%s19113_s0 + $0x60] sm:$0xff]  ;;  %v15664_v27 = vpop.f32.mrf.mxu3 }
 0x1c4   : > { %v3030_v45 = vshrl.u32 %v14072_v26, 16  ;;  %v3033_v28 = vshll.u32 %v14072_v26, 16 }
 0x1c6   : > { %v3453_v2 = vpop.f32.mrf.mxu2  ;;  %v3032_v6 = vrot.slane %v3030_v45, 3 }
 0x1c7   : > { %v3734_v57 = vadd.f32 %v3453_v2, %v2466_v32  ;;  %v3035_v32 = vrot.slane %v3033_v28, 4 }
 0x1c8   : > { %v2188_v0 = vpop.f32.mrf.mxu1 }
 0x1c9   : > { %v5001_v42 = vadd.f32 %v15582_v52, %v3734_v57  ;;  %v2467_v5 = vadd.f32 %v2188_v0, %v15281_v59  ;;  %v4318_v52 = vshll.u32 %v14119_v51, 16  ;;  %v4317_v57 = vrot.slane %v4315_v7, 3 }
 0x1cb   : > { %v5619_v49 = vpop.f32.mrf.mxu0  ;;  %12337 = vmatmul.msk.bf16.gmra.mxu1 %vm1226_vm1, %v1963_v18  ;;  %12566 = vmatmul.msk.bf16.gmra.mxu2 %vm1226_vm1, %v3028_v56  ;;  %v15669_v39 = vadd.f32 %v5616_v14, %v5001_v42  ;;  %v14027_v14 = vld [vmem:[%s19113_s0 + $0x60] sm:$0xff]  ;;  %v15679_v2 = vpop.f32.mrf.mxu3  ;;  %v4320_v18 = vrot.slane %v4318_v52, 4  ;;  %v3036_v42 = vor.u32 %v3035_v32, %v3032_v6 }
 0x1cc   : > { %v1964_v0 = vrot.slane %v14027_v14, 3  ;;  %v14120_v14 = vld [vmem:[%s19113_s0 + $0x80] sm:$0xff] }
 0x1cd   : > { %v4321_v26 = vor.u32 %v4320_v18, %v4317_v57  ;;  %v3037_v52 = vsel %vm2921_vm2, %v3027_v61, %v3036_v42  ;;  %v4324_v57 = vshrl.u32 %v14120_v14, 16 }
 0x1ce   : > { %13020 = vmatmul.msk.bf16.gmra.mxu0 %vm1226_vm1, %v14160_v19  ;;  %v3456_v47 = vpop.f32.mrf.mxu2  ;;  %v1965_v7 = vsel %vm1940_vm3, %v1962_v43, %v1964_v0 }
 0x1cf   : > { %v3735_v16 = vadd.f32 %v3456_v47, %v2467_v5  ;;  %v4322_v51 = vsel %vm2921_vm2, %v4312_v29, %v4321_v26 }
 0x1d0   : > { %v2190_v36 = vpop.f32.mrf.mxu1 }
 0x1d1   : > { %v5002_v56 = vadd.f32 %v15598_v10, %v3735_v16  ;;  %v2468_v5 = vadd.f32 %v2190_v36, %v15306_v17  ;;  %v14161_v10 = vld [vmem:[%s19113_s0 + $0x64] sm:$0xff] }
 0x1d3   : > { %v5621_v19 = vpop.f32.mrf.mxu0  ;;  %v15682_v59 = vadd.f32 %v5619_v49, %v5002_v56  ;;  %12798 = vmatmul.msk.bf16.gmra.mxu3 %vm1226_vm1, %v4322_v51  ;;  %v14073_v49 = vld [vmem:[%s19113_s0 + $0x68] sm:$0xff]  ;;  %v15695_v29 = vpop.f32.mrf.mxu3 }
 0x1d4   : > { %v3039_v61 = vshrl.u32 %v14073_v49, 16  ;;  %v3042_v36 = vshll.u32 %v14073_v49, 16 }
 0x1d6   : > { %v3458_v45 = vpop.f32.mrf.mxu2  ;;  %v3041_v51 = vrot.slane %v3039_v61, 3 }
 0x1d7   : > { %v3736_v28 = vadd.f32 %v3458_v45, %v2468_v5  ;;  %v3044_v5 = vrot.slane %v3042_v36, 4 }
 0x1d8   : > { %v2193_v47 = vpop.f32.mrf.mxu1 }
 0x1d9   : > { %v5003_v17 = vadd.f32 %v15612_v44, %v3736_v28  ;;  %v2469_v6 = vadd.f32 %v2193_v47, %v15324_v37  ;;  %v4327_v44 = vshll.u32 %v14120_v14, 16  ;;  %v4326_v28 = vrot.slane %v4324_v57, 3 }
 0x1db   : > { %v5624_v16 = vpop.f32.mrf.mxu0  ;;  %12338 = vmatmul.msk.bf16.gmra.mxu1 %vm1226_vm1, %v1965_v7  ;;  %12567 = vmatmul.msk.bf16.gmra.mxu2 %vm1226_vm1, %v3037_v52  ;;  %v15700_v43 = vadd.f32 %v5621_v19, %v5003_v17  ;;  %v14028_v19 = vld [vmem:[%s19113_s0 + $0x68] sm:$0xff]  ;;  %v15710_v45 = vpop.f32.mrf.mxu3  ;;  %v4329_v7 = vrot.slane %v4327_v44, 4  ;;  %v3045_v17 = vor.u32 %v3044_v5, %v3041_v51 }
 0x1dc   : > { %v1966_v47 = vrot.slane %v14028_v19, 3  ;;  %v14121_v19 = vld [vmem:[%s19113_s0 + $0x88] sm:$0xff] }
 0x1dd   : > { %v4330_v49 = vor.u32 %v4329_v7, %v4326_v28  ;;  %v3046_v44 = vsel %vm2921_vm2, %v3036_v42, %v3045_v17  ;;  %v4333_v28 = vshrl.u32 %v14121_v19, 16 }
 0x1de   : > { %13021 = vmatmul.msk.bf16.gmra.mxu0 %vm1226_vm1, %v14161_v10  ;;  %v3461_v32 = vpop.f32.mrf.mxu2  ;;  %v1967_v57 = vsel %vm1940_vm3, %v1964_v0, %v1966_v47 }
 0x1df   : > { %v3737_v18 = vadd.f32 %v3461_v32, %v2469_v6  ;;  %v4331_v14 = vsel %vm2921_vm2, %v4321_v26, %v4330_v49 }
 0x1e0   : > { %v2195_v56 = vpop.f32.mrf.mxu1 }
 0x1e1   : > { %v5004_v52 = vadd.f32 %v15632_v24, %v3737_v18  ;;  %v2470_v6 = vadd.f32 %v2195_v56, %v15341_v62  ;;  %v14162_v24 = vld [vmem:[%s19113_s0 + $0x6c] sm:$0xff] }
 0x1e3   : > { %v5626_v10 = vpop.f32.mrf.mxu0  ;;  %v15713_v37 = vadd.f32 %v5624_v16, %v5004_v52  ;;  %12799 = vmatmul.msk.bf16.gmra.mxu3 %vm1226_vm1, %v4331_v14  ;;  %v14074_v16 = vld [vmem:[%s19113_s0 + $0x70] sm:$0xff] }
 0x1e4   : > { %v3048_v42 = vshrl.u32 %v14074_v16, 16  ;;  %v3051_v56 = vshll.u32 %v14074_v16, 16 }
 0x1e6   : > { %v3463_v61 = vpop.f32.mrf.mxu2  ;;  %v15726_v26 = vpop.f32.mrf.mxu3  ;;  %v3050_v14 = vrot.slane %v3048_v42, 3 }
 0x1e7   : > { %v3738_v36 = vadd.f32 %v3463_v61, %v2470_v6  ;;  %v3053_v6 = vrot.slane %v3051_v56, 4 }
 0x1e8   : > { %v2198_v32 = vpop.f32.mrf.mxu1 }
 0x1e9   : > { %v5005_v62 = vadd.f32 %v15648_v53, %v3738_v36  ;;  %v2471_v51 = vadd.f32 %v2198_v32, %v15359_v11  ;;  %v4336_v53 = vshll.u32 %v14121_v19, 16  ;;  %v4335_v36 = vrot.slane %v4333_v28, 3 }
 0x1eb   : > { %v5629_v18 = vpop.f32.mrf.mxu0  ;;  %12339 = vmatmul.msk.bf16.gmra.mxu1 %vm1226_vm1, %v1967_v57  ;;  %12568 = vmatmul.msk.bf16.gmra.mxu2 %vm1226_vm1, %v3046_v44  ;;  %v15731_v0 = vadd.f32 %v5626_v10, %v5005_v62  ;;  %v14029_v10 = vld [vmem:[%s19113_s0 + $0x70] sm:$0xff]  ;;  %v4338_v57 = vrot.slane %v4336_v53, 4  ;;  %v3054_v62 = vor.u32 %v3053_v6, %v3050_v14 }
 0x1ec   : > { %v1968_v32 = vrot.slane %v14029_v10, 3  ;;  %v14122_v10 = vld [vmem:[%s19113_s0 + $0x90] sm:$0xff] }
 0x1ed   : > { %v4339_v16 = vor.u32 %v4338_v57, %v4335_v36  ;;  %v3055_v53 = vsel %vm2921_vm2, %v3045_v17, %v3054_v62  ;;  %v4342_v36 = vshrl.u32 %v14122_v10, 16 }
 0x1ee   : > { %13022 = vmatmul.msk.bf16.gmra.mxu0 %vm1226_vm1, %v14162_v24  ;;  %v3466_v5 = vpop.f32.mrf.mxu2  ;;  %v15741_v61 = vpop.f32.mrf.mxu3  ;;  %v1969_v28 = vsel %vm1940_vm3, %v1966_v47, %v1968_v32 }
 0x1ef   : > { %v3739_v7 = vadd.f32 %v3466_v5, %v2471_v51  ;;  %v4340_v19 = vsel %vm2921_vm2, %v4330_v49, %v4339_v16 }
 0x1f0   : > { %v2200_v52 = vpop.f32.mrf.mxu1 }
 0x1f1   : > { %v5006_v44 = vadd.f32 %v15664_v27, %v3739_v7  ;;  %v2472_v51 = vadd.f32 %v2200_v52, %v15376_v40  ;;  %v14163_v27 = vld [vmem:[%s19113_s0 + $0x74] sm:$0xff] }
 0x1f3   : > { %v5631_v24 = vpop.f32.mrf.mxu0  ;;  %v15744_v11 = vadd.f32 %v5629_v18, %v5006_v44  ;;  %12800 = vmatmul.msk.bf16.gmra.mxu3 %vm1226_vm1, %v4340_v19  ;;  %v14075_v18 = vld [vmem:[%s19113_s0 + $0x78] sm:$0xff] }
 0x1f4   : > { %v3057_v17 = vshrl.u32 %v14075_v18, 16  ;;  %v3060_v52 = vshll.u32 %v14075_v18, 16 }
 0x1f6   : > { %v3468_v42 = vpop.f32.mrf.mxu2  ;;  %v15757_v49 = vpop.f32.mrf.mxu3  ;;  %v3059_v19 = vrot.slane %v3057_v17, 3 }
 0x1f7   : > { %v3740_v56 = vadd.f32 %v3468_v42, %v2472_v51  ;;  %v3062_v51 = vrot.slane %v3060_v52, 4 }
 0x1f8   : > { %v2203_v5 = vpop.f32.mrf.mxu1 }
 0x1f9   : > { %v5007_v40 = vadd.f32 %v15679_v2, %v3740_v56  ;;  %v2473_v14 = vadd.f32 %v2203_v5, %v15394_v63  ;;  %v4345_v2 = vshll.u32 %v14122_v10, 16  ;;  %v4344_v56 = vrot.slane %v4342_v36, 3 }
 0x1fb   : > { %v5634_v7 = vpop.f32.mrf.mxu0  ;;  %12340 = vmatmul.msk.bf16.gmra.mxu1 %vm1226_vm1, %v1969_v28  ;;  %12569 = vmatmul.msk.bf16.gmra.mxu2 %vm1226_vm1, %v3055_v53  ;;  %v15762_v47 = vadd.f32 %v5631_v24, %v5007_v40  ;;  %v14030_v24 = vld [vmem:[%s19113_s0 + $0x78] sm:$0xff]  ;;  %v4347_v28 = vrot.slane %v4345_v2, 4  ;;  %v3063_v40 = vor.u32 %v3062_v51, %v3059_v19 }
 0x1fc   : > { %v1970_v5 = vrot.slane %v14030_v24, 3  ;;  %v14123_v24 = vld [vmem:[%s19113_s0 + $0x98] sm:$0xff] }
 0x1fd   : > { %v4348_v18 = vor.u32 %v4347_v28, %v4344_v56  ;;  %v3064_v2 = vsel %vm2921_vm2, %v3054_v62, %v3063_v40  ;;  %v4351_v56 = vshrl.u32 %v14123_v24, 16 }
 0x1fe   : > { %13023 = vmatmul.msk.bf16.gmra.mxu0 %vm1226_vm1, %v14163_v27  ;;  %v3471_v6 = vpop.f32.mrf.mxu2  ;;  %v15772_v42 = vpop.f32.mrf.mxu3  ;;  %v1971_v36 = vsel %vm1940_vm3, %v1968_v32, %v1970_v5 }
 0x1ff   : > { %v3741_v57 = vadd.f32 %v3471_v6, %v2473_v14  ;;  %v4349_v10 = vsel %vm2921_vm2, %v4339_v16, %v4348_v18 }
 0x200   : > { %v2205_v44 = vpop.f32.mrf.mxu1 }
 0x201   : > { %v5008_v53 = vadd.f32 %v15695_v29, %v3741_v57  ;;  %v2474_v14 = vadd.f32 %v2205_v44, %v15411_v33  ;;  %v14164_v29 = vld [vmem:[%s19113_s0 + $0x7c] sm:$0xff] }
 0x203   : > { %v5636_v27 = vpop.f32.mrf.mxu0  ;;  %v15775_v63 = vadd.f32 %v5634_v7, %v5008_v53  ;;  %12801 = vmatmul.msk.bf16.gmra.mxu3 %vm1226_vm1, %v4349_v10  ;;  %v14076_v7 = vld [vmem:[%s19113_s0 + $0x80] sm:$0xff] }
 0x204   : > { %v3066_v62 = vshrl.u32 %v14076_v7, 16  ;;  %v3069_v44 = vshll.u32 %v14076_v7, 16 }
 0x206   : > { %v3473_v17 = vpop.f32.mrf.mxu2  ;;  %v15788_v16 = vpop.f32.mrf.mxu3  ;;  %v3068_v10 = vrot.slane %v3066_v62, 3 }
 0x207   : > { %v3742_v52 = vadd.f32 %v3473_v17, %v2474_v14  ;;  %v3071_v14 = vrot.slane %v3069_v44, 4 }
 0x208   : > { %v2208_v6 = vpop.f32.mrf.mxu1 }
 0x209   : > { %v5009_v33 = vadd.f32 %v15710_v45, %v3742_v52  ;;  %v2475_v19 = vadd.f32 %v2208_v6, %v15429_v41  ;;  %v4354_v45 = vshll.u32 %v14123_v24, 16  ;;  %v4353_v52 = vrot.slane %v4351_v56, 3 }
 0x20b   : > { %v5639_v57 = vpop.f32.mrf.mxu0  ;;  %12341 = vmatmul.msk.bf16.gmra.mxu1 %vm1226_vm1, %v1971_v36  ;;  %12570 = vmatmul.msk.bf16.gmra.mxu2 %vm1226_vm1, %v3064_v2  ;;  %v15793_v32 = vadd.f32 %v5636_v27, %v5009_v33  ;;  %v14031_v27 = vld [vmem:[%s19113_s0 + $0x80] sm:$0xff]  ;;  %v4356_v36 = vrot.slane %v4354_v45, 4  ;;  %v3072_v33 = vor.u32 %v3071_v14, %v3068_v10 }
 0x20c   : > { %v1972_v6 = vrot.slane %v14031_v27, 3  ;;  %v14124_v27 = vld [vmem:[%s19113_s0 + $0xa0] sm:$0xff] }
 0x20d   : > { %v4357_v7 = vor.u32 %v4356_v36, %v4353_v52  ;;  %v3073_v45 = vsel %vm2921_vm2, %v3063_v40, %v3072_v33  ;;  %v4360_v52 = vshrl.u32 %v14124_v27, 16 }
 0x20e   : > { %13024 = vmatmul.msk.bf16.gmra.mxu0 %vm1226_vm1, %v14164_v29  ;;  %v3476_v51 = vpop.f32.mrf.mxu2  ;;  %v15803_v17 = vpop.f32.mrf.mxu3  ;;  %v1973_v56 = vsel %vm1940_vm3, %v1970_v5, %v1972_v6 }
 0x20f   : > { %v3743_v28 = vadd.f32 %v3476_v51, %v2475_v19  ;;  %v4358_v24 = vsel %vm2921_vm2, %v4348_v18, %v4357_v7 }
 0x210   : > { %v2210_v53 = vpop.f32.mrf.mxu1 }
 0x211   : > { %v5010_v2 = vadd.f32 %v15726_v26, %v3743_v28  ;;  %v2476_v19 = vadd.f32 %v2210_v53, %v15446_v23  ;;  %v14165_v26 = vld [vmem:[%s19113_s0 + $0x84] sm:$0xff] }
 0x213   : > { %v5641_v29 = vpop.f32.mrf.mxu0  ;;  %v15806_v41 = vadd.f32 %v5639_v57, %v5010_v2  ;;  %12802 = vmatmul.msk.bf16.gmra.mxu3 %vm1226_vm1, %v4358_v24  ;;  %v14077_v57 = vld [vmem:[%s19113_s0 + $0x88] sm:$0xff] }
 0x214   : > { %v3075_v40 = vshrl.u32 %v14077_v57, 16  ;;  %v3078_v53 = vshll.u32 %v14077_v57, 16 }
 0x216   : > { %v3478_v62 = vpop.f32.mrf.mxu2  ;;  %v15819_v18 = vpop.f32.mrf.mxu3  ;;  %v3077_v24 = vrot.slane %v3075_v40, 3 }
 0x217   : > { %v3744_v44 = vadd.f32 %v3478_v62, %v2476_v19  ;;  %v3080_v19 = vrot.slane %v3078_v53, 4 }
 0x218   : > { %v2213_v51 = vpop.f32.mrf.mxu1 }
 0x219   : > { %v5011_v23 = vadd.f32 %v15741_v61, %v3744_v44  ;;  %v2477_v10 = vadd.f32 %v2213_v51, %v15464_v35  ;;  %v4363_v61 = vshll.u32 %v14124_v27, 16  ;;  %v4362_v44 = vrot.slane %v4360_v52, 3 }
 0x21b   : > { %v5644_v28 = vpop.f32.mrf.mxu0  ;;  %12342 = vmatmul.msk.bf16.gmra.mxu1 %vm1226_vm1, %v1973_v56  ;;  %12571 = vmatmul.msk.bf16.gmra.mxu2 %vm1226_vm1, %v3073_v45  ;;  %v15824_v5 = vadd.f32 %v5641_v29, %v5011_v23  ;;  %v14032_v29 = vld [vmem:[%s19113_s0 + $0x88] sm:$0xff]  ;;  %v4365_v56 = vrot.slane %v4363_v61, 4  ;;  %v3081_v23 = vor.u32 %v3080_v19, %v3077_v24 }
 0x21c   : > { %v1974_v51 = vrot.slane %v14032_v29, 3  ;;  %v14125_v29 = vld [vmem:[%s19113_s0 + $0xa8] sm:$0xff] }
 0x21d   : > { %v4366_v57 = vor.u32 %v4365_v56, %v4362_v44  ;;  %v3082_v61 = vsel %vm2921_vm2, %v3072_v33, %v3081_v23  ;;  %v4369_v44 = vshrl.u32 %v14125_v29, 16 }
 0x21e   : > { %13025 = vmatmul.msk.bf16.gmra.mxu0 %vm1226_vm1, %v14165_v26  ;;  %v3481_v14 = vpop.f32.mrf.mxu2  ;;  %v15834_v62 = vpop.f32.mrf.mxu3  ;;  %v1975_v52 = vsel %vm1940_vm3, %v1972_v6, %v1974_v51 }
 0x21f   : > { %v3745_v36 = vadd.f32 %v3481_v14, %v2477_v10  ;;  %v4367_v27 = vsel %vm2921_vm2, %v4357_v7, %v4366_v57 }
 0x220   : > { %v2215_v2 = vpop.f32.mrf.mxu1 }
 0x221   : > { %v5012_v45 = vadd.f32 %v15757_v49, %v3745_v36  ;;  %v2478_v10 = vadd.f32 %v2215_v2, %v15481_v13  ;;  %v14166_v49 = vld [vmem:[%s19113_s0 + $0x8c] sm:$0xff] }
 0x223   : > { %v5646_v26 = vpop.f32.mrf.mxu0  ;;  %v15837_v35 = vadd.f32 %v5644_v28, %v5012_v45  ;;  %12803 = vmatmul.msk.bf16.gmra.mxu3 %vm1226_vm1, %v4367_v27  ;;  %v14078_v28 = vld [vmem:[%s19113_s0 + $0x90] sm:$0xff] }
 0x224   : > { %v3084_v33 = vshrl.u32 %v14078_v28, 16  ;;  %v3087_v2 = vshll.u32 %v14078_v28, 16 }
 0x226   : > { %v3483_v40 = vpop.f32.mrf.mxu2  ;;  %v15850_v7 = vpop.f32.mrf.mxu3  ;;  %v3086_v27 = vrot.slane %v3084_v33, 3 }
 0x227   : > { %v3746_v53 = vadd.f32 %v3483_v40, %v2478_v10  ;;  %v3089_v10 = vrot.slane %v3087_v2, 4 }
 0x228   : > { %v2218_v14 = vpop.f32.mrf.mxu1 }
 0x229   : > { %v5013_v13 = vadd.f32 %v15772_v42, %v3746_v53  ;;  %v2479_v24 = vadd.f32 %v2218_v14, %v15499_v4  ;;  %v4372_v42 = vshll.u32 %v14125_v29, 16  ;;  %v4371_v53 = vrot.slane %v4369_v44, 3 }
 0x22b   : > { %v5649_v36 = vpop.f32.mrf.mxu0  ;;  %12343 = vmatmul.msk.bf16.gmra.mxu1 %vm1226_vm1, %v1975_v52  ;;  %12572 = vmatmul.msk.bf16.gmra.mxu2 %vm1226_vm1, %v3082_v61  ;;  %v15855_v6 = vadd.f32 %v5646_v26, %v5013_v13  ;;  %v14033_v26 = vld [vmem:[%s19113_s0 + $0x90] sm:$0xff]  ;;  %v4374_v52 = vrot.slane %v4372_v42, 4  ;;  %v3090_v13 = vor.u32 %v3089_v10, %v3086_v27 }
 0x22c   : > { %v1976_v14 = vrot.slane %v14033_v26, 3  ;;  %v14126_v26 = vld [vmem:[%s19113_s0 + $0xb0] sm:$0xff] }
 0x22d   : > { %v4375_v28 = vor.u32 %v4374_v52, %v4371_v53  ;;  %v3091_v42 = vsel %vm2921_vm2, %v3081_v23, %v3090_v13  ;;  %v4378_v53 = vshrl.u32 %v14126_v26, 16 }
 0x22e   : > { %13026 = vmatmul.msk.bf16.gmra.mxu0 %vm1226_vm1, %v14166_v49  ;;  %v3486_v19 = vpop.f32.mrf.mxu2  ;;  %v15865_v40 = vpop.f32.mrf.mxu3  ;;  %v1977_v44 = vsel %vm1940_vm3, %v1974_v51, %v1976_v14 }
 0x22f   : > { %v3747_v56 = vadd.f32 %v3486_v19, %v2479_v24  ;;  %v4376_v29 = vsel %vm2921_vm2, %v4366_v57, %v4375_v28 }
 0x230   : > { %v2220_v45 = vpop.f32.mrf.mxu1 }
 0x231   : > { %v5014_v61 = vadd.f32 %v15788_v16, %v3747_v56  ;;  %v2480_v24 = vadd.f32 %v2220_v45, %v15514_v60  ;;  %v14167_v16 = vld [vmem:[%s19113_s0 + $0x94] sm:$0xff] }
 0x233   : > { %v5651_v49 = vpop.f32.mrf.mxu0  ;;  %v15868_v4 = vadd.f32 %v5649_v36, %v5014_v61  ;;  %12804 = vmatmul.msk.bf16.gmra.mxu3 %vm1226_vm1, %v4376_v29  ;;  %v14079_v36 = vld [vmem:[%s19113_s0 + $0x98] sm:$0xff] }
 0x234   : > { %v3093_v23 = vshrl.u32 %v14079_v36, 16  ;;  %v3096_v45 = vshll.u32 %v14079_v36, 16 }
 0x236   : > { %v3488_v33 = vpop.f32.mrf.mxu2  ;;  %v15881_v57 = vpop.f32.mrf.mxu3  ;;  %v3095_v29 = vrot.slane %v3093_v23, 3 }
 0x237   : > { %v3748_v2 = vadd.f32 %v3488_v33, %v2480_v24  ;;  %v3098_v24 = vrot.slane %v3096_v45, 4 }
 0x238   : > { %v2223_v19 = vpop.f32.mrf.mxu1 }
 0x239   : > { %v5015_v60 = vadd.f32 %v15803_v17, %v3748_v2  ;;  %v2481_v27 = vadd.f32 %v2223_v19, %v15532_v58  ;;  %v4381_v17 = vshll.u32 %v14126_v26, 16  ;;  %v4380_v2 = vrot.slane %v4378_v53, 3 }
 0x23b   : > { %v5654_v56 = vpop.f32.mrf.mxu0  ;;  %12344 = vmatmul.msk.bf16.gmra.mxu1 %vm1226_vm1, %v1977_v44  ;;  %12573 = vmatmul.msk.bf16.gmra.mxu2 %vm1226_vm1, %v3091_v42  ;;  %v15886_v51 = vadd.f32 %v5651_v49, %v5015_v60  ;;  %v14034_v49 = vld [vmem:[%s19113_s0 + $0x98] sm:$0xff]  ;;  %v4383_v44 = vrot.slane %v4381_v17, 4  ;;  %v3099_v60 = vor.u32 %v3098_v24, %v3095_v29 }
 0x23c   : > { %v1978_v19 = vrot.slane %v14034_v49, 3  ;;  %v14127_v49 = vld [vmem:[%s19113_s0 + $0xb8] sm:$0xff] }
 0x23d   : > { %v4384_v36 = vor.u32 %v4383_v44, %v4380_v2  ;;  %v3100_v17 = vsel %vm2921_vm2, %v3090_v13, %v3099_v60  ;;  %v4387_v24 = vshrl.u32 %v14127_v49, 16  ;;  %v4390_v2 = vshll.u32 %v14127_v49, 16 }
 0x23e   : > { %13027 = vmatmul.msk.bf16.gmra.mxu0 %vm1226_vm1, %v14167_v16  ;;  %v3491_v10 = vpop.f32.mrf.mxu2  ;;  %v15896_v33 = vpop.f32.mrf.mxu3  ;;  %v1979_v53 = vsel %vm1940_vm3, %v1976_v14, %v1978_v19 }
 0x23f   : > { %v3749_v52 = vadd.f32 %v3491_v10, %v2481_v27  ;;  %v4385_v26 = vsel %vm2921_vm2, %v4375_v28, %v4384_v36 }
 0x240   : > { %v2225_v61 = vpop.f32.mrf.mxu1 }
 0x241   : > { %v5016_v42 = vadd.f32 %v15819_v18, %v3749_v52  ;;  %v2482_v27 = vadd.f32 %v2225_v61, %v15549_v46  ;;  %v14168_v18 = vld [vmem:[%s19113_s0 + $0x9c] sm:$0xff] }
 0x243   : > { %v5656_v16 = vpop.f32.mrf.mxu0  ;;  %v15899_v58 = vadd.f32 %v5654_v56, %v5016_v42  ;;  %12805 = vmatmul.msk.bf16.gmra.mxu3 %vm1226_vm1, %v4385_v26  ;;  %v14080_v56 = vld [vmem:[%s19113_s0 + $0xa0] sm:$0xff] }
 0x244   : > { %v3102_v13 = vshrl.u32 %v14080_v56, 16  ;;  %v3105_v61 = vshll.u32 %v14080_v56, 16 }
 0x246   : > { %v3493_v23 = vpop.f32.mrf.mxu2  ;;  %v15912_v28 = vpop.f32.mrf.mxu3  ;;  %v3104_v26 = vrot.slane %v3102_v13, 3 }
 0x247   : > { %v3750_v45 = vadd.f32 %v3493_v23, %v2482_v27  ;;  %v3107_v27 = vrot.slane %v3105_v61, 4 }
 0x248   : > { %v2228_v10 = vpop.f32.mrf.mxu1 }
 0x249   : > { %v5017_v46 = vadd.f32 %v15834_v62, %v3750_v45  ;;  %v2483_v29 = vadd.f32 %v2228_v10, %v15567_v20  ;;  %v4389_v45 = vrot.slane %v4387_v24, 3  ;;  %v14281_v20 = vld [vmem:[%s14996_s29 + $0xc8] sm:$0xff] }
 0x24a   : > { %v14326_v10 = vld [vmem:[%s14996_s29 + $0xe8] sm:$0xff]  ;;  %8059 = vmatpush.bf16.msra.mxu2 %v14281_v20 }
 0x24b   : > { %v5659_v52 = vpop.f32.mrf.mxu0  ;;  %12345 = vmatmul.msk.bf16.gmra.mxu1 %vm1226_vm1, %v1979_v53  ;;  %12574 = vmatmul.msk.bf16.gmra.mxu2 %vm1226_vm1, %v3100_v17  ;;  %v15917_v14 = vadd.f32 %v5656_v16, %v5017_v46  ;;  %v15927_v16 = vld [vmem:[%s19113_s0 + $0xa0] sm:$0xff]  ;;  %v4392_v53 = vrot.slane %v4390_v2, 4 }
 0x24c   : > { %9040 = vmatpush.bf16.msra.mxu3 %v14326_v10  ;;  %v1980_v49 = vrot.slane %v15927_v16, 3 }
 0x24d   : > { %v4393_v56 = vor.u32 %v4392_v53, %v4389_v45  ;;  %v14371_v45 = vld [vmem:[%s14996_s29 + $0x108] sm:$0xff]  ;;  %v14128_v53 = vld [vmem:[%s19113_s0 + $0xc0] sm:$0xff] }
 0x24e   : > { %13028 = vmatmul.msk.bf16.gmra.mxu0 %vm1226_vm1, %v14168_v18  ;;  %v3496_v62 = vpop.f32.mrf.mxu2  ;;  %v15929_v23 = vpop.f32.mrf.mxu3  ;;  %v1981_v2 = vsel %vm1940_vm3, %v1978_v19, %v1980_v49  ;;  %v4396_v20 = vshrl.u32 %v14128_v53, 16  ;;  %v4399_v10 = vshll.u32 %v14128_v53, 16 }
 0x24f   : > { %v3751_v44 = vadd.f32 %v3496_v62, %v2483_v29  ;;  %v3108_v29 = vor.u32 %v3107_v27, %v3104_v26  ;;  %v4394_v13 = vsel %vm2921_vm2, %v4384_v36, %v4393_v56  ;;  %v14081_v36 = vld [vmem:[%s19113_s0 + $0xa8] sm:$0xff]  ;;  %10308 = vmatpush.bf16.msra.mxu0 %v14371_v45 }
 0x250   : > { %v2230_v42 = vpop.f32.mrf.mxu1  ;;  %v14236_v26 = vld [vmem:[%s14996_s29 + $0xa8] sm:$0xff]  ;;  %v3114_v27 = vshll.u32 %v14081_v36, 16 }
 0x251   : > { %v5018_v17 = vadd.f32 %v15850_v7, %v3751_v44  ;;  %v2484_v61 = vadd.f32 %v2230_v42, %v15584_v34  ;;  %v3109_v44 = vsel %vm2921_vm2, %v3099_v60, %v3108_v29  ;;  %v3111_v60 = vshrl.u32 %v14081_v36, 16  ;;  %6833 = vmatpush.bf16.msra.mxu1 %v14236_v26 }
 0x253   : > { %v5661_v18 = vpop.f32.mrf.mxu0  ;;  %v15934_v46 = vadd.f32 %v5659_v52, %v5018_v17  ;;  %12806 = vmatmul.msk.bf16.gmra.mxu3 %vm1226_vm1, %v4394_v13  ;;  %v14169_v52 = vld [vmem:[%s19113_s0 + $0xa4] sm:$0xff] }
 0x256   : > { %v3498_v62 = vpop.f32.mrf.mxu2  ;;  %v15948_v16 = vpop.f32.mrf.mxu3 }
 0x257   : > { %v3752_v7 = vadd.f32 %v3498_v62, %v2484_v61  ;;  %v3113_v62 = vrot.slane %v3111_v60, 3 }
 0x258   : > { %v2233_v24 = vpop.f32.mrf.mxu1 }
 0x259   : > { %v5019_v34 = vadd.f32 %v15865_v40, %v3752_v7  ;;  %v2485_v40 = vadd.f32 %v2233_v24, %v15201_v48  ;;  %v3116_v7 = vrot.slane %v3114_v27, 4 }
 0x25b   : > { %v5664_v42 = vpop.f32.mrf.mxu0  ;;  %12346 = vmatmul.msk.bf16.gmra.mxu1 %vm1226_vm1, %v1981_v2  ;;  %12575 = vmatmul.msk.bf16.gmra.mxu2 %vm1226_vm1, %v3109_v44  ;;  %v15954_v19 = vadd.f32 %v5661_v18, %v5019_v34  ;;  %v14036_v18 = vld [vmem:[%s19113_s0 + $0xa8] sm:$0xff]  ;;  %v4398_v44 = vrot.slane %v4396_v20, 3  ;;  %v3117_v45 = vor.u32 %v3116_v7, %v3113_v62 }
 0x25c   : > { %v1982_v26 = vrot.slane %v14036_v18, 3  ;;  %v14129_v18 = vld [vmem:[%s19113_s0 + $0xc8] sm:$0xff] }
 0x25e   : > { %13029 = vmatmul.msk.bf16.gmra.mxu0 %vm1226_vm1, %v14169_v52  ;;  %v3501_v17 = vpop.f32.mrf.mxu2  ;;  %v15965_v2 = vpop.f32.mrf.mxu3  ;;  %v4401_v52 = vrot.slane %v4399_v10, 4  ;;  %v1983_v20 = vsel %vm1940_vm3, %v1980_v49, %v1982_v26  ;;  %v3118_v10 = vsel %vm2921_vm2, %v3108_v29, %v3117_v45 }
 0x25f   : > { %v3753_v13 = vadd.f32 %v3501_v17, %v2485_v40 }
 0x260   : > { %v2235_v61 = vpop.f32.mrf.mxu1  ;;  %v4402_v48 = vor.u32 %v4401_v52, %v4398_v44  ;;  %v4405_v44 = vshrl.u32 %v14129_v18, 16 }
 0x261   : > { %v5020_v36 = vadd.f32 %v15881_v57, %v3753_v13  ;;  %v2486_v40 = vadd.f32 %v2235_v61, %v15225_v9  ;;  %v14170_v57 = vld [vmem:[%s19113_s0 + $0xac] sm:$0xff] }
 0x262   : > { %v4403_v53 = vsel %vm2921_vm2, %v4393_v56, %v4402_v48 }
 0x263   : > { %v5666_v34 = vpop.f32.mrf.mxu0  ;;  %v15968_v24 = vadd.f32 %v5664_v42, %v5020_v36  ;;  %12807 = vmatmul.msk.bf16.gmra.mxu3 %vm1226_vm1, %v4403_v53  ;;  %v14082_v42 = vld [vmem:[%s19113_s0 + $0xb0] sm:$0xff] }
 0x264   : > { %v3120_v29 = vshrl.u32 %v14082_v42, 16  ;;  %v3123_v61 = vshll.u32 %v14082_v42, 16 }
 0x266   : > { %v3503_v60 = vpop.f32.mrf.mxu2  ;;  %v15981_v56 = vpop.f32.mrf.mxu3  ;;  %v3122_v53 = vrot.slane %v3120_v29, 3 }
 0x267   : > { %v3754_v27 = vadd.f32 %v3503_v60, %v2486_v40  ;;  %v3125_v40 = vrot.slane %v3123_v61, 4 }
 0x268   : > { %v2238_v17 = vpop.f32.mrf.mxu1 }
 0x269   : > { %v5021_v9 = vadd.f32 %v15896_v33, %v3754_v27  ;;  %v2487_v62 = vadd.f32 %v2238_v17, %v15233_v25  ;;  %v4408_v33 = vshll.u32 %v14129_v18, 16  ;;  %v4407_v27 = vrot.slane %v4405_v44, 3 }
 0x26b   : > { %v5669_v13 = vpop.f32.mrf.mxu0  ;;  %12347 = vmatmul.msk.bf16.gmra.mxu1 %vm1226_vm1, %v1983_v20  ;;  %12576 = vmatmul.msk.bf16.gmra.mxu2 %vm1226_vm1, %v3118_v10  ;;  %v15986_v49 = vadd.f32 %v5666_v34, %v5021_v9  ;;  %v14037_v34 = vld [vmem:[%s19113_s0 + $0xb0] sm:$0xff]  ;;  %v4410_v20 = vrot.slane %v4408_v33, 4  ;;  %v3126_v9 = vor.u32 %v3125_v40, %v3122_v53 }
 0x26c   : > { %v1984_v17 = vrot.slane %v14037_v34, 3  ;;  %v14130_v34 = vld [vmem:[%s19113_s0 + $0xd0] sm:$0xff] }
 0x26d   : > { %v4411_v42 = vor.u32 %v4410_v20, %v4407_v27  ;;  %v3127_v33 = vsel %vm2921_vm2, %v3117_v45, %v3126_v9  ;;  %v4414_v27 = vshrl.u32 %v14130_v34, 16 }
 0x26e   : > { %13030 = vmatmul.msk.bf16.gmra.mxu0 %vm1226_vm1, %v14170_v57  ;;  %v3506_v7 = vpop.f32.mrf.mxu2  ;;  %v15996_v60 = vpop.f32.mrf.mxu3  ;;  %v1985_v44 = vsel %vm1940_vm3, %v1982_v26, %v1984_v17 }
 0x26f   : > { %v3755_v52 = vadd.f32 %v3506_v7, %v2487_v62  ;;  %v4412_v18 = vsel %vm2921_vm2, %v4402_v48, %v4411_v42 }
 0x270   : > { %v2240_v36 = vpop.f32.mrf.mxu1 }
 0x271   : > { %v5022_v10 = vadd.f32 %v15912_v28, %v3755_v52  ;;  %v2488_v62 = vadd.f32 %v2240_v36, %v15253_v38  ;;  %v14171_v28 = vld [vmem:[%s19113_s0 + $0xb4] sm:$0xff] }
 0x273   : > { %v5671_v57 = vpop.f32.mrf.mxu0  ;;  %v15999_v25 = vadd.f32 %v5669_v13, %v5022_v10  ;;  %12808 = vmatmul.msk.bf16.gmra.mxu3 %vm1226_vm1, %v4412_v18  ;;  %v14083_v13 = vld [vmem:[%s19113_s0 + $0xb8] sm:$0xff] }
 0x274   : > { %v3129_v45 = vshrl.u32 %v14083_v13, 16  ;;  %v3132_v36 = vshll.u32 %v14083_v13, 16 }
 0x276   : > { %v3508_v29 = vpop.f32.mrf.mxu2  ;;  %v16012_v48 = vpop.f32.mrf.mxu3  ;;  %v3131_v18 = vrot.slane %v3129_v45, 3 }
 0x277   : > { %v3756_v61 = vadd.f32 %v3508_v29, %v2488_v62  ;;  %v3134_v62 = vrot.slane %v3132_v36, 4 }
 0x278   : > { %v2243_v7 = vpop.f32.mrf.mxu1 }
 0x279   : > { %v5023_v38 = vadd.f32 %v15929_v23, %v3756_v61  ;;  %v2489_v53 = vadd.f32 %v2243_v7, %v15273_v55  ;;  %v4417_v23 = vshll.u32 %v14130_v34, 16  ;;  %v4416_v61 = vrot.slane %v4414_v27, 3 }
 0x27b   : > { %v5674_v52 = vpop.f32.mrf.mxu0  ;;  %12348 = vmatmul.msk.bf16.gmra.mxu1 %vm1226_vm1, %v1985_v44  ;;  %12577 = vmatmul.msk.bf16.gmra.mxu2 %vm1226_vm1, %v3127_v33  ;;  %v16017_v26 = vadd.f32 %v5671_v57, %v5023_v38  ;;  %v14038_v57 = vld [vmem:[%s19113_s0 + $0xb8] sm:$0xff]  ;;  %v4419_v44 = vrot.slane %v4417_v23, 4  ;;  %v3135_v38 = vor.u32 %v3134_v62, %v3131_v18 }
 0x27c   : > { %v1986_v7 = vrot.slane %v14038_v57, 3  ;;  %v14131_v57 = vld [vmem:[%s19113_s0 + $0xd8] sm:$0xff] }
 0x27d   : > { %v4420_v13 = vor.u32 %v4419_v44, %v4416_v61  ;;  %v3136_v23 = vsel %vm2921_vm2, %v3126_v9, %v3135_v38  ;;  %v4423_v61 = vshrl.u32 %v14131_v57, 16 }
 0x27e   : > { %13031 = vmatmul.msk.bf16.gmra.mxu0 %vm1226_vm1, %v14171_v28  ;;  %v3511_v40 = vpop.f32.mrf.mxu2  ;;  %v16027_v29 = vpop.f32.mrf.mxu3  ;;  %v1987_v27 = vsel %vm1940_vm3, %v1984_v17, %v1986_v7 }
 0x27f   : > { %v3757_v20 = vadd.f32 %v3511_v40, %v2489_v53  ;;  %v4421_v34 = vsel %vm2921_vm2, %v4411_v42, %v4420_v13 }
 0x280   : > { %v2245_v10 = vpop.f32.mrf.mxu1 }
 0x281   : > { %v5024_v33 = vadd.f32 %v15948_v16, %v3757_v20  ;;  %v2490_v53 = vadd.f32 %v2245_v10, %v15299_v8  ;;  %v14172_v16 = vld [vmem:[%s19113_s0 + $0xbc] sm:$0xff] }
 0x283   : > { %v5676_v28 = vpop.f32.mrf.mxu0  ;;  %v16030_v55 = vadd.f32 %v5674_v52, %v5024_v33  ;;  %12809 = vmatmul.msk.bf16.gmra.mxu3 %vm1226_vm1, %v4421_v34  ;;  %v14084_v52 = vld [vmem:[%s19113_s0 + $0xc0] sm:$0xff] }
 0x284   : > { %v3138_v9 = vshrl.u32 %v14084_v52, 16  ;;  %v3141_v10 = vshll.u32 %v14084_v52, 16 }
 0x286   : > { %v3513_v45 = vpop.f32.mrf.mxu2  ;;  %v16043_v42 = vpop.f32.mrf.mxu3  ;;  %v3140_v34 = vrot.slane %v3138_v9, 3 }
 0x287   : > { %v3758_v36 = vadd.f32 %v3513_v45, %v2490_v53  ;;  %v3143_v53 = vrot.slane %v3141_v10, 4 }
 0x288   : > { %v2248_v40 = vpop.f32.mrf.mxu1 }
 0x289   : > { %v5025_v8 = vadd.f32 %v15965_v2, %v3758_v36  ;;  %v2491_v18 = vadd.f32 %v2248_v40, %v15312_v30  ;;  %v4426_v2 = vshll.u32 %v14131_v57, 16  ;;  %v4425_v36 = vrot.slane %v4423_v61, 3 }
 0x28b   : > { %v5679_v20 = vpop.f32.mrf.mxu0  ;;  %12349 = vmatmul.msk.bf16.gmra.mxu1 %vm1226_vm1, %v1987_v27  ;;  %12578 = vmatmul.msk.bf16.gmra.mxu2 %vm1226_vm1, %v3136_v23  ;;  %v16048_v17 = vadd.f32 %v5676_v28, %v5025_v8  ;;  %v14039_v28 = vld [vmem:[%s19113_s0 + $0xc0] sm:$0xff]  ;;  %v4428_v27 = vrot.slane %v4426_v2, 4  ;;  %v3144_v8 = vor.u32 %v3143_v53, %v3140_v34 }
 0x28c   : > { %v1988_v40 = vrot.slane %v14039_v28, 3  ;;  %v14132_v28 = vld [vmem:[%s19113_s0 + $0xe0] sm:$0xff] }
 0x28d   : > { %v4429_v52 = vor.u32 %v4428_v27, %v4425_v36  ;;  %v3145_v2 = vsel %vm2921_vm2, %v3135_v38, %v3144_v8  ;;  %v4432_v36 = vshrl.u32 %v14132_v28, 16 }
 0x28e   : > { %13032 = vmatmul.msk.bf16.gmra.mxu0 %vm1226_vm1, %v14172_v16  ;;  %v3516_v62 = vpop.f32.mrf.mxu2  ;;  %v16058_v45 = vpop.f32.mrf.mxu3  ;;  %v1989_v61 = vsel %vm1940_vm3, %v1986_v7, %v1988_v40 }
 0x28f   : > { %v3759_v44 = vadd.f32 %v3516_v62, %v2491_v18  ;;  %v4430_v57 = vsel %vm2921_vm2, %v4420_v13, %v4429_v52 }
 0x290   : > { %v2250_v33 = vpop.f32.mrf.mxu1 }
 0x291   : > { %v5026_v23 = vadd.f32 %v15981_v56, %v3759_v44  ;;  %v2492_v18 = vadd.f32 %v2250_v33, %v15334_v50  ;;  %v14173_v56 = vld [vmem:[%s19113_s0 + $0xc4] sm:$0xff] }
 0x293   : > { %v5681_v16 = vpop.f32.mrf.mxu0  ;;  %v16061_v30 = vadd.f32 %v5679_v20, %v5026_v23  ;;  %12810 = vmatmul.msk.bf16.gmra.mxu3 %vm1226_vm1, %v4430_v57  ;;  %v14085_v20 = vld [vmem:[%s19113_s0 + $0xc8] sm:$0xff] }
 0x294   : > { %v3147_v38 = vshrl.u32 %v14085_v20, 16  ;;  %v3150_v33 = vshll.u32 %v14085_v20, 16 }
 0x296   : > { %v3518_v9 = vpop.f32.mrf.mxu2  ;;  %v16074_v13 = vpop.f32.mrf.mxu3  ;;  %v3149_v57 = vrot.slane %v3147_v38, 3 }
 0x297   : > { %v3760_v10 = vadd.f32 %v3518_v9, %v2492_v18  ;;  %v3152_v18 = vrot.slane %v3150_v33, 4 }
 0x298   : > { %v2253_v62 = vpop.f32.mrf.mxu1 }
 0x299   : > { %v5027_v50 = vadd.f32 %v15996_v60, %v3760_v10  ;;  %v2493_v34 = vadd.f32 %v2253_v62, %v15347_v3  ;;  %v4435_v60 = vshll.u32 %v14132_v28, 16  ;;  %v4434_v10 = vrot.slane %v4432_v36, 3 }
 0x29b   : > { %v5684_v44 = vpop.f32.mrf.mxu0  ;;  %12350 = vmatmul.msk.bf16.gmra.mxu1 %vm1226_vm1, %v1989_v61  ;;  %12579 = vmatmul.msk.bf16.gmra.mxu2 %vm1226_vm1, %v3145_v2  ;;  %v16079_v7 = vadd.f32 %v5681_v16, %v5027_v50  ;;  %v14040_v16 = vld [vmem:[%s19113_s0 + $0xc8] sm:$0xff]  ;;  %v4437_v61 = vrot.slane %v4435_v60, 4  ;;  %v3153_v50 = vor.u32 %v3152_v18, %v3149_v57 }
 0x29c   : > { %v1990_v62 = vrot.slane %v14040_v16, 3  ;;  %v14133_v16 = vld [vmem:[%s19113_s0 + $0xe8] sm:$0xff] }
 0x29d   : > { %19170 = vst [vmem:[#allocation53_spill] sm:$0xff] %v16079_v7  ;;  %v4438_v20 = vor.u32 %v4437_v61, %v4434_v10  ;;  %v3154_v60 = vsel %vm2921_vm2, %v3144_v8, %v3153_v50  ;;  %v4441_v10 = vshrl.u32 %v14133_v16, 16 }
 0x29e   : > { %13033 = vmatmul.msk.bf16.gmra.mxu0 %vm1226_vm1, %v14173_v56  ;;  %v3521_v53 = vpop.f32.mrf.mxu2  ;;  %v16089_v9 = vpop.f32.mrf.mxu3  ;;  %v1991_v36 = vsel %vm1940_vm3, %v1988_v40, %v1990_v62 }
 0x29f   : > { %v3761_v27 = vadd.f32 %v3521_v53, %v2493_v34  ;;  %v4439_v28 = vsel %vm2921_vm2, %v4429_v52, %v4438_v20 }
 0x2a0   : > { %v2255_v23 = vpop.f32.mrf.mxu1 }
 0x2a1   : > { %v5028_v2 = vadd.f32 %v16012_v48, %v3761_v27  ;;  %v2494_v34 = vadd.f32 %v2255_v23, %v15369_v22  ;;  %v14174_v48 = vld [vmem:[%s19113_s0 + $0xcc] sm:$0xff] }
 0x2a3   : > { %v5686_v56 = vpop.f32.mrf.mxu0  ;;  %v16092_v3 = vadd.f32 %v5684_v44, %v5028_v2  ;;  %12811 = vmatmul.msk.bf16.gmra.mxu3 %vm1226_vm1, %v4439_v28  ;;  %v14086_v44 = vld [vmem:[%s19113_s0 + $0xd0] sm:$0xff] }
 0x2a4   : > { %v3156_v8 = vshrl.u32 %v14086_v44, 16  ;;  %v3159_v23 = vshll.u32 %v14086_v44, 16 }
 0x2a5   : > { %19171 = vst [vmem:[#allocation54_spill] sm:$0xff] %v16092_v3 }
 0x2a6   : > { %v3523_v38 = vpop.f32.mrf.mxu2  ;;  %v16105_v52 = vpop.f32.mrf.mxu3  ;;  %v3158_v28 = vrot.slane %v3156_v8, 3 }
 0x2a7   : > { %v3762_v33 = vadd.f32 %v3523_v38, %v2494_v34  ;;  %v3161_v34 = vrot.slane %v3159_v23, 4 }
 0x2a8   : > { %v2258_v53 = vpop.f32.mrf.mxu1 }
 0x2a9   : > { %v5029_v22 = vadd.f32 %v16027_v29, %v3762_v33  ;;  %v2495_v57 = vadd.f32 %v2258_v53, %v15382_v54  ;;  %v4444_v29 = vshll.u32 %v14133_v16, 16  ;;  %v4443_v33 = vrot.slane %v4441_v10, 3 }
 0x2ab   : > { %v5689_v27 = vpop.f32.mrf.mxu0  ;;  %12351 = vmatmul.msk.bf16.gmra.mxu1 %vm1226_vm1, %v1991_v36  ;;  %12580 = vmatmul.msk.bf16.gmra.mxu2 %vm1226_vm1, %v3154_v60  ;;  %v16110_v40 = vadd.f32 %v5686_v56, %v5029_v22  ;;  %v14041_v56 = vld [vmem:[%s19113_s0 + $0xd0] sm:$0xff]  ;;  %v4446_v36 = vrot.slane %v4444_v29, 4  ;;  %v3162_v22 = vor.u32 %v3161_v34, %v3158_v28 }
 0x2ac   : > { %v1992_v53 = vrot.slane %v14041_v56, 3  ;;  %v14134_v56 = vld [vmem:[%s19113_s0 + $0xf0] sm:$0xff] }
 0x2ad   : > { %19172 = vst [vmem:[#allocation55_spill] sm:$0xff] %v16110_v40  ;;  %v4447_v44 = vor.u32 %v4446_v36, %v4443_v33  ;;  %v3163_v29 = vsel %vm2921_vm2, %v3153_v50, %v3162_v22  ;;  %v4450_v33 = vshrl.u32 %v14134_v56, 16 }
 0x2ae   : > { %13034 = vmatmul.msk.bf16.gmra.mxu0 %vm1226_vm1, %v14174_v48  ;;  %v3526_v18 = vpop.f32.mrf.mxu2  ;;  %v16120_v38 = vpop.f32.mrf.mxu3  ;;  %v1993_v10 = vsel %vm1940_vm3, %v1990_v62, %v1992_v53 }
 0x2af   : > { %v3763_v61 = vadd.f32 %v3526_v18, %v2495_v57  ;;  %v4448_v16 = vsel %vm2921_vm2, %v4438_v20, %v4447_v44 }
 0x2b0   : > { %v2260_v2 = vpop.f32.mrf.mxu1 }
 0x2b1   : > { %v5030_v60 = vadd.f32 %v16043_v42, %v3763_v61  ;;  %v2496_v57 = vadd.f32 %v2260_v2, %v15404_v15  ;;  %v14175_v42 = vld [vmem:[%s19113_s0 + $0xd4] sm:$0xff] }
 0x2b3   : > { %v5691_v48 = vpop.f32.mrf.mxu0  ;;  %v16123_v54 = vadd.f32 %v5689_v27, %v5030_v60  ;;  %12812 = vmatmul.msk.bf16.gmra.mxu3 %vm1226_vm1, %v4448_v16  ;;  %v14087_v27 = vld [vmem:[%s19113_s0 + $0xd8] sm:$0xff] }
 0x2b4   : > { %v3165_v50 = vshrl.u32 %v14087_v27, 16  ;;  %v3168_v2 = vshll.u32 %v14087_v27, 16 }
 0x2b5   : > { %19173 = vst [vmem:[#allocation56_spill] sm:$0xff] %v16123_v54 }
 0x2b6   : > { %v3528_v8 = vpop.f32.mrf.mxu2  ;;  %v16136_v20 = vpop.f32.mrf.mxu3  ;;  %v3167_v16 = vrot.slane %v3165_v50, 3 }
 0x2b7   : > { %v3764_v23 = vadd.f32 %v3528_v8, %v2496_v57  ;;  %v3170_v57 = vrot.slane %v3168_v2, 4 }
 0x2b8   : > { %v2263_v18 = vpop.f32.mrf.mxu1 }
 0x2b9   : > { %v5031_v15 = vadd.f32 %v16058_v45, %v3764_v23  ;;  %v2497_v28 = vadd.f32 %v2263_v18, %v15417_v1  ;;  %v4453_v45 = vshll.u32 %v14134_v56, 16  ;;  %v4452_v23 = vrot.slane %v4450_v33, 3 }
 0x2bb   : > { %v5694_v61 = vpop.f32.mrf.mxu0  ;;  %12352 = vmatmul.msk.bf16.gmra.mxu1 %vm1226_vm1, %v1993_v10  ;;  %12581 = vmatmul.msk.bf16.gmra.mxu2 %vm1226_vm1, %v3163_v29  ;;  %v16141_v62 = vadd.f32 %v5691_v48, %v5031_v15  ;;  %v14042_v48 = vld [vmem:[%s19113_s0 + $0xd8] sm:$0xff]  ;;  %v4455_v10 = vrot.slane %v4453_v45, 4  ;;  %v3171_v15 = vor.u32 %v3170_v57, %v3167_v16  ;;  %v19177_v16 = vld [vmem:[#allocation33_spill] sm:$0xff] }
 0x2bc   : > { %v1994_v18 = vrot.slane %v14042_v48, 3  ;;  %v14135_v48 = vld [vmem:[%s19113_s0 + $0xf8] sm:$0xff] }
 0x2bd   : > { %19174 = vst [vmem:[#allocation57_spill] sm:$0xff] %v16141_v62  ;;  %v4456_v27 = vor.u32 %v4455_v10, %v4452_v23  ;;  %v3172_v45 = vsel %vm2921_vm2, %v3162_v22, %v3171_v15  ;;  %v4459_v10 = vshrl.u32 %v14135_v48, 16 }
 0x2be   : > { %13035 = vmatmul.msk.bf16.gmra.mxu0 %vm1226_vm1, %v14175_v42  ;;  %v3531_v34 = vpop.f32.mrf.mxu2  ;;  %v16151_v8 = vpop.f32.mrf.mxu3  ;;  %v1995_v33 = vsel %vm1940_vm3, %v1992_v53, %v1994_v18 }
 0x2bf   : > { %v3765_v36 = vadd.f32 %v3531_v34, %v2497_v28  ;;  %v4457_v56 = vsel %vm2921_vm2, %v4447_v44, %v4456_v27 }
 0x2c0   : > { %v2265_v60 = vpop.f32.mrf.mxu1 }
 0x2c1   : > { %v5032_v29 = vadd.f32 %v16074_v13, %v3765_v36  ;;  %v2498_v28 = vadd.f32 %v2265_v60, %v15439_v31  ;;  %v14176_v13 = vld [vmem:[%s19113_s0 + $0xdc] sm:$0xff] }
 0x2c3   : > { %v5696_v42 = vpop.f32.mrf.mxu0  ;;  %v16154_v1 = vadd.f32 %v5694_v61, %v5032_v29  ;;  %12813 = vmatmul.msk.bf16.gmra.mxu3 %vm1226_vm1, %v4457_v56  ;;  %v14088_v61 = vld [vmem:[%s19113_s0 + $0xe0] sm:$0xff] }
 0x2c4   : > { %v3174_v22 = vshrl.u32 %v14088_v61, 16  ;;  %v3177_v60 = vshll.u32 %v14088_v61, 16 }
 0x2c5   : > { %19175 = vst [vmem:[#allocation58_spill] sm:$0xff] %v16154_v1 }
 0x2c6   : > { %v3533_v50 = vpop.f32.mrf.mxu2  ;;  %v16167_v44 = vpop.f32.mrf.mxu3 }
 0x2c7   : > { %v3766_v2 = vadd.f32 %v3533_v50, %v2498_v28  ;;  %v3176_v28 = vrot.slane %v3174_v22, 3  ;;  %v3179_v50 = vrot.slane %v3177_v60, 4 }
 0x2c8   : > { %v2268_v34 = vpop.f32.mrf.mxu1 }
 0x2c9   : > { %v5033_v31 = vadd.f32 %v16089_v9, %v3766_v2  ;;  %v2499_v57 = vadd.f32 %v2268_v34, %v19177_v16  ;;  %v4462_v9 = vshll.u32 %v14135_v48, 16  ;;  %v3180_v48 = vor.u32 %v3179_v50, %v3176_v28  ;;  %v19181_v28 = vld [vmem:[#allocation39_spill] sm:$0xff] }
 0x2cb   : > { %v5699_v36 = vpop.f32.mrf.mxu0  ;;  %12353 = vmatmul.msk.bf16.gmra.mxu1 %vm1226_vm1, %v1995_v33  ;;  %12582 = vmatmul.msk.bf16.gmra.mxu2 %vm1226_vm1, %v3172_v45  ;;  %v16172_v53 = vadd.f32 %v5696_v42, %v5033_v31  ;;  %v14043_v42 = vld [vmem:[%s19113_s0 + $0xe0] sm:$0xff]  ;;  %v4461_v33 = vrot.slane %v4459_v10, 3  ;;  %v4464_v45 = vrot.slane %v4462_v9, 4  ;;  %v3181_v9 = vsel %vm2921_vm2, %v3171_v15, %v3180_v48 }
 0x2cc   : > { %v1996_v16 = vrot.slane %v14043_v42, 3  ;;  %v14136_v42 = vld [vmem:[%s19113_s0 + $0x100] sm:$0xff] }
 0x2cd   : > { %19176 = vst [vmem:[#allocation59_spill] sm:$0xff] %v16172_v53  ;;  %v4465_v31 = vor.u32 %v4464_v45, %v4461_v33  ;;  %v4468_v45 = vshrl.u32 %v14136_v42, 16 }
 0x2ce   : > { %13036 = vmatmul.msk.bf16.gmra.mxu0 %vm1226_vm1, %v14176_v13  ;;  %v3536_v23 = vpop.f32.mrf.mxu2  ;;  %v16182_v2 = vpop.f32.mrf.mxu3  ;;  %v1997_v10 = vsel %vm1940_vm3, %v1994_v18, %v1996_v16 }
 0x2cf   : > { %v3767_v29 = vadd.f32 %v3536_v23, %v2499_v57  ;;  %v4466_v57 = vsel %vm2921_vm2, %v4456_v27, %v4465_v31  ;;  %v19179_v23 = vld [vmem:[#allocation36_spill] sm:$0xff] }
 0x2d0   : > { %v2270_v56 = vpop.f32.mrf.mxu1 }
 0x2d1   : > { %v5034_v13 = vadd.f32 %v16105_v52, %v3767_v29  ;;  %v2500_v53 = vadd.f32 %v2270_v56, %v19179_v23  ;;  %v14177_v52 = vld [vmem:[%s19113_s0 + $0xe4] sm:$0xff] }
 0x2d3   : > { %v5701_v61 = vpop.f32.mrf.mxu0  ;;  %v16185_v34 = vadd.f32 %v5699_v36, %v5034_v13  ;;  %12814 = vmatmul.msk.bf16.gmra.mxu3 %vm1226_vm1, %v4466_v57  ;;  %v14089_v36 = vld [vmem:[%s19113_s0 + $0xe8] sm:$0xff] }
 0x2d4   : > { %v3183_v15 = vshrl.u32 %v14089_v36, 16 }
 0x2d5   : > { %19178 = vst [vmem:[#allocation33_spill] sm:$0xff] %v16185_v34 }
 0x2d6   : > { %v3538_v22 = vpop.f32.mrf.mxu2  ;;  %v16198_v27 = vpop.f32.mrf.mxu3  ;;  %v3185_v23 = vrot.slane %v3183_v15, 3 }
 0x2d7   : > { %v3768_v60 = vadd.f32 %v3538_v22, %v2500_v53  ;;  %v3186_v53 = vshll.u32 %v14089_v36, 16 }
 0x2d8   : > { %v2273_v1 = vpop.f32.mrf.mxu1 }
 0x2d9   : > { %v5035_v29 = vadd.f32 %v16120_v38, %v3768_v60  ;;  %v2501_v50 = vadd.f32 %v2273_v1, %v19181_v28  ;;  %v4471_v38 = vshll.u32 %v14136_v42, 16  ;;  %v3188_v22 = vrot.slane %v3186_v53, 4 }
 0x2db   : > { %v5704_v56 = vpop.f32.mrf.mxu0  ;;  %12354 = vmatmul.msk.bf16.gmra.mxu1 %vm1226_vm1, %v1997_v10  ;;  %12583 = vmatmul.msk.bf16.gmra.mxu2 %vm1226_vm1, %v3181_v9  ;;  %v16203_v18 = vadd.f32 %v5701_v61, %v5035_v29  ;;  %v14044_v61 = vld [vmem:[%s19113_s0 + $0xe8] sm:$0xff]  ;;  %v4470_v10 = vrot.slane %v4468_v45, 3  ;;  %v4473_v9 = vrot.slane %v4471_v38, 4  ;;  %v3189_v42 = vor.u32 %v3188_v22, %v3185_v23  ;;  %v19185_v23 = vld [vmem:[#allocation44_spill] sm:$0xff] }
 0x2dc   : > { %v1998_v28 = vrot.slane %v14044_v61, 3  ;;  %v14137_v61 = vld [vmem:[%s19113_s0 + $0x108] sm:$0xff] }
 0x2dd   : > { %19180 = vst [vmem:[#allocation36_spill] sm:$0xff] %v16203_v18  ;;  %v4474_v29 = vor.u32 %v4473_v9, %v4470_v10  ;;  %v3190_v38 = vsel %vm2921_vm2, %v3180_v48, %v3189_v42  ;;  %v4477_v9 = vshrl.u32 %v14137_v61, 16 }
 0x2de   : > { %13037 = vmatmul.msk.bf16.gmra.mxu0 %vm1226_vm1, %v14177_v52  ;;  %v3541_v33 = vpop.f32.mrf.mxu2  ;;  %v16213_v60 = vpop.f32.mrf.mxu3  ;;  %v1999_v45 = vsel %vm1940_vm3, %v1996_v16, %v1998_v28 }
 0x2df   : > { %v3769_v13 = vadd.f32 %v3541_v33, %v2501_v50  ;;  %v4475_v50 = vsel %vm2921_vm2, %v4465_v31, %v4474_v29  ;;  %v19183_v33 = vld [vmem:[#allocation42_spill] sm:$0xff] }
 0x2e0   : > { %v2275_v57 = vpop.f32.mrf.mxu1 }
 0x2e1   : > { %v5036_v52 = vadd.f32 %v16136_v20, %v3769_v13  ;;  %v2502_v18 = vadd.f32 %v2275_v57, %v19183_v33  ;;  %v14178_v20 = vld [vmem:[%s19113_s0 + $0xec] sm:$0xff] }
 0x2e3   : > { %v5706_v36 = vpop.f32.mrf.mxu0  ;;  %v16216_v1 = vadd.f32 %v5704_v56, %v5036_v52  ;;  %12815 = vmatmul.msk.bf16.gmra.mxu3 %vm1226_vm1, %v4475_v50  ;;  %v14090_v56 = vld [vmem:[%s19113_s0 + $0xf0] sm:$0xff] }
 0x2e4   : > { %v3192_v48 = vshrl.u32 %v14090_v56, 16 }
 0x2e5   : > { %19182 = vst [vmem:[#allocation39_spill] sm:$0xff] %v16216_v1 }
 0x2e6   : > { %v3543_v15 = vpop.f32.mrf.mxu2  ;;  %v16229_v31 = vpop.f32.mrf.mxu3  ;;  %v3194_v33 = vrot.slane %v3192_v48, 3 }
 0x2e7   : > { %v3770_v53 = vadd.f32 %v3543_v15, %v2502_v18  ;;  %v3195_v18 = vshll.u32 %v14090_v56, 16 }
 0x2e8   : > { %v2278_v34 = vpop.f32.mrf.mxu1 }
 0x2e9   : > { %v5037_v13 = vadd.f32 %v16151_v8, %v3770_v53  ;;  %v2503_v22 = vadd.f32 %v2278_v34, %v19185_v23  ;;  %v4480_v8 = vshll.u32 %v14137_v61, 16  ;;  %v3197_v15 = vrot.slane %v3195_v18, 4 }
 0x2eb   : > { %v5709_v57 = vpop.f32.mrf.mxu0  ;;  %12355 = vmatmul.msk.bf16.gmra.mxu1 %vm1226_vm1, %v1999_v45  ;;  %12584 = vmatmul.msk.bf16.gmra.mxu2 %vm1226_vm1, %v3190_v38  ;;  %v16234_v16 = vadd.f32 %v5706_v36, %v5037_v13  ;;  %v16244_v36 = vld [vmem:[%s19113_s0 + $0xf0] sm:$0xff]  ;;  %v4479_v45 = vrot.slane %v4477_v9, 3  ;;  %v4482_v38 = vrot.slane %v4480_v8, 4  ;;  %v3198_v23 = vor.u32 %v3197_v15, %v3194_v33  ;;  %v14280_v15 = vld [vmem:[%s14996_s29 + $0xc0] sm:$0xff] }
 0x2ec   : > { %v2000_v61 = vrot.slane %v16244_v36, 3  ;;  %8060 = vmatpush.bf16.msra.mxu2 %v14280_v15 }
 0x2ed   : > { %19184 = vst [vmem:[#allocation42_spill] sm:$0xff] %v16234_v16  ;;  %v4483_v34 = vor.u32 %v4482_v38, %v4479_v45  ;;  %v14325_v45 = vld [vmem:[%s14996_s29 + $0xe0] sm:$0xff]  ;;  %v19191_v16 = vld [vmem:[#allocation50_spill] sm:$0xff] }
 0x2ee   : > { %13038 = vmatmul.msk.bf16.gmra.mxu0 %vm1226_vm1, %v14178_v20  ;;  %v3546_v10 = vpop.f32.mrf.mxu2  ;;  %v16246_v53 = vpop.f32.mrf.mxu3  ;;  %9041 = vmatpush.bf16.msra.mxu3 %v14325_v45  ;;  %v14370_v45 = vld [vmem:[%s14996_s29 + $0x100] sm:$0xff] }
 0x2ef   : > { %v3771_v52 = vadd.f32 %v3546_v10, %v2503_v22  ;;  %v4484_v22 = vsel %vm2921_vm2, %v4474_v29, %v4483_v34  ;;  %v19187_v10 = vld [vmem:[#allocation46_spill] sm:$0xff]  ;;  %v14091_v29 = vld [vmem:[%s19113_s0 + $0xf8] sm:$0xff]  ;;  %10309 = vmatpush.bf16.msra.mxu0 %v14370_v45 }
 0x2f0   : > { %v2280_v50 = vpop.f32.mrf.mxu1  ;;  %v3201_v38 = vshrl.u32 %v14091_v29, 16 }
 0x2f1   : > { %v5038_v20 = vadd.f32 %v16167_v44, %v3771_v52  ;;  %v2504_v48 = vadd.f32 %v2280_v50, %v19187_v10  ;;  %v2001_v44 = vsel %vm1940_vm3, %v1998_v28, %v2000_v61  ;;  %v14179_v52 = vld [vmem:[%s19113_s0 + $0xf4] sm:$0xff]  ;;  %v14235_v28 = vld [vmem:[%s14996_s29 + $0xa0] sm:$0xff]  ;;  %s14628_s29 = smul.u32 348, %s14978_s8 }
 0x2f2   : > { %6834 = vmatpush.bf16.msra.mxu1 %v14235_v28 }
 0x2f3   : > { %v5711_v56 = vpop.f32.mrf.mxu0  ;;  %v16249_v13 = vadd.f32 %v5709_v57, %v5038_v20  ;;  %12816 = vmatmul.msk.bf16.gmra.mxu3 %vm1226_vm1, %v4484_v22  ;;  %v3199_v57 = vsel %vm2921_vm2, %v3189_v42, %v3198_v23  ;;  %v3204_v20 = vshll.u32 %v14091_v29, 16  ;;  %v14138_v22 = vld [vmem:[%s19113_s0 + $0x110] sm:$0xff]  ;;  %s16653_s20 = scalar_lea.vmem [#allocation4], %s14628_s29 }
 0x2f4   : > { %s535_s29 = scalar_select %p534_p13, %s14793_s19, 1 }
 0x2f5   : > { %19186 = vst [vmem:[#allocation44_spill] sm:$0xff] %v16249_v13  ;;  %v3206_v29 = vrot.slane %v3204_v20, 4  ;;  %s11833_s7 = sshll.u32 %s16653_s20, 4  ;;  %s11822_s19 = scalar_lea.sflag [#allocation5], %s14978_s8  ;;  %s11834_s7 = int_to_ptr.vmem [resolvable:$true] %s11833_s7 }
 0x2f6   : > { %v3548_v18 = vpop.f32.mrf.mxu2  ;;  %v16263_v36 = vpop.f32.mrf.mxu3  ;;  %s16759_s22 = scalar_lea.vmem %s19115_s2, %s535_s29 }
 0x2f7   : > { %v3772_v9 = vadd.f32 %v3548_v18, %v2504_v48  ;;  %v4486_v18 = vshrl.u32 %v14138_v22, 16 }
 0x2f8   : > { %v2283_v8 = vpop.f32.mrf.mxu1 }
 0x2f9   : > { %v5039_v50 = vadd.f32 %v16182_v2, %v3772_v9  ;;  %v19189_v2 = vld [vmem:[#allocation48_spill] sm:$0xff]  ;;  %v4489_v9 = vshll.u32 %v14138_v22, 16  ;;  %v4488_v15 = vrot.slane %v4486_v18, 3 }
 0x2fa   : > { %v2505_v10 = vadd.f32 %v2283_v8, %v19189_v2 }
 0x2fb   : > { %v5714_v33 = vpop.f32.mrf.mxu0  ;;  %12356 = vmatmul.msk.bf16.gmra.mxu1 %vm1226_vm1, %v2001_v44  ;;  %12585 = vmatmul.msk.bf16.gmra.mxu2 %vm1226_vm1, %v3199_v57  ;;  %v16271_v42 = vadd.f32 %v5711_v56, %v5039_v50  ;;  %v14046_v57 = vld [vmem:[%s19113_s0 + $0xf8] sm:$0xff] }
 0x2fc   : > { %v2002_v22 = vrot.slane %v14046_v57, 3  ;;  %v19193_v57 = vld [vmem:[#allocation7_spill] sm:$0xff] }
 0x2fd   : > { %19188 = vst [vmem:[#allocation46_spill] sm:$0xff] %v16271_v42  ;;  %v4491_v42 = vrot.slane %v4489_v9, 4 }
 0x2fe   : > { %13039 = vmatmul.msk.bf16.gmra.mxu0 %vm1226_vm1, %v14179_v52  ;;  %v3551_v48 = vpop.f32.mrf.mxu2  ;;  %v3203_v52 = vrot.slane %v3201_v38, 3  ;;  %v16281_v50 = vpop.f32.mrf.mxu3  ;;  %v2003_v9 = vsel %vm1940_vm3, %v2000_v61, %v2002_v22 }
 0x2ff   : > { %v3773_v44 = vadd.f32 %v3551_v48, %v2505_v10  ;;  %v4492_v28 = vor.u32 %v4491_v42, %v4488_v15  ;;  %v14092_v42 = vld [vmem:[%s19113_s0 + $0x100] sm:$0xff] }
 0x300   : > { %v2285_v56 = vpop.f32.mrf.mxu1  ;;  %v3207_v10 = vor.u32 %v3206_v29, %v3203_v52  ;;  %v3210_v61 = vshrl.u32 %v14092_v42, 16 }
 0x301   : > { %v5040_v8 = vadd.f32 %v16198_v27, %v3773_v44  ;;  %v4493_v48 = vsel %vm2921_vm2, %v4483_v34, %v4492_v28  ;;  %v2506_v1 = vadd.f32 %v2285_v56, %v19191_v16  ;;  %v14139_v56 = vld [vmem:[%s19113_s0 + $0x118] sm:$0xff] }
 0x302   : > { %v3208_v27 = vsel %vm2921_vm2, %v3198_v23, %v3207_v10  ;;  %v3213_v23 = vshll.u32 %v14092_v42, 16  ;;  %v4495_v15 = vshrl.u32 %v14139_v56, 16 }
 0x303   : > { %v5716_v2 = vpop.f32.mrf.mxu0  ;;  %v16285_v13 = vadd.f32 %v5714_v33, %v5040_v8  ;;  %12817 = vmatmul.msk.bf16.gmra.mxu3 %vm1226_vm1, %v4493_v48  ;;  %v14180_v33 = vld [vmem:[%s19113_s0 + $0xfc] sm:$0xff]  ;;  %v3212_v48 = vrot.slane %v3210_v61, 3 }
 0x305   : > { %19190 = vst [vmem:[#allocation48_spill] sm:$0xff] %v16285_v13 }
 0x306   : > { %v3553_v38 = vpop.f32.mrf.mxu2  ;;  %v16298_v34 = vpop.f32.mrf.mxu3 }
 0x307   : > { %v3774_v20 = vadd.f32 %v3553_v38, %v2506_v1  ;;  %v3215_v38 = vrot.slane %v3213_v23, 4 }
 0x308   : > { %v2288_v18 = vpop.f32.mrf.mxu1 }
 0x309   : > { %v5041_v16 = vadd.f32 %v16213_v60, %v3774_v20  ;;  %v2507_v52 = vadd.f32 %v2288_v18, %v19193_v57  ;;  %v4498_v60 = vshll.u32 %v14139_v56, 16  ;;  %v3216_v56 = vor.u32 %v3215_v38, %v3212_v48  ;;  %v19197_v48 = vld [vmem:[#allocation10_spill] sm:$0xff] }
 0x30b   : > { %v5719_v44 = vpop.f32.mrf.mxu0  ;;  %12357 = vmatmul.msk.bf16.gmra.mxu1 %vm1226_vm1, %v2003_v9  ;;  %12586 = vmatmul.msk.bf16.gmra.mxu2 %vm1226_vm1, %v3208_v27  ;;  %v16303_v1 = vadd.f32 %v5716_v2, %v5041_v16  ;;  %v14047_v2 = vld [vmem:[%s19113_s0 + $0x100] sm:$0xff]  ;;  %v4497_v9 = vrot.slane %v4495_v15, 3  ;;  %v4500_v27 = vrot.slane %v4498_v60, 4  ;;  %v3217_v60 = vsel %vm2921_vm2, %v3207_v10, %v3216_v56 }
 0x30c   : > { %v2004_v57 = vrot.slane %v14047_v2, 3  ;;  %v14140_v2 = vld [vmem:[%s19113_s0 + $0x120] sm:$0xff] }
 0x30d   : > { %19192 = vst [vmem:[#allocation50_spill] sm:$0xff] %v16303_v1  ;;  %v4501_v16 = vor.u32 %v4500_v27, %v4497_v9  ;;  %v4504_v27 = vshrl.u32 %v14140_v2, 16 }
 0x30e   : > { %13040 = vmatmul.msk.bf16.gmra.mxu0 %vm1226_vm1, %v14180_v33  ;;  %v3556_v29 = vpop.f32.mrf.mxu2  ;;  %v16313_v20 = vpop.f32.mrf.mxu3  ;;  %v2005_v15 = vsel %vm1940_vm3, %v2002_v22, %v2004_v57 }
 0x30f   : > { %v3775_v8 = vadd.f32 %v3556_v29, %v2507_v52  ;;  %v4502_v52 = vsel %vm2921_vm2, %v4492_v28, %v4501_v16  ;;  %v19195_v29 = vld [vmem:[#allocation8_spill] sm:$0xff] }
 0x310   : > { %v2290_v45 = vpop.f32.mrf.mxu1 }
 0x311   : > { %v5042_v33 = vadd.f32 %v16229_v31, %v3775_v8  ;;  %v2508_v1 = vadd.f32 %v2290_v45, %v19195_v29  ;;  %v14181_v31 = vld [vmem:[%s19113_s0 + $0x104] sm:$0xff] }
 0x313   : > { %v5721_v42 = vpop.f32.mrf.mxu0  ;;  %v16316_v18 = vadd.f32 %v5719_v44, %v5042_v33  ;;  %12818 = vmatmul.msk.bf16.gmra.mxu3 %vm1226_vm1, %v4502_v52  ;;  %v14093_v44 = vld [vmem:[%s19113_s0 + $0x108] sm:$0xff] }
 0x314   : > { %v3219_v10 = vshrl.u32 %v14093_v44, 16 }
 0x315   : > { %19194 = vst [vmem:[#allocation7_spill] sm:$0xff] %v16316_v18 }
 0x316   : > { %v3558_v61 = vpop.f32.mrf.mxu2  ;;  %v16329_v28 = vpop.f32.mrf.mxu3  ;;  %v3221_v29 = vrot.slane %v3219_v10, 3 }
 0x317   : > { %v3776_v23 = vadd.f32 %v3558_v61, %v2508_v1  ;;  %v3222_v1 = vshll.u32 %v14093_v44, 16 }
 0x318   : > { %v2293_v13 = vpop.f32.mrf.mxu1 }
 0x319   : > { %v5043_v8 = vadd.f32 %v16246_v53, %v3776_v23  ;;  %v2509_v38 = vadd.f32 %v2293_v13, %v19197_v48  ;;  %v4507_v53 = vshll.u32 %v14140_v2, 16  ;;  %v3224_v61 = vrot.slane %v3222_v1, 4 }
 0x31b   : > { %v5724_v45 = vpop.f32.mrf.mxu0  ;;  %12358 = vmatmul.msk.bf16.gmra.mxu1 %vm1226_vm1, %v2005_v15  ;;  %12587 = vmatmul.msk.bf16.gmra.mxu2 %vm1226_vm1, %v3217_v60  ;;  %v16334_v22 = vadd.f32 %v5721_v42, %v5043_v8  ;;  %v14048_v42 = vld [vmem:[%s19113_s0 + $0x108] sm:$0xff]  ;;  %v4506_v15 = vrot.slane %v4504_v27, 3  ;;  %v4509_v60 = vrot.slane %v4507_v53, 4  ;;  %v3225_v2 = vor.u32 %v3224_v61, %v3221_v29  ;;  %v19201_v29 = vld [vmem:[#allocation14_spill] sm:$0xff] }
 0x31c   : > { %v2006_v48 = vrot.slane %v14048_v42, 3  ;;  %v14141_v42 = vld [vmem:[%s19113_s0 + $0x128] sm:$0xff] }
 0x31d   : > { %19196 = vst [vmem:[#allocation8_spill] sm:$0xff] %v16334_v22  ;;  %v4510_v8 = vor.u32 %v4509_v60, %v4506_v15  ;;  %v3226_v53 = vsel %vm2921_vm2, %v3216_v56, %v3225_v2  ;;  %v4513_v60 = vshrl.u32 %v14141_v42, 16 }
 0x31e   : > { %13041 = vmatmul.msk.bf16.gmra.mxu0 %vm1226_vm1, %v14181_v31  ;;  %v3561_v9 = vpop.f32.mrf.mxu2  ;;  %v16344_v23 = vpop.f32.mrf.mxu3  ;;  %v2007_v27 = vsel %vm1940_vm3, %v2004_v57, %v2006_v48 }
 0x31f   : > { %v3777_v33 = vadd.f32 %v3561_v9, %v2509_v38  ;;  %v4511_v38 = vsel %vm2921_vm2, %v4501_v16, %v4510_v8  ;;  %v19199_v9 = vld [vmem:[#allocation12_spill] sm:$0xff] }
 0x320   : > { %v2295_v52 = vpop.f32.mrf.mxu1 }
 0x321   : > { %v5044_v31 = vadd.f32 %v16263_v36, %v3777_v33  ;;  %v2510_v22 = vadd.f32 %v2295_v52, %v19199_v9  ;;  %v14182_v36 = vld [vmem:[%s19113_s0 + $0x10c] sm:$0xff] }
 0x323   : > { %v5726_v44 = vpop.f32.mrf.mxu0  ;;  %v16347_v13 = vadd.f32 %v5724_v45, %v5044_v31  ;;  %12819 = vmatmul.msk.bf16.gmra.mxu3 %vm1226_vm1, %v4511_v38  ;;  %v14094_v45 = vld [vmem:[%s19113_s0 + $0x110] sm:$0xff] }
 0x324   : > { %v3228_v56 = vshrl.u32 %v14094_v45, 16 }
 0x325   : > { %19198 = vst [vmem:[#allocation10_spill] sm:$0xff] %v16347_v13 }
 0x326   : > { %v3563_v10 = vpop.f32.mrf.mxu2  ;;  %v16360_v16 = vpop.f32.mrf.mxu3  ;;  %v3230_v9 = vrot.slane %v3228_v56, 3 }
 0x327   : > { %v3778_v1 = vadd.f32 %v3563_v10, %v2510_v22  ;;  %v3231_v22 = vshll.u32 %v14094_v45, 16 }
 0x328   : > { %v2298_v18 = vpop.f32.mrf.mxu1 }
 0x329   : > { %v5045_v33 = vadd.f32 %v16281_v50, %v3778_v1  ;;  %v2511_v61 = vadd.f32 %v2298_v18, %v19201_v29  ;;  %v4516_v50 = vshll.u32 %v14141_v42, 16  ;;  %v3233_v10 = vrot.slane %v3231_v22, 4 }
 0x32b   : > { %v5729_v52 = vpop.f32.mrf.mxu0  ;;  %12359 = vmatmul.msk.bf16.gmra.mxu1 %vm1226_vm1, %v2007_v27  ;;  %12588 = vmatmul.msk.bf16.gmra.mxu2 %vm1226_vm1, %v3226_v53  ;;  %v16365_v57 = vadd.f32 %v5726_v44, %v5045_v33  ;;  %v14049_v44 = vld [vmem:[%s19113_s0 + $0x110] sm:$0xff]  ;;  %v4515_v27 = vrot.slane %v4513_v60, 3  ;;  %v4518_v53 = vrot.slane %v4516_v50, 4  ;;  %v3234_v42 = vor.u32 %v3233_v10, %v3230_v9 }
 0x32c   : > { %v2008_v29 = vrot.slane %v14049_v44, 3  ;;  %v14142_v44 = vld [vmem:[%s19113_s0 + $0x130] sm:$0xff] }
 0x32d   : > { %19200 = vst [vmem:[#allocation12_spill] sm:$0xff] %v16365_v57  ;;  %v4519_v33 = vor.u32 %v4518_v53, %v4515_v27  ;;  %v3235_v50 = vsel %vm2921_vm2, %v3225_v2, %v3234_v42  ;;  %v19205_v9 = vld [vmem:[#allocation18_spill] sm:$0xff]  ;;  %v4522_v53 = vshrl.u32 %v14142_v44, 16 }
 0x32e   : > { %13042 = vmatmul.msk.bf16.gmra.mxu0 %vm1226_vm1, %v14182_v36  ;;  %v3566_v15 = vpop.f32.mrf.mxu2  ;;  %v16375_v1 = vpop.f32.mrf.mxu3  ;;  %v2009_v60 = vsel %vm1940_vm3, %v2006_v48, %v2008_v29 }
 0x32f   : > { %v3779_v31 = vadd.f32 %v3566_v15, %v2511_v61  ;;  %v4520_v61 = vsel %vm2921_vm2, %v4510_v8, %v4519_v33  ;;  %v19203_v15 = vld [vmem:[#allocation16_spill] sm:$0xff] }
 0x330   : > { %v2300_v38 = vpop.f32.mrf.mxu1 }
 0x331   : > { %v5046_v36 = vadd.f32 %v16298_v34, %v3779_v31  ;;  %v2512_v57 = vadd.f32 %v2300_v38, %v19203_v15  ;;  %v14183_v34 = vld [vmem:[%s19113_s0 + $0x114] sm:$0xff] }
 0x333   : > { %v5731_v45 = vpop.f32.mrf.mxu0  ;;  %v16378_v18 = vadd.f32 %v5729_v52, %v5046_v36  ;;  %12820 = vmatmul.msk.bf16.gmra.mxu3 %vm1226_vm1, %v4520_v61  ;;  %v14095_v52 = vld [vmem:[%s19113_s0 + $0x118] sm:$0xff] }
 0x334   : > { %v3237_v2 = vshrl.u32 %v14095_v52, 16 }
 0x335   : > { %19202 = vst [vmem:[#allocation14_spill] sm:$0xff] %v16378_v18 }
 0x336   : > { %v3568_v56 = vpop.f32.mrf.mxu2  ;;  %v16391_v8 = vpop.f32.mrf.mxu3  ;;  %v3239_v15 = vrot.slane %v3237_v2, 3 }
 0x337   : > { %v3780_v22 = vadd.f32 %v3568_v56, %v2512_v57  ;;  %v3240_v57 = vshll.u32 %v14095_v52, 16 }
 0x338   : > { %v2303_v13 = vpop.f32.mrf.mxu1 }
 0x339   : > { %v5047_v31 = vadd.f32 %v16313_v20, %v3780_v22  ;;  %v2513_v10 = vadd.f32 %v2303_v13, %v19205_v9  ;;  %v4525_v20 = vshll.u32 %v14142_v44, 16  ;;  %v3242_v56 = vrot.slane %v3240_v57, 4 }
 0x33b   : > { %v5734_v38 = vpop.f32.mrf.mxu0  ;;  %12360 = vmatmul.msk.bf16.gmra.mxu1 %vm1226_vm1, %v2009_v60  ;;  %12589 = vmatmul.msk.bf16.gmra.mxu2 %vm1226_vm1, %v3235_v50  ;;  %v16396_v48 = vadd.f32 %v5731_v45, %v5047_v31  ;;  %v14050_v45 = vld [vmem:[%s19113_s0 + $0x118] sm:$0xff]  ;;  %v4524_v60 = vrot.slane %v4522_v53, 3  ;;  %v4527_v50 = vrot.slane %v4525_v20, 4  ;;  %v3243_v44 = vor.u32 %v3242_v56, %v3239_v15  ;;  %v19209_v15 = vld [vmem:[#allocation22_spill] sm:$0xff] }
 0x33c   : > { %v2010_v9 = vrot.slane %v14050_v45, 3  ;;  %v14143_v45 = vld [vmem:[%s19113_s0 + $0x138] sm:$0xff] }
 0x33d   : > { %19204 = vst [vmem:[#allocation16_spill] sm:$0xff] %v16396_v48  ;;  %v4528_v31 = vor.u32 %v4527_v50, %v4524_v60  ;;  %v3244_v20 = vsel %vm2921_vm2, %v3234_v42, %v3243_v44  ;;  %v4531_v50 = vshrl.u32 %v14143_v45, 16 }
 0x33e   : > { %13043 = vmatmul.msk.bf16.gmra.mxu0 %vm1226_vm1, %v14183_v34  ;;  %v3571_v27 = vpop.f32.mrf.mxu2  ;;  %v16406_v22 = vpop.f32.mrf.mxu3  ;;  %v2011_v53 = vsel %vm1940_vm3, %v2008_v29, %v2010_v9 }
 0x33f   : > { %v3781_v36 = vadd.f32 %v3571_v27, %v2513_v10  ;;  %v4529_v10 = vsel %vm2921_vm2, %v4519_v33, %v4528_v31  ;;  %v19207_v27 = vld [vmem:[#allocation20_spill] sm:$0xff] }
 0x340   : > { %v2305_v61 = vpop.f32.mrf.mxu1 }
 0x341   : > { %v5048_v34 = vadd.f32 %v16329_v28, %v3781_v36  ;;  %v2514_v48 = vadd.f32 %v2305_v61, %v19207_v27  ;;  %v14184_v28 = vld [vmem:[%s19113_s0 + $0x11c] sm:$0xff] }
 0x343   : > { %v5736_v52 = vpop.f32.mrf.mxu0  ;;  %v16409_v13 = vadd.f32 %v5734_v38, %v5048_v34  ;;  %12821 = vmatmul.msk.bf16.gmra.mxu3 %vm1226_vm1, %v4529_v10  ;;  %v14096_v38 = vld [vmem:[%s19113_s0 + $0x120] sm:$0xff] }
 0x344   : > { %v3246_v42 = vshrl.u32 %v14096_v38, 16 }
 0x345   : > { %19206 = vst [vmem:[#allocation18_spill] sm:$0xff] %v16409_v13 }
 0x346   : > { %v3573_v2 = vpop.f32.mrf.mxu2  ;;  %v16422_v33 = vpop.f32.mrf.mxu3  ;;  %v3248_v27 = vrot.slane %v3246_v42, 3 }
 0x347   : > { %v3782_v57 = vadd.f32 %v3573_v2, %v2514_v48  ;;  %v3249_v48 = vshll.u32 %v14096_v38, 16 }
 0x348   : > { %v2308_v18 = vpop.f32.mrf.mxu1 }
 0x349   : > { %v5049_v36 = vadd.f32 %v16344_v23, %v3782_v57  ;;  %v2515_v56 = vadd.f32 %v2308_v18, %v19209_v15  ;;  %v4534_v23 = vshll.u32 %v14143_v45, 16  ;;  %v3251_v2 = vrot.slane %v3249_v48, 4 }
 0x34b   : > { %v5739_v61 = vpop.f32.mrf.mxu0  ;;  %12361 = vmatmul.msk.bf16.gmra.mxu1 %vm1226_vm1, %v2011_v53  ;;  %12590 = vmatmul.msk.bf16.gmra.mxu2 %vm1226_vm1, %v3244_v20  ;;  %v16427_v29 = vadd.f32 %v5736_v52, %v5049_v36  ;;  %v14051_v52 = vld [vmem:[%s19113_s0 + $0x120] sm:$0xff]  ;;  %v4533_v53 = vrot.slane %v4531_v50, 3  ;;  %v4536_v20 = vrot.slane %v4534_v23, 4  ;;  %v3252_v45 = vor.u32 %v3251_v2, %v3248_v27  ;;  %v19213_v27 = vld [vmem:[#allocation26_spill] sm:$0xff] }
 0x34c   : > { %v2012_v15 = vrot.slane %v14051_v52, 3  ;;  %v14144_v52 = vld [vmem:[%s19113_s0 + $0x140] sm:$0xff] }
 0x34d   : > { %19208 = vst [vmem:[#allocation20_spill] sm:$0xff] %v16427_v29  ;;  %v4537_v36 = vor.u32 %v4536_v20, %v4533_v53  ;;  %v3253_v23 = vsel %vm2921_vm2, %v3243_v44, %v3252_v45  ;;  %v4540_v20 = vshrl.u32 %v14144_v52, 16 }
 0x34e   : > { %13044 = vmatmul.msk.bf16.gmra.mxu0 %vm1226_vm1, %v14184_v28  ;;  %v3576_v60 = vpop.f32.mrf.mxu2  ;;  %v16437_v57 = vpop.f32.mrf.mxu3  ;;  %v2013_v50 = vsel %vm1940_vm3, %v2010_v9, %v2012_v15 }
 0x34f   : > { %v3783_v34 = vadd.f32 %v3576_v60, %v2515_v56  ;;  %v4538_v56 = vsel %vm2921_vm2, %v4528_v31, %v4537_v36  ;;  %v19211_v60 = vld [vmem:[#allocation24_spill] sm:$0xff] }
 0x350   : > { %v2310_v10 = vpop.f32.mrf.mxu1 }
 0x351   : > { %v5050_v28 = vadd.f32 %v16360_v16, %v3783_v34  ;;  %v2516_v29 = vadd.f32 %v2310_v10, %v19211_v60  ;;  %v14185_v16 = vld [vmem:[%s19113_s0 + $0x124] sm:$0xff] }
 0x353   : > { %v5741_v38 = vpop.f32.mrf.mxu0  ;;  %v16440_v18 = vadd.f32 %v5739_v61, %v5050_v28  ;;  %12822 = vmatmul.msk.bf16.gmra.mxu3 %vm1226_vm1, %v4538_v56  ;;  %v14097_v61 = vld [vmem:[%s19113_s0 + $0x128] sm:$0xff] }
 0x354   : > { %v3255_v44 = vshrl.u32 %v14097_v61, 16 }
 0x355   : > { %19210 = vst [vmem:[#allocation22_spill] sm:$0xff] %v16440_v18 }
 0x356   : > { %v3578_v42 = vpop.f32.mrf.mxu2  ;;  %v16453_v31 = vpop.f32.mrf.mxu3  ;;  %v3257_v60 = vrot.slane %v3255_v44, 3 }
 0x357   : > { %v3784_v48 = vadd.f32 %v3578_v42, %v2516_v29  ;;  %v3258_v29 = vshll.u32 %v14097_v61, 16 }
 0x358   : > { %v2313_v13 = vpop.f32.mrf.mxu1 }
 0x359   : > { %v5051_v34 = vadd.f32 %v16375_v1, %v3784_v48  ;;  %v2517_v2 = vadd.f32 %v2313_v13, %v19213_v27  ;;  %v4543_v1 = vshll.u32 %v14144_v52, 16  ;;  %v3260_v42 = vrot.slane %v3258_v29, 4 }
 0x35b   : > { %v5744_v10 = vpop.f32.mrf.mxu0  ;;  %12362 = vmatmul.msk.bf16.gmra.mxu1 %vm1226_vm1, %v2013_v50  ;;  %12591 = vmatmul.msk.bf16.gmra.mxu2 %vm1226_vm1, %v3253_v23  ;;  %v16458_v9 = vadd.f32 %v5741_v38, %v5051_v34  ;;  %v14052_v38 = vld [vmem:[%s19113_s0 + $0x128] sm:$0xff]  ;;  %v4542_v50 = vrot.slane %v4540_v20, 3  ;;  %v4545_v23 = vrot.slane %v4543_v1, 4  ;;  %v3261_v52 = vor.u32 %v3260_v42, %v3257_v60  ;;  %v19217_v60 = vld [vmem:[#allocation30_spill] sm:$0xff] }
 0x35c   : > { %v2014_v27 = vrot.slane %v14052_v38, 3  ;;  %v14145_v38 = vld [vmem:[%s19113_s0 + $0x148] sm:$0xff] }
 0x35d   : > { %19212 = vst [vmem:[#allocation24_spill] sm:$0xff] %v16458_v9  ;;  %v4546_v34 = vor.u32 %v4545_v23, %v4542_v50  ;;  %v3262_v1 = vsel %vm2921_vm2, %v3252_v45, %v3261_v52  ;;  %v4549_v23 = vshrl.u32 %v14145_v38, 16 }
 0x35e   : > { %13045 = vmatmul.msk.bf16.gmra.mxu0 %vm1226_vm1, %v14185_v16  ;;  %v3581_v53 = vpop.f32.mrf.mxu2  ;;  %v16468_v48 = vpop.f32.mrf.mxu3  ;;  %v2015_v20 = vsel %vm1940_vm3, %v2012_v15, %v2014_v27 }
 0x35f   : > { %v3785_v28 = vadd.f32 %v3581_v53, %v2517_v2  ;;  %v4547_v2 = vsel %vm2921_vm2, %v4537_v36, %v4546_v34  ;;  %v19215_v53 = vld [vmem:[#allocation28_spill] sm:$0xff] }
 0x360   : > { %v2315_v56 = vpop.f32.mrf.mxu1 }
 0x361   : > { %v5052_v16 = vadd.f32 %v16391_v8, %v3785_v28  ;;  %v2518_v9 = vadd.f32 %v2315_v56, %v19215_v53  ;;  %v14186_v8 = vld [vmem:[%s19113_s0 + $0x12c] sm:$0xff] }
 0x363   : > { %v5746_v61 = vpop.f32.mrf.mxu0  ;;  %v16471_v13 = vadd.f32 %v5744_v10, %v5052_v16  ;;  %12823 = vmatmul.msk.bf16.gmra.mxu3 %vm1226_vm1, %v4547_v2  ;;  %v14098_v10 = vld [vmem:[%s19113_s0 + $0x130] sm:$0xff] }
 0x364   : > { %v3264_v45 = vshrl.u32 %v14098_v10, 16 }
 0x365   : > { %19214 = vst [vmem:[#allocation26_spill] sm:$0xff] %v16471_v13 }
 0x366   : > { %v3583_v44 = vpop.f32.mrf.mxu2  ;;  %v16484_v36 = vpop.f32.mrf.mxu3  ;;  %v3266_v53 = vrot.slane %v3264_v45, 3 }
 0x367   : > { %v3786_v29 = vadd.f32 %v3583_v44, %v2518_v9  ;;  %v3267_v9 = vshll.u32 %v14098_v10, 16 }
 0x368   : > { %v2318_v18 = vpop.f32.mrf.mxu1 }
 0x369   : > { %v5053_v28 = vadd.f32 %v16406_v22, %v3786_v29  ;;  %v2519_v42 = vadd.f32 %v2318_v18, %v19217_v60  ;;  %v4552_v22 = vshll.u32 %v14145_v38, 16  ;;  %v3269_v44 = vrot.slane %v3267_v9, 4 }
 0x36b   : > { %v5749_v56 = vpop.f32.mrf.mxu0  ;;  %12363 = vmatmul.msk.bf16.gmra.mxu1 %vm1226_vm1, %v2015_v20  ;;  %12592 = vmatmul.msk.bf16.gmra.mxu2 %vm1226_vm1, %v3262_v1  ;;  %v16489_v15 = vadd.f32 %v5746_v61, %v5053_v28  ;;  %v14053_v61 = vld [vmem:[%s19113_s0 + $0x130] sm:$0xff]  ;;  %v4551_v20 = vrot.slane %v4549_v23, 3  ;;  %v4554_v1 = vrot.slane %v4552_v22, 4  ;;  %v3270_v38 = vor.u32 %v3269_v44, %v3266_v53 }
 0x36c   : > { %v2016_v60 = vrot.slane %v14053_v61, 3  ;;  %v19221_v61 = vld [vmem:[#allocation35_spill] sm:$0xff] }
 0x36d   : > { %19216 = vst [vmem:[#allocation28_spill] sm:$0xff] %v16489_v15  ;;  %v4555_v28 = vor.u32 %v4554_v1, %v4551_v20  ;;  %v3271_v22 = vsel %vm2921_vm2, %v3261_v52, %v3270_v38 }
 0x36e   : > { %13046 = vmatmul.msk.bf16.gmra.mxu0 %vm1226_vm1, %v14186_v8  ;;  %v3586_v50 = vpop.f32.mrf.mxu2  ;;  %v16499_v29 = vpop.f32.mrf.mxu3  ;;  %v2017_v23 = vsel %vm1940_vm3, %v2014_v27, %v2016_v60 }
 0x36f   : > { %v3787_v16 = vadd.f32 %v3586_v50, %v2519_v42  ;;  %v4556_v42 = vsel %vm2921_vm2, %v4546_v34, %v4555_v28  ;;  %v19219_v50 = vld [vmem:[#allocation32_spill] sm:$0xff] }
 0x370   : > { %v2320_v2 = vpop.f32.mrf.mxu1 }
 0x371   : > { %v5054_v8 = vadd.f32 %v16422_v33, %v3787_v16  ;;  %v2520_v15 = vadd.f32 %v2320_v2, %v19219_v50  ;;  %v14187_v33 = vld [vmem:[%s19113_s0 + $0x134] sm:$0xff] }
 0x373   : > { %v5751_v10 = vpop.f32.mrf.mxu0  ;;  %v16502_v18 = vadd.f32 %v5749_v56, %v5054_v8  ;;  %12824 = vmatmul.msk.bf16.gmra.mxu3 %vm1226_vm1, %v4556_v42  ;;  %v14099_v56 = vld [vmem:[%s19113_s0 + $0x138] sm:$0xff] }
 0x374   : > { %v3273_v52 = vshrl.u32 %v14099_v56, 16 }
 0x375   : > { %19218 = vst [vmem:[#allocation30_spill] sm:$0xff] %v16502_v18 }
 0x376   : > { %v3588_v45 = vpop.f32.mrf.mxu2  ;;  %v16515_v34 = vpop.f32.mrf.mxu3  ;;  %v3275_v8 = vrot.slane %v3273_v52, 3 }
 0x377   : > { %v3788_v9 = vadd.f32 %v3588_v45, %v2520_v15  ;;  %v3276_v15 = vshll.u32 %v14099_v56, 16 }
 0x378   : > { %v2323_v13 = vpop.f32.mrf.mxu1 }
 0x379   : > { %v5055_v16 = vadd.f32 %v16437_v57, %v3788_v9  ;;  %v2521_v53 = vadd.f32 %v2323_v13, %v19221_v61  ;;  %v14054_v57 = vld [vmem:[%s19113_s0 + $0x138] sm:$0xff]  ;;  %v3278_v42 = vrot.slane %v3276_v15, 4 }
 0x37b   : > { %v5754_v2 = vpop.f32.mrf.mxu0  ;;  %12364 = vmatmul.msk.bf16.gmra.mxu1 %vm1226_vm1, %v2017_v23  ;;  %12593 = vmatmul.msk.bf16.gmra.mxu2 %vm1226_vm1, %v3271_v22  ;;  %v16520_v27 = vadd.f32 %v5751_v10, %v5055_v16  ;;  %v2018_v23 = vrot.slane %v14054_v57, 3  ;;  %v3279_v22 = vor.u32 %v3278_v42, %v3275_v8  ;;  %v12309_v8 = vld [vmem:[%s19113_s0 + $0x140] sm:$0xf] }
 0x37d   : > { %19220 = vst [vmem:[#allocation32_spill] sm:$0xff] %v16520_v27  ;;  %v3280_v52 = vsel %vm2921_vm2, %v3270_v38, %v3279_v22 }
 0x37e   : > { %13047 = vmatmul.msk.bf16.gmra.mxu0 %vm1226_vm1, %v14187_v33  ;;  %v3591_v44 = vpop.f32.mrf.mxu2  ;;  %v16527_v50 = vpop.f32.mrf.mxu3  ;;  %v19223_v33 = vld [vmem:[#allocation38_spill] sm:$0xff] }
 0x37f   : > { %v3789_v20 = vadd.f32 %v3591_v44, %v2521_v53  ;;  %v2019_v53 = vsel %vm1940_vm3, %v2016_v60, %v2018_v23 }
 0x380   : > { %v2325_v1 = vpop.f32.mrf.mxu1 }
 0x381   : > { %v5056_v10 = vadd.f32 %v16453_v31, %v3789_v20  ;;  %v2522_v13 = vadd.f32 %v2325_v1, %v19223_v33  ;;  %v14188_v31 = vld [vmem:[%s19113_s0 + $0x13c] sm:$0xff]  ;;  %v19225_v1 = vld [vmem:[#allocation41_spill] sm:$0xff]  ;;  %v14284_v33 = vld [vmem:[%s19113_s0 + $0x14] sm:$0xf0] }
 0x383   : > { %v5756_v45 = vpop.f32.mrf.mxu0  ;;  %v16530_v9 = vadd.f32 %v5754_v2, %v5056_v10  ;;  %12825 = vmatmul.msk.bf16.gmra.mxu3 %vm1226_vm1, %v4555_v28  ;;  %v14100_v2 = vld [vmem:[%s19113_s0 + $0x140] sm:$0xff] }
 0x384   : > { %v3282_v38 = vshrl.u32 %v14100_v2, 16  ;;  %v3285_v20 = vshll.u32 %v14100_v2, 16 }
 0x385   : > { %19222 = vst [vmem:[#allocation35_spill] sm:$0xff] %v16530_v9 }
 0x386   : > { %v3593_v56 = vpop.f32.mrf.mxu2  ;;  %v16542_v15 = vpop.f32.mrf.mxu3 }
 0x387   : > { %v3790_v16 = vadd.f32 %v3593_v56, %v2522_v13 }
 0x388   : > { %v2328_v61 = vpop.f32.mrf.mxu1 }
 0x389   : > { %v5057_v44 = vadd.f32 %v16468_v48, %v3790_v16  ;;  %v2523_v57 = vadd.f32 %v2328_v61, %v19225_v1  ;;  %v14055_v48 = vld [vmem:[%s19113_s0 + $0x140] sm:$0x70]  ;;  %v3284_v16 = vrot.slane %v3282_v38, 3  ;;  %v3287_v61 = vrot.slane %v3285_v20, 4  ;;  %v19227_v20 = vld [vmem:[#allocation43_spill] sm:$0xff] }
 0x38a   : > { %v12310_v56 = vor.u32 %v14055_v48, %v12309_v8 }
 0x38b   : > { %v5759_v28 = vpop.f32.mrf.mxu0  ;;  %12365 = vmatmul.msk.bf16.gmra.mxu1 %vm1226_vm1, %v2019_v53  ;;  %12594 = vmatmul.msk.bf16.gmra.mxu2 %vm1226_vm1, %v3280_v52  ;;  %v16547_v60 = vadd.f32 %v5756_v45, %v5057_v44  ;;  %v13519_v45 = vld [vmem:[%s19113_s0 + $0x14] sm:$0xe]  ;;  %v14285_v52 = vld [vmem:[%s19113_s0 + $0x1c] sm:$0xff]  ;;  %v3288_v9 = vor.u32 %v3287_v61, %v3284_v16 }
 0x38d   : > { %19224 = vst [vmem:[#allocation38_spill] sm:$0xff] %v16547_v60  ;;  %v2020_v60 = vrot.slane %v12310_v56, 3 }
 0x38e   : > { %13048 = vmatmul.msk.bf16.gmra.mxu0 %vm1226_vm1, %v14188_v31  ;;  %v3596_v42 = vpop.f32.mrf.mxu2  ;;  %v16563_v53 = vpop.f32.mrf.mxu3  ;;  %v13520_v31 = vor.u32 %v14284_v33, %v13519_v45 }
 0x38f   : > { %v3791_v10 = vadd.f32 %v3596_v42, %v2523_v57  ;;  %v8807_v57 = vrot.slane %v14285_v52, 1  ;;  %v2021_v45 = vsel %vm1940_vm3, %v2018_v23, %v2020_v60  ;;  %v19229_v23 = vld [vmem:[#allocation45_spill] sm:$0xff] }
 0x390   : > { %v2330_v13 = vpop.f32.mrf.mxu1  ;;  %v8806_v1 = vrot.slane %v13520_v31, 1 }
 0x391   : > { %v5058_v2 = vadd.f32 %v16484_v36, %v3791_v10  ;;  %v2524_v8 = vadd.f32 %v2330_v13, %v19227_v20  ;;  %v3289_v36 = vsel %vm2921_vm2, %v3279_v22, %v3288_v9 }
 0x392   : > { %v8808_v38 = vsel %vm8805_vm4, %v8806_v1, %v8807_v57 }
 0x393   : > { %v5761_v44 = vpop.f32.mrf.mxu0  ;;  %v16569_v42 = vadd.f32 %v5759_v28, %v5058_v2  ;;  %13697 = vmatmul.msk.bf16.vlgmr.msra.gmra.mxu3 %vm1226_vm1, %v8808_v38  ;;  %v14189_v28 = vld [vmem:[%s19113_s0 + $0x144] sm:$0xff] }
 0x395   : > { %19226 = vst [vmem:[#allocation41_spill] sm:$0xff] %v16569_v42 }
 0x396   : > { %v3598_v48 = vpop.f32.mrf.mxu2  ;;  %v16579_v10 = vpop.f32.mrf.mxu3 }
 0x397   : > { %v3792_v27 = vadd.f32 %v3598_v48, %v2524_v8  ;;  %v19231_v8 = vld [vmem:[#allocation47_spill] sm:$0xff] }
 0x398   : > { %v2333_v18 = vpop.f32.mrf.mxu1 }
 0x399   : > { %v5059_v33 = vadd.f32 %v16499_v29, %v3792_v27  ;;  %v2525_v16 = vadd.f32 %v2333_v18, %v19229_v23  ;;  %v16593_v29 = vld [vmem:[%s19113_s0 + $0x24] sm:$0xff]  ;;  %v14239_v23 = vld [vmem:[%s19113_s0 + $0x14] sm:$0xff] }
 0x39a   : > { %v19118_v1 = vrot.slane %v16593_v29, 1 }
 0x39b   : > { %v5764_v56 = vpop.f32.mrf.mxu0  ;;  %12366 = vmatmul.msk.bf16.gmra.mxu1 %vm1226_vm1, %v2021_v45  ;;  %12595 = vmatmul.msk.bf16.gmra.mxu2 %vm1226_vm1, %v3289_v36  ;;  %v16584_v13 = vadd.f32 %v5761_v44, %v5059_v33  ;;  %v5240_v44 = vld [vmem:[%s19113_s0 + $0x14c] sm:$0xf]  ;;  %v14329_v45 = vld [vmem:[%s19113_s0 + $0x14] sm:$0xf0] }
 0x39c   : > { %v5411_v38 = vunpack.c.l.b16 %v5240_v44  ;;  %v8810_v20 = vsel %vm8805_vm4, %v8807_v57, %v19118_v1  ;;  %v14194_v33 = vld [vmem:[%s19113_s0 + $0xc] sm:$0xff]  ;;  %v16630_v44 = vld [vmem:[%s19113_s0 + $0x14] sm:$0xff] }
 0x39d   : > { %19228 = vst [vmem:[#allocation43_spill] sm:$0xff] %v16584_v13  ;;  %v6354_v1 = vshrl.u32 %v14194_v33, 16 }
 0x39e   : > { %13049 = vmatmul.msk.bf16.gmra.mxu0 %vm1226_vm1, %v14189_v28  ;;  %v3601_v22 = vpop.f32.mrf.mxu2  ;;  %v16588_v31 = vpop.f32.mrf.mxu3  ;;  %v5452_v57 = vpack.c.b16 %v5411_v38, %v5411_v38  ;;  %v6356_v38 = vshll.u32 %v14194_v33, 16 }
 0x39f   : > { %v3793_v61 = vadd.f32 %v3601_v22, %v2525_v16 }
 0x3a0   : > { %v2335_v52 = vpop.f32.mrf.mxu1 }
 0x3a1   : > { %v5060_v27 = vadd.f32 %v16515_v34, %v3793_v61  ;;  %v2526_v48 = vadd.f32 %v2335_v52, %v19231_v8  ;;  %v13748_v34 = vld [vmem:[%s19113_s0 + $0x14] sm:$0xe]  ;;  %v7582_v8 = vshll.u32 %v14239_v23, 16 }
 0x3a2   : > { %v13749_v16 = vor.u32 %v14329_v45, %v13748_v34 }
 0x3a3   : > { %v5766_v2 = vpop.f32.mrf.mxu0  ;;  %v16600_v18 = vadd.f32 %v5764_v56, %v5060_v27  ;;  %13698 = vmatmul.msk.bf16.gmra.mxu3 %vm1226_vm1, %v8810_v20  ;;  %v14330_v27 = vld [vmem:[%s19113_s0 + $0x1c] sm:$0xff]  ;;  %v7584_v13 = vrot.slane %v7582_v8, 1 }
 0x3a4   : > { %v9796_v45 = vshrl.u32 %v14330_v27, 16 }
 0x3a5   : > { %19230 = vst [vmem:[#allocation45_spill] sm:$0xff] %v16600_v18 }
 0x3a6   : > { %v3603_v36 = vpop.f32.mrf.mxu2  ;;  %v16619_v22 = vpop.f32.mrf.mxu3 }
 0x3a7   : > { %v3794_v28 = vadd.f32 %v3603_v36, %v2526_v48  ;;  %v9788_v48 = vshrl.u32 %v13749_v16, 16  ;;  %v9799_v36 = vshll.u32 %v14330_v27, 16  ;;  %v9798_v27 = vrot.slane %v9796_v45, 1  ;;  %v19236_v45 = vld [vmem:[#allocation51_spill] sm:$0xff] }
 0x3a8   : > { %v2338_v56 = vpop.f32.mrf.mxu1 }
 0x3a9   : > { %v5061_v61 = vadd.f32 %v16527_v50, %v3794_v28  ;;  %v16638_v50 = vld [vmem:[%s19113_s0 + $0x1c] sm:$0xff]  ;;  %v9790_v62 = vrot.slane %v9788_v48, 1 }
 0x3aa   : > { %v7587_v42 = vshll.u32 %v16638_v50, 16 }
 0x3ab   : > { %v5769_v52 = vpop.f32.mrf.mxu0  ;;  %12367 = vmatmul.msk.bf16.gmra.mxu1 %vm1226_vm1, %v2020_v60  ;;  %12596 = vmatmul.msk.bf16.gmra.mxu2 %vm1226_vm1, %v3288_v9  ;;  %v16632_v20 = vadd.f32 %v5766_v2, %v5061_v61  ;;  %v9791_v60 = vshll.u32 %v13749_v16, 16  ;;  %v19233_v9 = vld [vmem:[#allocation49_spill] sm:$0xff]  ;;  %v6358_v2 = vrot.slane %v6356_v38, 1  ;;  %v6361_v61 = vshll.u32 %v16630_v44, 16 }
 0x3ac   : > { %v2527_v34 = vadd.f32 %v2338_v56, %v19233_v9  ;;  %v16649_v56 = vld [vmem:[%s19113_s0 + $0x2c] sm:$0xff]  ;;  %v9801_v38 = vrot.slane %v9799_v36, 2  ;;  %v14743_v9 = vmov 0  }
 0x3ad   : > { %19232 = vst [vmem:[#allocation47_spill] sm:$0xff] %v16632_v20  ;;  %v9793_v54 = vrot.slane %v9791_v60, 2  ;;  %14672 = vset.pattern.permute.xlu0 %v14743_v9  ;;  %14673 = vset.pattern.permute.xlu1 %v14743_v9  ;;  %v6359_v8 = vor.u32 %v6358_v2, %v6354_v1  ;;  %v16666_v60 = vrot.slane %v7587_v42, 1  ;;  %v11005_v42 = vld [vmem:[%s19116_s3] sm:$0xff] }
 0x3ae   : > { %13050 = vmatmul.msk.bf16.gmra.mxu0 %vm1226_vm1, %v5452_v57  ;;  %v3606_v28 = vpop.f32.mrf.mxu2  ;;  %v7580_v57 = vshrl.u32 %v14239_v23, 16  ;;  %v16644_v40 = vpop.f32.mrf.mxu3  ;;  %11572 = vst [vmem:[%s16653_s20] sm:$0xf] %v14743_v9  ;;  %v8811_v23 = vrot.slane %v16649_v56, 1  ;;  %14674 = vset.pattern.permute.xlu2 %v14743_v9 }
 0x3af   : > { %v3795_v18 = vadd.f32 %v3606_v28, %v2527_v34  ;;  %11573 = vst [vmem:[%s16653_s20 + $0x4] sm:$0xf] %v14743_v9  ;;  %v19235_v34 = vrot.slane %v16593_v29, 1  ;;  %v16676_v28 = vor.u32 %v9801_v38, %v9798_v27  ;;  %11088 = vperm.xlu0 %14672, %v11005_v42   ;;  %v14331_v27 = vld [vmem:[%s19113_s0 + $0x24] sm:$0xff]  ;;  %v6365_v42 = vshrl.u32 %v16630_v44, 16 }
 0x3b0   : > { %v2340_v20 = vpop.f32.mrf.mxu1  ;;  %v7585_v48 = vor.u32 %v7584_v13, %v7580_v57  ;;  %11574 = vst [vmem:[%s16653_s20 + $0x8] sm:$0xf] %v14743_v9 }
 0x3b1   : > { %v5062_v33 = vadd.f32 %v16542_v15, %v3795_v18  ;;  %v16664_v18 = vrot.slane %v6361_v61, 1  ;;  %v8812_v1 = vsel %vm8805_vm4, %v19235_v34, %v8811_v23  ;;  %v2528_v36 = vadd.f32 %v2340_v20, %v19236_v45  ;;  %11575 = vst [vmem:[%s16653_s20 + $0xc] sm:$0xf] %v14743_v9 }
 0x3b2   : > { %11576 = vst [vmem:[%s16653_s20 + $0x10] sm:$0xf] %v14743_v9  ;;  %v7590_v20 = vsel %vm6352_vm5, %v7585_v48, %v16666_v60  ;;  %v19238_v48 = vld [vmem:[#allocation9_spill] sm:$0xff]  ;;  %v9808_v45 = vshll.u32 %v14331_v27, 16 }
 0x3b3   : > { %v5771_v16 = vpop.f32.mrf.mxu0  ;;  %v16662_v15 = vadd.f32 %v5769_v52, %v5062_v33  ;;  %v9794_v52 = vor.u32 %v9793_v54, %v9790_v62  ;;  %13699 = vmatmul.msk.bf16.gmra.mxu3 %vm1226_vm1, %v8812_v1  ;;  %11577 = vst [vmem:[%s16653_s20 + $0x14] sm:$0xf] %v14743_v9  ;;  %v6364_v62 = vsel %vm6352_vm5, %v6359_v8, %v16664_v18  ;;  %v16721_v8 = vld [vmem:[%s19113_s0 + $0x24] sm:$0xff]  ;;  %v9805_v1 = vshrl.u32 %v14331_v27, 16 }
 0x3b4   : > { %11578 = vst [vmem:[%s16653_s20 + $0x18] sm:$0xf] %v14743_v9 }
 0x3b5   : > { %19234 = vst [vmem:[#allocation49_spill] sm:$0xff] %v16662_v15  ;;  %v9803_v33 = vsel %vm9786_vm6, %v9794_v52, %v16676_v28  ;;  %v9807_v27 = vrot.slane %v9805_v1, 1 }
 0x3b6   : > { %v3608_v13 = vpop.f32.mrf.mxu2  ;;  %v16694_v2 = vpop.f32.mrf.mxu3  ;;  %11579 = vst [vmem:[%s16653_s20 + $0x1c] sm:$0xf] %v14743_v9 }
 0x3b7   : > { %v3796_v29 = vadd.f32 %v3608_v13, %v2528_v36  ;;  %11580 = vst [vmem:[%s16653_s20 + $0x20] sm:$0xf] %v14743_v9 }
 0x3b8   : > { %v2343_v54 = vpop.f32.mrf.mxu1  ;;  %11581 = vst [vmem:[%s16653_s20 + $0x24] sm:$0xf] %v14743_v9 }
 0x3b9   : > { %v5063_v61 = vadd.f32 %v16563_v53, %v3796_v29  ;;  %v16711_v53 = vld [vmem:[%s19113_s0 + $0x1c] sm:$0xff]  ;;  %11582 = vst [vmem:[%s16653_s20 + $0x28] sm:$0xf] %v14743_v9  ;;  %v2529_v34 = vadd.f32 %v2343_v54, %v19238_v48  ;;  %v7591_v54 = vshrl.u32 %v16638_v50, 16  ;;  %v9810_v48 = vrot.slane %v9808_v45, 2 }
 0x3ba   : > { %11583 = vst [vmem:[%s16653_s20 + $0x2c] sm:$0xf] %v14743_v9  ;;  %v6369_v13 = vshll.u32 %v16711_v53, 16 }
 0x3bb   : > { %v5774_v57 = vpop.f32.mrf.mxu0  ;;  %13239 = vmatmul.msk.bf16.vlgmr.msra.gmra.mxu1 %vm1226_vm1, %v6364_v62  ;;  %13468 = vmatmul.msk.bf16.vlgmr.msra.gmra.mxu2 %vm1226_vm1, %v7590_v20  ;;  %v16715_v38 = vadd.f32 %v5771_v16, %v5063_v61  ;;  %v11006_v16 = vld [vmem:[%s19116_s3 + $0x8] sm:$0xff]  ;;  %11584 = vst [vmem:[%s16653_s20 + $0x30] sm:$0xf] %v14743_v9  ;;  %v7595_v62 = vshll.u32 %v16721_v8, 16  ;;  %v16747_v61 = vld [vmem:[%s19113_s0 + $0x34] sm:$0xff]  ;;  %v7593_v45 = vor.u32 %v7591_v54, %v16666_v60 }
 0x3bc   : > { %11093 = vperm.xlu0 %14672, %v11006_v16   ;;  %11585 = vst [vmem:[%s16653_s20 + $0x34] sm:$0xf] %v14743_v9  ;;  %v19119_v50 = vrot.slane %v16747_v61, 1  ;;  %v6371_v1 = vrot.slane %v6369_v13, 1  ;;  %v11007_v60 = vld [vmem:[%s19116_s3 + $0x10] sm:$0xff] }
 0x3bd   : > { %19237 = vst [vmem:[#allocation51_spill] sm:$0xff] %v16715_v38  ;;  %v7597_v16 = vrot.slane %v7595_v62, 1  ;;  %11098 = vperm.xlu1 %14673, %v11007_v60  }
 0x3be   : > { %13926 = vmatmul.msk.bf16.vlgmr.msra.gmra.mxu0 %vm1226_vm1, %v9803_v33  ;;  %v3611_v36 = vpop.f32.mrf.mxu2  ;;  %11586 = vst [vmem:[%s16653_s20 + $0x38] sm:$0xf] %v14743_v9  ;;  %v16742_v20 = vpop.f32.mrf.mxu3 }
 0x3bf   : > { %v3797_v52 = vadd.f32 %v3611_v36, %v2529_v34  ;;  %11587 = vst [vmem:[%s16653_s20 + $0x3c] sm:$0xf] %v14743_v9  ;;  %v6367_v34 = vor.u32 %v6365_v42, %v16664_v18  ;;  %v8814_v36 = vsel %vm8805_vm4, %v8811_v23, %v19119_v50  ;;  %v16775_v42 = vor.u32 %v9810_v48, %v9807_v27  ;;  %v14332_v48 = vld [vmem:[%s19113_s0 + $0x2c] sm:$0xff] }
 0x3c0   : > { %v2345_v29 = vpop.f32.mrf.mxu1  ;;  %11588 = vst [vmem:[%s16653_s20 + $0x40] sm:$0xf] %v14743_v9 }
 0x3c1   : > { %v5064_v44 = vadd.f32 %v16579_v10, %v3797_v52  ;;  %11589 = vst [vmem:[%s16653_s20 + $0x44] sm:$0xf] %v14743_v9  ;;  %v19240_v52 = vld [vmem:[#allocation11_spill] sm:$0xff]  ;;  %v6372_v13 = vsel %vm6352_vm5, %v6367_v34, %v6371_v1  ;;  %v9812_v27 = vsel %vm9786_vm6, %v16676_v28, %v16775_v42  ;;  %v16816_v28 = vld [vmem:[%s19113_s0 + $0x24] sm:$0xff]  ;;  %v16821_v34 = vld [vmem:[%s19113_s0 + $0x2c] sm:$0xff] }
 0x3c2   : > { %11590 = vst [vmem:[%s16653_s20 + $0x48] sm:$0xf] %v14743_v9  ;;  %v2530_v18 = vadd.f32 %v2345_v29, %v19240_v52  ;;  %v7598_v29 = vsel %vm6352_vm5, %v7593_v45, %v7597_v16  ;;  %v19242_v45 = vld [vmem:[#allocation13_spill] sm:$0xff]  ;;  %v9817_v52 = vshll.u32 %v14332_v48, 16 }
 0x3c3   : > { %v5776_v33 = vpop.f32.mrf.mxu0  ;;  %v16764_v10 = vadd.f32 %v5774_v57, %v5064_v44  ;;  %11591 = vst [vmem:[%s16653_s20 + $0x4c] sm:$0xf] %v14743_v9  ;;  %13700 = vmatmul.msk.bf16.gmra.mxu3 %vm1226_vm1, %v8814_v36 }
 0x3c4   : > { %11592 = vst [vmem:[%s16653_s20 + $0x50] sm:$0xf] %v14743_v9 }
 0x3c5   : > { %19239 = vst [vmem:[#allocation9_spill] sm:$0xff] %v16764_v10  ;;  %v19245_v10 = vld [vmem:[#allocation15_spill] sm:$0xff] }
 0x3c6   : > { %v3613_v57 = vpop.f32.mrf.mxu2  ;;  %11593 = vst [vmem:[%s16653_s20 + $0x54] sm:$0xf] %v14743_v9  ;;  %v16791_v54 = vpop.f32.mrf.mxu3 }
 0x3c7   : > { %v3798_v56 = vadd.f32 %v3613_v57, %v2530_v18  ;;  %11594 = vst [vmem:[%s16653_s20 + $0x58] sm:$0xf] %v14743_v9  ;;  %v11008_v18 = vld [vmem:[%s19116_s3 + $0x18] sm:$0xff] }
 0x3c8   : > { %v2348_v23 = vpop.f32.mrf.mxu1  ;;  %11595 = vst [vmem:[%s16653_s20 + $0x5c] sm:$0xf] %v14743_v9  ;;  %11103 = vperm.xlu1 %14673, %v11008_v18   ;;  %v9819_v18 = vrot.slane %v9817_v52, 2 }
 0x3c9   : > { %v5065_v62 = vadd.f32 %v16588_v31, %v3798_v56  ;;  %11596 = vst [vmem:[%s16653_s20 + $0x60] sm:$0xf] %v14743_v9  ;;  %v2531_v36 = vadd.f32 %v2348_v23, %v19242_v45  ;;  %v6373_v56 = vshrl.u32 %v16711_v53, 16 }
 0x3ca   : > { %11597 = vst [vmem:[%s16653_s20 + $0x64] sm:$0xf] %v14743_v9 }
 0x3cb   : > { %v5779_v44 = vpop.f32.mrf.mxu0  ;;  %13240 = vmatmul.msk.bf16.gmra.mxu1 %vm1226_vm1, %v6372_v13  ;;  %13469 = vmatmul.msk.bf16.gmra.mxu2 %vm1226_vm1, %v7598_v29  ;;  %v16808_v31 = vadd.f32 %v5776_v33, %v5065_v62  ;;  %11598 = vst [vmem:[%s16653_s20 + $0x68] sm:$0xf] %v14743_v9  ;;  %v9814_v33 = vshrl.u32 %v14332_v48, 16  ;;  %v6377_v13 = vshll.u32 %v16816_v28, 16  ;;  %v7599_v29 = vshrl.u32 %v16721_v8, 16  ;;  %v16844_v48 = vld [vmem:[%s19113_s0 + $0x3c] sm:$0xff] }
 0x3cc   : > { %11599 = vst [vmem:[%s16653_s20 + $0x6c] sm:$0xf] %v14743_v9  ;;  %v7603_v62 = vshll.u32 %v16821_v34, 16  ;;  %v19120_v8 = vrot.slane %v16844_v48, 1 }
 0x3cd   : > { %19241 = vst [vmem:[#allocation11_spill] sm:$0xff] %v16808_v31 }
 0x3ce   : > { %13927 = vmatmul.msk.bf16.gmra.mxu0 %vm1226_vm1, %v9812_v27  ;;  %v3616_v60 = vpop.f32.mrf.mxu2  ;;  %11600 = vst [vmem:[%s16653_s20 + $0x70] sm:$0xf] %v14743_v9  ;;  %v16839_v27 = vpop.f32.mrf.mxu3  ;;  %v7605_v31 = vrot.slane %v7603_v62, 1  ;;  %v16907_v62 = vld [vmem:[%s19113_s0 + $0x34] sm:$0xff] }
 0x3cf   : > { %v3799_v57 = vadd.f32 %v3616_v60, %v2531_v36  ;;  %11601 = vst [vmem:[%s16653_s20 + $0x74] sm:$0xf] %v14743_v9  ;;  %v9816_v36 = vrot.slane %v9814_v33, 1  ;;  %v6375_v60 = vor.u32 %v6373_v56, %v6371_v1  ;;  %v19244_v33 = vrot.slane %v16747_v61, 1 }
 0x3d0   : > { %v2350_v23 = vpop.f32.mrf.mxu1  ;;  %11602 = vst [vmem:[%s16653_s20 + $0x78] sm:$0xf] %v14743_v9 }
 0x3d1   : > { %v5066_v45 = vadd.f32 %v16619_v22, %v3799_v57  ;;  %11603 = vst [vmem:[%s16653_s20 + $0x7c] sm:$0xf] %v14743_v9  ;;  %v6379_v22 = vrot.slane %v6377_v13, 1  ;;  %v7601_v57 = vor.u32 %v7599_v29, %v7597_v16  ;;  %v8816_v52 = vsel %vm8805_vm4, %v19244_v33, %v19120_v8  ;;  %v14333_v29 = vld [vmem:[%s19113_s0 + $0x34] sm:$0xff] }
 0x3d2   : > { %11604 = vst [vmem:[%s16653_s20 + $0x80] sm:$0xf] %v14743_v9  ;;  %v2532_v38 = vadd.f32 %v2350_v23, %v19245_v10  ;;  %v16866_v15 = vor.u32 %v9819_v18, %v9816_v36  ;;  %v9823_v36 = vshrl.u32 %v14333_v29, 16  ;;  %v9826_v18 = vshll.u32 %v14333_v29, 16 }
 0x3d3   : > { %v5781_v53 = vpop.f32.mrf.mxu0  ;;  %11605 = vst [vmem:[%s16653_s20 + $0x84] sm:$0xf] %v14743_v9  ;;  %v16854_v50 = vadd.f32 %v5779_v44, %v5066_v45  ;;  %13701 = vmatmul.msk.bf16.gmra.mxu3 %vm1226_vm1, %v8816_v52  ;;  %v6380_v10 = vsel %vm6352_vm5, %v6375_v60, %v6379_v22  ;;  %v7606_v44 = vsel %vm6352_vm5, %v7601_v57, %v7605_v31  ;;  %v19247_v45 = vld [vmem:[#allocation17_spill] sm:$0xff]  ;;  %v6381_v33 = vshrl.u32 %v16816_v28, 16 }
 0x3d4   : > { %11606 = vst [vmem:[%s16653_s20 + $0x88] sm:$0xf] %v14743_v9  ;;  %v9828_v29 = vrot.slane %v9826_v18, 2 }
 0x3d5   : > { %19243 = vst [vmem:[#allocation13_spill] sm:$0xff] %v16854_v50  ;;  %v19262_v50 = vld [vmem:[#allocation31_spill] sm:$0xff] }
 0x3d6   : > { %11607 = vst [vmem:[%s16653_s20 + $0x8c] sm:$0xf] %v14743_v9  ;;  %v3618_v1 = vpop.f32.mrf.mxu2  ;;  %v16877_v56 = vpop.f32.mrf.mxu3 }
 0x3d7   : > { %11608 = vst [vmem:[%s16653_s20 + $0x90] sm:$0xf] %v14743_v9  ;;  %v3800_v16 = vadd.f32 %v3618_v1, %v2532_v38  ;;  %v9821_v38 = vsel %vm9786_vm6, %v16775_v42, %v16866_v15  ;;  %v16902_v42 = vld [vmem:[%s19113_s0 + $0x2c] sm:$0xff] }
 0x3d8   : > { %11609 = vst [vmem:[%s16653_s20 + $0x94] sm:$0xf] %v14743_v9  ;;  %v2353_v61 = vpop.f32.mrf.mxu1  ;;  %v6385_v1 = vshll.u32 %v16902_v42, 16 }
 0x3d9   : > { %11610 = vst [vmem:[%s16653_s20 + $0x98] sm:$0xf] %v14743_v9  ;;  %v5067_v23 = vadd.f32 %v16644_v40, %v3800_v16  ;;  %v7607_v16 = vshrl.u32 %v16821_v34, 16 }
 0x3da   : > { %11611 = vst [vmem:[%s16653_s20 + $0x9c] sm:$0xf] %v14743_v9 }
 0x3db   : > { %v5784_v13 = vpop.f32.mrf.mxu0  ;;  %11612 = vst [vmem:[%s16653_s20 + $0xa0] sm:$0xf] %v14743_v9  ;;  %13241 = vmatmul.msk.bf16.gmra.mxu1 %vm1226_vm1, %v6380_v10  ;;  %13470 = vmatmul.msk.bf16.gmra.mxu2 %vm1226_vm1, %v7606_v44  ;;  %v16894_v40 = vadd.f32 %v5781_v53, %v5067_v23  ;;  %v2533_v53 = vadd.f32 %v2353_v61, %v19247_v45  ;;  %v7611_v61 = vshll.u32 %v16907_v62, 16  ;;  %v16927_v44 = vld [vmem:[%s19113_s0 + $0x44] sm:$0xff] }
 0x3dc   : > { %11613 = vst [vmem:[%s16653_s20 + $0xa4] sm:$0xf] %v14743_v9  ;;  %v19121_v34 = vrot.slane %v16927_v44, 1  ;;  %v6383_v45 = vor.u32 %v6381_v33, %v6379_v22  ;;  %v7609_v8 = vor.u32 %v7607_v16, %v7605_v31  ;;  %v11011_v31 = vld [vmem:[%s19116_s3 + $0x30] sm:$0xff] }
 0x3dd   : > { %19246 = vst [vmem:[#allocation15_spill] sm:$0xff] %v16894_v40  ;;  %11118 = vperm.xlu0 %14672, %v11011_v31   ;;  %v19255_v40 = vld [vmem:[#allocation23_spill] sm:$0xff] }
 0x3de   : > { %11614 = vst [vmem:[%s16653_s20 + $0xa8] sm:$0xf] %v14743_v9  ;;  %13928 = vmatmul.msk.bf16.gmra.mxu0 %vm1226_vm1, %v9821_v38  ;;  %v3621_v60 = vpop.f32.mrf.mxu2  ;;  %v16922_v10 = vpop.f32.mrf.mxu3  ;;  %v9825_v38 = vrot.slane %v9823_v36, 1  ;;  %v19249_v36 = vrot.slane %v16844_v48, 1 }
 0x3df   : > { %11615 = vst [vmem:[%s16653_s20 + $0xac] sm:$0xf] %v14743_v9  ;;  %v3801_v57 = vadd.f32 %v3621_v60, %v2533_v53  ;;  %v6387_v60 = vrot.slane %v6385_v1, 1 }
 0x3e0   : > { %11616 = vst [vmem:[%s16653_s20 + $0xb0] sm:$0xf] %v14743_v9  ;;  %v2355_v52 = vpop.f32.mrf.mxu1  ;;  %v8818_v18 = vsel %vm8805_vm4, %v19249_v36, %v19121_v34  ;;  %v14334_v36 = vld [vmem:[%s19113_s0 + $0x3c] sm:$0xff] }
 0x3e1   : > { %11617 = vst [vmem:[%s16653_s20 + $0xb4] sm:$0xf] %v14743_v9  ;;  %v5068_v28 = vadd.f32 %v16694_v2, %v3801_v57  ;;  %v16941_v2 = vrot.slane %v7611_v61, 1  ;;  %v19250_v57 = vld [vmem:[#allocation19_spill] sm:$0xff]  ;;  %v6388_v1 = vsel %vm6352_vm5, %v6383_v45, %v6387_v60  ;;  %v11009_v45 = vld [vmem:[%s19116_s3 + $0x20] sm:$0xff]  ;;  %v9835_v31 = vshll.u32 %v14334_v36, 16 }
 0x3e2   : > { %11618 = vst [vmem:[%s16653_s20 + $0xb8] sm:$0xf] %v14743_v9  ;;  %v2534_v22 = vadd.f32 %v2355_v52, %v19250_v57  ;;  %11108 = vperm.xlu2 %14674, %v11009_v45   ;;  %v17022_v45 = vld [vmem:[%s19113_s0 + $0x4c] sm:$0xff] }
 0x3e3   : > { %11619 = vst [vmem:[%s16653_s20 + $0xbc] sm:$0xf] %v14743_v9  ;;  %v5786_v23 = vpop.f32.mrf.mxu0  ;;  %v16937_v53 = vadd.f32 %v5784_v13, %v5068_v28  ;;  %v16951_v13 = vor.u32 %v9828_v29, %v9825_v38  ;;  %13702 = vmatmul.msk.bf16.gmra.mxu3 %vm1226_vm1, %v8818_v18  ;;  %v7614_v16 = vsel %vm6352_vm5, %v7609_v8, %v16941_v2  ;;  %v16996_v8 = vld [vmem:[%s19113_s0 + $0x3c] sm:$0xff] }
 0x3e4   : > { %11620 = vst [vmem:[%s16653_s20 + $0xc0] sm:$0xf] %v14743_v9  ;;  %v11012_v18 = vld [vmem:[%s19116_s3 + $0x38] sm:$0xff] }
 0x3e5   : > { %11621 = vst [vmem:[%s16653_s20 + $0xc4] sm:$0xf] %v14743_v9  ;;  %v9830_v29 = vsel %vm9786_vm6, %v16866_v15, %v16951_v13  ;;  %11123 = vperm.xlu1 %14673, %v11012_v18  }
 0x3e6   : > { %19248 = vst [vmem:[#allocation17_spill] sm:$0xff] %v16937_v53  ;;  %v3623_v48 = vpop.f32.mrf.mxu2  ;;  %v16966_v61 = vpop.f32.mrf.mxu3 }
 0x3e7   : > { %11622 = vst [vmem:[%s16653_s20 + $0xc8] sm:$0xf] %v14743_v9  ;;  %v3802_v33 = vadd.f32 %v3623_v48, %v2534_v22  ;;  %v9832_v22 = vshrl.u32 %v14334_v36, 16 }
 0x3e8   : > { %11623 = vst [vmem:[%s16653_s20 + $0xcc] sm:$0xf] %v14743_v9  ;;  %v2358_v52 = vpop.f32.mrf.mxu1 }
 0x3e9   : > { %11624 = vst [vmem:[%s16653_s20 + $0xd0] sm:$0xf] %v14743_v9  ;;  %v5069_v28 = vadd.f32 %v16742_v20, %v3802_v33  ;;  %v16986_v20 = vld [vmem:[%s19113_s0 + $0x34] sm:$0xff] }
 0x3ea   : > { %11625 = vst [vmem:[%s16653_s20 + $0xd4] sm:$0xf] %v14743_v9 }
 0x3eb   : > { %11626 = vst [vmem:[%s16653_s20 + $0xd8] sm:$0xf] %v14743_v9  ;;  %v5789_v38 = vpop.f32.mrf.mxu0  ;;  %13242 = vmatmul.msk.bf16.gmra.mxu1 %vm1226_vm1, %v6388_v1  ;;  %13471 = vmatmul.msk.bf16.gmra.mxu2 %vm1226_vm1, %v7614_v16  ;;  %v16988_v15 = vadd.f32 %v5786_v23, %v5069_v28  ;;  %v19252_v23 = vld [vmem:[#allocation21_spill] sm:$0xff]  ;;  %v6389_v1 = vshrl.u32 %v16902_v42, 16  ;;  %v7615_v28 = vshrl.u32 %v16907_v62, 16  ;;  %v8819_v62 = vrot.slane %v17022_v45, 1 }
 0x3ec   : > { %11627 = vst [vmem:[%s16653_s20 + $0xdc] sm:$0xf] %v14743_v9  ;;  %v2535_v57 = vadd.f32 %v2358_v52, %v19252_v23  ;;  %v6393_v52 = vshll.u32 %v16986_v20, 16  ;;  %v9834_v23 = vrot.slane %v9832_v22, 1 }
 0x3ed   : > { %11628 = vst [vmem:[%s16653_s20 + $0xe0] sm:$0xf] %v14743_v9  ;;  %v6391_v34 = vor.u32 %v6389_v1, %v6387_v60  ;;  %v7617_v22 = vor.u32 %v7615_v28, %v16941_v2 }
 0x3ee   : > { %11629 = vst [vmem:[%s16653_s20 + $0xe4] sm:$0xf] %v14743_v9  ;;  %13929 = vmatmul.msk.bf16.gmra.mxu0 %vm1226_vm1, %v9830_v29  ;;  %v3626_v48 = vpop.f32.mrf.mxu2  ;;  %v7619_v29 = vshll.u32 %v16996_v8, 16  ;;  %v17017_v36 = vpop.f32.mrf.mxu3 }
 0x3ef   : > { %19251 = vst [vmem:[#allocation19_spill] sm:$0xff] %v16988_v15  ;;  %v3803_v33 = vadd.f32 %v3626_v48, %v2535_v57  ;;  %v9837_v57 = vrot.slane %v9835_v31, 2  ;;  %v11010_v48 = vld [vmem:[%s19116_s3 + $0x28] sm:$0xff] }
 0x3f0   : > { %11630 = vst [vmem:[%s16653_s20 + $0xe8] sm:$0xf] %v14743_v9  ;;  %v2360_v16 = vpop.f32.mrf.mxu1  ;;  %v7621_v31 = vrot.slane %v7619_v29, 1  ;;  %11113 = vperm.xlu2 %14674, %v11010_v48  }
 0x3f1   : > { %11631 = vst [vmem:[%s16653_s20 + $0xec] sm:$0xf] %v14743_v9  ;;  %v5070_v42 = vadd.f32 %v16791_v54, %v3803_v33  ;;  %v6395_v54 = vrot.slane %v6393_v52, 1  ;;  %v19254_v33 = vrot.slane %v16927_v44, 1  ;;  %v2536_v60 = vadd.f32 %v2360_v16, %v19255_v40 }
 0x3f2   : > { %11632 = vst [vmem:[%s16653_s20 + $0xf0] sm:$0xf] %v14743_v9  ;;  %v17048_v1 = vor.u32 %v9837_v57, %v9834_v23  ;;  %v7622_v40 = vsel %vm6352_vm5, %v7617_v22, %v7621_v31  ;;  %v19257_v23 = vld [vmem:[#allocation25_spill] sm:$0xff] }
 0x3f3   : > { %11633 = vst [vmem:[%s16653_s20 + $0xf4] sm:$0xf] %v14743_v9  ;;  %v5791_v18 = vpop.f32.mrf.mxu0  ;;  %v17035_v15 = vadd.f32 %v5789_v38, %v5070_v42  ;;  %v8820_v53 = vsel %vm8805_vm4, %v19254_v33, %v8819_v62  ;;  %v6396_v52 = vsel %vm6352_vm5, %v6391_v34, %v6395_v54  ;;  %v14335_v42 = vld [vmem:[%s19113_s0 + $0x44] sm:$0xff]  ;;  %v17084_v34 = vld [vmem:[%s19113_s0 + $0x3c] sm:$0xff] }
 0x3f4   : > { %11634 = vst [vmem:[%s16653_s20 + $0xf8] sm:$0xf] %v14743_v9  ;;  %13703 = vmatmul.msk.bf16.gmra.mxu3 %vm1226_vm1, %v8820_v53  ;;  %v9839_v29 = vsel %vm9786_vm6, %v16951_v13, %v17048_v1  ;;  %v17089_v13 = vld [vmem:[%s19113_s0 + $0x44] sm:$0xff]  ;;  %v9841_v48 = vshrl.u32 %v14335_v42, 16  ;;  %v9844_v22 = vshll.u32 %v14335_v42, 16 }
 0x3f5   : > { %11635 = vst [vmem:[%s16653_s20 + $0xfc] sm:$0xf] %v14743_v9 }
 0x3f6   : > { %11636 = vst [vmem:[%s16653_s20 + $0x100] sm:$0xf] %v14743_v9  ;;  %v3628_v2 = vpop.f32.mrf.mxu2  ;;  %v17059_v16 = vpop.f32.mrf.mxu3 }
 0x3f7   : > { %11637 = vst [vmem:[%s16653_s20 + $0x104] sm:$0xf] %v14743_v9  ;;  %v3804_v44 = vadd.f32 %v3628_v2, %v2536_v60  ;;  %v6397_v2 = vshrl.u32 %v16986_v20, 16 }
 0x3f8   : > { %19253 = vst [vmem:[#allocation21_spill] sm:$0xff] %v17035_v15  ;;  %v2363_v38 = vpop.f32.mrf.mxu1 }
 0x3f9   : > { %11638 = vst [vmem:[%s16653_s20 + $0x108] sm:$0xf] %v14743_v9  ;;  %v5071_v53 = vadd.f32 %v16839_v27, %v3804_v44  ;;  %v2537_v57 = vadd.f32 %v2363_v38, %v19257_v23  ;;  %v7623_v38 = vshrl.u32 %v16996_v8, 16  ;;  %v9846_v23 = vrot.slane %v9844_v22, 2  ;;  %v11015_v8 = vld [vmem:[%s19116_s3 + $0x50] sm:$0xff] }
 0x3fa   : > { %11639 = vst [vmem:[%s16653_s20 + $0x10c] sm:$0xf] %v14743_v9  ;;  %11138 = vperm.xlu1 %14673, %v11015_v8  }
 0x3fb   : > { %11640 = vst [vmem:[%s16653_s20 + $0x110] sm:$0xf] %v14743_v9  ;;  %v5794_v28 = vpop.f32.mrf.mxu0  ;;  %13243 = vmatmul.msk.bf16.gmra.mxu1 %vm1226_vm1, %v6396_v52  ;;  %13472 = vmatmul.msk.bf16.gmra.mxu2 %vm1226_vm1, %v7622_v40  ;;  %v17076_v27 = vadd.f32 %v5791_v18, %v5071_v53  ;;  %v11014_v18 = vld [vmem:[%s19116_s3 + $0x48] sm:$0xff]  ;;  %v6401_v52 = vshll.u32 %v17084_v34, 16  ;;  %v7627_v40 = vshll.u32 %v17089_v13, 16  ;;  %v7625_v22 = vor.u32 %v7623_v38, %v7621_v31 }
 0x3fc   : > { %11641 = vst [vmem:[%s16653_s20 + $0x114] sm:$0xf] %v14743_v9  ;;  %11133 = vperm.xlu0 %14672, %v11014_v18   ;;  %v9843_v18 = vrot.slane %v9841_v48, 1  ;;  %v14336_v38 = vld [vmem:[%s19113_s0 + $0x4c] sm:$0xff] }
 0x3fd   : > { %11642 = vst [vmem:[%s16653_s20 + $0x118] sm:$0xf] %v14743_v9  ;;  %v6403_v48 = vrot.slane %v6401_v52, 1 }
 0x3fe   : > { %11643 = vst [vmem:[%s16653_s20 + $0x11c] sm:$0xf] %v14743_v9  ;;  %13930 = vmatmul.msk.bf16.gmra.mxu0 %vm1226_vm1, %v9839_v29  ;;  %v3631_v33 = vpop.f32.mrf.mxu2  ;;  %v17107_v53 = vpop.f32.mrf.mxu3  ;;  %v17112_v29 = vld [vmem:[%s19113_s0 + $0x54] sm:$0xff]  ;;  %v9847_v8 = vor.u32 %v9846_v23, %v9843_v18  ;;  %v9853_v18 = vshll.u32 %v14336_v38, 16 }
 0x3ff   : > { %11644 = vst [vmem:[%s16653_s20 + $0x120] sm:$0xf] %v14743_v9  ;;  %v3805_v60 = vadd.f32 %v3631_v33, %v2537_v57  ;;  %v8821_v57 = vrot.slane %v17112_v29, 1  ;;  %v6399_v33 = vor.u32 %v6397_v2, %v6395_v54  ;;  %v19259_v29 = vld [vmem:[#allocation27_spill] sm:$0xff] }
 0x400   : > { %11645 = vst [vmem:[%s16653_s20 + $0x124] sm:$0xf] %v14743_v9  ;;  %v2365_v44 = vpop.f32.mrf.mxu1 }
 0x401   : > { %19256 = vst [vmem:[#allocation23_spill] sm:$0xff] %v17076_v27  ;;  %v5072_v20 = vadd.f32 %v16877_v56, %v3805_v60  ;;  %v7629_v60 = vrot.slane %v7627_v40, 1  ;;  %v8822_v27 = vsel %vm8805_vm4, %v8819_v62, %v8821_v57  ;;  %v2538_v15 = vadd.f32 %v2365_v44, %v19259_v29  ;;  %v19261_v40 = vld [vmem:[#allocation29_spill] sm:$0xff] }
 0x402   : > { %11646 = vst [vmem:[%s16653_s20 + $0x128] sm:$0xf] %v14743_v9  ;;  %v6404_v45 = vsel %vm6352_vm5, %v6399_v33, %v6403_v48 }
 0x403   : > { %11647 = vst [vmem:[%s16653_s20 + $0x12c] sm:$0xf] %v14743_v9  ;;  %v5796_v42 = vpop.f32.mrf.mxu0  ;;  %v17125_v56 = vadd.f32 %v5794_v28, %v5072_v20  ;;  %v7630_v62 = vsel %vm6352_vm5, %v7625_v22, %v7629_v60  ;;  %v6405_v22 = vshrl.u32 %v17084_v34, 16  ;;  %v11017_v34 = vld [vmem:[%s19116_s3 + $0x60] sm:$0xff] }
 0x404   : > { %11648 = vst [vmem:[%s16653_s20 + $0x130] sm:$0xf] %v14743_v9  ;;  %13704 = vmatmul.msk.bf16.gmra.mxu3 %vm1226_vm1, %v8822_v27  ;;  %v9848_v27 = vsel %vm9786_vm6, %v17048_v1, %v9847_v8  ;;  %v11013_v1 = vld [vmem:[%s19116_s3 + $0x40] sm:$0xff]  ;;  %11148 = vperm.xlu0 %14672, %v11017_v34  }
 0x405   : > { %11649 = vst [vmem:[%s16653_s20 + $0x134] sm:$0xf] %v14743_v9  ;;  %11128 = vperm.xlu2 %14674, %v11013_v1   ;;  %v9855_v1 = vrot.slane %v9853_v18, 2 }
 0x406   : > { %11650 = vst [vmem:[%s16653_s20 + $0x138] sm:$0xf] %v14743_v9  ;;  %v3633_v54 = vpop.f32.mrf.mxu2  ;;  %v17144_v2 = vpop.f32.mrf.mxu3 }
 0x407   : > { %11651 = vst [vmem:[%s16653_s20 + $0x13c] sm:$0xf] %v14743_v9  ;;  %v3806_v28 = vadd.f32 %v3633_v54, %v2538_v15  ;;  %v17165_v15 = vld [vmem:[%s19113_s0 + $0x4c] sm:$0xff] }
 0x408   : > { %11652 = vst [vmem:[%s16653_s20 + $0x140] sm:$0xf] %v14743_v9  ;;  %v2368_v31 = vpop.f32.mrf.mxu1 }
 0x409   : > { %11653 = vst [vmem:[%s16653_s20 + $0x144] sm:$0xf] %v14743_v9  ;;  %v5073_v44 = vadd.f32 %v16922_v10, %v3806_v28  ;;  %v17160_v10 = vld [vmem:[%s19113_s0 + $0x44] sm:$0xff]  ;;  %v2539_v20 = vadd.f32 %v2368_v31, %v19261_v40  ;;  %v7631_v28 = vshrl.u32 %v17089_v13, 16 }
 0x40a   : > { %19258 = vst [vmem:[#allocation25_spill] sm:$0xff] %v17125_v56  ;;  %v6409_v54 = vshll.u32 %v17160_v10, 16 }
 0x40b   : > { %11654 = vst [vmem:[%s16653_s20 + $0x148] sm:$0xf] %v14743_v9  ;;  %v5799_v52 = vpop.f32.mrf.mxu0  ;;  %13244 = vmatmul.msk.bf16.gmra.mxu1 %vm1226_vm1, %v6404_v45  ;;  %13473 = vmatmul.msk.bf16.gmra.mxu2 %vm1226_vm1, %v7630_v62  ;;  %v7635_v45 = vshll.u32 %v17165_v15, 16 }
 0x40c   : > { %11655 = vst [vmem:[%s16653_s20 + $0x14c] sm:$0xf] %v14743_v9 }
 0x40d   : > { %11656 = vst [vmem:[%s16653_s20 + $0x150] sm:$0xf] %v14743_v9 }
 0x40e   : > { %11657 = vst [vmem:[%s16653_s20 + $0x154] sm:$0xf] %v14743_v9  ;;  %13931 = vmatmul.msk.bf16.gmra.mxu0 %vm1226_vm1, %v9848_v27  ;;  %v3636_v23 = vpop.f32.mrf.mxu2  ;;  %v4915_v62 = vpop.f32.mrf.mxu3 }
 0x40f   : > { %11658 = vst [vmem:[%s16653_s20 + $0x158] sm:$0xf] %v14743_v9  ;;  %v17154_v9 = vadd.f32 %v5796_v42, %v5073_v44  ;;  %v9850_v42 = vshrl.u32 %v14336_v38, 16  ;;  %v3807_v33 = vadd.f32 %v3636_v23, %v2539_v20  ;;  %v14293_v44 = vld [vmem:[%s19113_s0 + $0x5c] sm:$0xff]  ;;  %v6407_v20 = vor.u32 %v6405_v22, %v6403_v48 }
 0x410   : > { %v2370_v29 = vpop.f32.mrf.mxu1  ;;  %v8823_v40 = vrot.slane %v14293_v44, 1  ;;  %v6411_v23 = vrot.slane %v6409_v54, 1  ;;  %v7633_v62 = vor.u32 %v7631_v28, %v7629_v60 }
 0x411   : > { %19260 = vst [vmem:[#allocation27_spill] sm:$0xff] %v17154_v9  ;;  %v5074_v31 = vadd.f32 %v16966_v61, %v3807_v33  ;;  %v9852_v38 = vrot.slane %v9850_v42, 1  ;;  %v7637_v9 = vrot.slane %v7635_v45, 1  ;;  %v2540_v3 = vadd.f32 %v2370_v29, %v19262_v50  ;;  %v14337_v50 = vld [vmem:[%s19113_s0 + $0x54] sm:$0xff] }
 0x412   : > { %v8824_v56 = vsel %vm8805_vm4, %v8821_v57, %v8823_v40  ;;  %v6412_v7 = vsel %vm6352_vm5, %v6407_v20, %v6411_v23  ;;  %v17204_v57 = vld [vmem:[%s19113_s0 + $0x4c] sm:$0xff]  ;;  %v9859_v29 = vshrl.u32 %v14337_v50, 16  ;;  %v9862_v54 = vshll.u32 %v14337_v50, 16 }
 0x413   : > { %v5801_v27 = vpop.f32.mrf.mxu0  ;;  %v17182_v13 = vadd.f32 %v5799_v52, %v5074_v31  ;;  %v9856_v61 = vor.u32 %v9855_v1, %v9852_v38  ;;  %v7638_v44 = vsel %vm6352_vm5, %v7633_v62, %v7637_v9  ;;  %v6413_v31 = vshrl.u32 %v17160_v10, 16  ;;  %v14294_v62 = vld [vmem:[%s19113_s0 + $0x64] sm:$0xff] }
 0x414   : > { %13705 = vmatmul.msk.bf16.gmra.mxu3 %vm1226_vm1, %v8824_v56  ;;  %v19264_v56 = vld [vmem:[#allocation34_spill] sm:$0xff]  ;;  %v6417_v38 = vshll.u32 %v17204_v57, 16  ;;  %v7639_v1 = vshrl.u32 %v17165_v15, 16 }
 0x415   : > { %v9857_v22 = vsel %vm9786_vm6, %v9847_v8, %v9856_v61  ;;  %v6415_v10 = vor.u32 %v6413_v31, %v6411_v23 }
 0x416   : > { %v3638_v42 = vpop.f32.mrf.mxu2  ;;  %v17189_v48 = vpop.f32.mrf.mxu3  ;;  %v6419_v50 = vrot.slane %v6417_v38, 1 }
 0x417   : > { %v3808_v18 = vadd.f32 %v3638_v42, %v2540_v3 }
 0x418   : > { %v2373_v33 = vpop.f32.mrf.mxu1 }
 0x419   : > { %v5075_v52 = vadd.f32 %v17017_v36, %v3808_v18  ;;  %v17209_v36 = vld [vmem:[%s19113_s0 + $0x54] sm:$0xff]  ;;  %v2541_v8 = vadd.f32 %v2373_v33, %v19264_v56  ;;  %v9861_v33 = vrot.slane %v9859_v29, 1 }
 0x41a   : > { %v7643_v34 = vshll.u32 %v17209_v36, 16 }
 0x41b   : > { %v5804_v60 = vpop.f32.mrf.mxu0  ;;  %13245 = vmatmul.msk.bf16.gmra.mxu1 %vm1226_vm1, %v6412_v7  ;;  %13474 = vmatmul.msk.bf16.gmra.mxu2 %vm1226_vm1, %v7638_v44  ;;  %v17198_v3 = vadd.f32 %v5801_v27, %v5075_v52  ;;  %v11018_v7 = vld [vmem:[%s19116_s3 + $0x68] sm:$0xff]  ;;  %v9864_v44 = vrot.slane %v9862_v54, 2  ;;  %v8825_v52 = vrot.slane %v14294_v62, 1 }
 0x41c   : > { %11153 = vperm.xlu1 %14673, %v11018_v7   ;;  %v7641_v7 = vor.u32 %v7639_v1, %v7637_v9  ;;  %v7645_v56 = vrot.slane %v7643_v34, 1  ;;  %v19267_v1 = vld [vmem:[#allocation40_spill] sm:$0xff] }
 0x41d   : > { %19263 = vst [vmem:[#allocation29_spill] sm:$0xff] %v17198_v3 }
 0x41e   : > { %13932 = vmatmul.msk.bf16.gmra.mxu0 %vm1226_vm1, %v9857_v22  ;;  %v3641_v28 = vpop.f32.mrf.mxu2  ;;  %v17219_v20 = vpop.f32.mrf.mxu3  ;;  %v11016_v22 = vld [vmem:[%s19116_s3 + $0x58] sm:$0xff]  ;;  %v7646_v31 = vsel %vm6352_vm5, %v7641_v7, %v7645_v56 }
 0x41f   : > { %v3809_v45 = vadd.f32 %v3641_v28, %v2541_v8  ;;  %v8826_v8 = vsel %vm8805_vm4, %v8823_v40, %v8825_v52  ;;  %11143 = vperm.xlu2 %14674, %v11016_v22   ;;  %v19265_v28 = vld [vmem:[#allocation37_spill] sm:$0xff]  ;;  %v14338_v40 = vld [vmem:[%s19113_s0 + $0x5c] sm:$0xff] }
 0x420   : > { %v2375_v27 = vpop.f32.mrf.mxu1  ;;  %v9868_v62 = vshrl.u32 %v14338_v40, 16 }
 0x421   : > { %v5076_v42 = vadd.f32 %v17059_v16, %v3809_v45  ;;  %v2542_v3 = vadd.f32 %v2375_v27, %v19265_v28  ;;  %v9865_v16 = vor.u32 %v9864_v44, %v9861_v33  ;;  %v6420_v45 = vsel %vm6352_vm5, %v6415_v10, %v6419_v50 }
 0x422   : > { %v6421_v10 = vshrl.u32 %v17204_v57, 16 }
 0x423   : > { %v5806_v18 = vpop.f32.mrf.mxu0  ;;  %v17228_v15 = vadd.f32 %v5804_v60, %v5076_v42  ;;  %v9866_v9 = vsel %vm9786_vm6, %v9856_v61, %v9865_v16  ;;  %v17255_v61 = vld [vmem:[%s19113_s0 + $0x5c] sm:$0xff]  ;;  %v9871_v42 = vshll.u32 %v14338_v40, 16 }
 0x424   : > { %13706 = vmatmul.msk.bf16.gmra.mxu3 %vm1226_vm1, %v8826_v8  ;;  %v7647_v8 = vshrl.u32 %v17209_v36, 16  ;;  %v7651_v28 = vshll.u32 %v17255_v61, 16  ;;  %v6423_v57 = vor.u32 %v6421_v10, %v6419_v50  ;;  %v11021_v40 = vld [vmem:[%s19116_s3 + $0x80] sm:$0xff] }
 0x425   : > { %11168 = vperm.xlu1 %14673, %v11021_v40   ;;  %v7655_v40 = vshrl.u32 %v17255_v61, 16 }
 0x426   : > { %v3643_v29 = vpop.f32.mrf.mxu2  ;;  %v17240_v27 = vpop.f32.mrf.mxu3 }
 0x427   : > { %v3810_v54 = vadd.f32 %v3643_v29, %v2542_v3  ;;  %v14295_v29 = vld [vmem:[%s19113_s0 + $0x6c] sm:$0xff] }
 0x428   : > { %v2378_v23 = vpop.f32.mrf.mxu1 }
 0x429   : > { %v5077_v60 = vadd.f32 %v17107_v53, %v3810_v54  ;;  %v17250_v53 = vld [vmem:[%s19113_s0 + $0x54] sm:$0xff]  ;;  %v2543_v34 = vadd.f32 %v2378_v23, %v19267_v1 }
 0x42a   : > { %v6425_v7 = vshll.u32 %v17250_v53, 16 }
 0x42b   : > { %v5809_v38 = vpop.f32.mrf.mxu0  ;;  %13246 = vmatmul.msk.bf16.gmra.mxu1 %vm1226_vm1, %v6420_v45  ;;  %13475 = vmatmul.msk.bf16.gmra.mxu2 %vm1226_vm1, %v7646_v31  ;;  %v17244_v3 = vadd.f32 %v5806_v18, %v5077_v60  ;;  %v11020_v18 = vld [vmem:[%s19116_s3 + $0x78] sm:$0xff]  ;;  %v9870_v45 = vrot.slane %v9868_v62, 1  ;;  %v9873_v31 = vrot.slane %v9871_v42, 2 }
 0x42c   : > { %11163 = vperm.xlu0 %14672, %v11020_v18   ;;  %v6427_v1 = vrot.slane %v6425_v7, 1  ;;  %v7653_v18 = vrot.slane %v7651_v28, 1 }
 0x42d   : > { %19266 = vst [vmem:[#allocation31_spill] sm:$0xff] %v17244_v3 }
 0x42e   : > { %13933 = vmatmul.msk.bf16.gmra.mxu0 %vm1226_vm1, %v9866_v9  ;;  %v3646_v33 = vpop.f32.mrf.mxu2  ;;  %v17269_v60 = vpop.f32.mrf.mxu3  ;;  %v8827_v9 = vrot.slane %v14295_v29, 1  ;;  %v11019_v29 = vld [vmem:[%s19116_s3 + $0x70] sm:$0xff] }
 0x42f   : > { %v3811_v44 = vadd.f32 %v3646_v33, %v2543_v34  ;;  %v7649_v34 = vor.u32 %v7647_v8, %v7645_v56  ;;  %v14339_v56 = vld [vmem:[%s19113_s0 + $0x64] sm:$0xff]  ;;  %11158 = vperm.xlu2 %14674, %v11019_v29  }
 0x430   : > { %v2380_v22 = vpop.f32.mrf.mxu1  ;;  %v8828_v33 = vsel %vm8805_vm4, %v8825_v52, %v8827_v9  ;;  %v17292_v52 = vld [vmem:[%s19113_s0 + $0x5c] sm:$0xff]  ;;  %v9877_v8 = vshrl.u32 %v14339_v56, 16  ;;  %v9880_v28 = vshll.u32 %v14339_v56, 16 }
 0x431   : > { %v5078_v54 = vadd.f32 %v17144_v2, %v3811_v44  ;;  %v9874_v2 = vor.u32 %v9873_v31, %v9870_v45  ;;  %v6428_v44 = vsel %vm6352_vm5, %v6423_v57, %v6427_v1  ;;  %v7654_v50 = vsel %vm6352_vm5, %v7649_v34, %v7653_v18 }
 0x432   : > { %v6429_v45 = vshrl.u32 %v17250_v53, 16  ;;  %v6433_v57 = vshll.u32 %v17292_v52, 16 }
 0x433   : > { %v5811_v23 = vpop.f32.mrf.mxu0  ;;  %v17274_v36 = vadd.f32 %v5809_v38, %v5078_v54  ;;  %v9875_v22 = vsel %vm9786_vm6, %v9865_v16, %v9874_v2  ;;  %v17297_v16 = vld [vmem:[%s19113_s0 + $0x64] sm:$0xff] }
 0x434   : > { %13707 = vmatmul.msk.bf16.gmra.mxu3 %vm1226_vm1, %v8828_v33  ;;  %v7659_v34 = vshll.u32 %v17297_v16, 16  ;;  %v6431_v61 = vor.u32 %v6429_v45, %v6427_v1  ;;  %v6435_v29 = vrot.slane %v6433_v57, 1  ;;  %v11089_v1 = vpop.permute.xlu0 %11088 }
 0x435   : > { %19268 = vst [vmem:[#allocation34_spill] sm:$0xff] %v17274_v36 }
 0x436   : > { %v3648_v62 = vpop.f32.mrf.mxu2  ;;  %v17284_v38 = vpop.f32.mrf.mxu3  ;;  %v7661_v36 = vrot.slane %v7659_v34, 1 }
 0x438   : > { %v6836_v42 = vpop.f32.mrf.mxu1 }
 0x439   : > { %v7121_v7 = vadd.f32 %v6836_v42, %v15618_v12  ;;  %v17310_v12 = vld [vmem:[%s19113_s0 + $0x74] sm:$0xff]  ;;  %v17314_v42 = vld [vmem:[%s16759_s22] ss:$0 sm:$0xff] }
 0x43b   : > { %v10311_v10 = vpop.f32.mrf.mxu0  ;;  %13247 = vmatmul.msk.bf16.gmra.mxu1 %vm1226_vm1, %v6428_v44  ;;  %13476 = vmatmul.msk.bf16.gmra.mxu2 %vm1226_vm1, %v7654_v50  ;;  %v9879_v44 = vrot.slane %v9877_v8, 1  ;;  %v9882_v50 = vrot.slane %v9880_v28, 2 }
 0x43d   : > { %v17325_v28 = vor.u32 %v9882_v50, %v9879_v44  ;;  %v14340_v44 = vld [vmem:[%s19113_s0 + $0x6c] sm:$0xff] }
 0x43e   : > { %13934 = vmatmul.msk.bf16.gmra.mxu0 %vm1226_vm1, %v9875_v22  ;;  %v8062_v54 = vpop.f32.mrf.mxu2  ;;  %v17316_v53 = vpop.f32.mrf.mxu3  ;;  %v8829_v22 = vrot.slane %v17310_v12, 1 }
 0x43f   : > { %v8347_v23 = vadd.f32 %v8062_v54, %v7121_v7  ;;  %v11023_v7 = vld [vmem:[%s19116_s3 + $0x90] sm:$0xff]  ;;  %v7657_v54 = vor.u32 %v7655_v40, %v7653_v18  ;;  %v6436_v18 = vsel %vm6352_vm5, %v6431_v61, %v6435_v29  ;;  %v9884_v34 = vsel %vm9786_vm6, %v9874_v2, %v17325_v28 }
 0x440   : > { %v6838_v31 = vpop.f32.mrf.mxu1  ;;  %11178 = vperm.xlu0 %14672, %v11023_v7   ;;  %v17349_v2 = vld [vmem:[%s19113_s0 + $0x6c] sm:$0xff]  ;;  %v9886_v7 = vshrl.u32 %v14340_v44, 16 }
 0x441   : > { %v9328_v33 = vadd.f32 %v17189_v48, %v8347_v23  ;;  %v8830_v48 = vsel %vm8805_vm4, %v8827_v9, %v8829_v22  ;;  %v19269_v23 = vld [vmem:[#allocation52_spill] sm:$0xff]  ;;  %v7662_v57 = vsel %vm6352_vm5, %v7657_v54, %v7661_v36  ;;  %v9889_v54 = vshll.u32 %v14340_v44, 16 }
 0x442   : > { %v7122_v3 = vadd.f32 %v6838_v31, %v19269_v23 }
 0x443   : > { %v10313_v62 = vpop.f32.mrf.mxu0  ;;  %v10596_v56 = vadd.f32 %v10311_v10, %v9328_v33 }
 0x444   : > { %13708 = vmatmul.msk.bf16.gmra.mxu3 %vm1226_vm1, %v8830_v48  ;;  %v11024_v48 = vld [vmem:[%s19116_s3 + $0x98] sm:$0xff] }
 0x445   : > { %v10843_v8 = vadd.f32 %v17314_v42, %v10596_v56  ;;  %11183 = vperm.xlu1 %14673, %v11024_v48  }
 0x446   : > { %v8064_v10 = vpop.f32.mrf.mxu2  ;;  %v17336_v50 = vpop.f32.mrf.mxu3 }
 0x447   : > { %v8348_v45 = vadd.f32 %v8064_v10, %v7122_v3  ;;  %v10924_v12 = vmax.f32 %v10843_v8, 0.0  ;;  %v6437_v10 = vshrl.u32 %v17292_v52, 16 }
 0x448   : > { %v6841_v33 = vpop.f32.mrf.mxu1 }
 0x449   : > { %v9329_v9 = vadd.f32 %v17219_v20, %v8348_v45  ;;  %v11491_v40 = vmul.f32 %v11089_v1, %v10924_v12  ;;  %v17344_v20 = vld [vmem:[%s19113_s0 + $0x64] sm:$0xff]  ;;  %v7123_v56 = vadd.f32 %v6841_v33, %v15651_v21  ;;  %v7663_v12 = vshrl.u32 %v17297_v16, 16  ;;  %v17363_v21 = vld [vmem:[%s19113_s0 + $0x7c] sm:$0xff] }
 0x44a   : > { %v6441_v45 = vshll.u32 %v17344_v20, 16  ;;  %v6439_v16 = vor.u32 %v6437_v10, %v6435_v29  ;;  %v11099_v10 = vpop.permute.xlu1 %11098 }
 0x44b   : > { %v10316_v31 = vpop.f32.mrf.mxu0  ;;  %v11659_v3 = vpack.c.bf16 %v11491_v40, %v11491_v40  ;;  %13248 = vmatmul.msk.bf16.gmra.mxu1 %vm1226_vm1, %v6436_v18  ;;  %13477 = vmatmul.msk.bf16.gmra.mxu2 %vm1226_vm1, %v7662_v57  ;;  %v10597_v61 = vadd.f32 %v10313_v62, %v9329_v9  ;;  %v7667_v18 = vshll.u32 %v17349_v2, 16  ;;  %v9888_v9 = vrot.slane %v9886_v7, 1 }
 0x44c   : > { %v9891_v40 = vrot.slane %v9889_v54, 2  ;;  %v7665_v48 = vor.u32 %v7663_v12, %v7661_v36 }
 0x44d   : > { %11740 = vst [vmem:[%s16653_s20 + $0xc] sm:$0xf] %v11659_v3  ;;  %v10844_v33 = vadd.f32 %v17314_v42, %v10597_v61  ;;  %v11022_v3 = vld [vmem:[%s19116_s3 + $0x88] sm:$0xff]  ;;  %v11094_v61 = vpop.permute.xlu0 %11093 }
 0x44e   : > { %13935 = vmatmul.msk.bf16.gmra.mxu0 %vm1226_vm1, %v9884_v34  ;;  %v8067_v23 = vpop.f32.mrf.mxu2  ;;  %v17367_v52 = vpop.f32.mrf.mxu3  ;;  %v8831_v34 = vrot.slane %v17363_v21, 1  ;;  %11173 = vperm.xlu2 %14674, %v11022_v3  }
 0x44f   : > { %v8349_v8 = vadd.f32 %v8067_v23, %v7123_v56  ;;  %v6443_v56 = vrot.slane %v6441_v45, 1  ;;  %v7669_v23 = vrot.slane %v7667_v18, 1  ;;  %v10925_v7 = vmax.f32 %v10844_v33, 0.0 }
 0x450   : > { %v6843_v1 = vpop.f32.mrf.mxu1 }
 0x451   : > { %v9330_v62 = vadd.f32 %v17240_v27, %v8349_v8  ;;  %v8832_v27 = vsel %vm8805_vm4, %v8829_v22, %v8831_v34  ;;  %v7124_v54 = vadd.f32 %v6843_v1, %v15669_v39  ;;  %v6444_v18 = vsel %vm6352_vm5, %v6439_v16, %v6443_v56 }
 0x452   : > { %v7670_v22 = vsel %vm6352_vm5, %v7665_v48, %v7669_v23 }
 0x453   : > { %v10318_v57 = vpop.f32.mrf.mxu0  ;;  %v10598_v44 = vadd.f32 %v10316_v31, %v9330_v62  ;;  %v17378_v31 = vor.u32 %v9891_v40, %v9888_v9  ;;  %v11492_v62 = vmul.f32 %v11094_v61, %v10925_v7  ;;  %v14341_v40 = vld [vmem:[%s19113_s0 + $0x74] sm:$0xff]  ;;  %v11026_v7 = vld [vmem:[%s19116_s3 + $0xa8] sm:$0xff] }
 0x454   : > { %13709 = vmatmul.msk.bf16.gmra.mxu3 %vm1226_vm1, %v8832_v27  ;;  %v9895_v27 = vshrl.u32 %v14341_v40, 16  ;;  %v9898_v61 = vshll.u32 %v14341_v40, 16  ;;  %11193 = vperm.xlu0 %14672, %v11026_v7   ;;  %v11027_v40 = vld [vmem:[%s19116_s3 + $0xb0] sm:$0xff] }
 0x455   : > { %v10845_v8 = vadd.f32 %v17314_v42, %v10598_v44  ;;  %v9893_v9 = vsel %vm9786_vm6, %v17325_v28, %v17378_v31  ;;  %v17403_v28 = vld [vmem:[%s19113_s0 + $0x74] sm:$0xff]  ;;  %11198 = vperm.xlu1 %14673, %v11027_v40  }
 0x456   : > { %v8069_v29 = vpop.f32.mrf.mxu2  ;;  %v17390_v44 = vpop.f32.mrf.mxu3 }
 0x457   : > { %v8350_v45 = vadd.f32 %v8069_v29, %v7124_v54  ;;  %v10926_v36 = vmax.f32 %v10845_v8, 0.0  ;;  %v6445_v29 = vshrl.u32 %v17344_v20, 16 }
 0x458   : > { %v6846_v12 = vpop.f32.mrf.mxu1 }
 0x459   : > { %v9331_v33 = vadd.f32 %v17269_v60, %v8350_v45  ;;  %v11493_v39 = vmul.f32 %v11099_v10, %v10926_v36  ;;  %v17398_v60 = vld [vmem:[%s19113_s0 + $0x6c] sm:$0xff]  ;;  %v7125_v16 = vadd.f32 %v6846_v12, %v15682_v59  ;;  %v7671_v36 = vshrl.u32 %v17349_v2, 16  ;;  %v17417_v59 = vld [vmem:[%s19113_s0 + $0x84] sm:$0xff] }
 0x45a   : > { %v6449_v45 = vshll.u32 %v17398_v60, 16  ;;  %v6447_v2 = vor.u32 %v6445_v29, %v6443_v56 }
 0x45b   : > { %v10321_v1 = vpop.f32.mrf.mxu0  ;;  %v14377_v3 = vpack.c.bf16 %v11493_v39, %v11492_v62  ;;  %13249 = vmatmul.msk.bf16.gmra.mxu1 %vm1226_vm1, %v6444_v18  ;;  %13478 = vmatmul.msk.bf16.gmra.mxu2 %vm1226_vm1, %v7670_v22  ;;  %v10599_v48 = vadd.f32 %v10318_v57, %v9331_v33  ;;  %v7675_v18 = vshll.u32 %v17403_v28, 16  ;;  %v9897_v62 = vrot.slane %v9895_v27, 1 }
 0x45c   : > { %v9900_v33 = vrot.slane %v9898_v61, 2  ;;  %v8833_v39 = vrot.slane %v17417_v59, 1 }
 0x45d   : > { %14574 = vst [vmem:[%s16653_s20 + $0x10] sm:$0xff] %v14377_v3   ;;  %v10846_v12 = vadd.f32 %v17314_v42, %v10599_v48  ;;  %v6451_v3 = vrot.slane %v6449_v45, 1  ;;  %v7677_v7 = vrot.slane %v7675_v18, 1  ;;  %v11104_v48 = vpop.permute.xlu1 %11103 }
 0x45e   : > { %13936 = vmatmul.msk.bf16.gmra.mxu0 %vm1226_vm1, %v9893_v9  ;;  %v8072_v54 = vpop.f32.mrf.mxu2  ;;  %v17421_v20 = vpop.f32.mrf.mxu3 }
 0x45f   : > { %v8351_v8 = vadd.f32 %v8072_v54, %v7125_v16  ;;  %v7673_v16 = vor.u32 %v7671_v36, %v7669_v23  ;;  %v10927_v27 = vmax.f32 %v10846_v12, 0.0  ;;  %v11109_v23 = vpop.permute.xlu2 %11108  ;;  %v6452_v21 = vsel %vm6352_vm5, %v6447_v2, %v6451_v3  ;;  %v14342_v12 = vld [vmem:[%s19113_s0 + $0x7c] sm:$0xff] }
 0x460   : > { %v6848_v10 = vpop.f32.mrf.mxu1  ;;  %v9904_v40 = vshrl.u32 %v14342_v12, 16 }
 0x461   : > { %v9332_v57 = vadd.f32 %v17284_v38, %v8351_v8  ;;  %v8834_v38 = vsel %vm8805_vm4, %v8831_v34, %v8833_v39  ;;  %v7126_v61 = vadd.f32 %v6848_v10, %v15700_v43  ;;  %v7678_v34 = vsel %vm6352_vm5, %v7673_v16, %v7677_v7 }
 0x462   : > { %v11494_v36 = vmul.f32 %v11104_v48, %v10927_v27  ;;  %v9907_v16 = vshll.u32 %v14342_v12, 16 }
 0x463   : > { %v10323_v22 = vpop.f32.mrf.mxu0  ;;  %v10600_v9 = vadd.f32 %v10321_v1, %v9332_v57  ;;  %v17434_v1 = vor.u32 %v9900_v33, %v9897_v62 }
 0x464   : > { %13710 = vmatmul.msk.bf16.gmra.mxu3 %vm1226_vm1, %v8834_v38  ;;  %v11025_v38 = vld [vmem:[%s19116_s3 + $0xa0] sm:$0xff] }
 0x465   : > { %v10847_v56 = vadd.f32 %v17314_v42, %v10600_v9  ;;  %v9902_v57 = vsel %vm9786_vm6, %v17378_v31, %v17434_v1  ;;  %v17459_v31 = vld [vmem:[%s19113_s0 + $0x7c] sm:$0xff]  ;;  %11188 = vperm.xlu2 %14674, %v11025_v38  }
 0x466   : > { %v8074_v54 = vpop.f32.mrf.mxu2  ;;  %v17446_v62 = vpop.f32.mrf.mxu3 }
 0x467   : > { %v8352_v8 = vadd.f32 %v8074_v54, %v7126_v61  ;;  %v10928_v29 = vmax.f32 %v10847_v56, 0.0  ;;  %v6453_v61 = vshrl.u32 %v17398_v60, 16 }
 0x468   : > { %v6851_v45 = vpop.f32.mrf.mxu1 }
 0x469   : > { %v9333_v18 = vadd.f32 %v17316_v53, %v8352_v8  ;;  %v11495_v43 = vmul.f32 %v11109_v23, %v10928_v29  ;;  %v17454_v53 = vld [vmem:[%s19113_s0 + $0x74] sm:$0xff]  ;;  %v7127_v9 = vadd.f32 %v6851_v45, %v15713_v37  ;;  %v7679_v23 = vshrl.u32 %v17403_v28, 16  ;;  %v17473_v37 = vld [vmem:[%s19113_s0 + $0x8c] sm:$0xff] }
 0x46a   : > { %v6457_v54 = vshll.u32 %v17454_v53, 16  ;;  %v7683_v8 = vshll.u32 %v17459_v31, 16  ;;  %v6455_v28 = vor.u32 %v6453_v61, %v6451_v3 }
 0x46b   : > { %v10326_v10 = vpop.f32.mrf.mxu0  ;;  %v14382_v33 = vpack.c.bf16 %v11495_v43, %v11494_v36  ;;  %13250 = vmatmul.msk.bf16.gmra.mxu1 %vm1226_vm1, %v6452_v21  ;;  %13479 = vmatmul.msk.bf16.gmra.mxu2 %vm1226_vm1, %v7678_v34  ;;  %v10601_v2 = vadd.f32 %v10323_v22, %v9333_v18  ;;  %v9906_v21 = vrot.slane %v9904_v40, 1  ;;  %v9909_v34 = vrot.slane %v9907_v16, 2  ;;  %v11029_v43 = vld [vmem:[%s19116_s3 + $0xc0] sm:$0xff] }
 0x46c   : > { %v8835_v36 = vrot.slane %v17473_v37, 1  ;;  %v7681_v12 = vor.u32 %v7679_v23, %v7677_v7  ;;  %11208 = vperm.xlu0 %14672, %v11029_v43   ;;  %v11119_v7 = vpop.permute.xlu0 %11118  ;;  %v11030_v43 = vld [vmem:[%s19116_s3 + $0xc8] sm:$0xff] }
 0x46d   : > { %14575 = vst [vmem:[%s16653_s20 + $0x18] sm:$0xff] %v14382_v33   ;;  %v10848_v29 = vadd.f32 %v17314_v42, %v10601_v2  ;;  %v7685_v33 = vrot.slane %v7683_v8, 1  ;;  %v14343_v8 = vld [vmem:[%s19113_s0 + $0x84] sm:$0xff]  ;;  %11213 = vperm.xlu1 %14673, %v11030_v43  }
 0x46e   : > { %13937 = vmatmul.msk.bf16.gmra.mxu0 %vm1226_vm1, %v9902_v57  ;;  %v8077_v48 = vpop.f32.mrf.mxu2  ;;  %v17477_v60 = vpop.f32.mrf.mxu3  ;;  %v6459_v57 = vrot.slane %v6457_v54, 1 }
 0x46f   : > { %v8353_v27 = vadd.f32 %v8077_v48, %v7127_v9  ;;  %v11114_v9 = vpop.permute.xlu2 %11113  ;;  %v10929_v2 = vmax.f32 %v10848_v29, 0.0 }
 0x470   : > { %v6853_v56 = vpop.f32.mrf.mxu1  ;;  %v6460_v59 = vsel %vm6352_vm5, %v6455_v28, %v6459_v57  ;;  %v9916_v28 = vshll.u32 %v14343_v8, 16 }
 0x471   : > { %v9334_v22 = vadd.f32 %v17336_v50, %v8353_v27  ;;  %v8836_v50 = vsel %vm8805_vm4, %v8833_v39, %v8835_v36  ;;  %v7128_v40 = vadd.f32 %v6853_v56, %v15731_v0  ;;  %v7686_v39 = vsel %vm6352_vm5, %v7681_v12, %v7685_v33 }
 0x472   : > { %v11496_v61 = vmul.f32 %v11114_v9, %v10929_v2  ;;  %v6461_v9 = vshrl.u32 %v17454_v53, 16 }
 0x473   : > { %v10328_v45 = vpop.f32.mrf.mxu0  ;;  %v10602_v18 = vadd.f32 %v10326_v10, %v9334_v22  ;;  %v17490_v10 = vor.u32 %v9909_v34, %v9906_v21 }
 0x474   : > { %13711 = vmatmul.msk.bf16.gmra.mxu3 %vm1226_vm1, %v8836_v50 }
 0x475   : > { %v10849_v3 = vadd.f32 %v17314_v42, %v10602_v18  ;;  %v9911_v23 = vsel %vm9786_vm6, %v17434_v1, %v17490_v10  ;;  %v17515_v1 = vld [vmem:[%s19113_s0 + $0x84] sm:$0xff]  ;;  %v9913_v18 = vshrl.u32 %v14343_v8, 16  ;;  %v11124_v8 = vpop.permute.xlu1 %11123 }
 0x476   : > { %v8079_v16 = vpop.f32.mrf.mxu2 }
 0x477   : > { %v8354_v38 = vadd.f32 %v8079_v16, %v7128_v40  ;;  %v10930_v48 = vmax.f32 %v10849_v3, 0.0  ;;  %v17502_v22 = vpop.f32.mrf.mxu3  ;;  %v7687_v3 = vshrl.u32 %v17459_v31, 16  ;;  %v7691_v16 = vshll.u32 %v17515_v1, 16 }
 0x478   : > { %v6856_v27 = vpop.f32.mrf.mxu1  ;;  %v6463_v31 = vor.u32 %v6461_v9, %v6459_v57 }
 0x479   : > { %v9335_v54 = vadd.f32 %v17367_v52, %v8354_v38  ;;  %v11497_v0 = vmul.f32 %v11119_v7, %v10930_v48  ;;  %v17510_v52 = vld [vmem:[%s19113_s0 + $0x7c] sm:$0xff]  ;;  %v7129_v21 = vadd.f32 %v6856_v27, %v15744_v11  ;;  %v17529_v11 = vld [vmem:[%s19113_s0 + $0x94] sm:$0xff]  ;;  %v9915_v48 = vrot.slane %v9913_v18, 1 }
 0x47a   : > { %v6465_v40 = vshll.u32 %v17510_v52, 16  ;;  %v9918_v27 = vrot.slane %v9916_v28, 2 }
 0x47b   : > { %v10331_v56 = vpop.f32.mrf.mxu0  ;;  %v14387_v29 = vpack.c.bf16 %v11497_v0, %v11496_v61  ;;  %13251 = vmatmul.msk.bf16.gmra.mxu1 %vm1226_vm1, %v6460_v59  ;;  %13480 = vmatmul.msk.bf16.gmra.mxu2 %vm1226_vm1, %v7686_v39  ;;  %v10603_v34 = vadd.f32 %v10328_v45, %v9335_v54  ;;  %v8837_v59 = vrot.slane %v17529_v11, 1  ;;  %v11028_v61 = vld [vmem:[%s19116_s3 + $0xb8] sm:$0xff]  ;;  %v7689_v0 = vor.u32 %v7687_v3, %v7685_v33  ;;  %v11129_v33 = vpop.permute.xlu2 %11128 }
 0x47c   : > { %v6467_v54 = vrot.slane %v6465_v40, 1  ;;  %11203 = vperm.xlu2 %14674, %v11028_v61   ;;  %v14344_v40 = vld [vmem:[%s19113_s0 + $0x8c] sm:$0xff] }
 0x47d   : > { %14576 = vst [vmem:[%s16653_s20 + $0x20] sm:$0xff] %v14387_v29   ;;  %v10850_v7 = vadd.f32 %v17314_v42, %v10603_v34 }
 0x47e   : > { %13938 = vmatmul.msk.bf16.gmra.mxu0 %vm1226_vm1, %v9911_v23  ;;  %v8082_v12 = vpop.f32.mrf.mxu2  ;;  %v7693_v23 = vrot.slane %v7691_v16, 1  ;;  %v6468_v37 = vsel %vm6352_vm5, %v6463_v31, %v6467_v54 }
 0x47f   : > { %v8355_v50 = vadd.f32 %v8082_v12, %v7129_v21  ;;  %v17533_v53 = vpop.f32.mrf.mxu3  ;;  %v10931_v29 = vmax.f32 %v10850_v7, 0.0 }
 0x480   : > { %v6858_v2 = vpop.f32.mrf.mxu1 }
 0x481   : > { %v9336_v45 = vadd.f32 %v17390_v44, %v8355_v50  ;;  %v8838_v44 = vsel %vm8805_vm4, %v8835_v36, %v8837_v59  ;;  %v7130_v21 = vadd.f32 %v6858_v2, %v15762_v47  ;;  %v7694_v36 = vsel %vm6352_vm5, %v7689_v0, %v7693_v23 }
 0x482   : > { %v11498_v12 = vmul.f32 %v11124_v8, %v10931_v29  ;;  %v6469_v0 = vshrl.u32 %v17510_v52, 16  ;;  %v7695_v29 = vshrl.u32 %v17515_v1, 16 }
 0x483   : > { %v10333_v38 = vpop.f32.mrf.mxu0  ;;  %v10604_v39 = vadd.f32 %v10331_v56, %v9336_v45  ;;  %v17546_v56 = vor.u32 %v9918_v27, %v9915_v48  ;;  %v9922_v48 = vshrl.u32 %v14344_v40, 16  ;;  %v9925_v27 = vshll.u32 %v14344_v40, 16 }
 0x484   : > { %13712 = vmatmul.msk.bf16.gmra.mxu3 %vm1226_vm1, %v8838_v44  ;;  %v6471_v1 = vor.u32 %v6469_v0, %v6467_v54  ;;  %v14345_v0 = vld [vmem:[%s19113_s0 + $0x94] sm:$0xff] }
 0x485   : > { %v10851_v57 = vadd.f32 %v17314_v42, %v10604_v39  ;;  %v9920_v2 = vsel %vm9786_vm6, %v17490_v10, %v17546_v56  ;;  %v17571_v10 = vld [vmem:[%s19113_s0 + $0x8c] sm:$0xff]  ;;  %v11032_v39 = vld [vmem:[%s19116_s3 + $0xd8] sm:$0xff] }
 0x486   : > { %v8084_v34 = vpop.f32.mrf.mxu2  ;;  %11223 = vperm.xlu0 %14672, %v11032_v39  }
 0x487   : > { %v8356_v18 = vadd.f32 %v8084_v34, %v7130_v21  ;;  %v10932_v28 = vmax.f32 %v10851_v57, 0.0  ;;  %v17558_v3 = vpop.f32.mrf.mxu3  ;;  %v7699_v21 = vshll.u32 %v17571_v10, 16 }
 0x488   : > { %v6861_v43 = vpop.f32.mrf.mxu1 }
 0x489   : > { %v9337_v50 = vadd.f32 %v17421_v20, %v8356_v18  ;;  %v11499_v47 = vmul.f32 %v11129_v33, %v10932_v28  ;;  %v17566_v20 = vld [vmem:[%s19113_s0 + $0x84] sm:$0xff]  ;;  %v7131_v45 = vadd.f32 %v6861_v43, %v15775_v63  ;;  %v17585_v63 = vld [vmem:[%s19113_s0 + $0x9c] sm:$0xff]  ;;  %v9924_v33 = vrot.slane %v9922_v48, 1 }
 0x48a   : > { %v6473_v8 = vshll.u32 %v17566_v20, 16  ;;  %v9927_v18 = vrot.slane %v9925_v27, 2  ;;  %v8839_v28 = vrot.slane %v17585_v63, 1 }
 0x48b   : > { %v10336_v9 = vpop.f32.mrf.mxu0  ;;  %v14392_v16 = vpack.c.bf16 %v11499_v47, %v11498_v12  ;;  %13252 = vmatmul.msk.bf16.gmra.mxu1 %vm1226_vm1, %v6468_v37  ;;  %13481 = vmatmul.msk.bf16.gmra.mxu2 %vm1226_vm1, %v7694_v36  ;;  %v10605_v7 = vadd.f32 %v10333_v38, %v9337_v50  ;;  %v11033_v37 = vld [vmem:[%s19116_s3 + $0xe0] sm:$0xff]  ;;  %v7697_v12 = vor.u32 %v7695_v29, %v7693_v23  ;;  %v7701_v50 = vrot.slane %v7699_v21, 1  ;;  %v11134_v47 = vpop.permute.xlu0 %11133 }
 0x48c   : > { %v6475_v36 = vrot.slane %v6473_v8, 1  ;;  %11228 = vperm.xlu1 %14673, %v11033_v37   ;;  %v11139_v23 = vpop.permute.xlu1 %11138 }
 0x48d   : > { %14577 = vst [vmem:[%s16653_s20 + $0x28] sm:$0xff] %v14392_v16   ;;  %v10852_v57 = vadd.f32 %v17314_v42, %v10605_v7 }
 0x48e   : > { %13939 = vmatmul.msk.bf16.gmra.mxu0 %vm1226_vm1, %v9920_v2  ;;  %v8087_v31 = vpop.f32.mrf.mxu2  ;;  %v6476_v11 = vsel %vm6352_vm5, %v6471_v1, %v6475_v36  ;;  %v6477_v1 = vshrl.u32 %v17566_v20, 16 }
 0x48f   : > { %v8357_v61 = vadd.f32 %v8087_v31, %v7131_v45  ;;  %v17589_v52 = vpop.f32.mrf.mxu3  ;;  %v10933_v2 = vmax.f32 %v10852_v57, 0.0  ;;  %v9934_v57 = vshll.u32 %v14345_v0, 16 }
 0x490   : > { %v6863_v44 = vpop.f32.mrf.mxu1 }
 0x491   : > { %v9338_v38 = vadd.f32 %v17446_v62, %v8357_v61  ;;  %v8840_v62 = vsel %vm8805_vm4, %v8837_v59, %v8839_v28  ;;  %v7132_v40 = vadd.f32 %v6863_v44, %v15793_v32  ;;  %v7702_v59 = vsel %vm6352_vm5, %v7697_v12, %v7701_v50 }
 0x492   : > { %v11500_v27 = vmul.f32 %v11134_v47, %v10933_v2 }
 0x493   : > { %v10338_v34 = vpop.f32.mrf.mxu0  ;;  %v10606_v43 = vadd.f32 %v10336_v9, %v9338_v38  ;;  %v17602_v9 = vor.u32 %v9927_v18, %v9924_v33  ;;  %v9931_v38 = vshrl.u32 %v14345_v0, 16  ;;  %v11031_v33 = vld [vmem:[%s19116_s3 + $0xd0] sm:$0xff] }
 0x494   : > { %13713 = vmatmul.msk.bf16.gmra.mxu3 %vm1226_vm1, %v8840_v62  ;;  %11218 = vperm.xlu2 %14674, %v11031_v33   ;;  %v7703_v62 = vshrl.u32 %v17571_v10, 16  ;;  %v6479_v10 = vor.u32 %v6477_v1, %v6475_v36 }
 0x495   : > { %v10853_v54 = vadd.f32 %v17314_v42, %v10606_v43  ;;  %v9929_v61 = vsel %vm9786_vm6, %v17546_v56, %v17602_v9  ;;  %v17627_v56 = vld [vmem:[%s19113_s0 + $0x94] sm:$0xff] }
 0x496   : > { %v8089_v16 = vpop.f32.mrf.mxu2  ;;  %v7707_v47 = vshll.u32 %v17627_v56, 16 }
 0x497   : > { %v8358_v45 = vadd.f32 %v8089_v16, %v7132_v40  ;;  %v10934_v7 = vmax.f32 %v10853_v54, 0.0  ;;  %v17614_v44 = vpop.f32.mrf.mxu3  ;;  %v9933_v54 = vrot.slane %v9931_v38, 1  ;;  %v9936_v16 = vrot.slane %v9934_v57, 2 }
 0x498   : > { %v6866_v48 = vpop.f32.mrf.mxu1 }
 0x499   : > { %v9339_v39 = vadd.f32 %v17477_v60, %v8358_v45  ;;  %v11501_v32 = vmul.f32 %v11139_v23, %v10934_v7  ;;  %v17622_v60 = vld [vmem:[%s19113_s0 + $0x8c] sm:$0xff]  ;;  %v7133_v29 = vadd.f32 %v6866_v48, %v15806_v41  ;;  %v17641_v41 = vld [vmem:[%s19113_s0 + $0xa4] sm:$0xff] }
 0x49a   : > { %v6481_v12 = vshll.u32 %v17622_v60, 16  ;;  %v8841_v23 = vrot.slane %v17641_v41, 1  ;;  %v11035_v7 = vld [vmem:[%s19116_s3 + $0xf0] sm:$0xff] }
 0x49b   : > { %v10341_v31 = vpop.f32.mrf.mxu0  ;;  %v14397_v8 = vpack.c.bf16 %v11501_v32, %v11500_v27  ;;  %13253 = vmatmul.msk.bf16.gmra.mxu1 %vm1226_vm1, %v6476_v11  ;;  %13482 = vmatmul.msk.bf16.gmra.mxu2 %vm1226_vm1, %v7702_v59  ;;  %v10607_v21 = vadd.f32 %v10338_v34, %v9339_v39  ;;  %v7705_v11 = vor.u32 %v7703_v62, %v7701_v50  ;;  %v7709_v59 = vrot.slane %v7707_v47, 1  ;;  %v11144_v27 = vpop.permute.xlu2 %11143 }
 0x49c   : > { %v6483_v48 = vrot.slane %v6481_v12, 1  ;;  %11238 = vperm.xlu0 %14672, %v11035_v7   ;;  %v11149_v50 = vpop.permute.xlu0 %11148  ;;  %v7711_v7 = vshrl.u32 %v17627_v56, 16 }
 0x49d   : > { %14578 = vst [vmem:[%s16653_s20 + $0x30] sm:$0xff] %v14397_v8   ;;  %v10854_v2 = vadd.f32 %v17314_v42, %v10607_v21 }
 0x49e   : > { %13940 = vmatmul.msk.bf16.gmra.mxu0 %vm1226_vm1, %v9929_v61  ;;  %v8092_v18 = vpop.f32.mrf.mxu2  ;;  %v6484_v63 = vsel %vm6352_vm5, %v6479_v10, %v6483_v48 }
 0x49f   : > { %v8359_v43 = vadd.f32 %v8092_v18, %v7133_v29  ;;  %v17645_v20 = vpop.f32.mrf.mxu3  ;;  %v10935_v39 = vmax.f32 %v10854_v2, 0.0  ;;  %v14346_v18 = vld [vmem:[%s19113_s0 + $0x9c] sm:$0xff] }
 0x4a0   : > { %v6868_v37 = vpop.f32.mrf.mxu1  ;;  %v9940_v62 = vshrl.u32 %v14346_v18, 16  ;;  %v9943_v47 = vshll.u32 %v14346_v18, 16 }
 0x4a1   : > { %v9340_v34 = vadd.f32 %v17502_v22, %v8359_v43  ;;  %v8842_v22 = vsel %vm8805_vm4, %v8839_v28, %v8841_v23  ;;  %v7134_v32 = vadd.f32 %v6868_v37, %v15824_v5  ;;  %v7710_v28 = vsel %vm6352_vm5, %v7705_v11, %v7709_v59 }
 0x4a2   : > { %v11502_v21 = vmul.f32 %v11144_v27, %v10935_v39  ;;  %v9942_v39 = vrot.slane %v9940_v62, 1 }
 0x4a3   : > { %v10343_v40 = vpop.f32.mrf.mxu0  ;;  %v10608_v45 = vadd.f32 %v10341_v31, %v9340_v34  ;;  %v17658_v31 = vor.u32 %v9936_v16, %v9933_v54  ;;  %v11036_v34 = vld [vmem:[%s19116_s3 + $0xf8] sm:$0xff]  ;;  %v6485_v16 = vshrl.u32 %v17622_v60, 16 }
 0x4a4   : > { %13714 = vmatmul.msk.bf16.gmra.mxu3 %vm1226_vm1, %v8842_v22  ;;  %11243 = vperm.xlu1 %14673, %v11036_v34  }
 0x4a5   : > { %v10855_v36 = vadd.f32 %v17314_v42, %v10608_v45  ;;  %v9938_v33 = vsel %vm9786_vm6, %v17602_v9, %v17658_v31  ;;  %v17683_v9 = vld [vmem:[%s19113_s0 + $0x9c] sm:$0xff]  ;;  %v6487_v56 = vor.u32 %v6485_v16, %v6483_v48 }
 0x4a6   : > { %v8094_v61 = vpop.f32.mrf.mxu2  ;;  %v7715_v11 = vshll.u32 %v17683_v9, 16 }
 0x4a7   : > { %v8360_v0 = vadd.f32 %v8094_v61, %v7134_v32  ;;  %v10936_v8 = vmax.f32 %v10855_v36, 0.0  ;;  %v17670_v43 = vpop.f32.mrf.mxu3  ;;  %v9945_v32 = vrot.slane %v9943_v47, 2  ;;  %v14347_v47 = vld [vmem:[%s19113_s0 + $0xa4] sm:$0xff] }
 0x4a8   : > { %v6871_v29 = vpop.f32.mrf.mxu1 }
 0x4a9   : > { %v9341_v38 = vadd.f32 %v17533_v53, %v8360_v0  ;;  %v11503_v5 = vmul.f32 %v11149_v50, %v10936_v8  ;;  %v17678_v53 = vld [vmem:[%s19113_s0 + $0x94] sm:$0xff]  ;;  %v7135_v37 = vadd.f32 %v6871_v29, %v15837_v35  ;;  %v17697_v35 = vld [vmem:[%s19113_s0 + $0xac] sm:$0xff]  ;;  %v7713_v8 = vor.u32 %v7711_v7, %v7709_v59  ;;  %v11159_v59 = vpop.permute.xlu2 %11158 }
 0x4aa   : > { %v6489_v10 = vshll.u32 %v17678_v53, 16  ;;  %v8843_v36 = vrot.slane %v17697_v35, 1  ;;  %v11034_v50 = vld [vmem:[%s19116_s3 + $0xe8] sm:$0xff]  ;;  %v7717_v29 = vrot.slane %v7715_v11, 1 }
 0x4ab   : > { %v10346_v57 = vpop.f32.mrf.mxu0  ;;  %v14402_v1 = vpack.c.bf16 %v11503_v5, %v11502_v21  ;;  %13254 = vmatmul.msk.bf16.gmra.mxu1 %vm1226_vm1, %v6484_v63  ;;  %13483 = vmatmul.msk.bf16.gmra.mxu2 %vm1226_vm1, %v7710_v28  ;;  %v10609_v12 = vadd.f32 %v10343_v40, %v9341_v38  ;;  %v11154_v63 = vpop.permute.xlu1 %11153  ;;  %v17714_v38 = vor.u32 %v9945_v32, %v9942_v39  ;;  %v11038_v7 = vld [vmem:[%s19116_s3 + $0x108] sm:$0xff] }
 0x4ac   : > { %v6491_v0 = vrot.slane %v6489_v10, 1  ;;  %11233 = vperm.xlu2 %14674, %v11034_v50   ;;  %v9952_v10 = vshll.u32 %v14347_v47, 16  ;;  %11253 = vperm.xlu0 %14672, %v11038_v7  }
 0x4ad   : > { %14579 = vst [vmem:[%s16653_s20 + $0x38] sm:$0xff] %v14402_v1   ;;  %v10856_v22 = vadd.f32 %v17314_v42, %v10609_v12  ;;  %v9947_v62 = vsel %vm9786_vm6, %v17658_v31, %v17714_v38  ;;  %v17739_v31 = vld [vmem:[%s19113_s0 + $0xa4] sm:$0xff] }
 0x4ae   : > { %13941 = vmatmul.msk.bf16.gmra.mxu0 %vm1226_vm1, %v9938_v33  ;;  %v8097_v2 = vpop.f32.mrf.mxu2  ;;  %v6492_v41 = vsel %vm6352_vm5, %v6487_v56, %v6491_v0  ;;  %v7723_v56 = vshll.u32 %v17739_v31, 16 }
 0x4af   : > { %v8361_v54 = vadd.f32 %v8097_v2, %v7135_v37  ;;  %v17701_v60 = vpop.f32.mrf.mxu3  ;;  %v10937_v28 = vmax.f32 %v10856_v22, 0.0  ;;  %v6493_v22 = vshrl.u32 %v17678_v53, 16 }
 0x4b0   : > { %v6873_v45 = vpop.f32.mrf.mxu1 }
 0x4b1   : > { %v9342_v40 = vadd.f32 %v17558_v3, %v8361_v54  ;;  %v8844_v3 = vsel %vm8805_vm4, %v8841_v23, %v8843_v36  ;;  %v7136_v21 = vadd.f32 %v6873_v45, %v15855_v6  ;;  %v7718_v23 = vsel %vm6352_vm5, %v7713_v8, %v7717_v29 }
 0x4b2   : > { %v11504_v1 = vmul.f32 %v11154_v63, %v10937_v28  ;;  %v9949_v45 = vshrl.u32 %v14347_v47, 16  ;;  %v9954_v63 = vrot.slane %v9952_v10, 2 }
 0x4b3   : > { %v10348_v27 = vpop.f32.mrf.mxu0  ;;  %v10610_v61 = vadd.f32 %v10346_v57, %v9342_v40 }
 0x4b4   : > { %13715 = vmatmul.msk.bf16.gmra.mxu3 %vm1226_vm1, %v8844_v3  ;;  %v9951_v3 = vrot.slane %v9949_v45, 1 }
 0x4b5   : > { %v10857_v48 = vadd.f32 %v17314_v42, %v10610_v61  ;;  %v7719_v61 = vshrl.u32 %v17683_v9, 16  ;;  %v6495_v9 = vor.u32 %v6493_v22, %v6491_v0 }
 0x4b6   : > { %v8099_v5 = vpop.f32.mrf.mxu2 }
 0x4b7   : > { %v8362_v57 = vadd.f32 %v8099_v5, %v7136_v21  ;;  %v10938_v33 = vmax.f32 %v10857_v48, 0.0  ;;  %v17726_v34 = vpop.f32.mrf.mxu3  ;;  %v11039_v48 = vld [vmem:[%s19116_s3 + $0x110] sm:$0xff] }
 0x4b8   : > { %v6876_v18 = vpop.f32.mrf.mxu1  ;;  %11258 = vperm.xlu1 %14673, %v11039_v48  }
 0x4b9   : > { %v9343_v37 = vadd.f32 %v17589_v52, %v8362_v57  ;;  %v11505_v6 = vmul.f32 %v11159_v59, %v10938_v33  ;;  %v17734_v52 = vld [vmem:[%s19113_s0 + $0x9c] sm:$0xff]  ;;  %v7137_v54 = vadd.f32 %v6876_v18, %v15868_v4  ;;  %v17753_v4 = vld [vmem:[%s19113_s0 + $0xb4] sm:$0xff]  ;;  %v7721_v59 = vor.u32 %v7719_v61, %v7717_v29  ;;  %v11164_v33 = vpop.permute.xlu0 %11163  ;;  %v11169_v29 = vpop.permute.xlu1 %11168 }
 0x4ba   : > { %v6497_v32 = vshll.u32 %v17734_v52, 16  ;;  %v8845_v28 = vrot.slane %v17753_v4, 1  ;;  %v7725_v57 = vrot.slane %v7723_v56, 1  ;;  %v6501_v56 = vshrl.u32 %v17734_v52, 16 }
 0x4bb   : > { %v10351_v12 = vpop.f32.mrf.mxu0  ;;  %v14407_v2 = vpack.c.bf16 %v11505_v6, %v11504_v1  ;;  %13255 = vmatmul.msk.bf16.gmra.mxu1 %vm1226_vm1, %v6492_v41  ;;  %13484 = vmatmul.msk.bf16.gmra.mxu2 %vm1226_vm1, %v7718_v23  ;;  %v10611_v16 = vadd.f32 %v10348_v27, %v9343_v37  ;;  %v17770_v23 = vor.u32 %v9954_v63, %v9951_v3  ;;  %v7727_v3 = vshrl.u32 %v17739_v31, 16 }
 0x4bc   : > { %v6499_v5 = vrot.slane %v6497_v32, 1 }
 0x4bd   : > { %14580 = vst [vmem:[%s16653_s20 + $0x40] sm:$0xff] %v14407_v2   ;;  %v10858_v50 = vadd.f32 %v17314_v42, %v10611_v16  ;;  %v14348_v16 = vld [vmem:[%s19113_s0 + $0xac] sm:$0xff] }
 0x4be   : > { %13942 = vmatmul.msk.bf16.gmra.mxu0 %vm1226_vm1, %v9947_v62  ;;  %v8102_v11 = vpop.f32.mrf.mxu2  ;;  %v6500_v35 = vsel %vm6352_vm5, %v6495_v9, %v6499_v5  ;;  %v9961_v22 = vshll.u32 %v14348_v16, 16 }
 0x4bf   : > { %v8363_v40 = vadd.f32 %v8102_v11, %v7137_v54  ;;  %v17757_v53 = vpop.f32.mrf.mxu3  ;;  %v10939_v18 = vmax.f32 %v10858_v50, 0.0  ;;  %v9956_v54 = vsel %vm9786_vm6, %v17714_v38, %v17770_v23  ;;  %v17795_v38 = vld [vmem:[%s19113_s0 + $0xac] sm:$0xff] }
 0x4c0   : > { %v6878_v39 = vpop.f32.mrf.mxu1  ;;  %v7731_v63 = vshll.u32 %v17795_v38, 16  ;;  %v9963_v52 = vrot.slane %v9961_v22, 2 }
 0x4c1   : > { %v9344_v27 = vadd.f32 %v17614_v44, %v8363_v40  ;;  %v8846_v44 = vsel %vm8805_vm4, %v8843_v36, %v8845_v28  ;;  %v7138_v41 = vadd.f32 %v6878_v39, %v15886_v51  ;;  %v7726_v36 = vsel %vm6352_vm5, %v7721_v59, %v7725_v57  ;;  %v11037_v39 = vld [vmem:[%s19116_s3 + $0x100] sm:$0xff] }
 0x4c2   : > { %v11506_v62 = vmul.f32 %v11164_v33, %v10939_v18  ;;  %v9958_v40 = vshrl.u32 %v14348_v16, 16  ;;  %11248 = vperm.xlu2 %14674, %v11037_v39   ;;  %v6503_v33 = vor.u32 %v6501_v56, %v6499_v5  ;;  %v11041_v18 = vld [vmem:[%s19116_s3 + $0x120] sm:$0xff] }
 0x4c3   : > { %v10353_v8 = vpop.f32.mrf.mxu0  ;;  %v10612_v21 = vadd.f32 %v10351_v12, %v9344_v27  ;;  %11268 = vperm.xlu0 %14672, %v11041_v18  }
 0x4c4   : > { %13716 = vmatmul.msk.bf16.gmra.mxu3 %vm1226_vm1, %v8846_v44  ;;  %v9960_v48 = vrot.slane %v9958_v40, 1 }
 0x4c5   : > { %v10859_v0 = vadd.f32 %v17314_v42, %v10612_v21 }
 0x4c6   : > { %v8104_v1 = vpop.f32.mrf.mxu2 }
 0x4c7   : > { %v8364_v37 = vadd.f32 %v8104_v1, %v7138_v41  ;;  %v10940_v6 = vmax.f32 %v10859_v0, 0.0  ;;  %v17782_v45 = vpop.f32.mrf.mxu3  ;;  %v7729_v0 = vor.u32 %v7727_v3, %v7725_v57  ;;  %v7733_v1 = vrot.slane %v7731_v63, 1 }
 0x4c8   : > { %v6881_v12 = vpop.f32.mrf.mxu1 }
 0x4c9   : > { %v9345_v47 = vadd.f32 %v17645_v20, %v8364_v37  ;;  %v11507_v51 = vmul.f32 %v11169_v29, %v10940_v6  ;;  %v17790_v20 = vld [vmem:[%s19113_s0 + $0xa4] sm:$0xff]  ;;  %v7139_v7 = vadd.f32 %v6881_v12, %v15899_v58  ;;  %v17809_v58 = vld [vmem:[%s19113_s0 + $0xbc] sm:$0xff]  ;;  %v17829_v12 = vor.u32 %v9963_v52, %v9960_v48 }
 0x4ca   : > { %v6505_v50 = vshll.u32 %v17790_v20, 16  ;;  %v8847_v44 = vrot.slane %v17809_v58, 1  ;;  %v17826_v6 = vld [vmem:[%s16759_s22] ss:$0 sm:$0xff] }
 0x4cb   : > { %v10356_v2 = vpop.f32.mrf.mxu0  ;;  %v14412_v10 = vpack.c.bf16 %v11507_v51, %v11506_v62  ;;  %13256 = vmatmul.msk.bf16.gmra.mxu1 %vm1226_vm1, %v6500_v35  ;;  %13485 = vmatmul.msk.bf16.gmra.mxu2 %vm1226_vm1, %v7726_v36  ;;  %v10613_v11 = vadd.f32 %v10353_v8, %v9345_v47  ;;  %v11179_v35 = vpop.permute.xlu0 %11178  ;;  %v7734_v47 = vsel %vm6352_vm5, %v7729_v0, %v7733_v1 }
 0x4cc   : > { %v6507_v41 = vrot.slane %v6505_v50, 1  ;;  %v9965_v16 = vsel %vm9786_vm6, %v17770_v23, %v17829_v12  ;;  %v17854_v23 = vld [vmem:[%s19113_s0 + $0xb4] sm:$0xff]  ;;  %v6509_v50 = vshrl.u32 %v17790_v20, 16 }
 0x4cd   : > { %14581 = vst [vmem:[%s16653_s20 + $0x48] sm:$0xff] %v14412_v10   ;;  %v10860_v21 = vadd.f32 %v17314_v42, %v10613_v11  ;;  %v8848_v42 = vsel %vm8805_vm4, %v8845_v28, %v8847_v44  ;;  %v14349_v10 = vld [vmem:[%s19113_s0 + $0xb4] sm:$0xff] }
 0x4ce   : > { %13943 = vmatmul.msk.bf16.gmra.mxu0 %vm1226_vm1, %v9956_v54  ;;  %v8107_v32 = vpop.f32.mrf.mxu2  ;;  %v6508_v28 = vsel %vm6352_vm5, %v6503_v33, %v6507_v41  ;;  %v9967_v39 = vshrl.u32 %v14349_v10, 16 }
 0x4cf   : > { %v8365_v61 = vadd.f32 %v8107_v32, %v7139_v7  ;;  %v17813_v59 = vpop.f32.mrf.mxu3  ;;  %v10941_v29 = vmax.f32 %v10860_v21, 0.0  ;;  %v9970_v32 = vshll.u32 %v14349_v10, 16  ;;  %v7739_v21 = vshll.u32 %v17854_v23, 16 }
 0x4d0   : > { %v6883_v27 = vpop.f32.mrf.mxu1 }
 0x4d1   : > { %v9346_v8 = vadd.f32 %v17670_v43, %v8365_v61  ;;  %v11174_v43 = vpop.permute.xlu2 %11173  ;;  %v7140_v37 = vadd.f32 %v6883_v27, %v15917_v14  ;;  %v11042_v61 = vld [vmem:[%s19116_s3 + $0x128] sm:$0xff]  ;;  %v9972_v33 = vrot.slane %v9970_v32, 2 }
 0x4d2   : > { %v11508_v51 = vmul.f32 %v11174_v43, %v10941_v29  ;;  %11273 = vperm.xlu1 %14673, %v11042_v61   ;;  %v11044_v61 = vld [vmem:[%s19116_s3 + $0x138] sm:$0xff] }
 0x4d3   : > { %v10358_v9 = vpop.f32.mrf.mxu0  ;;  %v10614_v31 = vadd.f32 %v10356_v2, %v9346_v8  ;;  %v7735_v8 = vshrl.u32 %v17795_v38, 16  ;;  %v6511_v38 = vor.u32 %v6509_v50, %v6507_v41  ;;  %11283 = vperm.xlu0 %14672, %v11044_v61  }
 0x4d4   : > { %13717 = vmatmul.msk.bf16.gmra.mxu3 %vm1226_vm1, %v8848_v42  ;;  %v11040_v42 = vld [vmem:[%s19116_s3 + $0x118] sm:$0xff] }
 0x4d5   : > { %v10861_v5 = vadd.f32 %v17826_v6, %v10614_v31  ;;  %v9969_v31 = vrot.slane %v9967_v39, 1  ;;  %v7737_v29 = vor.u32 %v7735_v8, %v7733_v1  ;;  %11263 = vperm.xlu2 %14674, %v11040_v42   ;;  %v7743_v8 = vshrl.u32 %v17854_v23, 16  ;;  %v11045_v42 = vld [vmem:[%s19116_s3 + $0x140] sm:$0xff] }
 0x4d6   : > { %v8109_v57 = vpop.f32.mrf.mxu2 }
 0x4d7   : > { %v8366_v36 = vadd.f32 %v8109_v57, %v7140_v37  ;;  %v10942_v62 = vmax.f32 %v10861_v5, 0.0  ;;  %v17841_v7 = vpop.f32.mrf.mxu3  ;;  %v7741_v37 = vrot.slane %v7739_v21, 1  ;;  %v11184_v5 = vpop.permute.xlu1 %11183 }
 0x4d8   : > { %v6886_v4 = vpop.f32.mrf.mxu1 }
 0x4d9   : > { %v9347_v14 = vadd.f32 %v17701_v60, %v8366_v36  ;;  %v11509_v2 = vmul.f32 %v11179_v35, %v10942_v62  ;;  %v17849_v60 = vld [vmem:[%s19113_s0 + $0xac] sm:$0xff]  ;;  %v7141_v40 = vadd.f32 %v6886_v4, %v15934_v46  ;;  %v17868_v46 = vld [vmem:[%s19113_s0 + $0xc4] sm:$0xff]  ;;  %v17885_v36 = vor.u32 %v9972_v33, %v9969_v31  ;;  %v11189_v1 = vpop.permute.xlu2 %11188 }
 0x4da   : > { %v6513_v63 = vshll.u32 %v17849_v60, 16  ;;  %v8849_v18 = vrot.slane %v17868_v46, 1  ;;  %v6517_v50 = vshrl.u32 %v17849_v60, 16  ;;  %11288 = vperm.xlu1 %14673, %v11045_v42  }
 0x4db   : > { %v10361_v54 = vpop.f32.mrf.mxu0  ;;  %v14417_v11 = vpack.c.bf16 %v11509_v2, %v11508_v51  ;;  %13257 = vmatmul.msk.bf16.gmra.mxu1 %vm1226_vm1, %v6508_v28  ;;  %13486 = vmatmul.msk.bf16.gmra.mxu2 %vm1226_vm1, %v7734_v47  ;;  %v10615_v22 = vadd.f32 %v10358_v9, %v9347_v14 }
 0x4dc   : > { %v6515_v43 = vrot.slane %v6513_v63, 1 }
 0x4dd   : > { %14582 = vst [vmem:[%s16653_s20 + $0x50] sm:$0xff] %v14417_v11   ;;  %v10862_v48 = vadd.f32 %v17826_v6, %v10615_v22 }
 0x4de   : > { %13944 = vmatmul.msk.bf16.gmra.mxu0 %vm1226_vm1, %v9965_v16  ;;  %v8112_v56 = vpop.f32.mrf.mxu2  ;;  %v6516_v58 = vsel %vm6352_vm5, %v6511_v38, %v6515_v43  ;;  %v14350_v16 = vld [vmem:[%s19113_s0 + $0xbc] sm:$0xff]  ;;  %v6519_v23 = vor.u32 %v6517_v50, %v6515_v43 }
 0x4df   : > { %v8367_v27 = vadd.f32 %v8112_v56, %v7141_v40  ;;  %v17872_v20 = vpop.f32.mrf.mxu3  ;;  %v10943_v57 = vmax.f32 %v10862_v48, 0.0  ;;  %v9976_v39 = vshrl.u32 %v14350_v16, 16  ;;  %v9979_v32 = vshll.u32 %v14350_v16, 16 }
 0x4e0   : > { %v6888_v3 = vpop.f32.mrf.mxu1 }
 0x4e1   : > { %v9348_v9 = vadd.f32 %v17726_v34, %v8367_v27  ;;  %v8850_v34 = vsel %vm8805_vm4, %v8847_v44, %v8849_v18  ;;  %v7142_v35 = vadd.f32 %v6888_v3, %v15954_v19  ;;  %v7742_v44 = vsel %vm6352_vm5, %v7737_v29, %v7741_v37 }
 0x4e2   : > { %v11510_v51 = vmul.f32 %v11184_v5, %v10943_v57  ;;  %v9978_v31 = vrot.slane %v9976_v39, 1  ;;  %v9981_v33 = vrot.slane %v9979_v32, 2  ;;  %v11194_v57 = vpop.permute.xlu0 %11193  ;;  %v11043_v39 = vld [vmem:[%s19116_s3 + $0x130] sm:$0xff] }
 0x4e3   : > { %v10363_v52 = vpop.f32.mrf.mxu0  ;;  %v10616_v0 = vadd.f32 %v10361_v54, %v9348_v9  ;;  %v9974_v54 = vsel %vm9786_vm6, %v17829_v12, %v17885_v36  ;;  %v17910_v12 = vld [vmem:[%s19113_s0 + $0xbc] sm:$0xff]  ;;  %11278 = vperm.xlu2 %14674, %v11043_v39  }
 0x4e4   : > { %13718 = vmatmul.msk.bf16.gmra.mxu3 %vm1226_vm1, %v8850_v34  ;;  %v7747_v21 = vshll.u32 %v17910_v12, 16  ;;  %v7745_v34 = vor.u32 %v7743_v8, %v7741_v37  ;;  %v11199_v37 = vpop.permute.xlu1 %11198 }
 0x4e5   : > { %v10863_v41 = vadd.f32 %v17826_v6, %v10616_v0 }
 0x4e6   : > { %v8114_v62 = vpop.f32.mrf.mxu2  ;;  %v7749_v5 = vrot.slane %v7747_v21, 1 }
 0x4e7   : > { %v8368_v4 = vadd.f32 %v8114_v62, %v7142_v35  ;;  %v10944_v28 = vmax.f32 %v10863_v41, 0.0  ;;  %v17897_v10 = vpop.f32.mrf.mxu3  ;;  %v17941_v62 = vor.u32 %v9981_v33, %v9978_v31 }
 0x4e8   : > { %v6891_v47 = vpop.f32.mrf.mxu1 }
 0x4e9   : > { %v9349_v14 = vadd.f32 %v17757_v53, %v8368_v4  ;;  %v11511_v19 = vmul.f32 %v11189_v1, %v10944_v28  ;;  %v17905_v53 = vld [vmem:[%s19113_s0 + $0xb4] sm:$0xff]  ;;  %v7143_v40 = vadd.f32 %v6891_v47, %v15968_v24  ;;  %v17924_v24 = vld [vmem:[%s19113_s0 + $0xcc] sm:$0xff] }
 0x4ea   : > { %v6521_v63 = vshll.u32 %v17905_v53, 16  ;;  %v8851_v0 = vrot.slane %v17924_v24, 1 }
 0x4eb   : > { %v10366_v2 = vpop.f32.mrf.mxu0  ;;  %v14422_v11 = vpack.c.bf16 %v11511_v19, %v11510_v51  ;;  %13258 = vmatmul.msk.bf16.gmra.mxu1 %vm1226_vm1, %v6516_v58  ;;  %13487 = vmatmul.msk.bf16.gmra.mxu2 %vm1226_vm1, %v7742_v44  ;;  %v10617_v22 = vadd.f32 %v10363_v52, %v9349_v14  ;;  %v9983_v14 = vsel %vm9786_vm6, %v17885_v36, %v17941_v62  ;;  %v14351_v19 = vld [vmem:[%s19113_s0 + $0xc4] sm:$0xff] }
 0x4ec   : > { %v6523_v29 = vrot.slane %v6521_v63, 1  ;;  %v17966_v36 = vld [vmem:[%s19113_s0 + $0xc4] sm:$0xff] }
 0x4ed   : > { %14583 = vst [vmem:[%s16653_s20 + $0x58] sm:$0xff] %v14422_v11   ;;  %v10864_v48 = vadd.f32 %v17826_v6, %v10617_v22  ;;  %v9988_v22 = vshll.u32 %v14351_v19, 16  ;;  %v7755_v63 = vshll.u32 %v17966_v36, 16 }
 0x4ee   : > { %13945 = vmatmul.msk.bf16.gmra.mxu0 %vm1226_vm1, %v9974_v54  ;;  %v8117_v56 = vpop.f32.mrf.mxu2  ;;  %v6524_v46 = vsel %vm6352_vm5, %v6519_v23, %v6523_v29  ;;  %v11047_v23 = vld [vmem:[%s19116_s3 + $0x150] sm:$0xff] }
 0x4ef   : > { %v8369_v27 = vadd.f32 %v8117_v56, %v7143_v40  ;;  %v17928_v60 = vpop.f32.mrf.mxu3  ;;  %v10945_v35 = vmax.f32 %v10864_v48, 0.0  ;;  %v9985_v40 = vshrl.u32 %v14351_v19, 16  ;;  %v6525_v56 = vshrl.u32 %v17905_v53, 16  ;;  %11298 = vperm.xlu0 %14672, %v11047_v23  }
 0x4f0   : > { %v6893_v3 = vpop.f32.mrf.mxu1 }
 0x4f1   : > { %v9350_v9 = vadd.f32 %v17782_v45, %v8369_v27  ;;  %v8852_v45 = vsel %vm8805_vm4, %v8849_v18, %v8851_v0  ;;  %v7144_v41 = vadd.f32 %v6893_v3, %v15986_v49  ;;  %v7750_v18 = vsel %vm6352_vm5, %v7745_v34, %v7749_v5 }
 0x4f2   : > { %v11512_v58 = vmul.f32 %v11194_v57, %v10945_v35  ;;  %v7751_v3 = vshrl.u32 %v17910_v12, 16  ;;  %v9987_v48 = vrot.slane %v9985_v40, 1  ;;  %v6527_v12 = vor.u32 %v6525_v56, %v6523_v29  ;;  %v11204_v29 = vpop.permute.xlu2 %11203  ;;  %v11050_v40 = vld [vmem:[%s19116_s3 + $0x168] sm:$0xff] }
 0x4f3   : > { %v10368_v52 = vpop.f32.mrf.mxu0  ;;  %v10618_v38 = vadd.f32 %v10366_v2, %v9350_v9  ;;  %v7757_v34 = vrot.slane %v7755_v63, 1  ;;  %v7759_v56 = vshrl.u32 %v17966_v36, 16 }
 0x4f4   : > { %13719 = vmatmul.msk.bf16.gmra.mxu3 %vm1226_vm1, %v8852_v45  ;;  %v7753_v42 = vor.u32 %v7751_v3, %v7749_v5 }
 0x4f5   : > { %v10865_v43 = vadd.f32 %v17826_v6, %v10618_v38  ;;  %v11048_v38 = vld [vmem:[%s19116_s3 + $0x158] sm:$0xff]  ;;  %v7761_v23 = vor.u32 %v7759_v56, %v7757_v34 }
 0x4f6   : > { %v8119_v1 = vpop.f32.mrf.mxu2  ;;  %11303 = vperm.xlu1 %14673, %v11048_v38  }
 0x4f7   : > { %v8370_v4 = vadd.f32 %v8119_v1, %v7144_v41  ;;  %v10946_v28 = vmax.f32 %v10865_v43, 0.0  ;;  %v17953_v2 = vpop.f32.mrf.mxu3  ;;  %v11209_v1 = vpop.permute.xlu0 %11208  ;;  %11313 = vperm.xlu0 %14672, %v11050_v40  }
 0x4f8   : > { %v6896_v47 = vpop.f32.mrf.mxu1 }
 0x4f9   : > { %v9351_v44 = vadd.f32 %v17813_v59, %v8370_v4  ;;  %v11513_v49 = vmul.f32 %v11199_v37, %v10946_v28  ;;  %v17961_v59 = vld [vmem:[%s19113_s0 + $0xbc] sm:$0xff]  ;;  %v7145_v16 = vadd.f32 %v6896_v47, %v15999_v25  ;;  %v17980_v25 = vld [vmem:[%s19113_s0 + $0xd4] sm:$0xff] }
 0x4fa   : > { %v6529_v50 = vshll.u32 %v17961_v59, 16  ;;  %v8853_v31 = vrot.slane %v17980_v25, 1 }
 0x4fb   : > { %v10371_v51 = vpop.f32.mrf.mxu0  ;;  %v14427_v54 = vpack.c.bf16 %v11513_v49, %v11512_v58  ;;  %13259 = vmatmul.msk.bf16.gmra.mxu1 %vm1226_vm1, %v6524_v46  ;;  %13488 = vmatmul.msk.bf16.gmra.mxu2 %vm1226_vm1, %v7750_v18  ;;  %v10619_v11 = vadd.f32 %v10368_v52, %v9351_v44  ;;  %v9990_v52 = vrot.slane %v9988_v22, 2  ;;  %v14352_v44 = vld [vmem:[%s19113_s0 + $0xcc] sm:$0xff] }
 0x4fc   : > { %v8854_v45 = vsel %vm8805_vm4, %v8851_v0, %v8853_v31  ;;  %v7758_v0 = vsel %vm6352_vm5, %v7753_v42, %v7757_v34  ;;  %v11219_v34 = vpop.permute.xlu2 %11218 }
 0x4fd   : > { %14584 = vst [vmem:[%s16653_s20 + $0x60] sm:$0xff] %v14427_v54   ;;  %v10866_v21 = vadd.f32 %v17826_v6, %v10619_v11  ;;  %v18000_v43 = vor.u32 %v9990_v52, %v9987_v48  ;;  %v9994_v54 = vshrl.u32 %v14352_v44, 16  ;;  %v11051_v11 = vld [vmem:[%s19116_s3 + $0x170] sm:$0xff] }
 0x4fe   : > { %13946 = vmatmul.msk.bf16.gmra.mxu0 %vm1226_vm1, %v9983_v14  ;;  %v8122_v32 = vpop.f32.mrf.mxu2  ;;  %11318 = vperm.xlu1 %14673, %v11051_v11  }
 0x4ff   : > { %v8371_v61 = vadd.f32 %v8122_v32, %v7145_v16  ;;  %v17984_v53 = vpop.f32.mrf.mxu3  ;;  %v10947_v57 = vmax.f32 %v10866_v21, 0.0  ;;  %v9992_v58 = vsel %vm9786_vm6, %v17941_v62, %v18000_v43  ;;  %v18025_v62 = vld [vmem:[%s19113_s0 + $0xcc] sm:$0xff]  ;;  %v9997_v16 = vshll.u32 %v14352_v44, 16 }
 0x500   : > { %v6898_v27 = vpop.f32.mrf.mxu1  ;;  %v6533_v32 = vshrl.u32 %v17961_v59, 16  ;;  %v9996_v21 = vrot.slane %v9994_v54, 1  ;;  %v11057_v54 = vld [vmem:[%s19116_s3 + $0x1a0] sm:$0xff] }
 0x501   : > { %v9352_v8 = vadd.f32 %v17841_v7, %v8371_v61  ;;  %v6531_v7 = vrot.slane %v6529_v50, 1  ;;  %v7146_v35 = vadd.f32 %v6898_v27, %v16017_v26  ;;  %v11514_v47 = vmul.f32 %v11204_v29, %v10947_v57  ;;  %v18042_v50 = vld [vmem:[%s19113_s0 + $0xdc] sm:$0xff] }
 0x502   : > { %v7763_v27 = vshll.u32 %v18025_v62, 16  ;;  %v8855_v48 = vrot.slane %v18042_v50, 1 }
 0x503   : > { %v10373_v9 = vpop.f32.mrf.mxu0  ;;  %v10620_v33 = vadd.f32 %v10371_v51, %v9352_v8  ;;  %v6532_v24 = vsel %vm6352_vm5, %v6527_v12, %v6531_v7  ;;  %v6535_v36 = vor.u32 %v6533_v32, %v6531_v7  ;;  %v11054_v12 = vld [vmem:[%s19116_s3 + $0x188] sm:$0xff]  ;;  %v7767_v32 = vshrl.u32 %v18025_v62, 16 }
 0x504   : > { %13720 = vmatmul.msk.bf16.gmra.mxu3 %vm1226_vm1, %v8854_v45  ;;  %v7765_v42 = vrot.slane %v7763_v27, 1  ;;  %v8856_v7 = vsel %vm8805_vm4, %v8853_v31, %v8855_v48  ;;  %v11214_v45 = vpop.permute.xlu1 %11213 }
 0x505   : > { %v10867_v41 = vadd.f32 %v17826_v6, %v10620_v33  ;;  %v11046_v33 = vld [vmem:[%s19116_s3 + $0x148] sm:$0xff] }
 0x506   : > { %v8124_v5 = vpop.f32.mrf.mxu2  ;;  %11293 = vperm.xlu2 %14674, %v11046_v33   ;;  %11333 = vperm.xlu1 %14673, %v11054_v12   ;;  %v7769_v33 = vor.u32 %v7767_v32, %v7765_v42 }
 0x507   : > { %v8372_v37 = vadd.f32 %v8124_v5, %v7146_v35  ;;  %v10948_v4 = vmax.f32 %v10867_v41, 0.0  ;;  %v18012_v49 = vpop.f32.mrf.mxu3 }
 0x508   : > { %v6901_v28 = vpop.f32.mrf.mxu1 }
 0x509   : > { %v9353_v46 = vadd.f32 %v17872_v20, %v8372_v37  ;;  %v11515_v26 = vmul.f32 %v11209_v1, %v10948_v4  ;;  %v18020_v20 = vld [vmem:[%s19113_s0 + $0xc4] sm:$0xff]  ;;  %v7147_v14 = vadd.f32 %v6901_v28, %v16030_v55  ;;  %v7766_v4 = vsel %vm6352_vm5, %v7761_v23, %v7765_v42  ;;  %v11224_v23 = vpop.permute.xlu0 %11223 }
 0x50a   : > { %v6537_v55 = vshll.u32 %v18020_v20, 16 }
 0x50b   : > { %v10376_v18 = vpop.f32.mrf.mxu0  ;;  %v14432_v51 = vpack.c.bf16 %v11515_v26, %v11514_v47  ;;  %13260 = vmatmul.msk.bf16.gmra.mxu1 %vm1226_vm1, %v6532_v24  ;;  %13489 = vmatmul.msk.bf16.gmra.mxu2 %vm1226_vm1, %v7758_v0  ;;  %v10621_v19 = vadd.f32 %v10373_v9, %v9353_v46  ;;  %v9999_v9 = vrot.slane %v9997_v16, 2  ;;  %v14353_v46 = vld [vmem:[%s19113_s0 + $0xd4] sm:$0xff] }
 0x50c   : > { %v6539_v38 = vrot.slane %v6537_v55, 1  ;;  %v11056_v16 = vld [vmem:[%s19116_s3 + $0x198] sm:$0xff]  ;;  %v18110_v55 = vld [vmem:[%s19113_s0 + $0xe4] sm:$0xff] }
 0x50d   : > { %14585 = vst [vmem:[%s16653_s20 + $0x68] sm:$0xff] %v14432_v51   ;;  %v10868_v63 = vadd.f32 %v17826_v6, %v10621_v19  ;;  %v18065_v41 = vor.u32 %v9999_v9, %v9996_v21  ;;  %v10003_v51 = vshrl.u32 %v14353_v46, 16  ;;  %v11049_v19 = vld [vmem:[%s19116_s3 + $0x160] sm:$0xff]  ;;  %v8857_v21 = vrot.slane %v18110_v55, 1 }
 0x50e   : > { %13947 = vmatmul.msk.bf16.gmra.mxu0 %vm1226_vm1, %v9992_v58  ;;  %v8127_v22 = vpop.f32.mrf.mxu2  ;;  %v6540_v31 = vsel %vm6352_vm5, %v6535_v36, %v6539_v38  ;;  %11308 = vperm.xlu2 %14674, %v11049_v19   ;;  %v11060_v36 = vld [vmem:[%s19116_s3 + $0x1b8] sm:$0xff]  ;;  %v11063_v19 = vld [vmem:[%s19116_s3 + $0x1d0] sm:$0xff] }
 0x50f   : > { %v8373_v39 = vadd.f32 %v8127_v22, %v7147_v14  ;;  %v18046_v59 = vpop.f32.mrf.mxu3  ;;  %v10949_v29 = vmax.f32 %v10868_v63, 0.0  ;;  %v10001_v47 = vsel %vm9786_vm6, %v18000_v43, %v18065_v41  ;;  %v18090_v43 = vld [vmem:[%s19113_s0 + $0xd4] sm:$0xff]  ;;  %v10006_v14 = vshll.u32 %v14353_v46, 16  ;;  %11348 = vperm.xlu1 %14673, %v11057_v54   ;;  %v11062_v54 = vld [vmem:[%s19116_s3 + $0x1c8] sm:$0xff] }
 0x510   : > { %v6903_v61 = vpop.f32.mrf.mxu1  ;;  %v10005_v63 = vrot.slane %v10003_v51, 1  ;;  %v19271_v46 = vld [vmem:[#allocation54_spill] sm:$0xff] }
 0x511   : > { %v9354_v3 = vadd.f32 %v17897_v10, %v8373_v39  ;;  %v11053_v10 = vld [vmem:[%s19116_s3 + $0x180] sm:$0xff]  ;;  %v7148_v57 = vadd.f32 %v6903_v61, %v16048_v17  ;;  %v11516_v28 = vmul.f32 %v11214_v45, %v10949_v29  ;;  %v7771_v61 = vshll.u32 %v18090_v43, 16  ;;  %v19270_v45 = vld [vmem:[#allocation53_spill] sm:$0xff] }
 0x512   : > { %11328 = vperm.xlu0 %14672, %v11053_v10   ;;  %v8858_v10 = vsel %vm8805_vm4, %v8855_v48, %v8857_v21 }
 0x513   : > { %v10378_v8 = vpop.f32.mrf.mxu0  ;;  %v10622_v52 = vadd.f32 %v10376_v18, %v9354_v3  ;;  %v18123_v12 = vrot.slane %v7771_v61, 1  ;;  %v18181_v61 = vld [vmem:[%s19113_s0 + $0xec] sm:$0xff] }
 0x514   : > { %13721 = vmatmul.msk.bf16.gmra.mxu3 %vm1226_vm1, %v8856_v7 }
 0x515   : > { %v10869_v35 = vadd.f32 %v17826_v6, %v10622_v52  ;;  %v11052_v52 = vld [vmem:[%s19116_s3 + $0x178] sm:$0xff] }
 0x516   : > { %v8129_v5 = vpop.f32.mrf.mxu2  ;;  %11323 = vperm.xlu2 %14674, %v11052_v52   ;;  %v11058_v52 = vld [vmem:[%s19116_s3 + $0x1a8] sm:$0xff] }
 0x517   : > { %v8374_v1 = vadd.f32 %v8129_v5, %v7148_v57  ;;  %v10950_v37 = vmax.f32 %v10869_v35, 0.0  ;;  %v18077_v26 = vpop.f32.mrf.mxu3  ;;  %v11229_v5 = vpop.permute.xlu1 %11228  ;;  %11363 = vperm.xlu1 %14673, %v11060_v36   ;;  %v11066_v36 = vld [vmem:[%s19116_s3 + $0x1e8] sm:$0xff] }
 0x518   : > { %v6906_v25 = vpop.f32.mrf.mxu1 }
 0x519   : > { %v9355_v17 = vadd.f32 %v17928_v60, %v8374_v1  ;;  %v11517_v24 = vmul.f32 %v11219_v34, %v10950_v37  ;;  %v18085_v60 = vld [vmem:[%s19113_s0 + $0xcc] sm:$0xff]  ;;  %v7149_v58 = vadd.f32 %v6906_v25, %v16061_v30  ;;  %v6541_v30 = vshrl.u32 %v18020_v20, 16 }
 0x51a   : > { %11343 = vperm.xlu0 %14672, %v11056_v16   ;;  %v6545_v39 = vshll.u32 %v18085_v60, 16  ;;  %v10008_v20 = vrot.slane %v10006_v14, 2  ;;  %v7774_v37 = vsel %vm6352_vm5, %v7769_v33, %v18123_v12  ;;  %v11055_v14 = vld [vmem:[%s19116_s3 + $0x190] sm:$0xff] }
 0x51b   : > { %v10381_v0 = vpop.f32.mrf.mxu0  ;;  %v14437_v18 = vpack.c.bf16 %v11517_v24, %v11516_v28  ;;  %13261 = vmatmul.msk.bf16.gmra.mxu1 %vm1226_vm1, %v6540_v31  ;;  %13490 = vmatmul.msk.bf16.gmra.mxu2 %vm1226_vm1, %v7766_v4  ;;  %v10623_v44 = vadd.f32 %v10378_v8, %v9355_v17  ;;  %v6543_v62 = vor.u32 %v6541_v30, %v6539_v38  ;;  %v11059_v38 = vld [vmem:[%s19116_s3 + $0x1b0] sm:$0xff]  ;;  %v14354_v24 = vld [vmem:[%s19113_s0 + $0xdc] sm:$0xff] }
 0x51c   : > { %v18135_v35 = vor.u32 %v10008_v20, %v10005_v63  ;;  %v10015_v51 = vshll.u32 %v14354_v24, 16 }
 0x51d   : > { %14586 = vst [vmem:[%s16653_s20 + $0x70] sm:$0xff] %v14437_v18   ;;  %v10870_v27 = vadd.f32 %v17826_v6, %v10623_v44  ;;  %v10012_v44 = vshrl.u32 %v14354_v24, 16 }
 0x51e   : > { %13948 = vmatmul.msk.bf16.gmra.mxu0 %vm1226_vm1, %v10001_v47  ;;  %v8132_v11 = vpop.f32.mrf.mxu2  ;;  %v10010_v17 = vsel %vm9786_vm6, %v18065_v41, %v18135_v35  ;;  %v18161_v41 = vld [vmem:[%s19113_s0 + $0xdc] sm:$0xff]  ;;  %11338 = vperm.xlu2 %14674, %v11055_v14  }
 0x51f   : > { %v8375_v40 = vadd.f32 %v8132_v11, %v7149_v58  ;;  %v18114_v8 = vpop.f32.mrf.mxu3  ;;  %v10951_v7 = vmax.f32 %v10870_v27, 0.0  ;;  %11378 = vperm.xlu1 %14673, %v11063_v19   ;;  %v7779_v32 = vshll.u32 %v18161_v41, 16  ;;  %v10014_v63 = vrot.slane %v10012_v44, 1  ;;  %v11069_v14 = vld [vmem:[%s19116_s3 + $0x200] sm:$0xff]  ;;  %v11068_v19 = vld [vmem:[%s19116_s3 + $0x1f8] sm:$0xff] }
 0x520   : > { %v6908_v22 = vpop.f32.mrf.mxu1 }
 0x521   : > { %v9356_v56 = vadd.f32 %v17953_v2, %v8375_v40  ;;  %v6547_v2 = vrot.slane %v6545_v39, 1  ;;  %v7150_v29 = vadd.f32 %v6908_v22, %v19270_v45  ;;  %v11518_v25 = vmul.f32 %v11224_v23, %v10951_v7  ;;  %v11234_v23 = vpop.permute.xlu2 %11233  ;;  %v19272_v45 = vld [vmem:[#allocation55_spill] sm:$0xff] }
 0x522   : > { %11358 = vperm.xlu0 %14672, %v11059_v38   ;;  %v6549_v40 = vshrl.u32 %v18085_v60, 16  ;;  %v7775_v39 = vshrl.u32 %v18090_v43, 16  ;;  %v10017_v60 = vrot.slane %v10015_v51, 2  ;;  %v11061_v51 = vld [vmem:[%s19116_s3 + $0x1c0] sm:$0xff] }
 0x523   : > { %v10383_v3 = vpop.f32.mrf.mxu0  ;;  %v10624_v9 = vadd.f32 %v10381_v0, %v9356_v56  ;;  %v6548_v1 = vsel %vm6352_vm5, %v6543_v62, %v6547_v2 }
 0x524   : > { %13722 = vmatmul.msk.bf16.gmra.mxu3 %vm1226_vm1, %v8858_v10  ;;  %v6551_v43 = vor.u32 %v6549_v40, %v6547_v2  ;;  %v7777_v33 = vor.u32 %v7775_v39, %v18123_v12  ;;  %v18195_v10 = vrot.slane %v7779_v32, 1  ;;  %v11065_v2 = vld [vmem:[%s19116_s3 + $0x1e0] sm:$0xff]  ;;  %v18253_v32 = vld [vmem:[%s19113_s0 + $0xf4] sm:$0xff] }
 0x525   : > { %v10871_v57 = vadd.f32 %v17826_v6, %v10624_v9  ;;  %v8859_v9 = vrot.slane %v18181_v61, 1 }
 0x526   : > { %v8134_v42 = vpop.f32.mrf.mxu2  ;;  %11353 = vperm.xlu2 %14674, %v11058_v52   ;;  %v11064_v52 = vld [vmem:[%s19116_s3 + $0x1d8] sm:$0xff] }
 0x527   : > { %v8376_v50 = vadd.f32 %v8134_v42, %v7150_v29  ;;  %v10952_v48 = vmax.f32 %v10871_v57, 0.0  ;;  %v18148_v0 = vpop.f32.mrf.mxu3  ;;  %v8860_v38 = vsel %vm8805_vm4, %v8857_v21, %v8859_v9  ;;  %v18207_v42 = vor.u32 %v10017_v60, %v10014_v63  ;;  %11393 = vperm.xlu1 %14673, %v11066_v36   ;;  %v11072_v36 = vld [vmem:[%s19116_s3 + $0x218] sm:$0xff] }
 0x528   : > { %v6911_v34 = vpop.f32.mrf.mxu1 }
 0x529   : > { %v9357_v31 = vadd.f32 %v17984_v53, %v8376_v50  ;;  %v11519_v4 = vmul.f32 %v11229_v5, %v10952_v48  ;;  %v18156_v53 = vld [vmem:[%s19113_s0 + $0xd4] sm:$0xff]  ;;  %v7151_v18 = vadd.f32 %v6911_v34, %v19271_v46  ;;  %v11239_v5 = vpop.permute.xlu0 %11238  ;;  %v7782_v34 = vsel %vm6352_vm5, %v7777_v33, %v18195_v10 }
 0x52a   : > { %11373 = vperm.xlu0 %14672, %v11062_v54   ;;  %v6553_v22 = vshll.u32 %v18156_v53, 16 }
 0x52b   : > { %v10386_v28 = vpop.f32.mrf.mxu0  ;;  %v14442_v47 = vpack.c.bf16 %v11519_v4, %v11518_v25  ;;  %13262 = vmatmul.msk.bf16.gmra.mxu1 %vm1226_vm1, %v6548_v1  ;;  %13491 = vmatmul.msk.bf16.gmra.mxu2 %vm1226_vm1, %v7774_v37  ;;  %v10625_v58 = vadd.f32 %v10383_v3, %v9357_v31  ;;  %v10019_v4 = vsel %vm9786_vm6, %v18135_v35, %v18207_v42  ;;  %v18233_v35 = vld [vmem:[%s19113_s0 + $0xe4] sm:$0xff] }
 0x52c   : > { %v7787_v39 = vshll.u32 %v18233_v35, 16 }
 0x52d   : > { %14587 = vst [vmem:[%s16653_s20 + $0x78] sm:$0xff] %v14442_v47   ;;  %v10872_v27 = vadd.f32 %v17826_v6, %v10625_v58  ;;  %v19273_v47 = vld [vmem:[#allocation56_spill] sm:$0xff] }
 0x52e   : > { %13949 = vmatmul.msk.bf16.gmra.mxu0 %vm1226_vm1, %v10010_v17  ;;  %v8137_v16 = vpop.f32.mrf.mxu2  ;;  %11368 = vperm.xlu2 %14674, %v11061_v51   ;;  %v11075_v51 = vld [vmem:[%s19116_s3 + $0x230] sm:$0xff] }
 0x52f   : > { %v8377_v11 = vadd.f32 %v8137_v16, %v7151_v18  ;;  %v18185_v20 = vpop.f32.mrf.mxu3  ;;  %v10953_v7 = vmax.f32 %v10872_v27, 0.0  ;;  %11408 = vperm.xlu1 %14673, %v11069_v14   ;;  %v11074_v14 = vld [vmem:[%s19116_s3 + $0x228] sm:$0xff] }
 0x530   : > { %v6913_v30 = vpop.f32.mrf.mxu1 }
 0x531   : > { %v9358_v56 = vadd.f32 %v18012_v49, %v8377_v11  ;;  %v6555_v49 = vrot.slane %v6553_v22, 1  ;;  %v7152_v29 = vadd.f32 %v6913_v30, %v19272_v45  ;;  %v11520_v1 = vmul.f32 %v11234_v23, %v10953_v7  ;;  %v11244_v23 = vpop.permute.xlu1 %11243  ;;  %v19274_v45 = vld [vmem:[#allocation57_spill] sm:$0xff] }
 0x532   : > { %11388 = vperm.xlu0 %14672, %v11065_v2   ;;  %v6557_v11 = vshrl.u32 %v18156_v53, 16  ;;  %v7783_v22 = vshrl.u32 %v18161_v41, 16 }
 0x533   : > { %v10388_v3 = vpop.f32.mrf.mxu0  ;;  %v10626_v62 = vadd.f32 %v10386_v28, %v9358_v56  ;;  %v6556_v48 = vsel %vm6352_vm5, %v6551_v43, %v6555_v49  ;;  %v14355_v28 = vld [vmem:[%s19113_s0 + $0xe4] sm:$0xff] }
 0x534   : > { %13723 = vmatmul.msk.bf16.gmra.mxu3 %vm1226_vm1, %v8860_v38  ;;  %v10021_v58 = vshrl.u32 %v14355_v28, 16  ;;  %v10024_v44 = vshll.u32 %v14355_v28, 16  ;;  %v6559_v41 = vor.u32 %v6557_v11, %v6555_v49  ;;  %v7785_v33 = vor.u32 %v7783_v22, %v18195_v10  ;;  %v11071_v49 = vld [vmem:[%s19116_s3 + $0x210] sm:$0xff] }
 0x535   : > { %v10873_v57 = vadd.f32 %v17826_v6, %v10626_v62  ;;  %v8861_v62 = vrot.slane %v18253_v32, 1  ;;  %v18267_v38 = vrot.slane %v7787_v39, 1  ;;  %v18325_v39 = vld [vmem:[%s19113_s0 + $0xfc] sm:$0xff] }
 0x536   : > { %v8139_v12 = vpop.f32.mrf.mxu2  ;;  %v10023_v63 = vrot.slane %v10021_v58, 1  ;;  %v10026_v53 = vrot.slane %v10024_v44, 2  ;;  %11383 = vperm.xlu2 %14674, %v11064_v52   ;;  %v11067_v44 = vld [vmem:[%s19116_s3 + $0x1f0] sm:$0xff]  ;;  %v11070_v52 = vld [vmem:[%s19116_s3 + $0x208] sm:$0xff] }
 0x537   : > { %v8378_v55 = vadd.f32 %v8139_v12, %v7152_v29  ;;  %v10954_v21 = vmax.f32 %v10873_v57, 0.0  ;;  %v18220_v17 = vpop.f32.mrf.mxu3  ;;  %v8862_v2 = vsel %vm8805_vm4, %v8859_v9, %v8861_v62  ;;  %11423 = vperm.xlu1 %14673, %v11072_v36   ;;  %v11078_v36 = vld [vmem:[%s19116_s3 + $0x248] sm:$0xff] }
 0x538   : > { %v6916_v50 = vpop.f32.mrf.mxu1  ;;  %v18279_v12 = vor.u32 %v10026_v53, %v10023_v63 }
 0x539   : > { %v9359_v37 = vadd.f32 %v18046_v59, %v8378_v55  ;;  %v11521_v25 = vmul.f32 %v11239_v5, %v10954_v21  ;;  %v18228_v59 = vld [vmem:[%s19113_s0 + $0xdc] sm:$0xff]  ;;  %v7153_v46 = vadd.f32 %v6916_v50, %v19273_v47  ;;  %v11249_v5 = vpop.permute.xlu2 %11248  ;;  %v7790_v50 = vsel %vm6352_vm5, %v7785_v33, %v18267_v38 }
 0x53a   : > { %11403 = vperm.xlu0 %14672, %v11068_v19   ;;  %v6561_v30 = vshll.u32 %v18228_v59, 16 }
 0x53b   : > { %v10391_v31 = vpop.f32.mrf.mxu0  ;;  %v14447_v24 = vpack.c.bf16 %v11521_v25, %v11520_v1  ;;  %13263 = vmatmul.msk.bf16.gmra.mxu1 %vm1226_vm1, %v6556_v48  ;;  %13492 = vmatmul.msk.bf16.gmra.mxu2 %vm1226_vm1, %v7782_v34  ;;  %v10627_v18 = vadd.f32 %v10388_v3, %v9359_v37  ;;  %v10028_v25 = vsel %vm9786_vm6, %v18207_v42, %v18279_v12  ;;  %v18305_v42 = vld [vmem:[%s19113_s0 + $0xec] sm:$0xff] }
 0x53c   : > { %v7795_v22 = vshll.u32 %v18305_v42, 16 }
 0x53d   : > { %14588 = vst [vmem:[%s16653_s20 + $0x80] sm:$0xff] %v14447_v24   ;;  %v10874_v27 = vadd.f32 %v17826_v6, %v10627_v18  ;;  %v19275_v24 = vld [vmem:[#allocation58_spill] sm:$0xff] }
 0x53e   : > { %13950 = vmatmul.msk.bf16.gmra.mxu0 %vm1226_vm1, %v10019_v4  ;;  %v8142_v54 = vpop.f32.mrf.mxu2  ;;  %11398 = vperm.xlu2 %14674, %v11067_v44   ;;  %v11080_v44 = vld [vmem:[%s19116_s3 + $0x258] sm:$0xff] }
 0x53f   : > { %v8379_v16 = vadd.f32 %v8142_v54, %v7153_v46  ;;  %v18257_v60 = vpop.f32.mrf.mxu3  ;;  %v10955_v7 = vmax.f32 %v10874_v27, 0.0  ;;  %11438 = vperm.xlu1 %14673, %v11075_v51  }
 0x540   : > { %v6918_v40 = vpop.f32.mrf.mxu1 }
 0x541   : > { %v9360_v56 = vadd.f32 %v18077_v26, %v8379_v16  ;;  %v6563_v26 = vrot.slane %v6561_v30, 1  ;;  %v7154_v29 = vadd.f32 %v6918_v40, %v19274_v45  ;;  %v11522_v48 = vmul.f32 %v11244_v23, %v10955_v7  ;;  %v11254_v23 = vpop.permute.xlu0 %11253  ;;  %v19276_v45 = vld [vmem:[#allocation59_spill] sm:$0xff] }
 0x542   : > { %11418 = vperm.xlu0 %14672, %v11071_v49   ;;  %v6565_v16 = vshrl.u32 %v18228_v59, 16  ;;  %v7791_v30 = vshrl.u32 %v18233_v35, 16 }
 0x543   : > { %v10393_v3 = vpop.f32.mrf.mxu0  ;;  %v10628_v43 = vadd.f32 %v10391_v31, %v9360_v56  ;;  %v6564_v21 = vsel %vm6352_vm5, %v6559_v41, %v6563_v26  ;;  %v14356_v31 = vld [vmem:[%s19113_s0 + $0xec] sm:$0xff] }
 0x544   : > { %13724 = vmatmul.msk.bf16.gmra.mxu3 %vm1226_vm1, %v8862_v2  ;;  %v10030_v18 = vshrl.u32 %v14356_v31, 16  ;;  %v10033_v58 = vshll.u32 %v14356_v31, 16  ;;  %v6567_v35 = vor.u32 %v6565_v16, %v6563_v26  ;;  %v7793_v33 = vor.u32 %v7791_v30, %v18267_v38  ;;  %v11077_v26 = vld [vmem:[%s19116_s3 + $0x240] sm:$0xff]  ;;  %v19277_v31 = vld [vmem:[#allocation33_spill] sm:$0xff] }
 0x545   : > { %v10875_v57 = vadd.f32 %v17826_v6, %v10628_v43  ;;  %v8863_v43 = vrot.slane %v18325_v39, 1  ;;  %v18339_v2 = vrot.slane %v7795_v22, 1  ;;  %v18397_v30 = vld [vmem:[%s19113_s0 + $0x104] sm:$0xff] }
 0x546   : > { %v8144_v10 = vpop.f32.mrf.mxu2  ;;  %v10032_v63 = vrot.slane %v10030_v18, 1  ;;  %v10035_v59 = vrot.slane %v10033_v58, 2  ;;  %11413 = vperm.xlu2 %14674, %v11070_v52   ;;  %v11073_v18 = vld [vmem:[%s19116_s3 + $0x220] sm:$0xff]  ;;  %v11076_v52 = vld [vmem:[%s19116_s3 + $0x238] sm:$0xff] }
 0x547   : > { %v8380_v61 = vadd.f32 %v8144_v10, %v7154_v29  ;;  %v10956_v9 = vmax.f32 %v10875_v57, 0.0  ;;  %v18292_v4 = vpop.f32.mrf.mxu3  ;;  %v8864_v49 = vsel %vm8805_vm4, %v8861_v62, %v8863_v43  ;;  %11453 = vperm.xlu1 %14673, %v11078_v36   ;;  %v11081_v58 = vld [vmem:[%s19116_s3 + $0x260] sm:$0xff] }
 0x548   : > { %v6921_v55 = vpop.f32.mrf.mxu1  ;;  %v18351_v10 = vor.u32 %v10035_v59, %v10032_v63 }
 0x549   : > { %v9361_v34 = vadd.f32 %v18114_v8, %v8380_v61  ;;  %v11523_v1 = vmul.f32 %v11249_v5, %v10956_v9  ;;  %v18300_v8 = vld [vmem:[%s19113_s0 + $0xe4] sm:$0xff]  ;;  %v7155_v47 = vadd.f32 %v6921_v55, %v19275_v24  ;;  %v11259_v5 = vpop.permute.xlu1 %11258  ;;  %v7798_v55 = vsel %vm6352_vm5, %v7793_v33, %v18339_v2 }
 0x54a   : > { %11433 = vperm.xlu0 %14672, %v11074_v14   ;;  %v6569_v40 = vshll.u32 %v18300_v8, 16 }
 0x54b   : > { %v10396_v37 = vpop.f32.mrf.mxu0  ;;  %v14452_v28 = vpack.c.bf16 %v11523_v1, %v11522_v48  ;;  %13264 = vmatmul.msk.bf16.gmra.mxu1 %vm1226_vm1, %v6564_v21  ;;  %13493 = vmatmul.msk.bf16.gmra.mxu2 %vm1226_vm1, %v7790_v50  ;;  %v10629_v46 = vadd.f32 %v10393_v3, %v9361_v34  ;;  %v10037_v34 = vsel %vm9786_vm6, %v18279_v12, %v18351_v10  ;;  %v14357_v1 = vld [vmem:[%s19113_s0 + $0xf4] sm:$0xff] }
 0x54c   : > { %v18377_v12 = vld [vmem:[%s19113_s0 + $0xf4] sm:$0xff] }
 0x54d   : > { %14589 = vst [vmem:[%s16653_s20 + $0x88] sm:$0xff] %v14452_v28   ;;  %v10876_v27 = vadd.f32 %v17826_v6, %v10629_v46  ;;  %v10042_v46 = vshll.u32 %v14357_v1, 16 }
 0x54e   : > { %13951 = vmatmul.msk.bf16.gmra.mxu0 %vm1226_vm1, %v10028_v25  ;;  %v8147_v19 = vpop.f32.mrf.mxu2  ;;  %11428 = vperm.xlu2 %14674, %v11073_v18  }
 0x54f   : > { %v8381_v54 = vadd.f32 %v8147_v19, %v7155_v47  ;;  %v18329_v53 = vpop.f32.mrf.mxu3  ;;  %v10957_v7 = vmax.f32 %v10876_v27, 0.0  ;;  %v10039_v47 = vshrl.u32 %v14357_v1, 16  ;;  %11468 = vperm.xlu1 %14673, %v11081_v58   ;;  %v6573_v19 = vshrl.u32 %v18300_v8, 16 }
 0x550   : > { %v6923_v11 = vpop.f32.mrf.mxu1  ;;  %v10044_v63 = vrot.slane %v10042_v46, 2  ;;  %v11079_v46 = vld [vmem:[%s19116_s3 + $0x250] sm:$0xff] }
 0x551   : > { %v9362_v56 = vadd.f32 %v18148_v0, %v8381_v54  ;;  %v6571_v0 = vrot.slane %v6569_v40, 1  ;;  %v7156_v29 = vadd.f32 %v6923_v11, %v19276_v45  ;;  %v11524_v21 = vmul.f32 %v11254_v23, %v10957_v7  ;;  %v11264_v23 = vpop.permute.xlu2 %11263  ;;  %v19278_v45 = vld [vmem:[#allocation36_spill] sm:$0xff] }
 0x552   : > { %11448 = vperm.xlu0 %14672, %v11077_v26   ;;  %v7799_v11 = vshrl.u32 %v18305_v42, 16  ;;  %v7803_v40 = vshll.u32 %v18377_v12, 16  ;;  %v8865_v42 = vrot.slane %v18397_v30, 1 }
 0x553   : > { %v10398_v3 = vpop.f32.mrf.mxu0  ;;  %v10630_v41 = vadd.f32 %v10396_v37, %v9362_v56  ;;  %v6572_v9 = vsel %vm6352_vm5, %v6567_v35, %v6571_v0  ;;  %v18401_v56 = vld [vmem:[%s16759_s22] ss:$0 sm:$0xff]  ;;  %v6575_v35 = vor.u32 %v6573_v19, %v6571_v0  ;;  %v11083_v0 = vld [vmem:[%s19116_s3 + $0x270] sm:$0xff]  ;;  %v7807_v19 = vshrl.u32 %v18377_v12, 16 }
 0x554   : > { %13725 = vmatmul.msk.bf16.gmra.mxu3 %vm1226_vm1, %v8864_v49  ;;  %v7801_v33 = vor.u32 %v7799_v11, %v18339_v2  ;;  %v7805_v49 = vrot.slane %v7803_v40, 1  ;;  %v8866_v26 = vsel %vm8805_vm4, %v8863_v43, %v8865_v42 }
 0x555   : > { %v10877_v57 = vadd.f32 %v17826_v6, %v10630_v41 }
 0x556   : > { %v8149_v38 = vpop.f32.mrf.mxu2  ;;  %11443 = vperm.xlu2 %14674, %v11076_v52   ;;  %v7809_v52 = vor.u32 %v7807_v19, %v7805_v49 }
 0x557   : > { %v8382_v32 = vadd.f32 %v8149_v38, %v7156_v29  ;;  %v10958_v62 = vmax.f32 %v10877_v57, 0.0  ;;  %v18364_v37 = vpop.f32.mrf.mxu3 }
 0x558   : > { %v6926_v61 = vpop.f32.mrf.mxu1 }
 0x559   : > { %v9363_v6 = vadd.f32 %v18185_v20, %v8382_v32  ;;  %v11525_v50 = vmul.f32 %v11259_v5, %v10958_v62  ;;  %v18372_v20 = vld [vmem:[%s19113_s0 + $0xec] sm:$0xff]  ;;  %v7157_v28 = vadd.f32 %v6926_v61, %v19277_v31  ;;  %v11269_v5 = vpop.permute.xlu0 %11268  ;;  %v7806_v61 = vsel %vm6352_vm5, %v7801_v33, %v7805_v49  ;;  %v11274_v33 = vpop.permute.xlu1 %11273 }
 0x55a   : > { %11463 = vperm.xlu0 %14672, %v11080_v44   ;;  %v6577_v16 = vshll.u32 %v18372_v20, 16  ;;  %v6581_v44 = vshrl.u32 %v18372_v20, 16 }
 0x55b   : > { %v10401_v48 = vpop.f32.mrf.mxu0  ;;  %v14457_v25 = vpack.c.bf16 %v11525_v50, %v11524_v21  ;;  %13265 = vmatmul.msk.bf16.gmra.mxu1 %vm1226_vm1, %v6572_v9  ;;  %13494 = vmatmul.msk.bf16.gmra.mxu2 %vm1226_vm1, %v7798_v55  ;;  %v10631_v24 = vadd.f32 %v10398_v3, %v9363_v6  ;;  %v10041_v3 = vrot.slane %v10039_v47, 1 }
 0x55c   : > { %v6579_v36 = vrot.slane %v6577_v16, 1  ;;  %v18463_v16 = vld [vmem:[%s19113_s0 + $0x10c] sm:$0xff] }
 0x55d   : > { %14590 = vst [vmem:[%s16653_s20 + $0x90] sm:$0xff] %v14457_v25   ;;  %v10878_v27 = vadd.f32 %v18401_v56, %v10631_v24  ;;  %v18424_v38 = vor.u32 %v10044_v63, %v10041_v3  ;;  %v19279_v25 = vld [vmem:[#allocation39_spill] sm:$0xff]  ;;  %v8867_v3 = vrot.slane %v18463_v16, 1 }
 0x55e   : > { %13952 = vmatmul.msk.bf16.gmra.mxu0 %vm1226_vm1, %v10037_v34  ;;  %v8152_v51 = vpop.f32.mrf.mxu2  ;;  %v6580_v62 = vsel %vm6352_vm5, %v6575_v35, %v6579_v36  ;;  %11458 = vperm.xlu2 %14674, %v11079_v46   ;;  %v6583_v12 = vor.u32 %v6581_v44, %v6579_v36  ;;  %v18519_v44 = vld [vmem:[%s19113_s0 + $0x114] sm:$0xff] }
 0x55f   : > { %v8383_v14 = vadd.f32 %v8152_v51, %v7157_v28  ;;  %v18404_v59 = vpop.f32.mrf.mxu3  ;;  %v10959_v7 = vmax.f32 %v10878_v27, 0.0  ;;  %v10046_v50 = vsel %vm9786_vm6, %v18351_v10, %v18424_v38  ;;  %v18449_v10 = vld [vmem:[%s19113_s0 + $0xfc] sm:$0xff] }
 0x560   : > { %v6928_v54 = vpop.f32.mrf.mxu1 }
 0x561   : > { %v9364_v22 = vadd.f32 %v18220_v17, %v8383_v14  ;;  %v11084_v17 = vld [vmem:[%s19116_s3 + $0x278] sm:$0xff]  ;;  %v7158_v29 = vadd.f32 %v6928_v54, %v19278_v45  ;;  %v11526_v9 = vmul.f32 %v11264_v23, %v10959_v7  ;;  %v7811_v54 = vshll.u32 %v18449_v10, 16 }
 0x562   : > { %11483 = vperm.xlu1 %14673, %v11084_v17   ;;  %11478 = vperm.xlu0 %14672, %v11083_v0   ;;  %v19280_v0 = vld [vmem:[#allocation42_spill] sm:$0xff] }
 0x563   : > { %v10403_v8 = vpop.f32.mrf.mxu0  ;;  %v10632_v41 = vadd.f32 %v10401_v48, %v9364_v22  ;;  %v14358_v48 = vld [vmem:[%s19113_s0 + $0xfc] sm:$0xff]  ;;  %v7813_v17 = vrot.slane %v7811_v54, 1 }
 0x564   : > { %13726 = vmatmul.msk.bf16.gmra.mxu3 %vm1226_vm1, %v8866_v26  ;;  %v10048_v24 = vshrl.u32 %v14358_v48, 16  ;;  %v10051_v47 = vshll.u32 %v14358_v48, 16 }
 0x565   : > { %v10879_v57 = vadd.f32 %v18401_v56, %v10632_v41  ;;  %v11082_v41 = vld [vmem:[%s19116_s3 + $0x268] sm:$0xff] }
 0x566   : > { %v8154_v2 = vpop.f32.mrf.mxu2  ;;  %v10050_v27 = vrot.slane %v10048_v24, 1  ;;  %11473 = vperm.xlu2 %14674, %v11082_v41   ;;  %v11284_v41 = vpop.permute.xlu0 %11283 }
 0x567   : > { %v8384_v39 = vadd.f32 %v8154_v2, %v7158_v29  ;;  %v10960_v43 = vmax.f32 %v10879_v57, 0.0  ;;  %v18436_v34 = vpop.f32.mrf.mxu3  ;;  %v11279_v29 = vpop.permute.xlu2 %11278 }
 0x568   : > { %v6931_v32 = vpop.f32.mrf.mxu1 }
 0x569   : > { %v9365_v55 = vadd.f32 %v18257_v60, %v8384_v39  ;;  %v11527_v21 = vmul.f32 %v11269_v5, %v10960_v43  ;;  %v18444_v60 = vld [vmem:[%s19113_s0 + $0xf4] sm:$0xff]  ;;  %v7159_v31 = vadd.f32 %v6931_v32, %v19279_v25  ;;  %v11085_v25 = vld [vmem:[%s19116_s3 + $0x280] sm:$0xff] }
 0x56a   : > { %v6585_v14 = vshll.u32 %v18444_v60, 16  ;;  %v6589_v24 = vshrl.u32 %v18444_v60, 16 }
 0x56b   : > { %v10406_v6 = vpop.f32.mrf.mxu0  ;;  %v14462_v1 = vpack.c.bf16 %v11527_v21, %v11526_v9  ;;  %13266 = vmatmul.msk.bf16.gmra.mxu1 %vm1226_vm1, %v6580_v62  ;;  %13495 = vmatmul.msk.bf16.gmra.mxu2 %vm1226_vm1, %v7806_v61  ;;  %v10633_v28 = vadd.f32 %v10403_v8, %v9365_v55  ;;  %v10053_v8 = vrot.slane %v10051_v47, 2  ;;  %v14359_v61 = vld [vmem:[%s19113_s0 + $0x104] sm:$0xff] }
 0x56c   : > { %v6587_v35 = vrot.slane %v6585_v14, 1  ;;  %v19281_v21 = vld [vmem:[#allocation44_spill] sm:$0xff]  ;;  %v10057_v48 = vshrl.u32 %v14359_v61, 16 }
 0x56d   : > { %14591 = vst [vmem:[%s16653_s20 + $0x98] sm:$0xff] %v14462_v1   ;;  %v10880_v40 = vadd.f32 %v18401_v56, %v10633_v28  ;;  %v18480_v36 = vor.u32 %v10053_v8, %v10050_v27  ;;  %v10060_v1 = vshll.u32 %v14359_v61, 16 }
 0x56e   : > { %13953 = vmatmul.msk.bf16.gmra.mxu0 %vm1226_vm1, %v10046_v50  ;;  %v8157_v18 = vpop.f32.mrf.mxu2  ;;  %v6588_v30 = vsel %vm6352_vm5, %v6583_v12, %v6587_v35  ;;  %11488 = vperm.xlu2 %14674, %v11085_v25   ;;  %v10059_v54 = vrot.slane %v10057_v48, 1 }
 0x56f   : > { %v8385_v58 = vadd.f32 %v8157_v18, %v7159_v31  ;;  %v18467_v20 = vpop.f32.mrf.mxu3  ;;  %v10961_v26 = vmax.f32 %v10880_v40, 0.0  ;;  %v10055_v62 = vsel %vm9786_vm6, %v18424_v38, %v18480_v36  ;;  %v18505_v38 = vld [vmem:[%s19113_s0 + $0x104] sm:$0xff]  ;;  %v7815_v18 = vshrl.u32 %v18449_v10, 16 }
 0x570   : > { %v6933_v51 = vpop.f32.mrf.mxu1  ;;  %v8869_v40 = vrot.slane %v18519_v44, 1  ;;  %v6591_v10 = vor.u32 %v6589_v24, %v6587_v35 }
 0x571   : > { %v9366_v11 = vadd.f32 %v18292_v4, %v8385_v58  ;;  %v8868_v4 = vsel %vm8805_vm4, %v8865_v42, %v8867_v3  ;;  %v7160_v23 = vadd.f32 %v6933_v51, %v19280_v0  ;;  %v7814_v42 = vsel %vm6352_vm5, %v7809_v52, %v7813_v17  ;;  %v19282_v52 = vld [vmem:[#allocation46_spill] sm:$0xff] }
 0x572   : > { %v11528_v5 = vmul.f32 %v11274_v33, %v10961_v26  ;;  %v7819_v58 = vshll.u32 %v18505_v38, 16  ;;  %v7817_v8 = vor.u32 %v7815_v18, %v7813_v17  ;;  %v8870_v12 = vsel %vm8805_vm4, %v8867_v3, %v8869_v40 }
 0x573   : > { %v10408_v22 = vpop.f32.mrf.mxu0  ;;  %v10634_v63 = vadd.f32 %v10406_v6, %v9366_v11  ;;  %v10062_v11 = vrot.slane %v10060_v1, 2  ;;  %v7823_v1 = vshrl.u32 %v18505_v38, 16 }
 0x574   : > { %13727 = vmatmul.msk.bf16.gmra.mxu3 %vm1226_vm1, %v8868_v4 }
 0x575   : > { %v10881_v7 = vadd.f32 %v18401_v56, %v10634_v63  ;;  %v7821_v63 = vrot.slane %v7819_v58, 1  ;;  %v18531_v26 = vor.u32 %v10062_v11, %v10059_v54  ;;  %v11294_v11 = vpop.permute.xlu2 %11293 }
 0x576   : > { %v8159_v45 = vpop.f32.mrf.mxu2 }
 0x577   : > { %v8386_v49 = vadd.f32 %v8159_v45, %v7160_v23  ;;  %v10962_v57 = vmax.f32 %v10881_v7, 0.0  ;;  %v18492_v9 = vpop.f32.mrf.mxu3  ;;  %v11289_v23 = vpop.permute.xlu1 %11288  ;;  %v7822_v3 = vsel %vm6352_vm5, %v7817_v8, %v7821_v63 }
 0x578   : > { %v6936_v2 = vpop.f32.mrf.mxu1 }
 0x579   : > { %v9367_v39 = vadd.f32 %v18329_v53, %v8386_v49  ;;  %v11529_v43 = vmul.f32 %v11279_v29, %v10962_v57  ;;  %v18500_v53 = vld [vmem:[%s19113_s0 + $0xfc] sm:$0xff]  ;;  %v7161_v6 = vadd.f32 %v6936_v2, %v19281_v21  ;;  %v10064_v2 = vsel %vm9786_vm6, %v18480_v36, %v18531_v26  ;;  %v18556_v36 = vld [vmem:[%s19113_s0 + $0x10c] sm:$0xff] }
 0x57a   : > { %v6593_v46 = vshll.u32 %v18500_v53, 16  ;;  %v7827_v25 = vshll.u32 %v18556_v36, 16 }
 0x57b   : > { %v10411_v32 = vpop.f32.mrf.mxu0  ;;  %v14467_v55 = vpack.c.bf16 %v11529_v43, %v11528_v5  ;;  %13267 = vmatmul.msk.bf16.gmra.mxu1 %vm1226_vm1, %v6588_v30  ;;  %13496 = vmatmul.msk.bf16.gmra.mxu2 %vm1226_vm1, %v7814_v42  ;;  %v10635_v50 = vadd.f32 %v10408_v22, %v9367_v39  ;;  %v14360_v30 = vld [vmem:[%s19113_s0 + $0x10c] sm:$0xff]  ;;  %v19283_v39 = vld [vmem:[#allocation48_spill] sm:$0xff] }
 0x57c   : > { %v6595_v27 = vrot.slane %v6593_v46, 1  ;;  %v10069_v61 = vshll.u32 %v14360_v30, 16 }
 0x57d   : > { %14592 = vst [vmem:[%s16653_s20 + $0xa0] sm:$0xff] %v14467_v55   ;;  %v10882_v14 = vadd.f32 %v18401_v56, %v10635_v50 }
 0x57e   : > { %13954 = vmatmul.msk.bf16.gmra.mxu0 %vm1226_vm1, %v10055_v62  ;;  %v8162_v31 = vpop.f32.mrf.mxu2  ;;  %v6596_v16 = vsel %vm6352_vm5, %v6591_v10, %v6595_v27  ;;  %v10066_v62 = vshrl.u32 %v14360_v30, 16  ;;  %v10071_v18 = vrot.slane %v10069_v61, 2  ;;  %v19284_v10 = vld [vmem:[#allocation50_spill] sm:$0xff] }
 0x57f   : > { %v8387_v28 = vadd.f32 %v8162_v31, %v7161_v6  ;;  %v18523_v60 = vpop.f32.mrf.mxu3  ;;  %v6597_v6 = vshrl.u32 %v18500_v53, 16  ;;  %v18567_v31 = vld [vmem:[%s19113_s0 + $0x11c] sm:$0xff] }
 0x580   : > { %v6938_v47 = vpop.f32.mrf.mxu1  ;;  %v10068_v46 = vrot.slane %v10066_v62, 1  ;;  %v8871_v58 = vrot.slane %v18567_v31, 1  ;;  %v7831_v62 = vshrl.u32 %v18556_v36, 16 }
 0x581   : > { %v9368_v51 = vadd.f32 %v18364_v37, %v8387_v28  ;;  %v10963_v37 = vmax.f32 %v10882_v14, 0.0  ;;  %v7162_v4 = vadd.f32 %v6938_v47, %v19282_v52  ;;  %v6599_v38 = vor.u32 %v6597_v6, %v6595_v27 }
 0x582   : > { %v7825_v14 = vor.u32 %v7823_v1, %v7821_v63  ;;  %v8872_v54 = vsel %vm8805_vm4, %v8869_v40, %v8871_v58 }
 0x583   : > { %v10413_v19 = vpop.f32.mrf.mxu0  ;;  %v10636_v22 = vadd.f32 %v10411_v32, %v9368_v51  ;;  %v11530_v45 = vmul.f32 %v11284_v41, %v10963_v37  ;;  %v11299_v37 = vpop.permute.xlu0 %11298 }
 0x584   : > { %13728 = vmatmul.msk.bf16.gmra.mxu3 %vm1226_vm1, %v8870_v12  ;;  %v18577_v12 = vor.u32 %v10071_v18, %v10068_v46 }
 0x585   : > { %v10883_v33 = vadd.f32 %v18401_v56, %v10636_v22 }
 0x586   : > { %v8164_v0 = vpop.f32.mrf.mxu2 }
 0x587   : > { %v8388_v35 = vadd.f32 %v8164_v0, %v7162_v4  ;;  %v10964_v7 = vmax.f32 %v10883_v33, 0.0  ;;  %v18543_v42 = vpop.f32.mrf.mxu3 }
 0x588   : > { %v6941_v17 = vpop.f32.mrf.mxu1 }
 0x589   : > { %v9369_v29 = vadd.f32 %v18404_v59, %v8388_v35  ;;  %v11531_v49 = vmul.f32 %v11289_v23, %v10964_v7  ;;  %v18551_v59 = vld [vmem:[%s19113_s0 + $0x104] sm:$0xff]  ;;  %v7163_v43 = vadd.f32 %v6941_v17, %v19283_v39  ;;  %v10073_v7 = vsel %vm9786_vm6, %v18531_v26, %v18577_v12  ;;  %v14361_v17 = vld [vmem:[%s19113_s0 + $0x114] sm:$0xff] }
 0x58a   : > { %v6601_v48 = vshll.u32 %v18551_v59, 16  ;;  %v18602_v26 = vld [vmem:[%s19113_s0 + $0x114] sm:$0xff]  ;;  %v6605_v39 = vshrl.u32 %v18551_v59, 16 }
 0x58b   : > { %v10416_v57 = vpop.f32.mrf.mxu0  ;;  %v14472_v5 = vpack.c.bf16 %v11531_v49, %v11530_v45  ;;  %13268 = vmatmul.msk.bf16.gmra.mxu1 %vm1226_vm1, %v6596_v16  ;;  %13497 = vmatmul.msk.bf16.gmra.mxu2 %vm1226_vm1, %v7822_v3  ;;  %v10637_v32 = vadd.f32 %v10413_v19, %v9369_v29  ;;  %v7829_v19 = vrot.slane %v7827_v25, 1  ;;  %v19285_v29 = vld [vmem:[#allocation7_spill] sm:$0xff]  ;;  %v7835_v61 = vshll.u32 %v18602_v26, 16 }
 0x58c   : > { %v6603_v51 = vrot.slane %v6601_v48, 1 }
 0x58d   : > { %14593 = vst [vmem:[%s16653_s20 + $0xa8] sm:$0xff] %v14472_v5   ;;  %v10884_v24 = vadd.f32 %v18401_v56, %v10637_v32  ;;  %v7830_v40 = vsel %vm6352_vm5, %v7825_v14, %v7829_v19 }
 0x58e   : > { %13955 = vmatmul.msk.bf16.gmra.mxu0 %vm1226_vm1, %v10064_v2  ;;  %v8167_v55 = vpop.f32.mrf.mxu2  ;;  %v6604_v63 = vsel %vm6352_vm5, %v6599_v38, %v6603_v51  ;;  %v10078_v2 = vshll.u32 %v14361_v17, 16  ;;  %v6607_v36 = vor.u32 %v6605_v39, %v6603_v51  ;;  %v19286_v38 = vld [vmem:[#allocation8_spill] sm:$0xff] }
 0x58f   : > { %v8389_v21 = vadd.f32 %v8167_v55, %v7163_v43  ;;  %v18571_v53 = vpop.f32.mrf.mxu3  ;;  %v10965_v22 = vmax.f32 %v10884_v24, 0.0  ;;  %v18613_v55 = vld [vmem:[%s19113_s0 + $0x124] sm:$0xff]  ;;  %v7833_v24 = vor.u32 %v7831_v62, %v7829_v19 }
 0x590   : > { %v6943_v50 = vpop.f32.mrf.mxu1  ;;  %v10080_v1 = vrot.slane %v10078_v2, 2  ;;  %v8873_v25 = vrot.slane %v18613_v55, 1 }
 0x591   : > { %v9370_v28 = vadd.f32 %v18436_v34, %v8389_v21  ;;  %v7164_v34 = vadd.f32 %v6943_v50, %v19284_v10  ;;  %v11532_v33 = vmul.f32 %v11294_v11, %v10965_v22  ;;  %v11309_v11 = vpop.permute.xlu2 %11308 }
 0x592   : > { %v8874_v46 = vsel %vm8805_vm4, %v8871_v58, %v8873_v25 }
 0x593   : > { %v10418_v47 = vpop.f32.mrf.mxu0  ;;  %v10638_v44 = vadd.f32 %v10416_v57, %v9370_v28  ;;  %v10075_v57 = vshrl.u32 %v14361_v17, 16 }
 0x594   : > { %13729 = vmatmul.msk.bf16.gmra.mxu3 %vm1226_vm1, %v8872_v54 }
 0x595   : > { %v10885_v8 = vadd.f32 %v18401_v56, %v10638_v44  ;;  %v10077_v48 = vrot.slane %v10075_v57, 1  ;;  %v7839_v57 = vshrl.u32 %v18602_v26, 16 }
 0x596   : > { %v8169_v41 = vpop.f32.mrf.mxu2 }
 0x597   : > { %v8390_v52 = vadd.f32 %v8169_v41, %v7164_v34  ;;  %v10966_v4 = vmax.f32 %v10885_v8, 0.0  ;;  %v18589_v16 = vpop.f32.mrf.mxu3  ;;  %v11304_v34 = vpop.permute.xlu1 %11303 }
 0x598   : > { %v6946_v27 = vpop.f32.mrf.mxu1 }
 0x599   : > { %v9371_v0 = vadd.f32 %v18467_v20, %v8390_v52  ;;  %v11533_v23 = vmul.f32 %v11299_v37, %v10966_v4  ;;  %v18597_v20 = vld [vmem:[%s19113_s0 + $0x10c] sm:$0xff]  ;;  %v7165_v49 = vadd.f32 %v6946_v27, %v19285_v29  ;;  %v14362_v27 = vld [vmem:[%s19113_s0 + $0x11c] sm:$0xff] }
 0x59a   : > { %v6609_v32 = vshll.u32 %v18597_v20, 16 }
 0x59b   : > { %v10421_v35 = vpop.f32.mrf.mxu0  ;;  %v14477_v3 = vpack.c.bf16 %v11533_v23, %v11532_v33  ;;  %13269 = vmatmul.msk.bf16.gmra.mxu1 %vm1226_vm1, %v6604_v63  ;;  %13498 = vmatmul.msk.bf16.gmra.mxu2 %vm1226_vm1, %v7830_v40  ;;  %v10639_v45 = vadd.f32 %v10418_v47, %v9371_v0  ;;  %v7837_v47 = vrot.slane %v7835_v61, 1  ;;  %v19287_v0 = vld [vmem:[#allocation10_spill] sm:$0xff] }
 0x59c   : > { %v6611_v28 = vrot.slane %v6609_v32, 1 }
 0x59d   : > { %14594 = vst [vmem:[%s16653_s20 + $0xb0] sm:$0xff] %v14477_v3   ;;  %v10886_v21 = vadd.f32 %v18401_v56, %v10639_v45  ;;  %v7838_v58 = vsel %vm6352_vm5, %v7833_v24, %v7837_v47  ;;  %v6613_v45 = vshrl.u32 %v18597_v20, 16 }
 0x59e   : > { %13956 = vmatmul.msk.bf16.gmra.mxu0 %vm1226_vm1, %v10073_v7  ;;  %v8172_v30 = vpop.f32.mrf.mxu2  ;;  %v6612_v19 = vsel %vm6352_vm5, %v6607_v36, %v6611_v28  ;;  %v10087_v7 = vshll.u32 %v14362_v27, 16  ;;  %v19288_v36 = vld [vmem:[#allocation12_spill] sm:$0xff] }
 0x59f   : > { %v8391_v5 = vadd.f32 %v8172_v30, %v7165_v49  ;;  %v18617_v59 = vpop.f32.mrf.mxu3  ;;  %v10967_v18 = vmax.f32 %v10886_v21, 0.0  ;;  %v18659_v30 = vld [vmem:[%s19113_s0 + $0x12c] sm:$0xff]  ;;  %v6615_v26 = vor.u32 %v6613_v45, %v6611_v28 }
 0x5a0   : > { %v6948_v43 = vpop.f32.mrf.mxu1  ;;  %v10089_v62 = vrot.slane %v10087_v7, 2  ;;  %v8875_v61 = vrot.slane %v18659_v30, 1 }
 0x5a1   : > { %v9372_v6 = vadd.f32 %v18492_v9, %v8391_v5  ;;  %v7166_v14 = vadd.f32 %v6948_v43, %v19286_v38  ;;  %v18623_v9 = vor.u32 %v10080_v1, %v10077_v48  ;;  %v11534_v8 = vmul.f32 %v11304_v34, %v10967_v18  ;;  %v11319_v18 = vpop.permute.xlu1 %11318 }
 0x5a2   : > { %v8876_v48 = vsel %vm8805_vm4, %v8873_v25, %v8875_v61 }
 0x5a3   : > { %v10423_v50 = vpop.f32.mrf.mxu0  ;;  %v10640_v31 = vadd.f32 %v10421_v35, %v9372_v6  ;;  %v10082_v4 = vsel %vm9786_vm6, %v18577_v12, %v18623_v9  ;;  %v18648_v12 = vld [vmem:[%s19113_s0 + $0x11c] sm:$0xff]  ;;  %v10084_v35 = vshrl.u32 %v14362_v27, 16  ;;  %v7841_v6 = vor.u32 %v7839_v57, %v7837_v47 }
 0x5a4   : > { %13730 = vmatmul.msk.bf16.gmra.mxu3 %vm1226_vm1, %v8874_v46  ;;  %v7843_v2 = vshll.u32 %v18648_v12, 16 }
 0x5a5   : > { %v10887_v44 = vadd.f32 %v18401_v56, %v10640_v31  ;;  %v10086_v32 = vrot.slane %v10084_v35, 1  ;;  %v7847_v35 = vshrl.u32 %v18648_v12, 16 }
 0x5a6   : > { %v8174_v54 = vpop.f32.mrf.mxu2 }
 0x5a7   : > { %v10968_v22 = vmax.f32 %v10887_v44, 0.0  ;;  %v8392_v10 = vadd.f32 %v8174_v54, %v7166_v14  ;;  %v18635_v63 = vpop.f32.mrf.mxu3  ;;  %v11314_v14 = vpop.permute.xlu0 %11313 }
 0x5a8   : > { %v6951_v51 = vpop.f32.mrf.mxu1 }
 0x5a9   : > { %v11535_v41 = vmul.f32 %v11309_v11, %v10968_v22  ;;  %v9373_v37 = vadd.f32 %v18523_v60, %v8392_v10  ;;  %v18643_v60 = vld [vmem:[%s19113_s0 + $0x114] sm:$0xff]  ;;  %v7167_v23 = vadd.f32 %v6951_v51, %v19287_v0  ;;  %v14363_v51 = vld [vmem:[%s19113_s0 + $0x124] sm:$0xff] }
 0x5aa   : > { %v6617_v49 = vshll.u32 %v18643_v60, 16 }
 0x5ab   : > { %v10426_v52 = vpop.f32.mrf.mxu0  ;;  %v14482_v40 = vpack.c.bf16 %v11535_v41, %v11534_v8  ;;  %13270 = vmatmul.msk.bf16.gmra.mxu1 %vm1226_vm1, %v6612_v19  ;;  %13499 = vmatmul.msk.bf16.gmra.mxu2 %vm1226_vm1, %v7838_v58  ;;  %v10641_v33 = vadd.f32 %v10423_v50, %v9373_v37  ;;  %v7845_v50 = vrot.slane %v7843_v2, 1  ;;  %v19289_v41 = vld [vmem:[#allocation14_spill] sm:$0xff] }
 0x5ac   : > { %v6619_v21 = vrot.slane %v6617_v49, 1 }
 0x5ad   : > { %14595 = vst [vmem:[%s16653_s20 + $0xb8] sm:$0xff] %v14482_v40   ;;  %v10888_v5 = vadd.f32 %v18401_v56, %v10641_v33  ;;  %v7846_v25 = vsel %vm6352_vm5, %v7841_v6, %v7845_v50  ;;  %v6621_v33 = vshrl.u32 %v18643_v60, 16 }
 0x5ae   : > { %13957 = vmatmul.msk.bf16.gmra.mxu0 %vm1226_vm1, %v10082_v4  ;;  %v8177_v17 = vpop.f32.mrf.mxu2  ;;  %v6620_v47 = vsel %vm6352_vm5, %v6615_v26, %v6619_v21  ;;  %v10096_v4 = vshll.u32 %v14363_v51, 16  ;;  %v19290_v26 = vld [vmem:[#allocation16_spill] sm:$0xff] }
 0x5af   : > { %v8393_v3 = vadd.f32 %v8177_v17, %v7167_v23  ;;  %v18663_v20 = vpop.f32.mrf.mxu3  ;;  %v10969_v1 = vmax.f32 %v10888_v5, 0.0  ;;  %v18705_v17 = vld [vmem:[%s19113_s0 + $0x134] sm:$0xff]  ;;  %v6623_v12 = vor.u32 %v6621_v33, %v6619_v21 }
 0x5b0   : > { %v6953_v29 = vpop.f32.mrf.mxu1  ;;  %v10098_v57 = vrot.slane %v10096_v4, 2  ;;  %v8877_v2 = vrot.slane %v18705_v17, 1 }
 0x5b1   : > { %v9374_v39 = vadd.f32 %v18543_v42, %v8393_v3  ;;  %v7168_v24 = vadd.f32 %v6953_v29, %v19288_v36  ;;  %v18669_v42 = vor.u32 %v10089_v62, %v10086_v32  ;;  %v11536_v54 = vmul.f32 %v11314_v14, %v10969_v1  ;;  %v11324_v1 = vpop.permute.xlu2 %11323 }
 0x5b2   : > { %v8878_v32 = vsel %vm8805_vm4, %v8875_v61, %v8877_v2 }
 0x5b3   : > { %v10428_v43 = vpop.f32.mrf.mxu0  ;;  %v10642_v55 = vadd.f32 %v10426_v52, %v9374_v39  ;;  %v10091_v34 = vsel %vm9786_vm6, %v18623_v9, %v18669_v42  ;;  %v18694_v9 = vld [vmem:[%s19113_s0 + $0x124] sm:$0xff]  ;;  %v10093_v52 = vshrl.u32 %v14363_v51, 16  ;;  %v7849_v39 = vor.u32 %v7847_v35, %v7845_v50 }
 0x5b4   : > { %13731 = vmatmul.msk.bf16.gmra.mxu3 %vm1226_vm1, %v8876_v48  ;;  %v7851_v7 = vshll.u32 %v18694_v9, 16 }
 0x5b5   : > { %v10889_v31 = vadd.f32 %v18401_v56, %v10642_v55  ;;  %v10095_v49 = vrot.slane %v10093_v52, 1  ;;  %v7855_v52 = vshrl.u32 %v18694_v9, 16 }
 0x5b6   : > { %v8179_v46 = vpop.f32.mrf.mxu2 }
 0x5b7   : > { %v10970_v44 = vmax.f32 %v10889_v31, 0.0  ;;  %v8394_v38 = vadd.f32 %v8179_v46, %v7168_v24  ;;  %v18681_v19 = vpop.f32.mrf.mxu3  ;;  %v11329_v24 = vpop.permute.xlu0 %11328 }
 0x5b8   : > { %v6956_v28 = vpop.f32.mrf.mxu1 }
 0x5b9   : > { %v11537_v11 = vmul.f32 %v11319_v18, %v10970_v44  ;;  %v9375_v22 = vadd.f32 %v18571_v53, %v8394_v38  ;;  %v18689_v53 = vld [vmem:[%s19113_s0 + $0x11c] sm:$0xff]  ;;  %v7169_v37 = vadd.f32 %v6956_v28, %v19289_v41  ;;  %v14364_v28 = vld [vmem:[%s19113_s0 + $0x12c] sm:$0xff] }
 0x5ba   : > { %v6625_v23 = vshll.u32 %v18689_v53, 16 }
 0x5bb   : > { %v10431_v10 = vpop.f32.mrf.mxu0  ;;  %v14487_v58 = vpack.c.bf16 %v11537_v11, %v11536_v54  ;;  %13271 = vmatmul.msk.bf16.gmra.mxu1 %vm1226_vm1, %v6620_v47  ;;  %13500 = vmatmul.msk.bf16.gmra.mxu2 %vm1226_vm1, %v7846_v25  ;;  %v10643_v8 = vadd.f32 %v10428_v43, %v9375_v22  ;;  %v7853_v43 = vrot.slane %v7851_v7, 1  ;;  %v19291_v11 = vld [vmem:[#allocation18_spill] sm:$0xff] }
 0x5bc   : > { %v6627_v5 = vrot.slane %v6625_v23, 1 }
 0x5bd   : > { %14596 = vst [vmem:[%s16653_s20 + $0xc0] sm:$0xff] %v14487_v58   ;;  %v10890_v3 = vadd.f32 %v18401_v56, %v10643_v8  ;;  %v7854_v61 = vsel %vm6352_vm5, %v7849_v39, %v7853_v43  ;;  %v6629_v8 = vshrl.u32 %v18689_v53, 16 }
 0x5be   : > { %13958 = vmatmul.msk.bf16.gmra.mxu0 %vm1226_vm1, %v10091_v34  ;;  %v8182_v27 = vpop.f32.mrf.mxu2  ;;  %v6628_v50 = vsel %vm6352_vm5, %v6623_v12, %v6627_v5  ;;  %v10105_v34 = vshll.u32 %v14364_v28, 16  ;;  %v19292_v12 = vld [vmem:[#allocation20_spill] sm:$0xff] }
 0x5bf   : > { %v8395_v40 = vadd.f32 %v8182_v27, %v7169_v37  ;;  %v18709_v60 = vpop.f32.mrf.mxu3  ;;  %v10971_v62 = vmax.f32 %v10890_v3, 0.0  ;;  %v18751_v27 = vld [vmem:[%s19113_s0 + $0x13c] sm:$0xff]  ;;  %v6631_v9 = vor.u32 %v6629_v8, %v6627_v5 }
 0x5c0   : > { %v6958_v0 = vpop.f32.mrf.mxu1  ;;  %v10107_v35 = vrot.slane %v10105_v34, 2  ;;  %v8879_v7 = vrot.slane %v18751_v27, 1 }
 0x5c1   : > { %v9376_v45 = vadd.f32 %v18589_v16, %v8395_v40  ;;  %v7170_v6 = vadd.f32 %v6958_v0, %v19290_v26  ;;  %v18715_v16 = vor.u32 %v10098_v57, %v10095_v49  ;;  %v11538_v46 = vmul.f32 %v11324_v1, %v10971_v62  ;;  %v11339_v62 = vpop.permute.xlu2 %11338 }
 0x5c2   : > { %v8880_v49 = vsel %vm8805_vm4, %v8877_v2, %v8879_v7 }
 0x5c3   : > { %v10433_v29 = vpop.f32.mrf.mxu0  ;;  %v10644_v30 = vadd.f32 %v10431_v10, %v9376_v45  ;;  %v10100_v14 = vsel %vm9786_vm6, %v18669_v42, %v18715_v16  ;;  %v18740_v42 = vld [vmem:[%s19113_s0 + $0x12c] sm:$0xff]  ;;  %v10102_v10 = vshrl.u32 %v14364_v28, 16  ;;  %v7857_v45 = vor.u32 %v7855_v52, %v7853_v43 }
 0x5c4   : > { %13732 = vmatmul.msk.bf16.gmra.mxu3 %vm1226_vm1, %v8878_v32  ;;  %v7859_v4 = vshll.u32 %v18740_v42, 16 }
 0x5c5   : > { %v10891_v55 = vadd.f32 %v18401_v56, %v10644_v30  ;;  %v10104_v23 = vrot.slane %v10102_v10, 1  ;;  %v7863_v10 = vshrl.u32 %v18740_v42, 16 }
 0x5c6   : > { %v8184_v48 = vpop.f32.mrf.mxu2 }
 0x5c7   : > { %v10972_v31 = vmax.f32 %v10891_v55, 0.0  ;;  %v8396_v36 = vadd.f32 %v8184_v48, %v7170_v6  ;;  %v18727_v47 = vpop.f32.mrf.mxu3  ;;  %v11334_v6 = vpop.permute.xlu1 %11333 }
 0x5c8   : > { %v6961_v21 = vpop.f32.mrf.mxu1 }
 0x5c9   : > { %v11539_v18 = vmul.f32 %v11329_v24, %v10972_v31  ;;  %v9377_v44 = vadd.f32 %v18617_v59, %v8396_v36  ;;  %v18735_v59 = vld [vmem:[%s19113_s0 + $0x124] sm:$0xff]  ;;  %v7171_v22 = vadd.f32 %v6961_v21, %v19291_v11  ;;  %v14365_v21 = vld [vmem:[%s19113_s0 + $0x134] sm:$0xff] }
 0x5ca   : > { %v6633_v37 = vshll.u32 %v18735_v59, 16 }
 0x5cb   : > { %v10436_v38 = vpop.f32.mrf.mxu0  ;;  %v14492_v25 = vpack.c.bf16 %v11539_v18, %v11538_v46  ;;  %13272 = vmatmul.msk.bf16.gmra.mxu1 %vm1226_vm1, %v6628_v50  ;;  %13501 = vmatmul.msk.bf16.gmra.mxu2 %vm1226_vm1, %v7854_v61  ;;  %v10645_v54 = vadd.f32 %v10433_v29, %v9377_v44  ;;  %v7861_v29 = vrot.slane %v7859_v4, 1  ;;  %v19293_v18 = vld [vmem:[#allocation22_spill] sm:$0xff] }
 0x5cc   : > { %v6635_v3 = vrot.slane %v6633_v37, 1 }
 0x5cd   : > { %14597 = vst [vmem:[%s16653_s20 + $0xc8] sm:$0xff] %v14492_v25   ;;  %v10892_v40 = vadd.f32 %v18401_v56, %v10645_v54  ;;  %v7862_v2 = vsel %vm6352_vm5, %v7857_v45, %v7861_v29  ;;  %v6637_v54 = vshrl.u32 %v18735_v59, 16 }
 0x5ce   : > { %13959 = vmatmul.msk.bf16.gmra.mxu0 %vm1226_vm1, %v10100_v14  ;;  %v8187_v51 = vpop.f32.mrf.mxu2  ;;  %v6636_v43 = vsel %vm6352_vm5, %v6631_v9, %v6635_v3  ;;  %v10114_v14 = vshll.u32 %v14365_v21, 16  ;;  %v19294_v9 = vld [vmem:[#allocation24_spill] sm:$0xff] }
 0x5cf   : > { %v8397_v58 = vadd.f32 %v8187_v51, %v7171_v22  ;;  %v18755_v53 = vpop.f32.mrf.mxu3  ;;  %v10973_v57 = vmax.f32 %v10892_v40, 0.0  ;;  %v18797_v51 = vld [vmem:[%s19113_s0 + $0x144] sm:$0xff]  ;;  %v6639_v42 = vor.u32 %v6637_v54, %v6635_v3 }
 0x5d0   : > { %v6963_v41 = vpop.f32.mrf.mxu1  ;;  %v10116_v52 = vrot.slane %v10114_v14, 2  ;;  %v8881_v4 = vrot.slane %v18797_v51, 1 }
 0x5d1   : > { %v9378_v33 = vadd.f32 %v18635_v63, %v8397_v58  ;;  %v7172_v39 = vadd.f32 %v6963_v41, %v19292_v12  ;;  %v18761_v63 = vor.u32 %v10107_v35, %v10104_v23  ;;  %v11540_v48 = vmul.f32 %v11334_v6, %v10973_v57  ;;  %v11349_v57 = vpop.permute.xlu1 %11348 }
 0x5d2   : > { %v8882_v23 = vsel %vm8805_vm4, %v8879_v7, %v8881_v4 }
 0x5d3   : > { %v10438_v0 = vpop.f32.mrf.mxu0  ;;  %v10646_v17 = vadd.f32 %v10436_v38, %v9378_v33  ;;  %v10109_v24 = vsel %vm9786_vm6, %v18715_v16, %v18761_v63  ;;  %v18786_v16 = vld [vmem:[%s19113_s0 + $0x134] sm:$0xff]  ;;  %v10111_v38 = vshrl.u32 %v14365_v21, 16  ;;  %v7865_v33 = vor.u32 %v7863_v10, %v7861_v29 }
 0x5d4   : > { %13733 = vmatmul.msk.bf16.gmra.mxu3 %vm1226_vm1, %v8880_v49  ;;  %v7867_v34 = vshll.u32 %v18786_v16, 16 }
 0x5d5   : > { %v10893_v30 = vadd.f32 %v18401_v56, %v10646_v17  ;;  %v10113_v37 = vrot.slane %v10111_v38, 1  ;;  %v7871_v38 = vshrl.u32 %v18786_v16, 16 }
 0x5d6   : > { %v8189_v32 = vpop.f32.mrf.mxu2 }
 0x5d7   : > { %v10974_v55 = vmax.f32 %v10893_v30, 0.0  ;;  %v8398_v26 = vadd.f32 %v8189_v32, %v7172_v39  ;;  %v18773_v50 = vpop.f32.mrf.mxu3  ;;  %v11344_v39 = vpop.permute.xlu0 %11343 }
 0x5d8   : > { %v6966_v5 = vpop.f32.mrf.mxu1 }
 0x5d9   : > { %v11541_v1 = vmul.f32 %v11339_v62, %v10974_v55  ;;  %v9379_v31 = vadd.f32 %v18663_v20, %v8398_v26  ;;  %v18781_v20 = vld [vmem:[%s19113_s0 + $0x12c] sm:$0xff]  ;;  %v7173_v44 = vadd.f32 %v6966_v5, %v19293_v18  ;;  %v14366_v5 = vld [vmem:[%s19113_s0 + $0x13c] sm:$0xff] }
 0x5da   : > { %v6641_v22 = vshll.u32 %v18781_v20, 16 }
 0x5db   : > { %v10441_v36 = vpop.f32.mrf.mxu0  ;;  %v14497_v61 = vpack.c.bf16 %v11541_v1, %v11540_v48  ;;  %13273 = vmatmul.msk.bf16.gmra.mxu1 %vm1226_vm1, %v6636_v43  ;;  %13502 = vmatmul.msk.bf16.gmra.mxu2 %vm1226_vm1, %v7862_v2  ;;  %v10647_v46 = vadd.f32 %v10438_v0, %v9379_v31  ;;  %v7869_v0 = vrot.slane %v7867_v34, 1  ;;  %v19295_v1 = vld [vmem:[#allocation26_spill] sm:$0xff] }
 0x5dc   : > { %v6643_v40 = vrot.slane %v6641_v22, 1 }
 0x5dd   : > { %14598 = vst [vmem:[%s16653_s20 + $0xd0] sm:$0xff] %v14497_v61   ;;  %v10894_v58 = vadd.f32 %v18401_v56, %v10647_v46  ;;  %v7870_v7 = vsel %vm6352_vm5, %v7865_v33, %v7869_v0  ;;  %v6645_v46 = vshrl.u32 %v18781_v20, 16 }
 0x5de   : > { %13960 = vmatmul.msk.bf16.gmra.mxu0 %vm1226_vm1, %v10109_v24  ;;  %v8192_v28 = vpop.f32.mrf.mxu2  ;;  %v6644_v29 = vsel %vm6352_vm5, %v6639_v42, %v6643_v40  ;;  %v10123_v24 = vshll.u32 %v14366_v5, 16  ;;  %v19296_v42 = vld [vmem:[#allocation28_spill] sm:$0xff] }
 0x5df   : > { %v8399_v25 = vadd.f32 %v8192_v28, %v7173_v44  ;;  %v18801_v59 = vpop.f32.mrf.mxu3  ;;  %v10975_v35 = vmax.f32 %v10894_v58, 0.0  ;;  %v18843_v28 = vld [vmem:[%s19113_s0 + $0x14c] sm:$0xff]  ;;  %v6647_v16 = vor.u32 %v6645_v46, %v6643_v40  ;;  %v18893_v46 = vld [vmem:[%s16759_s22] ss:$0 sm:$0xff] }
 0x5e0   : > { %v6968_v11 = vpop.f32.mrf.mxu1  ;;  %v10125_v10 = vrot.slane %v10123_v24, 2  ;;  %v8883_v34 = vrot.slane %v18843_v28, 1 }
 0x5e1   : > { %v9380_v8 = vadd.f32 %v18681_v19, %v8399_v25  ;;  %v7174_v45 = vadd.f32 %v6968_v11, %v19294_v9  ;;  %v18807_v19 = vor.u32 %v10116_v52, %v10113_v37  ;;  %v11542_v32 = vmul.f32 %v11344_v39, %v10975_v35  ;;  %v11354_v35 = vpop.permute.xlu2 %11353  ;;  %v14367_v39 = vld [vmem:[%s19113_s0 + $0x144] sm:$0xff] }
 0x5e2   : > { %v8884_v37 = vsel %vm8805_vm4, %v8881_v4, %v8883_v34 }
 0x5e3   : > { %v10443_v41 = vpop.f32.mrf.mxu0  ;;  %v10648_v27 = vadd.f32 %v10441_v36, %v9380_v8  ;;  %v10118_v6 = vsel %vm9786_vm6, %v18761_v63, %v18807_v19  ;;  %v18832_v63 = vld [vmem:[%s19113_s0 + $0x13c] sm:$0xff]  ;;  %v10120_v36 = vshrl.u32 %v14366_v5, 16  ;;  %v7873_v8 = vor.u32 %v7871_v38, %v7869_v0 }
 0x5e4   : > { %13734 = vmatmul.msk.bf16.gmra.mxu3 %vm1226_vm1, %v8882_v23  ;;  %v7875_v14 = vshll.u32 %v18832_v63, 16  ;;  %v7879_v24 = vshrl.u32 %v18832_v63, 16 }
 0x5e5   : > { %v10895_v17 = vadd.f32 %v18401_v56, %v10648_v27  ;;  %v10122_v22 = vrot.slane %v10120_v36, 1 }
 0x5e6   : > { %v8194_v49 = vpop.f32.mrf.mxu2 }
 0x5e7   : > { %v10976_v30 = vmax.f32 %v10895_v17, 0.0  ;;  %v8400_v12 = vadd.f32 %v8194_v49, %v7174_v45  ;;  %v18819_v43 = vpop.f32.mrf.mxu3  ;;  %v11359_v45 = vpop.permute.xlu0 %11358 }
 0x5e8   : > { %v6971_v3 = vpop.f32.mrf.mxu1 }
 0x5e9   : > { %v11543_v62 = vmul.f32 %v11349_v57, %v10976_v30  ;;  %v9381_v55 = vadd.f32 %v18709_v60, %v8400_v12  ;;  %v18827_v60 = vld [vmem:[%s19113_s0 + $0x134] sm:$0xff]  ;;  %v7175_v31 = vadd.f32 %v6971_v3, %v19295_v1 }
 0x5ea   : > { %v6649_v44 = vshll.u32 %v18827_v60, 16  ;;  %v14324_v1 = vld [vmem:[%s19113_s0 + $0x154] sm:$0x10] }
 0x5eb   : > { %v10446_v26 = vpop.f32.mrf.mxu0  ;;  %v14502_v2 = vpack.c.bf16 %v11543_v62, %v11542_v32  ;;  %13274 = vmatmul.msk.bf16.gmra.mxu1 %vm1226_vm1, %v6644_v29  ;;  %13503 = vmatmul.msk.bf16.gmra.mxu2 %vm1226_vm1, %v7870_v7  ;;  %v10649_v48 = vadd.f32 %v10443_v41, %v9381_v55  ;;  %v7877_v41 = vrot.slane %v7875_v14, 1  ;;  %v19297_v32 = vld [vmem:[#allocation30_spill] sm:$0xff]  ;;  %v10129_v55 = vshrl.u32 %v14367_v39, 16 }
 0x5ec   : > { %v6651_v58 = vrot.slane %v6649_v44, 1 }
 0x5ed   : > { %14599 = vst [vmem:[%s16653_s20 + $0xd8] sm:$0xff] %v14502_v2   ;;  %v10896_v25 = vadd.f32 %v18401_v56, %v10649_v48  ;;  %v7878_v4 = vsel %vm6352_vm5, %v7873_v8, %v7877_v41  ;;  %v6653_v2 = vshrl.u32 %v18827_v60, 16  ;;  %v13679_v48 = vld [vmem:[%s19113_s0 + $0x154] sm:$0xf]  ;;  %v10131_v38 = vrot.slane %v10129_v55, 1 }
 0x5ee   : > { %13961 = vmatmul.msk.bf16.gmra.mxu0 %vm1226_vm1, %v10118_v6  ;;  %v8197_v21 = vpop.f32.mrf.mxu2  ;;  %v6652_v0 = vsel %vm6352_vm5, %v6647_v16, %v6651_v58 }
 0x5ef   : > { %v8401_v61 = vadd.f32 %v8197_v21, %v7175_v31  ;;  %v18847_v20 = vpop.f32.mrf.mxu3  ;;  %v10977_v52 = vmax.f32 %v10896_v25, 0.0 }
 0x5f0   : > { %v6973_v18 = vpop.f32.mrf.mxu1 }
 0x5f1   : > { %v9382_v54 = vadd.f32 %v18727_v47, %v8401_v61  ;;  %v7176_v33 = vadd.f32 %v6973_v18, %v19296_v42  ;;  %v18853_v47 = vor.u32 %v10125_v10, %v10122_v22  ;;  %v11544_v49 = vmul.f32 %v11354_v35, %v10977_v52  ;;  %v11369_v42 = vpop.permute.xlu2 %11368  ;;  %v11364_v35 = vpop.permute.xlu1 %11363 }
 0x5f2   : > { %v13680_v61 = vor.u32 %v14324_v1, %v13679_v48  ;;  %v7881_v10 = vor.u32 %v7879_v24, %v7877_v41 }
 0x5f3   : > { %v10448_v11 = vpop.f32.mrf.mxu0  ;;  %v10650_v51 = vadd.f32 %v10446_v26, %v9382_v54  ;;  %v10127_v12 = vsel %vm9786_vm6, %v18807_v19, %v18853_v47  ;;  %v18878_v19 = vld [vmem:[%s19113_s0 + $0x144] sm:$0xff]  ;;  %v10132_v26 = vshll.u32 %v14367_v39, 16  ;;  %v19299_v39 = vld [vmem:[#allocation35_spill] sm:$0xff] }
 0x5f4   : > { %13735 = vmatmul.msk.bf16.gmra.mxu3 %vm1226_vm1, %v8884_v37  ;;  %v7883_v21 = vshll.u32 %v18878_v19, 16  ;;  %v8885_v25 = vrot.slane %v13680_v61, 1  ;;  %v19298_v37 = vld [vmem:[#allocation32_spill] sm:$0xff] }
 0x5f5   : > { %v10897_v27 = vadd.f32 %v18401_v56, %v10650_v51  ;;  %v10134_v14 = vrot.slane %v10132_v26, 2 }
 0x5f6   : > { %v8199_v23 = vpop.f32.mrf.mxu2  ;;  %v7885_v63 = vrot.slane %v7883_v21, 1  ;;  %v8886_v51 = vsel %vm8805_vm4, %v8883_v34, %v8885_v25  ;;  %v14368_v34 = vld [vmem:[%s19113_s0 + $0x14c] sm:$0xff] }
 0x5f7   : > { %v10978_v17 = vmax.f32 %v10897_v27, 0.0  ;;  %v8402_v9 = vadd.f32 %v8199_v23, %v7176_v33  ;;  %v18865_v3 = vpop.f32.mrf.mxu3  ;;  %v10135_v27 = vor.u32 %v10134_v14, %v10131_v38  ;;  %v19300_v14 = vld [vmem:[#allocation38_spill] sm:$0xff] }
 0x5f8   : > { %v6976_v40 = vpop.f32.mrf.mxu1  ;;  %v7886_v41 = vsel %vm6352_vm5, %v7881_v10, %v7885_v63 }
 0x5f9   : > { %v11545_v57 = vmul.f32 %v11359_v45, %v10978_v17  ;;  %v9383_v56 = vadd.f32 %v18755_v53, %v8402_v9  ;;  %v18873_v53 = vld [vmem:[%s19113_s0 + $0x13c] sm:$0xff]  ;;  %v7177_v62 = vadd.f32 %v6976_v40, %v19297_v32  ;;  %v11379_v10 = vpop.permute.xlu1 %11378 }
 0x5fa   : > { %v6657_v36 = vshll.u32 %v18873_v53, 16 }
 0x5fb   : > { %v10451_v30 = vpop.f32.mrf.mxu0  ;;  %v14507_v29 = vpack.c.bf16 %v11545_v57, %v11544_v49  ;;  %13275 = vmatmul.msk.bf16.gmra.mxu1 %vm1226_vm1, %v6652_v0  ;;  %13504 = vmatmul.msk.bf16.gmra.mxu2 %vm1226_vm1, %v7878_v4  ;;  %v10651_v7 = vadd.f32 %v10448_v11, %v9383_v56  ;;  %v6655_v11 = vor.u32 %v6653_v2, %v6651_v58  ;;  %v18918_v56 = vld [vmem:[%s19113_s0 + $0x144] sm:$0xff] }
 0x5fc   : > { %v6659_v22 = vrot.slane %v6657_v36, 1  ;;  %v10136_v4 = vsel %vm9786_vm6, %v18853_v47, %v10135_v27  ;;  %v10138_v47 = vshrl.u32 %v14368_v34, 16  ;;  %v6665_v55 = vshll.u32 %v18918_v56, 16 }
 0x5fd   : > { %14600 = vst [vmem:[%s16653_s20 + $0xe0] sm:$0xff] %v14507_v29   ;;  %v10898_v60 = vadd.f32 %v18893_v46, %v10651_v7 }
 0x5fe   : > { %13962 = vmatmul.msk.bf16.gmra.mxu0 %vm1226_vm1, %v10127_v12  ;;  %v8202_v6 = vpop.f32.mrf.mxu2  ;;  %v6660_v58 = vsel %vm6352_vm5, %v6655_v11, %v6659_v22  ;;  %v10140_v2 = vrot.slane %v10138_v47, 1 }
 0x5ff   : > { %v8403_v5 = vadd.f32 %v8202_v6, %v7177_v62  ;;  %v18897_v28 = vpop.f32.mrf.mxu3  ;;  %v10979_v16 = vmax.f32 %v10898_v60, 0.0  ;;  %v6661_v62 = vshrl.u32 %v18873_v53, 16  ;;  %v7887_v6 = vshrl.u32 %v18878_v19, 16 }
 0x600   : > { %v6978_v31 = vpop.f32.mrf.mxu1  ;;  %v6667_v60 = vrot.slane %v6665_v55, 1 }
 0x601   : > { %v9384_v18 = vadd.f32 %v18773_v50, %v8403_v5  ;;  %v7178_v52 = vadd.f32 %v6978_v31, %v19298_v37  ;;  %v11546_v9 = vmul.f32 %v11364_v35, %v10979_v16  ;;  %v6663_v61 = vor.u32 %v6661_v62, %v6659_v22  ;;  %v14369_v22 = vld [vmem:[%s19113_s0 + $0x154] sm:$0x30]  ;;  %v11374_v16 = vpop.permute.xlu0 %11373 }
 0x602   : > { %v7889_v53 = vor.u32 %v7887_v6, %v7885_v63 }
 0x603   : > { %v10453_v44 = vpop.f32.mrf.mxu0  ;;  %v10652_v54 = vadd.f32 %v10451_v30, %v9384_v18  ;;  %v10141_v30 = vshll.u32 %v14368_v34, 16  ;;  %v6668_v37 = vsel %vm6352_vm5, %v6663_v61, %v6667_v60 }
 0x604   : > { %13736 = vmatmul.msk.bf16.gmra.mxu3 %vm1226_vm1, %v8886_v51 }
 0x605   : > { %v10899_v8 = vadd.f32 %v18893_v46, %v10652_v54  ;;  %v10143_v48 = vrot.slane %v10141_v30, 2 }
 0x606   : > { %v8204_v50 = vpop.f32.mrf.mxu2 }
 0x607   : > { %v10980_v33 = vmax.f32 %v10899_v8, 0.0  ;;  %v8404_v23 = vadd.f32 %v8204_v50, %v7178_v52  ;;  %v18911_v49 = vpop.f32.mrf.mxu3  ;;  %v13221_v50 = vld [vmem:[%s19113_s0 + $0x14c] sm:$0xf] }
 0x608   : > { %v6981_v17 = vpop.f32.mrf.mxu1 }
 0x609   : > { %v11547_v45 = vmul.f32 %v11369_v42, %v10980_v33  ;;  %v9385_v40 = vadd.f32 %v18801_v59, %v8404_v23  ;;  %v18924_v59 = vld [vmem:[%s19113_s0 + $0x14c] sm:$0xff]  ;;  %v7179_v29 = vadd.f32 %v6981_v17, %v19299_v39 }
 0x60a   : > { %v7891_v5 = vshll.u32 %v18924_v59, 16  ;;  %v14234_v17 = vld [vmem:[%s19113_s0 + $0x14c] sm:$0x10] }
 0x60b   : > { %v10456_v0 = vpop.f32.mrf.mxu0  ;;  %v14512_v57 = vpack.c.bf16 %v11547_v45, %v11546_v9  ;;  %13276 = vmatmul.msk.bf16.gmra.mxu1 %vm1226_vm1, %v6660_v58  ;;  %13505 = vmatmul.msk.bf16.gmra.mxu2 %vm1226_vm1, %v7886_v41  ;;  %v10653_v12 = vadd.f32 %v10453_v44, %v9385_v40  ;;  %v18936_v44 = vor.u32 %v10143_v48, %v10140_v2  ;;  %v13450_v58 = vld [vmem:[%s19113_s0 + $0x154] sm:$0xf] }
 0x60c   : > { %v7893_v18 = vrot.slane %v7891_v5, 1 }
 0x60d   : > { %14601 = vst [vmem:[%s16653_s20 + $0xe8] sm:$0xff] %v14512_v57   ;;  %v10900_v1 = vadd.f32 %v18893_v46, %v10653_v12 }
 0x60e   : > { %13963 = vmatmul.msk.bf16.gmra.mxu0 %vm1226_vm1, %v10136_v4  ;;  %v8207_v7 = vpop.f32.mrf.mxu2  ;;  %v7894_v52 = vsel %vm6352_vm5, %v7889_v53, %v7893_v18 }
 0x60f   : > { %v8405_v32 = vadd.f32 %v8207_v7, %v7179_v29  ;;  %v18934_v24 = vpop.f32.mrf.mxu3  ;;  %v10981_v38 = vmax.f32 %v10900_v1, 0.0  ;;  %v6669_v29 = vshrl.u32 %v18918_v56, 16 }
 0x610   : > { %v6983_v26 = vpop.f32.mrf.mxu1 }
 0x611   : > { %v9386_v31 = vadd.f32 %v18819_v43, %v8405_v32  ;;  %v7180_v54 = vadd.f32 %v6983_v26, %v19300_v14  ;;  %v13908_v43 = vld [vmem:[%s19113_s0 + $0x154] sm:$0xf]  ;;  %v11548_v42 = vmul.f32 %v11374_v16, %v10981_v38  ;;  %v7895_v32 = vshrl.u32 %v18924_v59, 16  ;;  %v19302_v59 = vld [vmem:[#allocation43_spill] sm:$0xff] }
 0x612   : > { %v13909_v41 = vor.u32 %v14369_v22, %v13908_v43  ;;  %v11389_v43 = vpop.permute.xlu0 %11388 }
 0x613   : > { %v10458_v36 = vpop.f32.mrf.mxu0  ;;  %v10654_v21 = vadd.f32 %v10456_v0, %v9386_v31  ;;  %v19301_v0 = vld [vmem:[#allocation41_spill] sm:$0xff]  ;;  %v6671_v31 = vor.u32 %v6669_v29, %v6667_v60 }
 0x614   : > { %13737 = vmatmul.msk.bf16.gmra.mxu3 %vm1226_vm1, %v8885_v25  ;;  %v10145_v25 = vsel %vm9786_vm6, %v10135_v27, %v18936_v44  ;;  %v14279_v27 = vld [vmem:[%s19113_s0 + $0x154] sm:$0x10]  ;;  %v10147_v57 = vshrl.u32 %v13909_v41, 16  ;;  %v10150_v47 = vshll.u32 %v13909_v41, 16 }
 0x615   : > { %v10901_v19 = vadd.f32 %v18893_v46, %v10654_v21  ;;  %v18971_v45 = vor.u32 %v14279_v27, %v13450_v58  ;;  %v7897_v21 = vor.u32 %v7895_v32, %v7893_v18 }
 0x616   : > { %v8209_v11 = vpop.f32.mrf.mxu2  ;;  %v10149_v5 = vrot.slane %v10147_v57, 1  ;;  %v10152_v2 = vrot.slane %v10150_v47, 2 }
 0x617   : > { %v10982_v63 = vmax.f32 %v10901_v19, 0.0  ;;  %v8406_v51 = vadd.f32 %v8209_v11, %v7180_v54  ;;  %v18964_v34 = vpop.f32.mrf.mxu3  ;;  %v7899_v62 = vshll.u32 %v18971_v45, 16  ;;  %v11384_v54 = vpop.permute.xlu2 %11383 }
 0x618   : > { %v6986_v8 = vpop.f32.mrf.mxu1  ;;  %v10153_v19 = vor.u32 %v10152_v2, %v10149_v5  ;;  %v19305_v2 = vld [vmem:[#allocation49_spill] sm:$0xff] }
 0x619   : > { %v11549_v33 = vmul.f32 %v11379_v10, %v10982_v63  ;;  %v9387_v23 = vadd.f32 %v18847_v20, %v8406_v51  ;;  %v18969_v20 = vor.u32 %v14234_v17, %v13221_v50  ;;  %v7181_v4 = vadd.f32 %v6986_v8, %v19301_v0  ;;  %v19303_v50 = vld [vmem:[#allocation45_spill] sm:$0xff] }
 0x61a   : > { %v7901_v56 = vrot.slane %v7899_v62, 1  ;;  %v10154_v8 = vsel %vm9786_vm6, %v18936_v44, %v10153_v19 }
 0x61b   : > { %v10461_v35 = vpop.f32.mrf.mxu0  ;;  %v14517_v9 = vpack.c.bf16 %v11549_v33, %v11548_v42  ;;  %13277 = vmatmul.msk.bf16.gmra.mxu1 %vm1226_vm1, %v6668_v37  ;;  %13506 = vmatmul.msk.bf16.gmra.mxu2 %vm1226_vm1, %v7894_v52  ;;  %v10655_v40 = vadd.f32 %v10458_v36, %v9387_v23  ;;  %v6673_v7 = vshll.u32 %v18969_v20, 16  ;;  %v6677_v41 = vshrl.u32 %v18969_v20, 16 }
 0x61c   : > { %v7902_v60 = vsel %vm6352_vm5, %v7897_v21, %v7901_v56 }
 0x61d   : > { %14602 = vst [vmem:[%s16653_s20 + $0xf0] sm:$0xff] %v14517_v9   ;;  %v10902_v55 = vadd.f32 %v18893_v46, %v10655_v40  ;;  %v6675_v36 = vrot.slane %v6673_v7, 1  ;;  %v7903_v9 = vshrl.u32 %v18971_v45, 16  ;;  %v11394_v7 = vpop.permute.xlu1 %11393 }
 0x61e   : > { %13964 = vmatmul.msk.bf16.gmra.mxu0 %vm1226_vm1, %v10145_v25  ;;  %v8212_v30 = vpop.f32.mrf.mxu2 }
 0x61f   : > { %v8407_v12 = vadd.f32 %v8212_v30, %v7181_v4  ;;  %v18981_v48 = vpop.f32.mrf.mxu3  ;;  %v10983_v61 = vmax.f32 %v10902_v55, 0.0  ;;  %v6676_v10 = vsel %vm6352_vm5, %v6671_v31, %v6675_v36  ;;  %v19304_v4 = vld [vmem:[#allocation47_spill] sm:$0xff]  ;;  %v11399_v30 = vpop.permute.xlu2 %11398  ;;  %v6679_v29 = vor.u32 %v6677_v41, %v6675_v36 }
 0x620   : > { %v6988_v39 = vpop.f32.mrf.mxu1 }
 0x621   : > { %v9388_v26 = vadd.f32 %v18865_v3, %v8407_v12  ;;  %v7182_v38 = vadd.f32 %v6988_v39, %v19302_v59  ;;  %v11550_v63 = vmul.f32 %v11384_v54, %v10983_v61 }
 0x623   : > { %v10463_v6 = vpop.f32.mrf.mxu0  ;;  %v10656_v1 = vadd.f32 %v10461_v35, %v9388_v26 }
 0x625   : > { %v10903_v53 = vadd.f32 %v18893_v46, %v10656_v1 }
 0x626   : > { %v8214_v14 = vpop.f32.mrf.mxu2 }
 0x627   : > { %v10984_v11 = vmax.f32 %v10903_v53, 0.0  ;;  %v8408_v3 = vadd.f32 %v8214_v14, %v7182_v38  ;;  %v18990_v37 = vpop.f32.mrf.mxu3 }
 0x628   : > { %v6991_v22 = vpop.f32.mrf.mxu1 }
 0x629   : > { %v11551_v18 = vmul.f32 %v11389_v43, %v10984_v11  ;;  %v9389_v51 = vadd.f32 %v18897_v28, %v8408_v3  ;;  %v7183_v42 = vadd.f32 %v6991_v22, %v19303_v50  ;;  %v11409_v3 = vpop.permute.xlu1 %11408 }
 0x62b   : > { %v10466_v16 = vpop.f32.mrf.mxu0  ;;  %v14522_v52 = vpack.c.bf16 %v11551_v18, %v11550_v63  ;;  %13278 = vmatmul.msk.bf16.gmra.mxu1 %vm1226_vm1, %v6676_v10  ;;  %13507 = vmatmul.msk.bf16.gmra.mxu2 %vm1226_vm1, %v7902_v60  ;;  %v10657_v25 = vadd.f32 %v10463_v6, %v9389_v51  ;;  %v11404_v10 = vpop.permute.xlu0 %11403 }
 0x62d   : > { %14603 = vst [vmem:[%s16653_s20 + $0xf8] sm:$0xff] %v14522_v52   ;;  %v10904_v35 = vadd.f32 %v18893_v46, %v10657_v25  ;;  %v19307_v25 = vld [vmem:[#allocation9_spill] sm:$0xff] }
 0x62e   : > { %13965 = vmatmul.msk.bf16.gmra.mxu0 %vm1226_vm1, %v10154_v8  ;;  %v8217_v33 = vpop.f32.mrf.mxu2 }
 0x62f   : > { %v8409_v23 = vadd.f32 %v8217_v33, %v7183_v42  ;;  %v18999_v58 = vpop.f32.mrf.mxu3  ;;  %v10985_v40 = vmax.f32 %v10904_v35, 0.0 }
 0x630   : > { %v6993_v28 = vpop.f32.mrf.mxu1 }
 0x631   : > { %v9390_v44 = vadd.f32 %v18911_v49, %v8409_v23  ;;  %v7184_v57 = vadd.f32 %v6993_v28, %v19304_v4  ;;  %v7905_v49 = vor.u32 %v7903_v9, %v7901_v56  ;;  %v11552_v62 = vmul.f32 %v11394_v7, %v10985_v40  ;;  %v19308_v9 = vld [vmem:[#allocation11_spill] sm:$0xff]  ;;  %v11414_v4 = vpop.permute.xlu2 %11413 }
 0x633   : > { %v10468_v17 = vpop.f32.mrf.mxu0  ;;  %v10658_v27 = vadd.f32 %v10466_v16, %v9390_v44 }
 0x635   : > { %v10905_v0 = vadd.f32 %v18893_v46, %v10658_v27 }
 0x636   : > { %v8219_v47 = vpop.f32.mrf.mxu2 }
 0x637   : > { %v10986_v12 = vmax.f32 %v10905_v0, 0.0  ;;  %v8410_v39 = vadd.f32 %v8219_v47, %v7184_v57  ;;  %v19006_v45 = vpop.f32.mrf.mxu3 }
 0x638   : > { %v6996_v32 = vpop.f32.mrf.mxu1 }
 0x639   : > { %v11553_v55 = vmul.f32 %v11399_v30, %v10986_v12  ;;  %v9391_v20 = vadd.f32 %v18934_v24, %v8410_v39  ;;  %v7185_v1 = vadd.f32 %v6996_v32, %v19305_v2  ;;  %v11419_v30 = vpop.permute.xlu0 %11418 }
 0x63b   : > { %v10471_v26 = vpop.f32.mrf.mxu0  ;;  %v14527_v6 = vpack.c.bf16 %v11553_v55, %v11552_v62  ;;  %13279 = vmatmul.msk.bf16.gmra.mxu1 %vm1226_vm1, %v6679_v29  ;;  %13508 = vmatmul.msk.bf16.gmra.mxu2 %vm1226_vm1, %v7905_v49  ;;  %v10659_v5 = vadd.f32 %v10468_v17, %v9391_v20  ;;  %v19309_v55 = vld [vmem:[#allocation13_spill] sm:$0xff] }
 0x63d   : > { %14604 = vst [vmem:[%s16653_s20 + $0x100] sm:$0xff] %v14527_v6   ;;  %v10906_v56 = vadd.f32 %v18893_v46, %v10659_v5 }
 0x63e   : > { %13966 = vmatmul.msk.bf16.gmra.mxu0 %vm1226_vm1, %v10153_v19  ;;  %v8222_v31 = vpop.f32.mrf.mxu2  ;;  %v19306_v19 = vld [vmem:[#allocation51_spill] sm:$0xff] }
 0x63f   : > { %v8411_v36 = vadd.f32 %v8222_v31, %v7185_v1  ;;  %v19015_v53 = vpop.f32.mrf.mxu3  ;;  %v10987_v38 = vmax.f32 %v10906_v56, 0.0 }
 0x640   : > { %v6998_v21 = vpop.f32.mrf.mxu1 }
 0x641   : > { %v9392_v24 = vadd.f32 %v18964_v34, %v8411_v36  ;;  %v7186_v54 = vadd.f32 %v6998_v21, %v19306_v19  ;;  %v11554_v63 = vmul.f32 %v11404_v10, %v10987_v38  ;;  %v11429_v38 = vpop.permute.xlu2 %11428 }
 0x643   : > { %v10473_v61 = vpop.f32.mrf.mxu0  ;;  %v10660_v59 = vadd.f32 %v10471_v26, %v9392_v24  ;;  %v19310_v24 = vld [vmem:[#allocation15_spill] sm:$0xff] }
 0x645   : > { %v10907_v14 = vadd.f32 %v18893_v46, %v10660_v59 }
 0x646   : > { %v8224_v11 = vpop.f32.mrf.mxu2 }
 0x647   : > { %v10988_v43 = vmax.f32 %v10907_v14, 0.0  ;;  %v8412_v22 = vadd.f32 %v8224_v11, %v7186_v54  ;;  %v9218_v16 = vpop.f32.mrf.mxu3  ;;  %v11424_v54 = vpop.permute.xlu1 %11423 }
 0x648   : > { %v7001_v60 = vpop.f32.mrf.mxu1 }
 0x649   : > { %v11555_v18 = vmul.f32 %v11409_v3, %v10988_v43  ;;  %v9393_v34 = vadd.f32 %v18981_v48, %v8412_v22  ;;  %v7187_v50 = vadd.f32 %v7001_v60, %v19307_v25 }
 0x64b   : > { %v10476_v51 = vpop.f32.mrf.mxu0  ;;  %v14532_v8 = vpack.c.bf16 %v11555_v18, %v11554_v63  ;;  %v10661_v52 = vadd.f32 %v10473_v61, %v9393_v34  ;;  %v19311_v18 = vld [vmem:[#allocation17_spill] sm:$0xff] }
 0x64d   : > { %14605 = vst [vmem:[%s16653_s20 + $0x108] sm:$0xff] %v14532_v8   ;;  %v10908_v28 = vadd.f32 %v18893_v46, %v10661_v52 }
 0x64e   : > { %v8227_v42 = vpop.f32.mrf.mxu2 }
 0x64f   : > { %v8413_v33 = vadd.f32 %v8227_v42, %v7187_v50  ;;  %v19024_v17 = vpop.f32.mrf.mxu3  ;;  %v10989_v48 = vmax.f32 %v10908_v28, 0.0 }
 0x650   : > { %v7003_v23 = vpop.f32.mrf.mxu1 }
 0x651   : > { %v9394_v35 = vadd.f32 %v18990_v37, %v8413_v33  ;;  %v7188_v40 = vadd.f32 %v7003_v23, %v19308_v9  ;;  %v11556_v39 = vmul.f32 %v11414_v4, %v10989_v48  ;;  %v11439_v48 = vpop.permute.xlu1 %11438 }
 0x653   : > { %v10478_v44 = vpop.f32.mrf.mxu0  ;;  %v10662_v27 = vadd.f32 %v10476_v51, %v9394_v35  ;;  %v19312_v35 = vld [vmem:[#allocation19_spill] sm:$0xff] }
 0x655   : > { %v10909_v41 = vadd.f32 %v18893_v46, %v10662_v27 }
 0x656   : > { %v8229_v0 = vpop.f32.mrf.mxu2 }
 0x657   : > { %v10990_v57 = vmax.f32 %v10909_v41, 0.0  ;;  %v8414_v47 = vadd.f32 %v8229_v0, %v7188_v40  ;;  %v9223_v7 = vpop.f32.mrf.mxu3  ;;  %v11434_v40 = vpop.permute.xlu0 %11433 }
 0x658   : > { %v7006_v12 = vpop.f32.mrf.mxu1 }
 0x659   : > { %v11557_v29 = vmul.f32 %v11419_v30, %v10990_v57  ;;  %v9395_v37 = vadd.f32 %v18999_v58, %v8414_v47  ;;  %v7189_v20 = vadd.f32 %v7006_v12, %v19309_v55 }
 0x65b   : > { %v10481_v49 = vpop.f32.mrf.mxu0  ;;  %v14537_v32 = vpack.c.bf16 %v11557_v29, %v11556_v39  ;;  %v10663_v62 = vadd.f32 %v10478_v44, %v9395_v37  ;;  %v19313_v29 = vld [vmem:[#allocation21_spill] sm:$0xff] }
 0x65d   : > { %14606 = vst [vmem:[%s16653_s20 + $0x110] sm:$0xff] %v14537_v32   ;;  %v10910_v2 = vadd.f32 %v18893_v46, %v10663_v62 }
 0x65e   : > { %v8232_v26 = vpop.f32.mrf.mxu2 }
 0x65f   : > { %v8415_v6 = vadd.f32 %v8232_v26, %v7189_v20  ;;  %v19033_v36 = vpop.f32.mrf.mxu3  ;;  %v10991_v58 = vmax.f32 %v10910_v2, 0.0 }
 0x660   : > { %v7008_v5 = vpop.f32.mrf.mxu1 }
 0x661   : > { %v9396_v1 = vadd.f32 %v19006_v45, %v8415_v6  ;;  %v7190_v61 = vadd.f32 %v7008_v5, %v19310_v24  ;;  %v11558_v3 = vmul.f32 %v11424_v54, %v10991_v58  ;;  %v11444_v58 = vpop.permute.xlu2 %11443 }
 0x663   : > { %v10483_v31 = vpop.f32.mrf.mxu0  ;;  %v10664_v21 = vadd.f32 %v10481_v49, %v9396_v1  ;;  %v19314_v1 = vld [vmem:[#allocation23_spill] sm:$0xff] }
 0x665   : > { %v10911_v56 = vadd.f32 %v18893_v46, %v10664_v21 }
 0x666   : > { %v8234_v59 = vpop.f32.mrf.mxu2 }
 0x667   : > { %v10992_v14 = vmax.f32 %v10911_v56, 0.0  ;;  %v8416_v19 = vadd.f32 %v8234_v59, %v7190_v61  ;;  %v9228_v10 = vpop.f32.mrf.mxu3  ;;  %v11449_v61 = vpop.permute.xlu0 %11448 }
 0x668   : > { %v7011_v11 = vpop.f32.mrf.mxu1 }
 0x669   : > { %v11559_v43 = vmul.f32 %v11429_v38, %v10992_v14  ;;  %v9397_v45 = vadd.f32 %v19015_v53, %v8416_v19  ;;  %v7191_v34 = vadd.f32 %v7011_v11, %v19311_v18 }
 0x66b   : > { %v10486_v22 = vpop.f32.mrf.mxu0  ;;  %v14542_v60 = vpack.c.bf16 %v11559_v43, %v11558_v3  ;;  %v10665_v63 = vadd.f32 %v10483_v31, %v9397_v45  ;;  %v19315_v43 = vld [vmem:[#allocation25_spill] sm:$0xff] }
 0x66d   : > { %14607 = vst [vmem:[%s16653_s20 + $0x118] sm:$0xff] %v14542_v60   ;;  %v10912_v25 = vadd.f32 %v18893_v46, %v10665_v63 }
 0x66e   : > { %v8237_v51 = vpop.f32.mrf.mxu2 }
 0x66f   : > { %v8417_v8 = vadd.f32 %v8237_v51, %v7191_v34  ;;  %v19041_v33 = vpop.f32.mrf.mxu3  ;;  %v10993_v28 = vmax.f32 %v10912_v25, 0.0 }
 0x670   : > { %v7013_v52 = vpop.f32.mrf.mxu1 }
 0x671   : > { %v9398_v50 = vadd.f32 %v9218_v16, %v8417_v8  ;;  %v7192_v44 = vadd.f32 %v7013_v52, %v19312_v35  ;;  %v11560_v4 = vmul.f32 %v11434_v40, %v10993_v28  ;;  %v11459_v28 = vpop.permute.xlu2 %11458 }
 0x673   : > { %v10488_v42 = vpop.f32.mrf.mxu0  ;;  %v10666_v23 = vadd.f32 %v10486_v22, %v9398_v50  ;;  %v19316_v50 = vld [vmem:[#allocation27_spill] sm:$0xff] }
 0x675   : > { %v10913_v53 = vadd.f32 %v18893_v46, %v10666_v23 }
 0x676   : > { %v8239_v27 = vpop.f32.mrf.mxu2 }
 0x677   : > { %v10994_v41 = vmax.f32 %v10913_v53, 0.0  ;;  %v8418_v9 = vadd.f32 %v8239_v27, %v7192_v44  ;;  %v9233_v30 = vpop.f32.mrf.mxu3  ;;  %v11454_v44 = vpop.permute.xlu1 %11453 }
 0x678   : > { %v7016_v0 = vpop.f32.mrf.mxu1 }
 0x679   : > { %v11561_v57 = vmul.f32 %v11439_v48, %v10994_v41  ;;  %v9399_v16 = vadd.f32 %v19024_v17, %v8418_v9  ;;  %v7193_v37 = vadd.f32 %v7016_v0, %v19313_v29 }
 0x67b   : > { %v10491_v47 = vpop.f32.mrf.mxu0  ;;  %v14547_v12 = vpack.c.bf16 %v11561_v57, %v11560_v4  ;;  %v10667_v39 = vadd.f32 %v10488_v42, %v9399_v16 }
 0x67d   : > { %14608 = vst [vmem:[%s16653_s20 + $0x120] sm:$0xff] %v14547_v12   ;;  %v10914_v55 = vadd.f32 %v18893_v46, %v10667_v39 }
 0x67e   : > { %v8242_v49 = vpop.f32.mrf.mxu2 }
 0x67f   : > { %v8419_v32 = vadd.f32 %v8242_v49, %v7193_v37  ;;  %v19049_v6 = vpop.f32.mrf.mxu3  ;;  %v10995_v2 = vmax.f32 %v10914_v55, 0.0  ;;  %v19317_v55 = vld [vmem:[#allocation29_spill] sm:$0xff] }
 0x680   : > { %v7018_v62 = vpop.f32.mrf.mxu1 }
 0x681   : > { %v9400_v20 = vadd.f32 %v9223_v7, %v8419_v32  ;;  %v7194_v31 = vadd.f32 %v7018_v62, %v19314_v1  ;;  %v11562_v38 = vmul.f32 %v11444_v58, %v10995_v2 }
 0x683   : > { %v10493_v26 = vpop.f32.mrf.mxu0  ;;  %v10668_v5 = vadd.f32 %v10491_v47, %v9400_v20 }
 0x685   : > { %v10915_v17 = vadd.f32 %v18893_v46, %v10668_v5  ;;  %v11469_v5 = vpop.permute.xlu1 %11468 }
 0x686   : > { %v8244_v21 = vpop.f32.mrf.mxu2 }
 0x687   : > { %v10996_v56 = vmax.f32 %v10915_v17, 0.0  ;;  %v8420_v24 = vadd.f32 %v8244_v21, %v7194_v31  ;;  %v9238_v54 = vpop.f32.mrf.mxu3 }
 0x688   : > { %v7021_v59 = vpop.f32.mrf.mxu1 }
 0x689   : > { %v11563_v14 = vmul.f32 %v11449_v61, %v10996_v56  ;;  %v9401_v7 = vadd.f32 %v19033_v36, %v8420_v24  ;;  %v7195_v45 = vadd.f32 %v7021_v59, %v19315_v43 }
 0x68b   : > { %v10496_v19 = vpop.f32.mrf.mxu0  ;;  %v14552_v11 = vpack.c.bf16 %v11563_v14, %v11562_v38  ;;  %v10669_v3 = vadd.f32 %v10493_v26, %v9401_v7 }
 0x68d   : > { %14609 = vst [vmem:[%s16653_s20 + $0x128] sm:$0xff] %v14552_v11   ;;  %v10916_v18 = vadd.f32 %v18893_v46, %v10669_v3 }
 0x68e   : > { %v8247_v22 = vpop.f32.mrf.mxu2 }
 0x68f   : > { %v8421_v60 = vadd.f32 %v8247_v22, %v7195_v45  ;;  %v19057_v8 = vpop.f32.mrf.mxu3  ;;  %v10997_v25 = vmax.f32 %v10916_v18, 0.0  ;;  %v19318_v22 = vld [vmem:[#allocation31_spill] sm:$0xff] }
 0x690   : > { %v7023_v63 = vpop.f32.mrf.mxu1 }
 0x691   : > { %v9402_v34 = vadd.f32 %v9228_v10, %v8421_v60  ;;  %v7196_v42 = vadd.f32 %v7023_v63, %v19316_v50  ;;  %v11564_v48 = vmul.f32 %v11454_v44, %v10997_v25  ;;  %v11474_v63 = vpop.permute.xlu2 %11473 }
 0x693   : > { %v10498_v51 = vpop.f32.mrf.mxu0  ;;  %v10670_v52 = vadd.f32 %v10496_v19, %v9402_v34 }
 0x695   : > { %v10917_v36 = vadd.f32 %v18893_v46, %v10670_v52 }
 0x696   : > { %v8249_v23 = vpop.f32.mrf.mxu2 }
 0x697   : > { %v10998_v53 = vmax.f32 %v10917_v36, 0.0  ;;  %v8422_v35 = vadd.f32 %v8249_v23, %v7196_v42  ;;  %v9243_v40 = vpop.f32.mrf.mxu3  ;;  %v19319_v23 = vld [vmem:[#allocation34_spill] sm:$0xff] }
 0x698   : > { %v7026_v27 = vpop.f32.mrf.mxu1 }
 0x699   : > { %v11565_v41 = vmul.f32 %v11459_v28, %v10998_v53  ;;  %v9403_v10 = vadd.f32 %v19041_v33, %v8422_v35  ;;  %v7197_v57 = vadd.f32 %v7026_v27, %v17182_v13  ;;  %v11464_v13 = vpop.permute.xlu0 %11463 }
 0x69b   : > { %v10501_v9 = vpop.f32.mrf.mxu0  ;;  %v14557_v0 = vpack.c.bf16 %v11565_v41, %v11564_v48  ;;  %v10671_v4 = vadd.f32 %v10498_v51, %v9403_v10 }
 0x69d   : > { %14610 = vst [vmem:[%s16653_s20 + $0x130] sm:$0xff] %v14557_v0   ;;  %v10918_v39 = vadd.f32 %v18893_v46, %v10671_v4 }
 0x69e   : > { %v8252_v16 = vpop.f32.mrf.mxu2 }
 0x69f   : > { %v8423_v47 = vadd.f32 %v8252_v16, %v7197_v57  ;;  %v9245_v49 = vpop.f32.mrf.mxu3  ;;  %v10999_v62 = vmax.f32 %v10918_v39, 0.0  ;;  %v11489_v57 = vpop.permute.xlu2 %11488 }
 0x6a0   : > { %v7028_v12 = vpop.f32.mrf.mxu1  ;;  %v11484_v16 = vpop.permute.xlu1 %11483 }
 0x6a1   : > { %v9404_v29 = vadd.f32 %v9233_v30, %v8423_v47  ;;  %v7198_v20 = vadd.f32 %v7028_v12, %v19317_v55  ;;  %v11566_v31 = vmul.f32 %v11464_v13, %v10999_v62  ;;  %v11479_v51 = vpop.permute.xlu0 %11478 }
 0x6a3   : > { %v10503_v37 = vpop.f32.mrf.mxu0  ;;  %v10672_v32 = vadd.f32 %v10501_v9, %v9404_v29 }
 0x6a5   : > { %v10919_v33 = vadd.f32 %v18893_v46, %v10672_v32 }
 0x6a6   : > { %v8254_v26 = vpop.f32.mrf.mxu2 }
 0x6a7   : > { %v11000_v2 = vmax.f32 %v10919_v33, 0.0  ;;  %v8424_v17 = vadd.f32 %v8254_v26, %v7198_v20 }
 0x6a8   : > { %v7031_v1 = vpop.f32.mrf.mxu1 }
 0x6a9   : > { %v11567_v21 = vmul.f32 %v11469_v5, %v11000_v2  ;;  %v9405_v58 = vadd.f32 %v19049_v6, %v8424_v17  ;;  %v7199_v61 = vadd.f32 %v7031_v1, %v17228_v15 }
 0x6ab   : > { %v10506_v30 = vpop.f32.mrf.mxu0  ;;  %v14562_v56 = vpack.c.bf16 %v11567_v21, %v11566_v31  ;;  %v10673_v24 = vadd.f32 %v10503_v37, %v9405_v58 }
 0x6ad   : > { %14611 = vst [vmem:[%s16653_s20 + $0x138] sm:$0xff] %v14562_v56   ;;  %v10920_v7 = vadd.f32 %v18893_v46, %v10673_v24 }
 0x6ae   : > { %v8257_v59 = vpop.f32.mrf.mxu2 }
 0x6af   : > { %v8425_v38 = vadd.f32 %v8257_v59, %v7199_v61  ;;  %v11001_v43 = vmax.f32 %v10920_v7, 0.0 }
 0x6b0   : > { %v7033_v14 = vpop.f32.mrf.mxu1 }
 0x6b1   : > { %v9406_v19 = vadd.f32 %v9238_v54, %v8425_v38  ;;  %v7200_v6 = vadd.f32 %v7033_v14, %v19318_v22  ;;  %v11568_v52 = vmul.f32 %v11474_v63, %v11001_v43 }
 0x6b3   : > { %v10508_v11 = vpop.f32.mrf.mxu0  ;;  %v10674_v3 = vadd.f32 %v10506_v30, %v9406_v19 }
 0x6b5   : > { %v10921_v45 = vadd.f32 %v18893_v46, %v10674_v3 }
 0x6b6   : > { %v8259_v60 = vpop.f32.mrf.mxu2 }
 0x6b7   : > { %v11002_v18 = vmax.f32 %v10921_v45, 0.0  ;;  %v8426_v34 = vadd.f32 %v8259_v60, %v7200_v6 }
 0x6b8   : > { %v7036_v15 = vpop.f32.mrf.mxu1 }
 0x6b9   : > { %v11569_v25 = vmul.f32 %v11479_v51, %v11002_v18  ;;  %v9407_v36 = vadd.f32 %v19057_v8, %v8426_v34  ;;  %v7201_v28 = vadd.f32 %v7036_v15, %v19319_v23 }
 0x6bb   : > { %v10511_v54 = vpop.f32.mrf.mxu0  ;;  %v14567_v50 = vpack.c.bf16 %v11569_v25, %v11568_v52  ;;  %v10675_v42 = vadd.f32 %v10508_v11, %v9407_v36 }
 0x6bd   : > { %14612 = vst [vmem:[%s16653_s20 + $0x140] sm:$0xff] %v14567_v50   ;;  %v10922_v27 = vadd.f32 %v18893_v46, %v10675_v42 }
 0x6be   : > { %v8262_v53 = vpop.f32.mrf.mxu2 }
 0x6bf   : > { %v8427_v35 = vadd.f32 %v8262_v53, %v7201_v28  ;;  %v11003_v8 = vmax.f32 %v10922_v27, 0.0 }
 0x6c0   : > { %v7038_v44 = vpop.f32.mrf.mxu1 }
 0x6c1   : > { %v9408_v48 = vadd.f32 %v9243_v40, %v8427_v35  ;;  %v11570_v40 = vmul.f32 %v11484_v16, %v11003_v8 }
 0x6c3   : > { %v10513_v41 = vpop.f32.mrf.mxu0  ;;  %v10676_v10 = vadd.f32 %v10511_v54, %v9408_v48 }
 0x6c5   : > { %v10923_v9 = vadd.f32 %v18893_v46, %v10676_v10 }
 0x6c6   : > { %v8264_v0 = vpop.f32.mrf.mxu2 }
 0x6c7   : > { %v11004_v4 = vmax.f32 %v10923_v9, 0.0 }
 0x6c9   : > { %v11571_v47 = vmul.f32 %v11489_v57, %v11004_v4 }
 0x6cb   : > { %v14572_v12 = vpack.c.bf16 %v11571_v47, %v11570_v40 }
 0x6cd   : > { %14613 = vst [vmem:[%s16653_s20 + $0x148] sm:$0xff] %v14572_v12  }
 0x6ce   : > { %14706 = shalt.err (!%p14703_p7)
}
 0x6cf   : > { %s14744_s8 = smov 64   ;;  %s14745_s20 = smov 128  }
 0x6d0   : > { %s14746_s23 = smov 4  }
 0x6d1   : > { %14629 = dma.vmem_to_hbm [thread:$0]  (%p14811_p6), %s11834_s7, 5568, %s11836_s9, %s11822_s19, %s14744_s8, %s14745_s20, %s14746_s23  }
 0x6d2 PF: > { %s11850_s27 = sand.u32 1, %s14729_s15   ;;  %p14632_p10 = pnand %p11915_p9, %p14815_p8 }
 0x6d3   : > { %s11851_s28 = scalar_lea.sflag [#allocation5], %s11850_s27 }
 0x6d4   : > { %p14633_p11 = pneg %p14632_p10 }
 0x6d6   : > { %14724 = dma.done.wait (%p14633_p11), %s11851_s28, 5568  }
 0x6d7   : > { %14726 = vsyncadd (%p14633_p11), %s11851_s28, 4294961728  ;;  %p14_p12 = scmp.ge.s32.totalorder %s14797_s21, 4   ;;  %s19320_s15 = smov %s14733_s16 }
 0x6d8   : > { %s19321_s16 = smov %s14737_s17  ;;  %s19322_s17 = smov %s14809_s24 }
 0x6d9   : > { %s19323_s18 = smov %s14797_s21  ;;  %16 = sbr.rel (!%p14_p12) target bundleno = 3 (0x3), region = 128 }
 0x6de   :  { %11857 = vsyncpa [#allocation5], 1 }
 0x6df   :  { %11859 = vsyncpa [#allocation5 + $0x1], 1 }

</bundles_post_ra>
